<compile_context>
chip_gen: v7x
topology: tpu7x:2x2x1
jax: 0.10.0
libtpu: 0.0.40
codegen_flags: <defaults>
</compile_context>

<pallas_src>
import functools

import jax
import jax.numpy as jnp
from jax.experimental import pallas as pl
from jax.experimental.pallas import tpu as pltpu

EPS = 1e-5  # PyTorch GroupNorm default


# ------------------------------ sizing utilities --------------------------------------

def _vmem_capacity_bytes():
    """Per-TensorCore VMEM capacity; falls back to the smallest (v7x) if unknown."""
    try:
        info = pltpu.get_tpu_info()
        for attr in ("vmem_capacity_bytes", "vmem_bytes", "vmem_size_bytes"):
            v = getattr(info, attr, None)
            if v:
                return int(v)
    except Exception:
        pass
    return 64 << 20


def _pick_strip_rows(H, W, per_row_bytes, budget_bytes):
    """Largest divisor of H whose per-strip working set fits the budget, preferring
    MXU-M-aligned (TH*W % 256 == 0) and sublane-aligned (TH % 8 == 0) strips."""
    cap = max(1, budget_bytes // max(per_row_bytes, 1))
    best, best_key = 1, (-1, -1, -1, 0)
    for th in range(1, min(H, cap) + 1):
        if H % th:
            continue
        m = th * W
        key = (int(m % 256 == 0 or th == H),
               int(th % 8 == 0 or th == H),
               int(m % 128 == 0),
               th)
        if key > best_key:
            best_key, best = key, th
    return best


def _fold_gn_affine(stats, gamma, beta, groups, hw):
    """Fold GroupNorm stats + affine into per-(sample, channel) scale/shift so that
    GN(x)*gamma + beta == x*scale + shift.
    stats[:,0] = per-channel sum over H*W, stats[:,1] = per-channel sum of squares."""
    N, _, C = stats.shape
    cpg = C // groups
    cnt = float(hw * cpg)
    gsum = stats[:, 0, :].reshape(N, groups, cpg).sum(axis=-1)
    gsq = stats[:, 1, :].reshape(N, groups, cpg).sum(axis=-1)
    mean = gsum / cnt
    var = jnp.maximum(gsq / cnt - mean * mean, 0.0)
    rstd = jax.lax.rsqrt(var + EPS)
    mean_c = jnp.repeat(mean, cpg, axis=1)                       # (N, C)
    rstd_c = jnp.repeat(rstd, cpg, axis=1)
    g = gamma.reshape(1, C).astype(jnp.float32)
    b = beta.reshape(1, C).astype(jnp.float32)
    scale = rstd_c * g
    shift = b - mean_c * scale
    return scale[:, None, :], shift[:, None, :]                  # (N, 1, C) each


# ------------------------------ in-kernel helpers -------------------------------------

def _fill_slab(slab_ref, body, top, bot, scale, shift, TH, W, C):
    """Folded GroupNorm + SiLU on one H-strip (+ 1-row halos), written into the
    dw-pre-shifted im2col slab of shape (TH+2, W, 3C):
        slab[r, w, dw*C:(dw+1)*C] == activated zero-padded input at (row r, col w+dw-1)
    so each of the three kernel-row matmuls just row-slices slab[dh:dh+TH]."""
    s = pl.program_id(1)
    last = pl.num_programs(1) - 1
    dt = slab_ref.dtype

    def act(v):                                    # GN (folded) + SiLU, bf16 out
        h = v * scale + shift
        return (h * jax.nn.sigmoid(h)).astype(dt)

    def store_rows(rs, rn, a):                     # a: (rn, W, C) activated values
        z = jnp.zeros((rn, 1, C), dt)
        left = jnp.concatenate([z, a[:, :W - 1, :]], axis=1)     # dw=0: col w-1
        right = jnp.concatenate([a[:, 1:, :], z], axis=1)        # dw=2: col w+1
        slab_ref[rs:rs + rn, :, :] = jnp.concatenate([left, a, right], axis=-1)

    store_rows(1, TH, act(body))                   # strip interior

    zero_row = jnp.zeros((1, W, 3 * C), dt)

    @pl.when(s == 0)
    def _():                                       # image top border
        slab_ref[0:1, :, :] = zero_row

    @pl.when(s > 0)
    def _():                                       # halo row from the strip above
        store_rows(0, 1, act(top))

    @pl.when(s == last)
    def _():                                       # image bottom border
        slab_ref[TH + 1:TH + 2, :, :] = zero_row

    @pl.when(s < last)
    def _():                                       # halo row from the strip below
        store_rows(TH + 1, 1, act(bot))


def _conv3x3_from_slab(slab_ref, w_ref, bias, acc_ref, TH, W, C):
    """3x3 / stride-1 conv as 3 MXU matmuls (one per kernel row, K=3C) over the
    pre-shifted slab; bias folded into the accumulator init; f32 accumulation."""
    for dh in range(3):
        lhs = slab_ref[dh:dh + TH, :, :].reshape(TH * W, 3 * C)
        part = jnp.dot(lhs, w_ref[dh], preferred_element_type=jnp.float32)
        if dh == 0:
            acc_ref[...] = part + bias
        else:
            acc_ref[...] += part


# ------------------------------ kernels ------------------------------------------------

def _make_stats_kernel(TH, W, C):
    """Per-channel partial sum / sum-of-squares of x, accumulated over strips."""
    def kernel(x_ref, st_ref):
        s = pl.program_id(1)
        x = x_ref[...].reshape(TH * W, C)
        part = jnp.concatenate(
            [jnp.sum(x, axis=0, keepdims=True),
             jnp.sum(x * x, axis=0, keepdims=True)], axis=0)     # (2, C)

        @pl.when(s == 0)
        def _():
            st_ref[...] = part

        @pl.when(s > 0)
        def _():
            st_ref[...] += part
    return kernel


def _make_gn_conv1_kernel(TH, W, cin, cout):
    """GN1 (folded) -> SiLU -> conv1 for one strip; emits bf16 h1 + GN2 partial sums."""
    def kernel(xb_ref, xt_ref, xbm_ref, sc_ref, sh_ref, w_ref, b_ref,
               h1_ref, st_ref, slab_ref, acc_ref):
        s = pl.program_id(1)
        _fill_slab(slab_ref, xb_ref[...], xt_ref[...], xbm_ref[...],
                   sc_ref[0], sh_ref[0], TH, W, cin)
        _conv3x3_from_slab(slab_ref, w_ref, b_ref[...], acc_ref, TH, W, cin)

        h1 = acc_ref[...]                                        # (TH*W, cout) f32
        h1_ref[...] = h1.reshape(TH, W, cout).astype(h1_ref.dtype)

        part = jnp.concatenate(                                  # GN2 stats from f32 acc
            [jnp.sum(h1, axis=0, keepdims=True),
             jnp.sum(h1 * h1, axis=0, keepdims=True)], axis=0)   # (2, cout)

        @pl.when(s == 0)
        def _():
            st_ref[...] = part

        @pl.when(s > 0)
        def _():
            st_ref[...] += part
    return kernel


def _make_gn_conv2_kernel(TH, W, cin, cout, use_res_conv):
    """GN2 (folded) -> SiLU -> conv2 (+ residual: identity or bf16 1x1 matmul)."""
    def kernel(*refs):
        if use_res_conv:
            (hb_ref, ht_ref, hbm_ref, sc_ref, sh_ref, w_ref, b_ref,
             xr_ref, rw_ref, rb_ref, o_ref, slab_ref, acc_ref) = refs
        else:
            (hb_ref, ht_ref, hbm_ref, sc_ref, sh_ref, w_ref, b_ref,
             xr_ref, o_ref, slab_ref, acc_ref) = refs

        _fill_slab(slab_ref, hb_ref[...], ht_ref[...], hbm_ref[...],
                   sc_ref[0], sh_ref[0], TH, W, cout)
        _conv3x3_from_slab(slab_ref, w_ref, b_ref[...], acc_ref, TH, W, cout)
        y = acc_ref[...]                                         # (TH*W, cout) f32

        xr = xr_ref[...].reshape(TH * W, cin)                    # residual, read late
        if use_res_conv:
            res = jnp.dot(xr.astype(jnp.bfloat16), rw_ref[...],
                          preferred_element_type=jnp.float32) + rb_ref[...]
        else:
            res = xr                                             # identity (cin == cout)
        o_ref[...] = (y + res).reshape(TH, W, cout).astype(o_ref.dtype)
    return kernel


# ------------------------------ wrapper ------------------------------------------------

@functools.partial(jax.jit, static_argnames=("groups",))
def vae_resblock(x_nchw, params, *, groups=32):
    N, cin, H, W = x_nchw.shape
    cout = params["conv1_w"].shape[-1]
    assert cin % groups == 0 and cout % groups == 0
    use_res_conv = cin != cout
    bf16 = jnp.bfloat16

    # ---- generation-aware VMEM budgets (128 MiB v5e/v6e, 64 MiB v7x per TC) ----------
    vmem_cap = _vmem_capacity_bytes()
    vmem_limit = int(vmem_cap * 3 // 4)
    weight_bytes = 2 * 9 * max(cin, cout) * cout          # bf16 conv weights (largest pass)
    conv_budget = max(2 << 20, vmem_cap // 4 - 2 * weight_bytes)   # weights double-buffered
    stats_budget = vmem_cap // 3

    # per-strip-row working-set estimate (slab + acc + double-buffered blocks), 1.25x slack
    conv_per_row = W * max(14 * cin + 8 * cout, 8 * cin + 22 * cout) * 5 // 4
    TH = _pick_strip_rows(H, W, conv_per_row, conv_budget)
    TH1 = _pick_strip_rows(H, W, 8 * W * cin, stats_budget)       # pass 1: stats only
    S, S1 = H // TH, H // TH1

    x = jnp.transpose(x_nchw, (0, 2, 3, 1)).astype(jnp.float32)       # (N, H, W, cin)
    w1 = params["conv1_w"].reshape(3, 3 * cin, cout).astype(bf16)     # (dh, dw*cin, cout)
    w2 = params["conv2_w"].reshape(3, 3 * cout, cout).astype(bf16)
    b1 = params["conv1_b"].astype(jnp.float32)
    b2 = params["conv2_b"].astype(jnp.float32)

    def cparams(sem):
        return pltpu.CompilerParams(dimension_semantics=sem,
                                    vmem_limit_bytes=vmem_limit)

    def strip_spec(C, th):     # one H-strip of an (N, H, W, C) tensor
        return pl.BlockSpec((None, th, W, C), lambda b, s: (b, s, 0, 0))

    def top_spec(C):           # 1-row halo just above the strip (clamped at row 0)
        return pl.BlockSpec((None, 1, W, C),
                            lambda b, s: (b, jnp.maximum(s * TH - 1, 0), 0, 0))

    def bot_spec(C):           # 1-row halo just below the strip (clamped at row H-1)
        return pl.BlockSpec((None, 1, W, C),
                            lambda b, s: (b, jnp.minimum((s + 1) * TH, H - 1), 0, 0))

    def vec_spec(C):           # per-sample (1, C) folded GN scale / shift vector
        return pl.BlockSpec((None, 1, C), lambda b, s: (b, 0, 0))

    def stat_spec(C):          # per-sample (2, C) sum / sum-of-squares accumulator
        return pl.BlockSpec((None, 2, C), lambda b, s: (b, 0, 0))

    def full(shape):           # whole (small) array, constant block index
        return pl.BlockSpec(shape, lambda b, s: (0,) * len(shape))

    # ---- pass 1: GroupNorm-1 statistics (large strips, pure HBM-bound reduction) -----
    stats1 = pl.pallas_call(
        _make_stats_kernel(TH1, W, cin),
        out_shape=jax.ShapeDtypeStruct((N, 2, cin), jnp.float32),
        grid_spec=pltpu.PrefetchScalarGridSpec(
            num_scalar_prefetch=0, grid=(N, S1),
            in_specs=[strip_spec(cin, TH1)],
            out_specs=stat_spec(cin)),
        compiler_params=cparams(("parallel", "arbitrary")),
    )(x)
    sc1, sh1 = _fold_gn_affine(stats1, params["gn1_g"], params["gn1_b"], groups, H * W)

    # ---- pass 2: GN1 -> SiLU -> conv1 (h1 stored bf16) + GroupNorm-2 partial sums ----
    h1, stats2 = pl.pallas_call(
        _make_gn_conv1_kernel(TH, W, cin, cout),
        out_shape=(jax.ShapeDtypeStruct((N, H, W, cout), bf16),
                   jax.ShapeDtypeStruct((N, 2, cout), jnp.float32)),
        grid_spec=pltpu.PrefetchScalarGridSpec(
            num_scalar_prefetch=0, grid=(N, S),
            in_specs=[strip_spec(cin, TH), top_spec(cin), bot_spec(cin),
                      vec_spec(cin), vec_spec(cin),
                      full((3, 3 * cin, cout)), full((1, cout))],
            out_specs=[strip_spec(cout, TH), stat_spec(cout)],
            scratch_shapes=[pltpu.VMEM((TH + 2, W, 3 * cin), bf16),
                            pltpu.VMEM((TH * W, cout), jnp.float32)]),
        compiler_params=cparams(("parallel", "arbitrary")),
    )(x, x, x, sc1, sh1, w1, b1)
    sc2, sh2 = _fold_gn_affine(stats2, params["gn2_g"], params["gn2_b"], groups, H * W)

    # ---- pass 3: GN2 -> SiLU -> conv2 + residual --------------------------------------
    in_specs = [strip_spec(cout, TH), top_spec(cout), bot_spec(cout),
                vec_spec(cout), vec_spec(cout),
                full((3, 3 * cout, cout)), full((1, cout)),
                strip_spec(cin, TH)]
    args = [h1, h1, h1, sc2, sh2, w2, b2, x]
    if use_res_conv:                               # only ship 1x1 weights when used
        in_specs += [full((cin, cout)), full((1, cout))]
        args += [params["res_w"].astype(bf16), params["res_b"].astype(jnp.float32)]

    out = pl.pallas_call(
        _make_gn_conv2_kernel(TH, W, cin, cout, use_res_conv),
        out_shape=jax.ShapeDtypeStruct((N, H, W, cout), jnp.float32),
        grid_spec=pltpu.PrefetchScalarGridSpec(
            num_scalar_prefetch=0, grid=(N, S),
            in_specs=in_specs,
            out_specs=strip_spec(cout, TH),
            scratch_shapes=[pltpu.VMEM((TH + 2, W, 3 * cout), bf16),
                            pltpu.VMEM((TH * W, cout), jnp.float32)]),
        compiler_params=cparams(("parallel", "parallel")),
    )(*args)

    return jnp.transpose(out, (0, 3, 1, 2))        # back to NCHW


# ----------------------------- deterministic params + pure-JAX reference ---------------

def init_params(key, cin, cout):
    ks = jax.random.split(key, 10)
    f32 = jnp.float32
    p = {
        "gn1_g": 1.0 + 0.1 * jax.random.normal(ks[0], (1, cin), f32),
        "gn1_b": 0.1 * jax.random.normal(ks[1], (1, cin), f32),
        "conv1_w": 0.05 * jax.random.normal(ks[2], (3, 3, cin, cout), f32),  # HWIO
        "conv1_b": 0.1 * jax.random.normal(ks[3], (1, cout), f32),
        "gn2_g": 1.0 + 0.1 * jax.random.normal(ks[4], (1, cout), f32),
        "gn2_b": 0.1 * jax.random.normal(ks[5], (1, cout), f32),
        "conv2_w": 0.05 * jax.random.normal(ks[6], (3, 3, cout, cout), f32),
        "conv2_b": 0.1 * jax.random.normal(ks[7], (1, cout), f32),
    }
    if cin != cout:   # 1x1 residual conv only exists when channel counts differ
        p["res_w"] = 0.1 * jax.random.normal(ks[8], (cin, cout), f32)
        p["res_b"] = 0.1 * jax.random.normal(ks[9], (1, cout), f32)
    return p


def _ref_groupnorm(x, gamma, beta, groups):
    N, H, W, C = x.shape
    xg = x.reshape(N, H, W, groups, C // groups)
    mu = jnp.mean(xg, axis=(1, 2, 4), keepdims=True)
    var = jnp.mean(jnp.square(xg - mu), axis=(1, 2, 4), keepdims=True)
    xn = ((xg - mu) / jnp.sqrt(var + EPS)).reshape(N, H, W, C)
    return xn * gamma + beta


def ref_resblock(x_nchw, params, *, groups=32):
    x = jnp.transpose(x_nchw, (0, 2, 3, 1)).astype(jnp.float32)  # NHWC
    silu = lambda t: t * jax.nn.sigmoid(t)

    def conv3x3(t, w, b):
        y = jax.lax.conv_general_dilated(
            t, w, window_strides=(1, 1), padding="SAME",
            dimension_numbers=("NHWC", "HWIO", "NHWC"))
        return y + b

    h = conv3x3(silu(_ref_groupnorm(x, params["gn1_g"], params["gn1_b"], groups)),
                params["conv1_w"], params["conv1_b"])
    h = conv3x3(silu(_ref_groupnorm(h, params["gn2_g"], params["gn2_b"], groups)),
                params["conv2_w"], params["conv2_b"])
    cin, cout = params["conv1_w"].shape[2], params["conv1_w"].shape[3]
    if cin != cout:
        res = jnp.einsum("nhwi,io->nhwo", x, params["res_w"]) + params["res_b"]
    else:
        res = x
    return jnp.transpose(h + res, (0, 3, 1, 2))


# ----------------------------- demo ----------------------------------------------------

if __name__ == "__main__":
    key = jax.random.PRNGKey(0)
    kx1, kp1, kx2, kp2 = jax.random.split(key, 4)

    # GroupNorm(32, C) requires C % 32 == 0 -> smallest sensible channels are 32/64.
    N, cin, cout, H, W = 2, 32, 64, 16, 16

    # Case 1: in_chann != out_chann  (residual goes through the 1x1 conv)
    x1 = jax.random.normal(kx1, (N, cin, H, W), jnp.float32)
    p1 = init_params(kp1, cin, cout)
    y1 = jax.block_until_ready(vae_resblock(x1, p1))
    r1 = ref_resblock(x1, p1)
    assert y1.shape == (N, cout, H, W)
    # bf16 MXU operands + bf16 h1 intermediate vs f32 reference -> loose tolerance
    assert jnp.allclose(y1, r1, atol=1e-1, rtol=1e-1), float(jnp.max(jnp.abs(y1 - r1)))

    # Case 2: in_chann == out_chann  (residual is nn.Identity)
    x2 = jax.random.normal(kx2, (N, cin, H, W), jnp.float32)
    p2 = init_params(kp2, cin, cin)
    y2 = jax.block_until_ready(vae_resblock(x2, p2))
    r2 = ref_resblock(x2, p2)
    assert y2.shape == (N, cin, H, W)
    assert jnp.allclose(y2, r2, atol=1e-1, rtol=1e-1), float(jnp.max(jnp.abs(y2 - r2)))

    print("KERNEL_OK")
</pallas_src>

<mosaic_0001>
module attributes {stable_mosaic.version = 11 : i64} {
  func.func @kernel(%arg0: i32, %arg1: i32, %arg2: memref<1x16x16x32xf32, #tpu.memory_space<vmem>>, %arg3: memref<1x2x32xf32, #tpu.memory_space<vmem>>) attributes {dimension_semantics = [#tpu.dimension_semantics<parallel>, #tpu.dimension_semantics<arbitrary>], iteration_bounds = array<i64: 2, 1>, scalar_prefetch = 0 : i64, scratch_operands = 0 : i64, tpu.core_type = #tpu.core_type<tc>, window_params = [{transform_indices = @transform_0, window_bounds = array<i64: 1, 16, 16, 32>}, {transform_indices = @transform_1, window_bounds = array<i64: 1, 2, 32>}]} {
    %c0 = arith.constant 0 : index
    %c0_0 = arith.constant 0 : index
    %c0_1 = arith.constant 0 : index
    %c0_2 = arith.constant 0 : index
    %0 = vector.load %arg2[%c0, %c0_0, %c0_1, %c0_2] : memref<1x16x16x32xf32, #tpu.memory_space<vmem>>, vector<1x16x16x32xf32>
    %1 = vector.shape_cast %0 : vector<1x16x16x32xf32> to vector<16x16x32xf32>
    %2 = vector.shape_cast %1 : vector<16x16x32xf32> to vector<256x32xf32>
    %cst = arith.constant dense<0.000000e+00> : vector<32xf32>
    %3 = vector.multi_reduction <add>, %2, %cst [0] : vector<256x32xf32> to vector<32xf32>
    %4 = vector.shape_cast %3 : vector<32xf32> to vector<1x32xf32>
    %5 = arith.mulf %2, %2 : vector<256x32xf32>
    %cst_3 = arith.constant dense<0.000000e+00> : vector<32xf32>
    %6 = vector.multi_reduction <add>, %5, %cst_3 [0] : vector<256x32xf32> to vector<32xf32>
    %7 = vector.shape_cast %6 : vector<32xf32> to vector<1x32xf32>
    %8 = tpu.concatenate %4, %7 in 0 : vector<1x32xf32>, vector<1x32xf32> -> vector<2x32xf32>
    %c0_i32 = arith.constant 0 : i32
    %9 = arith.cmpi eq, %arg1, %c0_i32 : i32
    %10 = arith.extui %9 : i1 to i32
    %c0_i32_4 = arith.constant 0 : i32
    %11 = arith.cmpi ne, %10, %c0_i32_4 : i32
    scf.if %11 {
      %c0_7 = arith.constant 0 : index
      %c0_8 = arith.constant 0 : index
      %c0_9 = arith.constant 0 : index
      %15 = vector.load %arg3[%c0_7, %c0_8, %c0_9] : memref<1x2x32xf32, #tpu.memory_space<vmem>>, vector<1x2x32xf32>
      %16 = vector.shape_cast %15 : vector<1x2x32xf32> to vector<2x32xf32>
      %17 = vector.shape_cast %8 : vector<2x32xf32> to vector<1x2x32xf32>
      tpu.vector_store %arg3[%c0_7, %c0_8, %c0_9], %17 {strides = array<i32>} : memref<1x2x32xf32, #tpu.memory_space<vmem>>, vector<1x2x32xf32>,
    } else {
    }
    %c0_i32_5 = arith.constant 0 : i32
    %12 = arith.cmpi sgt, %arg1, %c0_i32_5 : i32
    %13 = arith.extui %12 : i1 to i32
    %c0_i32_6 = arith.constant 0 : i32
    %14 = arith.cmpi ne, %13, %c0_i32_6 : i32
    scf.if %14 {
      %c0_7 = arith.constant 0 : index
      %c0_8 = arith.constant 0 : index
      %c0_9 = arith.constant 0 : index
      %15 = vector.load %arg3[%c0_7, %c0_8, %c0_9] : memref<1x2x32xf32, #tpu.memory_space<vmem>>, vector<1x2x32xf32>
      %16 = vector.shape_cast %15 : vector<1x2x32xf32> to vector<2x32xf32>
      %17 = arith.addf %16, %8 : vector<2x32xf32>
      %c0_10 = arith.constant 0 : index
      %c0_11 = arith.constant 0 : index
      %c0_12 = arith.constant 0 : index
      %18 = vector.load %arg3[%c0_10, %c0_11, %c0_12] : memref<1x2x32xf32, #tpu.memory_space<vmem>>, vector<1x2x32xf32>
      %19 = vector.shape_cast %18 : vector<1x2x32xf32> to vector<2x32xf32>
      %20 = vector.shape_cast %17 : vector<2x32xf32> to vector<1x2x32xf32>
      tpu.vector_store %arg3[%c0_10, %c0_11, %c0_12], %20 {strides = array<i32>} : memref<1x2x32xf32, #tpu.memory_space<vmem>>, vector<1x2x32xf32>,
    } else {
    }
    return
  }
  func.func @transform_0(%arg0: i32, %arg1: i32) -> (i32, i32, i32, i32) {
    %c0_i32 = arith.constant 0 : i32
    %c0_i32_0 = arith.constant 0 : i32
    %c0_i32_1 = arith.constant 0 : i32
    return %arg0, %arg1, %c0_i32, %c0_i32_0 : i32, i32, i32, i32
  }
  func.func @transform_1(%arg0: i32, %arg1: i32) -> (i32, i32, i32) {
    %c0_i32 = arith.constant 0 : i32
    %c0_i32_0 = arith.constant 0 : i32
    %c0_i32_1 = arith.constant 0 : i32
    return %arg0, %c0_i32, %c0_i32_0 : i32, i32, i32
  }
}

module attributes {stable_mosaic.version = 11 : i64} {
  func.func @kernel(%arg0: i32, %arg1: i32, %arg2: memref<1x16x16x32xf32, #tpu.memory_space<vmem>>, %arg3: memref<1x1x16x32xf32, #tpu.memory_space<vmem>>, %arg4: memref<1x1x16x32xf32, #tpu.memory_space<vmem>>, %arg5: memref<1x1x32xf32, #tpu.memory_space<vmem>>, %arg6: memref<1x1x32xf32, #tpu.memory_space<vmem>>, %arg7: memref<3x96x64xbf16, #tpu.memory_space<vmem>>, %arg8: memref<1x64xf32, #tpu.memory_space<vmem>>, %arg9: memref<1x16x16x64xbf16, #tpu.memory_space<vmem>>, %arg10: memref<1x2x64xf32, #tpu.memory_space<vmem>>, %arg11: memref<18x16x96xbf16, #tpu.memory_space<vmem>>, %arg12: memref<256x64xf32, #tpu.memory_space<vmem>>) attributes {dimension_semantics = [#tpu.dimension_semantics<parallel>, #tpu.dimension_semantics<arbitrary>], iteration_bounds = array<i64: 2, 1>, scalar_prefetch = 0 : i64, scratch_operands = 2 : i64, tpu.core_type = #tpu.core_type<tc>, window_params = [{transform_indices = @transform_0, window_bounds = array<i64: 1, 16, 16, 32>}, {transform_indices = @transform_1, window_bounds = array<i64: 1, 1, 16, 32>}, {transform_indices = @transform_2, window_bounds = array<i64: 1, 1, 16, 32>}, {transform_indices = @transform_3, window_bounds = array<i64: 1, 1, 32>}, {transform_indices = @transform_4, window_bounds = array<i64: 1, 1, 32>}, {pipeline_mode = #tpu.pipeline_mode<synchronous>, transform_indices = @transform_5, window_bounds = array<i64: 3, 96, 64>}, {pipeline_mode = #tpu.pipeline_mode<synchronous>, transform_indices = @transform_6, window_bounds = array<i64: 1, 64>}, {transform_indices = @transform_7, window_bounds = array<i64: 1, 16, 16, 64>}, {transform_indices = @transform_8, window_bounds = array<i64: 1, 2, 64>}]} {
    %c0 = arith.constant 0 : index
    %c0_0 = arith.constant 0 : index
    %c0_1 = arith.constant 0 : index
    %c0_2 = arith.constant 0 : index
    %0 = vector.load %arg2[%c0, %c0_0, %c0_1, %c0_2] : memref<1x16x16x32xf32, #tpu.memory_space<vmem>>, vector<1x16x16x32xf32>
    %1 = vector.shape_cast %0 : vector<1x16x16x32xf32> to vector<16x16x32xf32>
    %c0_3 = arith.constant 0 : index
    %c0_4 = arith.constant 0 : index
    %c0_5 = arith.constant 0 : index
    %c0_6 = arith.constant 0 : index
    %2 = vector.load %arg3[%c0_3, %c0_4, %c0_5, %c0_6] : memref<1x1x16x32xf32, #tpu.memory_space<vmem>>, vector<1x1x16x32xf32>
    %3 = vector.shape_cast %2 : vector<1x1x16x32xf32> to vector<1x16x32xf32>
    %c0_7 = arith.constant 0 : index
    %c0_8 = arith.constant 0 : index
    %c0_9 = arith.constant 0 : index
    %c0_10 = arith.constant 0 : index
    %4 = vector.load %arg4[%c0_7, %c0_8, %c0_9, %c0_10] : memref<1x1x16x32xf32, #tpu.memory_space<vmem>>, vector<1x1x16x32xf32>
    %5 = vector.shape_cast %4 : vector<1x1x16x32xf32> to vector<1x16x32xf32>
    %c0_11 = arith.constant 0 : index
    %c0_12 = arith.constant 0 : index
    %c0_13 = arith.constant 0 : index
    %6 = vector.load %arg5[%c0_11, %c0_12, %c0_13] : memref<1x1x32xf32, #tpu.memory_space<vmem>>, vector<1x1x32xf32>
    %7 = vector.shape_cast %6 : vector<1x1x32xf32> to vector<32xf32>
    %c0_14 = arith.constant 0 : index
    %c0_15 = arith.constant 0 : index
    %c0_16 = arith.constant 0 : index
    %8 = vector.load %arg6[%c0_14, %c0_15, %c0_16] : memref<1x1x32xf32, #tpu.memory_space<vmem>>, vector<1x1x32xf32>
    %9 = vector.shape_cast %8 : vector<1x1x32xf32> to vector<32xf32>
    %10 = vector.shape_cast %7 : vector<32xf32> to vector<1x1x32xf32>
    %11 = vector.broadcast %10 : vector<1x1x32xf32> to vector<16x16x32xf32>
    %12 = arith.mulf %1, %11 : vector<16x16x32xf32>
    %13 = vector.shape_cast %9 : vector<32xf32> to vector<1x1x32xf32>
    %14 = vector.broadcast %13 : vector<1x1x32xf32> to vector<16x16x32xf32>
    %15 = arith.addf %12, %14 : vector<16x16x32xf32>
    %16 = arith.negf %15 : vector<16x16x32xf32>
    %17 = math.exp %16 : vector<16x16x32xf32>
    %cst = arith.constant 1.000000e+00 : f32
    %18 = vector.broadcast %cst : f32 to vector<16x16x32xf32>
    %19 = arith.addf %18, %17 : vector<16x16x32xf32>
    %20 = arith.divf %18, %19 : vector<16x16x32xf32>
    %21 = arith.mulf %15, %20 : vector<16x16x32xf32>
    %22 = arith.truncf %21 : vector<16x16x32xf32> to vector<16x16x32xbf16>
    %cst_17 = arith.constant 0.000000e+00 : bf16
    %23 = vector.broadcast %cst_17 : bf16 to vector<16x1x32xbf16>
    %24 = vector.extract_strided_slice %22 {offsets = [0, 0, 0], sizes = [16, 15, 32], strides = [1, 1, 1]} : vector<16x16x32xbf16> to vector<16x15x32xbf16>
    %25 = tpu.concatenate %23, %24 in 1 : vector<16x1x32xbf16>, vector<16x15x32xbf16> -> vector<16x16x32xbf16>
    %26 = vector.extract_strided_slice %22 {offsets = [0, 1, 0], sizes = [16, 15, 32], strides = [1, 1, 1]} : vector<16x16x32xbf16> to vector<16x15x32xbf16>
    %27 = tpu.concatenate %26, %23 in 1 : vector<16x15x32xbf16>, vector<16x1x32xbf16> -> vector<16x16x32xbf16>
    %28 = tpu.concatenate %25, %22, %27 in 2 : vector<16x16x32xbf16>, vector<16x16x32xbf16>, vector<16x16x32xbf16> -> vector<16x16x96xbf16>
    %c1 = arith.constant 1 : index
    %c0_18 = arith.constant 0 : index
    %c0_19 = arith.constant 0 : index
    %29 = vector.load %arg11[%c1, %c0_18, %c0_19] : memref<18x16x96xbf16, #tpu.memory_space<vmem>>, vector<16x16x96xbf16>
    tpu.vector_store %arg11[%c1, %c0_18, %c0_19], %28 {strides = array<i32>} : memref<18x16x96xbf16, #tpu.memory_space<vmem>>, vector<16x16x96xbf16>,
    %cst_20 = arith.constant 0.000000e+00 : bf16
    %30 = vector.broadcast %cst_20 : bf16 to vector<1x16x96xbf16>
    %c0_i32 = arith.constant 0 : i32
    %31 = arith.cmpi eq, %arg1, %c0_i32 : i32
    %32 = arith.extui %31 : i1 to i32
    %c0_i32_21 = arith.constant 0 : i32
    %33 = arith.cmpi ne, %32, %c0_i32_21 : i32
    scf.if %33 {
      %c0_72 = arith.constant 0 : index
      %c0_73 = arith.constant 0 : index
      %c0_74 = arith.constant 0 : index
      %86 = vector.load %arg11[%c0_72, %c0_73, %c0_74] : memref<18x16x96xbf16, #tpu.memory_space<vmem>>, vector<1x16x96xbf16>
      tpu.vector_store %arg11[%c0_72, %c0_73, %c0_74], %30 {strides = array<i32>} : memref<18x16x96xbf16, #tpu.memory_space<vmem>>, vector<1x16x96xbf16>,
    } else {
    }
    %c0_i32_22 = arith.constant 0 : i32
    %34 = arith.cmpi sgt, %arg1, %c0_i32_22 : i32
    %35 = arith.extui %34 : i1 to i32
    %c0_i32_23 = arith.constant 0 : i32
    %36 = arith.cmpi ne, %35, %c0_i32_23 : i32
    scf.if %36 {
      %86 = vector.shape_cast %7 : vector<32xf32> to vector<1x1x32xf32>
      %87 = vector.broadcast %86 : vector<1x1x32xf32> to vector<1x16x32xf32>
      %88 = arith.mulf %3, %87 : vector<1x16x32xf32>
      %89 = vector.shape_cast %9 : vector<32xf32> to vector<1x1x32xf32>
      %90 = vector.broadcast %89 : vector<1x1x32xf32> to vector<1x16x32xf32>
      %91 = arith.addf %88, %90 : vector<1x16x32xf32>
      %92 = arith.negf %91 : vector<1x16x32xf32>
      %93 = math.exp %92 : vector<1x16x32xf32>
      %cst_72 = arith.constant 1.000000e+00 : f32
      %94 = vector.broadcast %cst_72 : f32 to vector<1x16x32xf32>
      %95 = arith.addf %94, %93 : vector<1x16x32xf32>
      %96 = arith.divf %94, %95 : vector<1x16x32xf32>
      %97 = arith.mulf %91, %96 : vector<1x16x32xf32>
      %98 = arith.truncf %97 : vector<1x16x32xf32> to vector<1x16x32xbf16>
      %cst_73 = arith.constant 0.000000e+00 : bf16
      %99 = vector.broadcast %cst_73 : bf16 to vector<1x1x32xbf16>
      %100 = vector.extract_strided_slice %98 {offsets = [0, 0, 0], sizes = [1, 15, 32], strides = [1, 1, 1]} : vector<1x16x32xbf16> to vector<1x15x32xbf16>
      %101 = tpu.concatenate %99, %100 in 1 : vector<1x1x32xbf16>, vector<1x15x32xbf16> -> vector<1x16x32xbf16>
      %102 = vector.extract_strided_slice %98 {offsets = [0, 1, 0], sizes = [1, 15, 32], strides = [1, 1, 1]} : vector<1x16x32xbf16> to vector<1x15x32xbf16>
      %103 = tpu.concatenate %102, %99 in 1 : vector<1x15x32xbf16>, vector<1x1x32xbf16> -> vector<1x16x32xbf16>
      %104 = tpu.concatenate %101, %98, %103 in 2 : vector<1x16x32xbf16>, vector<1x16x32xbf16>, vector<1x16x32xbf16> -> vector<1x16x96xbf16>
      %c0_74 = arith.constant 0 : index
      %c0_75 = arith.constant 0 : index
      %c0_76 = arith.constant 0 : index
      %105 = vector.load %arg11[%c0_74, %c0_75, %c0_76] : memref<18x16x96xbf16, #tpu.memory_space<vmem>>, vector<1x16x96xbf16>
      tpu.vector_store %arg11[%c0_74, %c0_75, %c0_76], %104 {strides = array<i32>} : memref<18x16x96xbf16, #tpu.memory_space<vmem>>, vector<1x16x96xbf16>,
    } else {
    }
    %c0_i32_24 = arith.constant 0 : i32
    %37 = arith.cmpi eq, %arg1, %c0_i32_24 : i32
    %38 = arith.extui %37 : i1 to i32
    %c0_i32_25 = arith.constant 0 : i32
    %39 = arith.cmpi ne, %38, %c0_i32_25 : i32
    scf.if %39 {
      %c17 = arith.constant 17 : index
      %c0_72 = arith.constant 0 : index
      %c0_73 = arith.constant 0 : index
      %86 = vector.load %arg11[%c17, %c0_72, %c0_73] : memref<18x16x96xbf16, #tpu.memory_space<vmem>>, vector<1x16x96xbf16>
      tpu.vector_store %arg11[%c17, %c0_72, %c0_73], %30 {strides = array<i32>} : memref<18x16x96xbf16, #tpu.memory_space<vmem>>, vector<1x16x96xbf16>,
    } else {
    }
    %c0_i32_26 = arith.constant 0 : i32
    %40 = arith.cmpi slt, %arg1, %c0_i32_26 : i32
    %41 = arith.extui %40 : i1 to i32
    %c0_i32_27 = arith.constant 0 : i32
    %42 = arith.cmpi ne, %41, %c0_i32_27 : i32
    scf.if %42 {
      %86 = vector.shape_cast %7 : vector<32xf32> to vector<1x1x32xf32>
      %87 = vector.broadcast %86 : vector<1x1x32xf32> to vector<1x16x32xf32>
      %88 = arith.mulf %5, %87 : vector<1x16x32xf32>
      %89 = vector.shape_cast %9 : vector<32xf32> to vector<1x1x32xf32>
      %90 = vector.broadcast %89 : vector<1x1x32xf32> to vector<1x16x32xf32>
      %91 = arith.addf %88, %90 : vector<1x16x32xf32>
      %92 = arith.negf %91 : vector<1x16x32xf32>
      %93 = math.exp %92 : vector<1x16x32xf32>
      %cst_72 = arith.constant 1.000000e+00 : f32
      %94 = vector.broadcast %cst_72 : f32 to vector<1x16x32xf32>
      %95 = arith.addf %94, %93 : vector<1x16x32xf32>
      %96 = arith.divf %94, %95 : vector<1x16x32xf32>
      %97 = arith.mulf %91, %96 : vector<1x16x32xf32>
      %98 = arith.truncf %97 : vector<1x16x32xf32> to vector<1x16x32xbf16>
      %cst_73 = arith.constant 0.000000e+00 : bf16
      %99 = vector.broadcast %cst_73 : bf16 to vector<1x1x32xbf16>
      %100 = vector.extract_strided_slice %98 {offsets = [0, 0, 0], sizes = [1, 15, 32], strides = [1, 1, 1]} : vector<1x16x32xbf16> to vector<1x15x32xbf16>
      %101 = tpu.concatenate %99, %100 in 1 : vector<1x1x32xbf16>, vector<1x15x32xbf16> -> vector<1x16x32xbf16>
      %102 = vector.extract_strided_slice %98 {offsets = [0, 1, 0], sizes = [1, 15, 32], strides = [1, 1, 1]} : vector<1x16x32xbf16> to vector<1x15x32xbf16>
      %103 = tpu.concatenate %102, %99 in 1 : vector<1x15x32xbf16>, vector<1x1x32xbf16> -> vector<1x16x32xbf16>
      %104 = tpu.concatenate %101, %98, %103 in 2 : vector<1x16x32xbf16>, vector<1x16x32xbf16>, vector<1x16x32xbf16> -> vector<1x16x96xbf16>
      %c17 = arith.constant 17 : index
      %c0_74 = arith.constant 0 : index
      %c0_75 = arith.constant 0 : index
      %105 = vector.load %arg11[%c17, %c0_74, %c0_75] : memref<18x16x96xbf16, #tpu.memory_space<vmem>>, vector<1x16x96xbf16>
      tpu.vector_store %arg11[%c17, %c0_74, %c0_75], %104 {strides = array<i32>} : memref<18x16x96xbf16, #tpu.memory_space<vmem>>, vector<1x16x96xbf16>,
    } else {
    }
    %c0_28 = arith.constant 0 : index
    %c0_29 = arith.constant 0 : index
    %43 = vector.load %arg8[%c0_28, %c0_29] : memref<1x64xf32, #tpu.memory_space<vmem>>, vector<1x64xf32>
    %c0_30 = arith.constant 0 : index
    %c0_31 = arith.constant 0 : index
    %c0_32 = arith.constant 0 : index
    %44 = vector.load %arg11[%c0_30, %c0_31, %c0_32] : memref<18x16x96xbf16, #tpu.memory_space<vmem>>, vector<16x16x96xbf16>
    %45 = vector.shape_cast %44 : vector<16x16x96xbf16> to vector<256x96xbf16>
    %c0_33 = arith.constant 0 : index
    %c0_34 = arith.constant 0 : index
    %c0_35 = arith.constant 0 : index
    %46 = vector.load %arg7[%c0_33, %c0_34, %c0_35] : memref<3x96x64xbf16, #tpu.memory_space<vmem>>, vector<1x96x64xbf16>
    %47 = vector.shape_cast %46 : vector<1x96x64xbf16> to vector<96x64xbf16>
    %cst_36 = arith.constant dense<0.000000e+00> : vector<256x64xf32>
    %48 = tpu.matmul %45, %47, %cst_36 {dimension_numbers = #tpu.dot_dimension_numbers<[1], [0], [0], [1], [0, 0, 1, 1], [], []>} : vector<256x96xbf16>, vector<96x64xbf16>, vector<256x64xf32> -> vector<256x64xf32>
    %49 = vector.broadcast %43 : vector<1x64xf32> to vector<256x64xf32>
    %50 = arith.addf %48, %49 : vector<256x64xf32>
    %c0_37 = arith.constant 0 : index
    %c0_38 = arith.constant 0 : index
    %51 = vector.load %arg12[%c0_37, %c0_38] : memref<256x64xf32, #tpu.memory_space<vmem>>, vector<256x64xf32>
    tpu.vector_store %arg12[%c0_37, %c0_38], %50 {strides = array<i32>} : memref<256x64xf32, #tpu.memory_space<vmem>>, vector<256x64xf32>,
    %c1_39 = arith.constant 1 : index
    %c0_40 = arith.constant 0 : index
    %c0_41 = arith.constant 0 : index
    %52 = vector.load %arg11[%c1_39, %c0_40, %c0_41] : memref<18x16x96xbf16, #tpu.memory_space<vmem>>, vector<16x16x96xbf16>
    %53 = vector.shape_cast %52 : vector<16x16x96xbf16> to vector<256x96xbf16>
    %c1_42 = arith.constant 1 : index
    %c0_43 = arith.constant 0 : index
    %c0_44 = arith.constant 0 : index
    %54 = vector.load %arg7[%c1_42, %c0_43, %c0_44] : memref<3x96x64xbf16, #tpu.memory_space<vmem>>, vector<1x96x64xbf16>
    %55 = vector.shape_cast %54 : vector<1x96x64xbf16> to vector<96x64xbf16>
    %cst_45 = arith.constant dense<0.000000e+00> : vector<256x64xf32>
    %56 = tpu.matmul %53, %55, %cst_45 {dimension_numbers = #tpu.dot_dimension_numbers<[1], [0], [0], [1], [0, 0, 1, 1], [], []>} : vector<256x96xbf16>, vector<96x64xbf16>, vector<256x64xf32> -> vector<256x64xf32>
    %c0_46 = arith.constant 0 : index
    %c0_47 = arith.constant 0 : index
    %57 = vector.load %arg12[%c0_46, %c0_47] : memref<256x64xf32, #tpu.memory_space<vmem>>, vector<256x64xf32>
    %58 = arith.addf %57, %56 : vector<256x64xf32>
    %c0_48 = arith.constant 0 : index
    %c0_49 = arith.constant 0 : index
    %59 = vector.load %arg12[%c0_48, %c0_49] : memref<256x64xf32, #tpu.memory_space<vmem>>, vector<256x64xf32>
    tpu.vector_store %arg12[%c0_48, %c0_49], %58 {strides = array<i32>} : memref<256x64xf32, #tpu.memory_space<vmem>>, vector<256x64xf32>,
    %c2 = arith.constant 2 : index
    %c0_50 = arith.constant 0 : index
    %c0_51 = arith.constant 0 : index
    %60 = vector.load %arg11[%c2, %c0_50, %c0_51] : memref<18x16x96xbf16, #tpu.memory_space<vmem>>, vector<16x16x96xbf16>
    %61 = vector.shape_cast %60 : vector<16x16x96xbf16> to vector<256x96xbf16>
    %c2_52 = arith.constant 2 : index
    %c0_53 = arith.constant 0 : index
    %c0_54 = arith.constant 0 : index
    %62 = vector.load %arg7[%c2_52, %c0_53, %c0_54] : memref<3x96x64xbf16, #tpu.memory_space<vmem>>, vector<1x96x64xbf16>
    %63 = vector.shape_cast %62 : vector<1x96x64xbf16> to vector<96x64xbf16>
    %cst_55 = arith.constant dense<0.000000e+00> : vector<256x64xf32>
    %64 = tpu.matmul %61, %63, %cst_55 {dimension_numbers = #tpu.dot_dimension_numbers<[1], [0], [0], [1], [0, 0, 1, 1], [], []>} : vector<256x96xbf16>, vector<96x64xbf16>, vector<256x64xf32> -> vector<256x64xf32>
    %c0_56 = arith.constant 0 : index
    %c0_57 = arith.constant 0 : index
    %65 = vector.load %arg12[%c0_56, %c0_57] : memref<256x64xf32, #tpu.memory_space<vmem>>, vector<256x64xf32>
    %66 = arith.addf %65, %64 : vector<256x64xf32>
    %c0_58 = arith.constant 0 : index
    %c0_59 = arith.constant 0 : index
    %67 = vector.load %arg12[%c0_58, %c0_59] : memref<256x64xf32, #tpu.memory_space<vmem>>, vector<256x64xf32>
    tpu.vector_store %arg12[%c0_58, %c0_59], %66 {strides = array<i32>} : memref<256x64xf32, #tpu.memory_space<vmem>>, vector<256x64xf32>,
    %c0_60 = arith.constant 0 : index
    %c0_61 = arith.constant 0 : index
    %68 = vector.load %arg12[%c0_60, %c0_61] : memref<256x64xf32, #tpu.memory_space<vmem>>, vector<256x64xf32>
    %69 = vector.shape_cast %68 : vector<256x64xf32> to vector<16x16x64xf32>
    %70 = arith.truncf %69 : vector<16x16x64xf32> to vector<16x16x64xbf16>
    %c0_62 = arith.constant 0 : index
    %c0_63 = arith.constant 0 : index
    %c0_64 = arith.constant 0 : index
    %c0_65 = arith.constant 0 : index
    %71 = vector.load %arg9[%c0_62, %c0_63, %c0_64, %c0_65] : memref<1x16x16x64xbf16, #tpu.memory_space<vmem>>, vector<1x16x16x64xbf16>
    %72 = vector.shape_cast %71 : vector<1x16x16x64xbf16> to vector<16x16x64xbf16>
    %73 = vector.shape_cast %70 : vector<16x16x64xbf16> to vector<1x16x16x64xbf16>
    tpu.vector_store %arg9[%c0_62, %c0_63, %c0_64, %c0_65], %73 {strides = array<i32>} : memref<1x16x16x64xbf16, #tpu.memory_space<vmem>>, vector<1x16x16x64xbf16>,
    %cst_66 = arith.constant dense<0.000000e+00> : vector<64xf32>
    %74 = vector.multi_reduction <add>, %68, %cst_66 [0] : vector<256x64xf32> to vector<64xf32>
    %75 = vector.shape_cast %74 : vector<64xf32> to vector<1x64xf32>
    %76 = arith.mulf %68, %68 : vector<256x64xf32>
    %cst_67 = arith.constant dense<0.000000e+00> : vector<64xf32>
    %77 = vector.multi_reduction <add>, %76, %cst_67 [0] : vector<256x64xf32> to vector<64xf32>
    %78 = vector.shape_cast %77 : vector<64xf32> to vector<1x64xf32>
    %79 = tpu.concatenate %75, %78 in 0 : vector<1x64xf32>, vector<1x64xf32> -> vector<2x64xf32>
    %c0_i32_68 = arith.constant 0 : i32
    %80 = arith.cmpi eq, %arg1, %c0_i32_68 : i32
    %81 = arith.extui %80 : i1 to i32
    %c0_i32_69 = arith.constant 0 : i32
    %82 = arith.cmpi ne, %81, %c0_i32_69 : i32
    scf.if %82 {
      %c0_72 = arith.constant 0 : index
      %c0_73 = arith.constant 0 : index
      %c0_74 = arith.constant 0 : index
      %86 = vector.load %arg10[%c0_72, %c0_73, %c0_74] : memref<1x2x64xf32, #tpu.memory_space<vmem>>, vector<1x2x64xf32>
      %87 = vector.shape_cast %86 : vector<1x2x64xf32> to vector<2x64xf32>
      %88 = vector.shape_cast %79 : vector<2x64xf32> to vector<1x2x64xf32>
      tpu.vector_store %arg10[%c0_72, %c0_73, %c0_74], %88 {strides = array<i32>} : memref<1x2x64xf32, #tpu.memory_space<vmem>>, vector<1x2x64xf32>,
    } else {
    }
    %c0_i32_70 = arith.constant 0 : i32
    %83 = arith.cmpi sgt, %arg1, %c0_i32_70 : i32
    %84 = arith.extui %83 : i1 to i32
    %c0_i32_71 = arith.constant 0 : i32
    %85 = arith.cmpi ne, %84, %c0_i32_71 : i32
    scf.if %85 {
      %c0_72 = arith.constant 0 : index
      %c0_73 = arith.constant 0 : index
      %c0_74 = arith.constant 0 : index
      %86 = vector.load %arg10[%c0_72, %c0_73, %c0_74] : memref<1x2x64xf32, #tpu.memory_space<vmem>>, vector<1x2x64xf32>
      %87 = vector.shape_cast %86 : vector<1x2x64xf32> to vector<2x64xf32>
      %88 = arith.addf %87, %79 : vector<2x64xf32>
      %c0_75 = arith.constant 0 : index
      %c0_76 = arith.constant 0 : index
      %c0_77 = arith.constant 0 : index
      %89 = vector.load %arg10[%c0_75, %c0_76, %c0_77] : memref<1x2x64xf32, #tpu.memory_space<vmem>>, vector<1x2x64xf32>
      %90 = vector.shape_cast %89 : vector<1x2x64xf32> to vector<2x64xf32>
      %91 = vector.shape_cast %88 : vector<2x64xf32> to vector<1x2x64xf32>
      tpu.vector_store %arg10[%c0_75, %c0_76, %c0_77], %91 {strides = array<i32>} : memref<1x2x64xf32, #tpu.memory_space<vmem>>, vector<1x2x64xf32>,
    } else {
    }
    return
  }
  func.func @transform_0(%arg0: i32, %arg1: i32) -> (i32, i32, i32, i32) {
    %c0_i32 = arith.constant 0 : i32
    %c0_i32_0 = arith.constant 0 : i32
    %c0_i32_1 = arith.constant 0 : i32
    return %arg0, %arg1, %c0_i32, %c0_i32_0 : i32, i32, i32, i32
  }
  func.func @transform_1(%arg0: i32, %arg1: i32) -> (i32, i32, i32, i32) {
    %c16_i32 = arith.constant 16 : i32
    %0 = arith.muli %arg1, %c16_i32 : i32
    %c1_i32 = arith.constant 1 : i32
    %1 = arith.subi %0, %c1_i32 : i32
    %c0_i32 = arith.constant 0 : i32
    %2 = arith.maxsi %1, %c0_i32 : i32
    %c0_i32_0 = arith.constant 0 : i32
    %c0_i32_1 = arith.constant 0 : i32
    %c0_i32_2 = arith.constant 0 : i32
    return %arg0, %2, %c0_i32_0, %c0_i32_1 : i32, i32, i32, i32
  }
  func.func @transform_2(%arg0: i32, %arg1: i32) -> (i32, i32, i32, i32) {
    %c1_i32 = arith.constant 1 : i32
    %0 = arith.addi %arg1, %c1_i32 : i32
    %c16_i32 = arith.constant 16 : i32
    %1 = arith.muli %0, %c16_i32 : i32
    %c15_i32 = arith.constant 15 : i32
    %2 = arith.minsi %1, %c15_i32 : i32
    %c0_i32 = arith.constant 0 : i32
    %c0_i32_0 = arith.constant 0 : i32
    %c0_i32_1 = arith.constant 0 : i32
    return %arg0, %2, %c0_i32, %c0_i32_0 : i32, i32, i32, i32
  }
  func.func @transform_3(%arg0: i32, %arg1: i32) -> (i32, i32, i32) {
    %c0_i32 = arith.constant 0 : i32
    %c0_i32_0 = arith.constant 0 : i32
    %c0_i32_1 = arith.constant 0 : i32
    return %arg0, %c0_i32, %c0_i32_0 : i32, i32, i32
  }
  func.func @transform_4(%arg0: i32, %arg1: i32) -> (i32, i32, i32) {
    %c0_i32 = arith.constant 0 : i32
    %c0_i32_0 = arith.constant 0 : i32
    %c0_i32_1 = arith.constant 0 : i32
    return %arg0, %c0_i32, %c0_i32_0 : i32, i32, i32
  }
  func.func @transform_5(%arg0: i32, %arg1: i32) -> (i32, i32, i32) {
    %c0_i32 = arith.constant 0 : i32
    %c0_i32_0 = arith.constant 0 : i32
    %c0_i32_1 = arith.constant 0 : i32
    %c0_i32_2 = arith.constant 0 : i32
    return %c0_i32, %c0_i32_0, %c0_i32_1 : i32, i32, i32
  }
  func.func @transform_6(%arg0: i32, %arg1: i32) -> (i32, i32) {
    %c0_i32 = arith.constant 0 : i32
    %c0_i32_0 = arith.constant 0 : i32
    %c0_i32_1 = arith.constant 0 : i32
    return %c0_i32, %c0_i32_0 : i32, i32
  }
  func.func @transform_7(%arg0: i32, %arg1: i32) -> (i32, i32, i32, i32) {
    %c0_i32 = arith.constant 0 : i32
    %c0_i32_0 = arith.constant 0 : i32
    %c0_i32_1 = arith.constant 0 : i32
    return %arg0, %arg1, %c0_i32, %c0_i32_0 : i32, i32, i32, i32
  }
  func.func @transform_8(%arg0: i32, %arg1: i32) -> (i32, i32, i32) {
    %c0_i32 = arith.constant 0 : i32
    %c0_i32_0 = arith.constant 0 : i32
    %c0_i32_1 = arith.constant 0 : i32
    return %arg0, %c0_i32, %c0_i32_0 : i32, i32, i32
  }
}

module attributes {stable_mosaic.version = 11 : i64} {
  func.func @kernel(%arg0: i32, %arg1: i32, %arg2: memref<1x16x16x64xbf16, #tpu.memory_space<vmem>>, %arg3: memref<1x1x16x64xbf16, #tpu.memory_space<vmem>>, %arg4: memref<1x1x16x64xbf16, #tpu.memory_space<vmem>>, %arg5: memref<1x1x64xf32, #tpu.memory_space<vmem>>, %arg6: memref<1x1x64xf32, #tpu.memory_space<vmem>>, %arg7: memref<3x192x64xbf16, #tpu.memory_space<vmem>>, %arg8: memref<1x64xf32, #tpu.memory_space<vmem>>, %arg9: memref<1x16x16x32xf32, #tpu.memory_space<vmem>>, %arg10: memref<32x64xbf16, #tpu.memory_space<vmem>>, %arg11: memref<1x64xf32, #tpu.memory_space<vmem>>, %arg12: memref<1x16x16x64xf32, #tpu.memory_space<vmem>>, %arg13: memref<18x16x192xbf16, #tpu.memory_space<vmem>>, %arg14: memref<256x64xf32, #tpu.memory_space<vmem>>) attributes {dimension_semantics = [#tpu.dimension_semantics<parallel>, #tpu.dimension_semantics<parallel>], iteration_bounds = array<i64: 2, 1>, scalar_prefetch = 0 : i64, scratch_operands = 2 : i64, tpu.core_type = #tpu.core_type<tc>, window_params = [{transform_indices = @transform_0, window_bounds = array<i64: 1, 16, 16, 64>}, {transform_indices = @transform_1, window_bounds = array<i64: 1, 1, 16, 64>}, {transform_indices = @transform_2, window_bounds = array<i64: 1, 1, 16, 64>}, {transform_indices = @transform_3, window_bounds = array<i64: 1, 1, 64>}, {transform_indices = @transform_4, window_bounds = array<i64: 1, 1, 64>}, {pipeline_mode = #tpu.pipeline_mode<synchronous>, transform_indices = @transform_5, window_bounds = array<i64: 3, 192, 64>}, {pipeline_mode = #tpu.pipeline_mode<synchronous>, transform_indices = @transform_6, window_bounds = array<i64: 1, 64>}, {transform_indices = @transform_7, window_bounds = array<i64: 1, 16, 16, 32>}, {pipeline_mode = #tpu.pipeline_mode<synchronous>, transform_indices = @transform_8, window_bounds = array<i64: 32, 64>}, {pipeline_mode = #tpu.pipeline_mode<synchronous>, transform_indices = @transform_9, window_bounds = array<i64: 1, 64>}, {transform_indices = @transform_10, window_bounds = array<i64: 1, 16, 16, 64>}]} {
    %c0 = arith.constant 0 : index
    %c0_0 = arith.constant 0 : index
    %c0_1 = arith.constant 0 : index
    %c0_2 = arith.constant 0 : index
    %0 = vector.load %arg2[%c0, %c0_0, %c0_1, %c0_2] : memref<1x16x16x64xbf16, #tpu.memory_space<vmem>>, vector<1x16x16x64xbf16>
    %1 = vector.shape_cast %0 : vector<1x16x16x64xbf16> to vector<16x16x64xbf16>
    %c0_3 = arith.constant 0 : index
    %c0_4 = arith.constant 0 : index
    %c0_5 = arith.constant 0 : index
    %c0_6 = arith.constant 0 : index
    %2 = vector.load %arg3[%c0_3, %c0_4, %c0_5, %c0_6] : memref<1x1x16x64xbf16, #tpu.memory_space<vmem>>, vector<1x1x16x64xbf16>
    %3 = vector.shape_cast %2 : vector<1x1x16x64xbf16> to vector<1x16x64xbf16>
    %c0_7 = arith.constant 0 : index
    %c0_8 = arith.constant 0 : index
    %c0_9 = arith.constant 0 : index
    %c0_10 = arith.constant 0 : index
    %4 = vector.load %arg4[%c0_7, %c0_8, %c0_9, %c0_10] : memref<1x1x16x64xbf16, #tpu.memory_space<vmem>>, vector<1x1x16x64xbf16>
    %5 = vector.shape_cast %4 : vector<1x1x16x64xbf16> to vector<1x16x64xbf16>
    %c0_11 = arith.constant 0 : index
    %c0_12 = arith.constant 0 : index
    %c0_13 = arith.constant 0 : index
    %6 = vector.load %arg5[%c0_11, %c0_12, %c0_13] : memref<1x1x64xf32, #tpu.memory_space<vmem>>, vector<1x1x64xf32>
    %7 = vector.shape_cast %6 : vector<1x1x64xf32> to vector<64xf32>
    %c0_14 = arith.constant 0 : index
    %c0_15 = arith.constant 0 : index
    %c0_16 = arith.constant 0 : index
    %8 = vector.load %arg6[%c0_14, %c0_15, %c0_16] : memref<1x1x64xf32, #tpu.memory_space<vmem>>, vector<1x1x64xf32>
    %9 = vector.shape_cast %8 : vector<1x1x64xf32> to vector<64xf32>
    %10 = arith.extf %1 : vector<16x16x64xbf16> to vector<16x16x64xf32>
    %11 = vector.shape_cast %7 : vector<64xf32> to vector<1x1x64xf32>
    %12 = vector.broadcast %11 : vector<1x1x64xf32> to vector<16x16x64xf32>
    %13 = arith.mulf %10, %12 : vector<16x16x64xf32>
    %14 = vector.shape_cast %9 : vector<64xf32> to vector<1x1x64xf32>
    %15 = vector.broadcast %14 : vector<1x1x64xf32> to vector<16x16x64xf32>
    %16 = arith.addf %13, %15 : vector<16x16x64xf32>
    %17 = arith.negf %16 : vector<16x16x64xf32>
    %18 = math.exp %17 : vector<16x16x64xf32>
    %cst = arith.constant 1.000000e+00 : f32
    %19 = vector.broadcast %cst : f32 to vector<16x16x64xf32>
    %20 = arith.addf %19, %18 : vector<16x16x64xf32>
    %21 = arith.divf %19, %20 : vector<16x16x64xf32>
    %22 = arith.mulf %16, %21 : vector<16x16x64xf32>
    %23 = arith.truncf %22 : vector<16x16x64xf32> to vector<16x16x64xbf16>
    %cst_17 = arith.constant 0.000000e+00 : bf16
    %24 = vector.broadcast %cst_17 : bf16 to vector<16x1x64xbf16>
    %25 = vector.extract_strided_slice %23 {offsets = [0, 0, 0], sizes = [16, 15, 64], strides = [1, 1, 1]} : vector<16x16x64xbf16> to vector<16x15x64xbf16>
    %26 = tpu.concatenate %24, %25 in 1 : vector<16x1x64xbf16>, vector<16x15x64xbf16> -> vector<16x16x64xbf16>
    %27 = vector.extract_strided_slice %23 {offsets = [0, 1, 0], sizes = [16, 15, 64], strides = [1, 1, 1]} : vector<16x16x64xbf16> to vector<16x15x64xbf16>
    %28 = tpu.concatenate %27, %24 in 1 : vector<16x15x64xbf16>, vector<16x1x64xbf16> -> vector<16x16x64xbf16>
    %29 = tpu.concatenate %26, %23, %28 in 2 : vector<16x16x64xbf16>, vector<16x16x64xbf16>, vector<16x16x64xbf16> -> vector<16x16x192xbf16>
    %c1 = arith.constant 1 : index
    %c0_18 = arith.constant 0 : index
    %c0_19 = arith.constant 0 : index
    %30 = vector.load %arg13[%c1, %c0_18, %c0_19] : memref<18x16x192xbf16, #tpu.memory_space<vmem>>, vector<16x16x192xbf16>
    tpu.vector_store %arg13[%c1, %c0_18, %c0_19], %29 {strides = array<i32>} : memref<18x16x192xbf16, #tpu.memory_space<vmem>>, vector<16x16x192xbf16>,
    %cst_20 = arith.constant 0.000000e+00 : bf16
    %31 = vector.broadcast %cst_20 : bf16 to vector<1x16x192xbf16>
    %c0_i32 = arith.constant 0 : i32
    %32 = arith.cmpi eq, %arg1, %c0_i32 : i32
    %33 = arith.extui %32 : i1 to i32
    %c0_i32_21 = arith.constant 0 : i32
    %34 = arith.cmpi ne, %33, %c0_i32_21 : i32
    scf.if %34 {
      %c0_75 = arith.constant 0 : index
      %c0_76 = arith.constant 0 : index
      %c0_77 = arith.constant 0 : index
      %84 = vector.load %arg13[%c0_75, %c0_76, %c0_77] : memref<18x16x192xbf16, #tpu.memory_space<vmem>>, vector<1x16x192xbf16>
      tpu.vector_store %arg13[%c0_75, %c0_76, %c0_77], %31 {strides = array<i32>} : memref<18x16x192xbf16, #tpu.memory_space<vmem>>, vector<1x16x192xbf16>,
    } else {
    }
    %c0_i32_22 = arith.constant 0 : i32
    %35 = arith.cmpi sgt, %arg1, %c0_i32_22 : i32
    %36 = arith.extui %35 : i1 to i32
    %c0_i32_23 = arith.constant 0 : i32
    %37 = arith.cmpi ne, %36, %c0_i32_23 : i32
    scf.if %37 {
      %84 = arith.extf %3 : vector<1x16x64xbf16> to vector<1x16x64xf32>
      %85 = vector.shape_cast %7 : vector<64xf32> to vector<1x1x64xf32>
      %86 = vector.broadcast %85 : vector<1x1x64xf32> to vector<1x16x64xf32>
      %87 = arith.mulf %84, %86 : vector<1x16x64xf32>
      %88 = vector.shape_cast %9 : vector<64xf32> to vector<1x1x64xf32>
      %89 = vector.broadcast %88 : vector<1x1x64xf32> to vector<1x16x64xf32>
      %90 = arith.addf %87, %89 : vector<1x16x64xf32>
      %91 = arith.negf %90 : vector<1x16x64xf32>
      %92 = math.exp %91 : vector<1x16x64xf32>
      %cst_75 = arith.constant 1.000000e+00 : f32
      %93 = vector.broadcast %cst_75 : f32 to vector<1x16x64xf32>
      %94 = arith.addf %93, %92 : vector<1x16x64xf32>
      %95 = arith.divf %93, %94 : vector<1x16x64xf32>
      %96 = arith.mulf %90, %95 : vector<1x16x64xf32>
      %97 = arith.truncf %96 : vector<1x16x64xf32> to vector<1x16x64xbf16>
      %cst_76 = arith.constant 0.000000e+00 : bf16
      %98 = vector.broadcast %cst_76 : bf16 to vector<1x1x64xbf16>
      %99 = vector.extract_strided_slice %97 {offsets = [0, 0, 0], sizes = [1, 15, 64], strides = [1, 1, 1]} : vector<1x16x64xbf16> to vector<1x15x64xbf16>
      %100 = tpu.concatenate %98, %99 in 1 : vector<1x1x64xbf16>, vector<1x15x64xbf16> -> vector<1x16x64xbf16>
      %101 = vector.extract_strided_slice %97 {offsets = [0, 1, 0], sizes = [1, 15, 64], strides = [1, 1, 1]} : vector<1x16x64xbf16> to vector<1x15x64xbf16>
      %102 = tpu.concatenate %101, %98 in 1 : vector<1x15x64xbf16>, vector<1x1x64xbf16> -> vector<1x16x64xbf16>
      %103 = tpu.concatenate %100, %97, %102 in 2 : vector<1x16x64xbf16>, vector<1x16x64xbf16>, vector<1x16x64xbf16> -> vector<1x16x192xbf16>
      %c0_77 = arith.constant 0 : index
      %c0_78 = arith.constant 0 : index
      %c0_79 = arith.constant 0 : index
      %104 = vector.load %arg13[%c0_77, %c0_78, %c0_79] : memref<18x16x192xbf16, #tpu.memory_space<vmem>>, vector<1x16x192xbf16>
      tpu.vector_store %arg13[%c0_77, %c0_78, %c0_79], %103 {strides = array<i32>} : memref<18x16x192xbf16, #tpu.memory_space<vmem>>, vector<1x16x192xbf16>,
    } else {
    }
    %c0_i32_24 = arith.constant 0 : i32
    %38 = arith.cmpi eq, %arg1, %c0_i32_24 : i32
    %39 = arith.extui %38 : i1 to i32
    %c0_i32_25 = arith.constant 0 : i32
    %40 = arith.cmpi ne, %39, %c0_i32_25 : i32
    scf.if %40 {
      %c17 = arith.constant 17 : index
      %c0_75 = arith.constant 0 : index
      %c0_76 = arith.constant 0 : index
      %84 = vector.load %arg13[%c17, %c0_75, %c0_76] : memref<18x16x192xbf16, #tpu.memory_space<vmem>>, vector<1x16x192xbf16>
      tpu.vector_store %arg13[%c17, %c0_75, %c0_76], %31 {strides = array<i32>} : memref<18x16x192xbf16, #tpu.memory_space<vmem>>, vector<1x16x192xbf16>,
    } else {
    }
    %c0_i32_26 = arith.constant 0 : i32
    %41 = arith.cmpi slt, %arg1, %c0_i32_26 : i32
    %42 = arith.extui %41 : i1 to i32
    %c0_i32_27 = arith.constant 0 : i32
    %43 = arith.cmpi ne, %42, %c0_i32_27 : i32
    scf.if %43 {
      %84 = arith.extf %5 : vector<1x16x64xbf16> to vector<1x16x64xf32>
      %85 = vector.shape_cast %7 : vector<64xf32> to vector<1x1x64xf32>
      %86 = vector.broadcast %85 : vector<1x1x64xf32> to vector<1x16x64xf32>
      %87 = arith.mulf %84, %86 : vector<1x16x64xf32>
      %88 = vector.shape_cast %9 : vector<64xf32> to vector<1x1x64xf32>
      %89 = vector.broadcast %88 : vector<1x1x64xf32> to vector<1x16x64xf32>
      %90 = arith.addf %87, %89 : vector<1x16x64xf32>
      %91 = arith.negf %90 : vector<1x16x64xf32>
      %92 = math.exp %91 : vector<1x16x64xf32>
      %cst_75 = arith.constant 1.000000e+00 : f32
      %93 = vector.broadcast %cst_75 : f32 to vector<1x16x64xf32>
      %94 = arith.addf %93, %92 : vector<1x16x64xf32>
      %95 = arith.divf %93, %94 : vector<1x16x64xf32>
      %96 = arith.mulf %90, %95 : vector<1x16x64xf32>
      %97 = arith.truncf %96 : vector<1x16x64xf32> to vector<1x16x64xbf16>
      %cst_76 = arith.constant 0.000000e+00 : bf16
      %98 = vector.broadcast %cst_76 : bf16 to vector<1x1x64xbf16>
      %99 = vector.extract_strided_slice %97 {offsets = [0, 0, 0], sizes = [1, 15, 64], strides = [1, 1, 1]} : vector<1x16x64xbf16> to vector<1x15x64xbf16>
      %100 = tpu.concatenate %98, %99 in 1 : vector<1x1x64xbf16>, vector<1x15x64xbf16> -> vector<1x16x64xbf16>
      %101 = vector.extract_strided_slice %97 {offsets = [0, 1, 0], sizes = [1, 15, 64], strides = [1, 1, 1]} : vector<1x16x64xbf16> to vector<1x15x64xbf16>
      %102 = tpu.concatenate %101, %98 in 1 : vector<1x15x64xbf16>, vector<1x1x64xbf16> -> vector<1x16x64xbf16>
      %103 = tpu.concatenate %100, %97, %102 in 2 : vector<1x16x64xbf16>, vector<1x16x64xbf16>, vector<1x16x64xbf16> -> vector<1x16x192xbf16>
      %c17 = arith.constant 17 : index
      %c0_77 = arith.constant 0 : index
      %c0_78 = arith.constant 0 : index
      %104 = vector.load %arg13[%c17, %c0_77, %c0_78] : memref<18x16x192xbf16, #tpu.memory_space<vmem>>, vector<1x16x192xbf16>
      tpu.vector_store %arg13[%c17, %c0_77, %c0_78], %103 {strides = array<i32>} : memref<18x16x192xbf16, #tpu.memory_space<vmem>>, vector<1x16x192xbf16>,
    } else {
    }
    %c0_28 = arith.constant 0 : index
    %c0_29 = arith.constant 0 : index
    %44 = vector.load %arg8[%c0_28, %c0_29] : memref<1x64xf32, #tpu.memory_space<vmem>>, vector<1x64xf32>
    %c0_30 = arith.constant 0 : index
    %c0_31 = arith.constant 0 : index
    %c0_32 = arith.constant 0 : index
    %45 = vector.load %arg13[%c0_30, %c0_31, %c0_32] : memref<18x16x192xbf16, #tpu.memory_space<vmem>>, vector<16x16x192xbf16>
    %46 = vector.shape_cast %45 : vector<16x16x192xbf16> to vector<256x192xbf16>
    %c0_33 = arith.constant 0 : index
    %c0_34 = arith.constant 0 : index
    %c0_35 = arith.constant 0 : index
    %47 = vector.load %arg7[%c0_33, %c0_34, %c0_35] : memref<3x192x64xbf16, #tpu.memory_space<vmem>>, vector<1x192x64xbf16>
    %48 = vector.shape_cast %47 : vector<1x192x64xbf16> to vector<192x64xbf16>
    %cst_36 = arith.constant dense<0.000000e+00> : vector<256x64xf32>
    %49 = tpu.matmul %46, %48, %cst_36 {dimension_numbers = #tpu.dot_dimension_numbers<[1], [0], [0], [1], [0, 0, 1, 1], [], []>} : vector<256x192xbf16>, vector<192x64xbf16>, vector<256x64xf32> -> vector<256x64xf32>
    %50 = vector.broadcast %44 : vector<1x64xf32> to vector<256x64xf32>
    %51 = arith.addf %49, %50 : vector<256x64xf32>
    %c0_37 = arith.constant 0 : index
    %c0_38 = arith.constant 0 : index
    %52 = vector.load %arg14[%c0_37, %c0_38] : memref<256x64xf32, #tpu.memory_space<vmem>>, vector<256x64xf32>
    tpu.vector_store %arg14[%c0_37, %c0_38], %51 {strides = array<i32>} : memref<256x64xf32, #tpu.memory_space<vmem>>, vector<256x64xf32>,
    %c1_39 = arith.constant 1 : index
    %c0_40 = arith.constant 0 : index
    %c0_41 = arith.constant 0 : index
    %53 = vector.load %arg13[%c1_39, %c0_40, %c0_41] : memref<18x16x192xbf16, #tpu.memory_space<vmem>>, vector<16x16x192xbf16>
    %54 = vector.shape_cast %53 : vector<16x16x192xbf16> to vector<256x192xbf16>
    %c1_42 = arith.constant 1 : index
    %c0_43 = arith.constant 0 : index
    %c0_44 = arith.constant 0 : index
    %55 = vector.load %arg7[%c1_42, %c0_43, %c0_44] : memref<3x192x64xbf16, #tpu.memory_space<vmem>>, vector<1x192x64xbf16>
    %56 = vector.shape_cast %55 : vector<1x192x64xbf16> to vector<192x64xbf16>
    %cst_45 = arith.constant dense<0.000000e+00> : vector<256x64xf32>
    %57 = tpu.matmul %54, %56, %cst_45 {dimension_numbers = #tpu.dot_dimension_numbers<[1], [0], [0], [1], [0, 0, 1, 1], [], []>} : vector<256x192xbf16>, vector<192x64xbf16>, vector<256x64xf32> -> vector<256x64xf32>
    %c0_46 = arith.constant 0 : index
    %c0_47 = arith.constant 0 : index
    %58 = vector.load %arg14[%c0_46, %c0_47] : memref<256x64xf32, #tpu.memory_space<vmem>>, vector<256x64xf32>
    %59 = arith.addf %58, %57 : vector<256x64xf32>
    %c0_48 = arith.constant 0 : index
    %c0_49 = arith.constant 0 : index
    %60 = vector.load %arg14[%c0_48, %c0_49] : memref<256x64xf32, #tpu.memory_space<vmem>>, vector<256x64xf32>
    tpu.vector_store %arg14[%c0_48, %c0_49], %59 {strides = array<i32>} : memref<256x64xf32, #tpu.memory_space<vmem>>, vector<256x64xf32>,
    %c2 = arith.constant 2 : index
    %c0_50 = arith.constant 0 : index
    %c0_51 = arith.constant 0 : index
    %61 = vector.load %arg13[%c2, %c0_50, %c0_51] : memref<18x16x192xbf16, #tpu.memory_space<vmem>>, vector<16x16x192xbf16>
    %62 = vector.shape_cast %61 : vector<16x16x192xbf16> to vector<256x192xbf16>
    %c2_52 = arith.constant 2 : index
    %c0_53 = arith.constant 0 : index
    %c0_54 = arith.constant 0 : index
    %63 = vector.load %arg7[%c2_52, %c0_53, %c0_54] : memref<3x192x64xbf16, #tpu.memory_space<vmem>>, vector<1x192x64xbf16>
    %64 = vector.shape_cast %63 : vector<1x192x64xbf16> to vector<192x64xbf16>
    %cst_55 = arith.constant dense<0.000000e+00> : vector<256x64xf32>
    %65 = tpu.matmul %62, %64, %cst_55 {dimension_numbers = #tpu.dot_dimension_numbers<[1], [0], [0], [1], [0, 0, 1, 1], [], []>} : vector<256x192xbf16>, vector<192x64xbf16>, vector<256x64xf32> -> vector<256x64xf32>
    %c0_56 = arith.constant 0 : index
    %c0_57 = arith.constant 0 : index
    %66 = vector.load %arg14[%c0_56, %c0_57] : memref<256x64xf32, #tpu.memory_space<vmem>>, vector<256x64xf32>
    %67 = arith.addf %66, %65 : vector<256x64xf32>
    %c0_58 = arith.constant 0 : index
    %c0_59 = arith.constant 0 : index
    %68 = vector.load %arg14[%c0_58, %c0_59] : memref<256x64xf32, #tpu.memory_space<vmem>>, vector<256x64xf32>
    tpu.vector_store %arg14[%c0_58, %c0_59], %67 {strides = array<i32>} : memref<256x64xf32, #tpu.memory_space<vmem>>, vector<256x64xf32>,
    %c0_60 = arith.constant 0 : index
    %c0_61 = arith.constant 0 : index
    %69 = vector.load %arg14[%c0_60, %c0_61] : memref<256x64xf32, #tpu.memory_space<vmem>>, vector<256x64xf32>
    %c0_62 = arith.constant 0 : index
    %c0_63 = arith.constant 0 : index
    %c0_64 = arith.constant 0 : index
    %c0_65 = arith.constant 0 : index
    %70 = vector.load %arg9[%c0_62, %c0_63, %c0_64, %c0_65] : memref<1x16x16x32xf32, #tpu.memory_space<vmem>>, vector<1x16x16x32xf32>
    %71 = vector.shape_cast %70 : vector<1x16x16x32xf32> to vector<16x16x32xf32>
    %72 = vector.shape_cast %71 : vector<16x16x32xf32> to vector<256x32xf32>
    %73 = arith.truncf %72 : vector<256x32xf32> to vector<256x32xbf16>
    %c0_66 = arith.constant 0 : index
    %c0_67 = arith.constant 0 : index
    %74 = vector.load %arg10[%c0_66, %c0_67] : memref<32x64xbf16, #tpu.memory_space<vmem>>, vector<32x64xbf16>
    %cst_68 = arith.constant dense<0.000000e+00> : vector<256x64xf32>
    %75 = tpu.matmul %73, %74, %cst_68 {dimension_numbers = #tpu.dot_dimension_numbers<[1], [0], [0], [1], [0, 0, 1, 1], [], []>} : vector<256x32xbf16>, vector<32x64xbf16>, vector<256x64xf32> -> vector<256x64xf32>
    %c0_69 = arith.constant 0 : index
    %c0_70 = arith.constant 0 : index
    %76 = vector.load %arg11[%c0_69, %c0_70] : memref<1x64xf32, #tpu.memory_space<vmem>>, vector<1x64xf32>
    %77 = vector.broadcast %76 : vector<1x64xf32> to vector<256x64xf32>
    %78 = arith.addf %75, %77 : vector<256x64xf32>
    %79 = arith.addf %69, %78 : vector<256x64xf32>
    %80 = vector.shape_cast %79 : vector<256x64xf32> to vector<16x16x64xf32>
    %c0_71 = arith.constant 0 : index
    %c0_72 = arith.constant 0 : index
    %c0_73 = arith.constant 0 : index
    %c0_74 = arith.constant 0 : index
    %81 = vector.load %arg12[%c0_71, %c0_72, %c0_73, %c0_74] : memref<1x16x16x64xf32, #tpu.memory_space<vmem>>, vector<1x16x16x64xf32>
    %82 = vector.shape_cast %81 : vector<1x16x16x64xf32> to vector<16x16x64xf32>
    %83 = vector.shape_cast %80 : vector<16x16x64xf32> to vector<1x16x16x64xf32>
    tpu.vector_store %arg12[%c0_71, %c0_72, %c0_73, %c0_74], %83 {strides = array<i32>} : memref<1x16x16x64xf32, #tpu.memory_space<vmem>>, vector<1x16x16x64xf32>,
    return
  }
  func.func @transform_0(%arg0: i32, %arg1: i32) -> (i32, i32, i32, i32) {
    %c0_i32 = arith.constant 0 : i32
    %c0_i32_0 = arith.constant 0 : i32
    %c0_i32_1 = arith.constant 0 : i32
    return %arg0, %arg1, %c0_i32, %c0_i32_0 : i32, i32, i32, i32
  }
  func.func @transform_1(%arg0: i32, %arg1: i32) -> (i32, i32, i32, i32) {
    %c16_i32 = arith.constant 16 : i32
    %0 = arith.muli %arg1, %c16_i32 : i32
    %c1_i32 = arith.constant 1 : i32
    %1 = arith.subi %0, %c1_i32 : i32
    %c0_i32 = arith.constant 0 : i32
    %2 = arith.maxsi %1, %c0_i32 : i32
    %c0_i32_0 = arith.constant 0 : i32
    %c0_i32_1 = arith.constant 0 : i32
    %c0_i32_2 = arith.constant 0 : i32
    return %arg0, %2, %c0_i32_0, %c0_i32_1 : i32, i32, i32, i32
  }
  func.func @transform_2(%arg0: i32, %arg1: i32) -> (i32, i32, i32, i32) {
    %c1_i32 = arith.constant 1 : i32
    %0 = arith.addi %arg1, %c1_i32 : i32
    %c16_i32 = arith.constant 16 : i32
    %1 = arith.muli %0, %c16_i32 : i32
    %c15_i32 = arith.constant 15 : i32
    %2 = arith.minsi %1, %c15_i32 : i32
    %c0_i32 = arith.constant 0 : i32
    %c0_i32_0 = arith.constant 0 : i32
    %c0_i32_1 = arith.constant 0 : i32
    return %arg0, %2, %c0_i32, %c0_i32_0 : i32, i32, i32, i32
  }
  func.func @transform_3(%arg0: i32, %arg1: i32) -> (i32, i32, i32) {
    %c0_i32 = arith.constant 0 : i32
    %c0_i32_0 = arith.constant 0 : i32
    %c0_i32_1 = arith.constant 0 : i32
    return %arg0, %c0_i32, %c0_i32_0 : i32, i32, i32
  }
  func.func @transform_4(%arg0: i32, %arg1: i32) -> (i32, i32, i32) {
    %c0_i32 = arith.constant 0 : i32
    %c0_i32_0 = arith.constant 0 : i32
    %c0_i32_1 = arith.constant 0 : i32
    return %arg0, %c0_i32, %c0_i32_0 : i32, i32, i32
  }
  func.func @transform_5(%arg0: i32, %arg1: i32) -> (i32, i32, i32) {
    %c0_i32 = arith.constant 0 : i32
    %c0_i32_0 = arith.constant 0 : i32
    %c0_i32_1 = arith.constant 0 : i32
    %c0_i32_2 = arith.constant 0 : i32
    return %c0_i32, %c0_i32_0, %c0_i32_1 : i32, i32, i32
  }
  func.func @transform_6(%arg0: i32, %arg1: i32) -> (i32, i32) {
    %c0_i32 = arith.constant 0 : i32
    %c0_i32_0 = arith.constant 0 : i32
    %c0_i32_1 = arith.constant 0 : i32
    return %c0_i32, %c0_i32_0 : i32, i32
  }
  func.func @transform_7(%arg0: i32, %arg1: i32) -> (i32, i32, i32, i32) {
    %c0_i32 = arith.constant 0 : i32
    %c0_i32_0 = arith.constant 0 : i32
    %c0_i32_1 = arith.constant 0 : i32
    return %arg0, %arg1, %c0_i32, %c0_i32_0 : i32, i32, i32, i32
  }
  func.func @transform_8(%arg0: i32, %arg1: i32) -> (i32, i32) {
    %c0_i32 = arith.constant 0 : i32
    %c0_i32_0 = arith.constant 0 : i32
    %c0_i32_1 = arith.constant 0 : i32
    return %c0_i32, %c0_i32_0 : i32, i32
  }
  func.func @transform_9(%arg0: i32, %arg1: i32) -> (i32, i32) {
    %c0_i32 = arith.constant 0 : i32
    %c0_i32_0 = arith.constant 0 : i32
    %c0_i32_1 = arith.constant 0 : i32
    return %c0_i32, %c0_i32_0 : i32, i32
  }
  func.func @transform_10(%arg0: i32, %arg1: i32) -> (i32, i32, i32, i32) {
    %c0_i32 = arith.constant 0 : i32
    %c0_i32_0 = arith.constant 0 : i32
    %c0_i32_1 = arith.constant 0 : i32
    return %arg0, %arg1, %c0_i32, %c0_i32_0 : i32, i32, i32, i32
  }
}

</mosaic_0001>

<bundles_post_ra>
// kernel: squeeze.6
= control target key start
LH: loop header
LB: loop body
LE: loop exit
PB: predicated region body
PF: predicated region fallthrough
CT: control target
= control target key end

     0   :  { %s354_s8 = smov 122   ;;  %s355_s9 = smov 124   ;;  %vm7_vm0 = vcmask 15360   ;;  %s653_s0 = inlined_call_operand.vmem [shape: f32[2,64], index: 0, kind: input, shape index: {}]   ;;  %s654_s1 = inlined_call_operand.vmem [shape: f32[2,32,2], index: 1, kind: output, shape index: {}]  }
   0x1   :  { %v4_v0 = vld [vmem:[%s653_s0] sm:$0x3]  ;;  %s353_s0 = smov 126   ;;  %s356_s10 = smov 120  }
   0x2   :  { %5 = vst [vmem:[#allocation0] sm:$0x3] %v4_v0  ;;  %s357_s11 = smov 118   ;;  %s358_s12 = smov 116  }
   0x3   :  { %s359_s13 = smov 114   ;;  %s360_s14 = smov 112  }
   0x4   :  { %s361_s15 = smov 110   ;;  %s362_s16 = smov 108  }
   0x5   :  { %s363_s17 = smov 106   ;;  %s364_s18 = smov 104  }
   0x6   :  { %s365_s19 = smov 102   ;;  %s366_s20 = smov 100  }
   0x7   :  { %s367_s21 = smov 98   ;;  %s368_s22 = smov 96  }
   0x8   :  { %s369_s23 = smov 94   ;;  %s370_s24 = smov 92  }
   0x9   :  { %v11_v1 = vld [vmem:[#allocation0] sm:$0x3]   ;;  %s371_s25 = smov 90   ;;  %s372_s26 = smov 88  }
   0xa   :  { %v27_v2 = vld [vmem:[#allocation0] sm:$0x3]   ;;  %12 = vrot.lane.b32.xlu0 %v11_v1, %s353_s0  ;;  %s373_s27 = smov 86   ;;  %s374_s28 = smov 84  }
   0xb   :  { %28 = vrot.lane.b32.xlu1 %v27_v2, %s354_s8  ;;  %v19_v3 = vld [vmem:[#allocation0] sm:$0x3]   ;;  %s375_s29 = smov 82   ;;  %s376_s30 = smov 80  }
   0xc   :  { %v35_v4 = vld [vmem:[#allocation0] sm:$0x3]   ;;  %s377_s6 = smov 78   ;;  %s378_s7 = smov 76  }
   0xd   :  { %v43_v5 = vld [vmem:[#allocation0] sm:$0x3]   ;;  %s379_s0 = smov 74   ;;  %s380_s8 = smov 72  }
   0xe   :  { %20 = vrot.lane.b32.xlu0 %v19_v3, %s355_s9  ;;  %v51_v6 = vld [vmem:[#allocation0] sm:$0x3]   ;;  %s381_s9 = smov 70  }
   0xf   :  { %36 = vrot.lane.b32.xlu1 %v35_v4, %s356_s10  ;;  %v59_v7 = vld [vmem:[#allocation0] sm:$0x3]   ;;  %s382_s10 = smov 68  }
  0x10   :  { %v67_v8 = vld [vmem:[#allocation0] sm:$0x3]  }
  0x11   :  { %v75_v9 = vld [vmem:[#allocation0] sm:$0x3]  }
  0x12   :  { %44 = vrot.lane.b32.xlu0 %v43_v5, %s357_s11  ;;  %v83_v10 = vld [vmem:[#allocation0] sm:$0x3]   ;;  %s383_s11 = smov 66  }
  0x13   :  { %52 = vrot.lane.b32.xlu1 %v51_v6, %s358_s12  ;;  %v91_v11 = vld [vmem:[#allocation0] sm:$0x3]  }
  0x14   :  { %v99_v12 = vld [vmem:[#allocation0] sm:$0x3]  }
  0x15   :  { %v107_v13 = vld [vmem:[#allocation0] sm:$0x3]  }
  0x16   :  { %60 = vrot.lane.b32.xlu0 %v59_v7, %s359_s13  ;;  %v115_v14 = vld [vmem:[#allocation0] sm:$0x3]  }
  0x17   :  { %68 = vrot.lane.b32.xlu1 %v67_v8, %s360_s14  ;;  %v123_v15 = vld [vmem:[#allocation0] sm:$0x3]  }
  0x18   :  { %v131_v16 = vld [vmem:[#allocation0] sm:$0x3]  }
  0x19   :  { %v139_v17 = vld [vmem:[#allocation0] sm:$0x3]  }
  0x1a   :  { %76 = vrot.lane.b32.xlu0 %v75_v9, %s361_s15  ;;  %v147_v18 = vld [vmem:[#allocation0] sm:$0x3]  }
  0x1b   :  { %84 = vrot.lane.b32.xlu1 %v83_v10, %s362_s16  ;;  %v155_v19 = vld [vmem:[#allocation0] sm:$0x3]  }
  0x1c   :  { %v163_v20 = vld [vmem:[#allocation0] sm:$0x3]  }
  0x1d   :  { %v171_v21 = vld [vmem:[#allocation0] sm:$0x3]  }
  0x1e   :  { %92 = vrot.lane.b32.xlu0 %v91_v11, %s363_s17  ;;  %v179_v22 = vld [vmem:[#allocation0] sm:$0x3]  }
  0x1f   :  { %100 = vrot.lane.b32.xlu1 %v99_v12, %s364_s18  ;;  %v187_v23 = vld [vmem:[#allocation0] sm:$0x3]  }
  0x20   :  { %v195_v24 = vld [vmem:[#allocation0] sm:$0x3]  }
  0x21   :  { %v203_v25 = vld [vmem:[#allocation0] sm:$0x3]  }
  0x22   :  { %108 = vrot.lane.b32.xlu0 %v107_v13, %s365_s19  ;;  %v211_v26 = vld [vmem:[#allocation0] sm:$0x3]  }
  0x23   :  { %116 = vrot.lane.b32.xlu1 %v115_v14, %s366_s20  ;;  %v6_v27 = vld [vmem:[#allocation0] sm:$0x3]  }
  0x24   :  { %8 = vst.msk [vmem:[%s654_s1] sm:$0x1] %vm7_vm0, %v6_v27   ;;  %259 = vst.msk [vmem:[%s654_s1 + $0x1f] sm:$0x2] %vm7_vm0, %v6_v27   ;;  %v219_v28 = vld [vmem:[#allocation0] sm:$0x3]  }
  0x25   :  { %v227_v29 = vld [vmem:[#allocation0] sm:$0x3]  }
  0x26   :  { %124 = vrot.lane.b32.xlu0 %v123_v15, %s367_s21  ;;  %v235_v30 = vld [vmem:[#allocation0] sm:$0x3]  }
  0x27   :  { %132 = vrot.lane.b32.xlu1 %v131_v16, %s368_s22  ;;  %v243_v31 = vld [vmem:[#allocation0] sm:$0x3]  }
  0x28   :  { %v251_v32 = vld [vmem:[#allocation0] sm:$0x3]  }
  0x2a   :  { %140 = vrot.lane.b32.xlu0 %v139_v17, %s369_s23 }
  0x2b   :  { %148 = vrot.lane.b32.xlu1 %v147_v18, %s370_s24 }
  0x2e   :  { %156 = vrot.lane.b32.xlu0 %v155_v19, %s371_s25 }
  0x2f   :  { %164 = vrot.lane.b32.xlu1 %v163_v20, %s372_s26 }
  0x32   :  { %172 = vrot.lane.b32.xlu0 %v171_v21, %s373_s27 }
  0x33   :  { %180 = vrot.lane.b32.xlu1 %v179_v22, %s374_s28 }
  0x36   :  { %188 = vrot.lane.b32.xlu0 %v187_v23, %s375_s29 }
  0x37   :  { %196 = vrot.lane.b32.xlu1 %v195_v24, %s376_s30 }
  0x3a   :  { %204 = vrot.lane.b32.xlu0 %v203_v25, %s377_s6 }
  0x3b   :  { %212 = vrot.lane.b32.xlu1 %v211_v26, %s378_s7 }
  0x3e   :  { %220 = vrot.lane.b32.xlu0 %v219_v28, %s379_s0 }
  0x3f   :  { %228 = vrot.lane.b32.xlu1 %v227_v29, %s380_s8 }
  0x42   :  { %236 = vrot.lane.b32.xlu0 %v235_v30, %s381_s9 }
  0x43   :  { %244 = vrot.lane.b32.xlu1 %v243_v31, %s382_s10 }
  0x46   :  { %252 = vrot.lane.b32.xlu0 %v251_v32, %s383_s11 }
  0x7c   :  { %v13_v33 = vpop.permute.xlu0 %12  }
  0x7d   :  { %v29_v34 = vpop.permute.xlu1 %28   ;;  %260 = vst.msk [vmem:[%s654_s1 + $0x1] sm:$0x1] %vm7_vm0, %v13_v33   ;;  %261 = vst.msk [vmem:[%s654_s1 + $0x20] sm:$0x2] %vm7_vm0, %v13_v33  }
  0x7e   :  { %264 = vst.msk [vmem:[%s654_s1 + $0x3] sm:$0x1] %vm7_vm0, %v29_v34   ;;  %265 = vst.msk [vmem:[%s654_s1 + $0x22] sm:$0x2] %vm7_vm0, %v29_v34  }
  0x80   :  { %v21_v35 = vpop.permute.xlu0 %20  }
  0x81   :  { %v37_v36 = vpop.permute.xlu1 %36   ;;  %262 = vst.msk [vmem:[%s654_s1 + $0x2] sm:$0x1] %vm7_vm0, %v21_v35   ;;  %263 = vst.msk [vmem:[%s654_s1 + $0x21] sm:$0x2] %vm7_vm0, %v21_v35  }
  0x82   :  { %266 = vst.msk [vmem:[%s654_s1 + $0x4] sm:$0x1] %vm7_vm0, %v37_v36   ;;  %267 = vst.msk [vmem:[%s654_s1 + $0x23] sm:$0x2] %vm7_vm0, %v37_v36  }
  0x84   :  { %v45_v37 = vpop.permute.xlu0 %44  }
  0x85   :  { %v53_v38 = vpop.permute.xlu1 %52   ;;  %268 = vst.msk [vmem:[%s654_s1 + $0x5] sm:$0x1] %vm7_vm0, %v45_v37   ;;  %269 = vst.msk [vmem:[%s654_s1 + $0x24] sm:$0x2] %vm7_vm0, %v45_v37  }
  0x86   :  { %270 = vst.msk [vmem:[%s654_s1 + $0x6] sm:$0x1] %vm7_vm0, %v53_v38   ;;  %271 = vst.msk [vmem:[%s654_s1 + $0x25] sm:$0x2] %vm7_vm0, %v53_v38  }
  0x88   :  { %v61_v39 = vpop.permute.xlu0 %60  }
  0x89   :  { %v69_v40 = vpop.permute.xlu1 %68   ;;  %272 = vst.msk [vmem:[%s654_s1 + $0x7] sm:$0x1] %vm7_vm0, %v61_v39   ;;  %273 = vst.msk [vmem:[%s654_s1 + $0x26] sm:$0x2] %vm7_vm0, %v61_v39  }
  0x8a   :  { %274 = vst.msk [vmem:[%s654_s1 + $0x8] sm:$0x1] %vm7_vm0, %v69_v40   ;;  %275 = vst.msk [vmem:[%s654_s1 + $0x27] sm:$0x2] %vm7_vm0, %v69_v40  }
  0x8c   :  { %v77_v41 = vpop.permute.xlu0 %76  }
  0x8d   :  { %v85_v42 = vpop.permute.xlu1 %84   ;;  %276 = vst.msk [vmem:[%s654_s1 + $0x9] sm:$0x1] %vm7_vm0, %v77_v41   ;;  %277 = vst.msk [vmem:[%s654_s1 + $0x28] sm:$0x2] %vm7_vm0, %v77_v41  }
  0x8e   :  { %278 = vst.msk [vmem:[%s654_s1 + $0xa] sm:$0x1] %vm7_vm0, %v85_v42   ;;  %279 = vst.msk [vmem:[%s654_s1 + $0x29] sm:$0x2] %vm7_vm0, %v85_v42  }
  0x90   :  { %v93_v43 = vpop.permute.xlu0 %92  }
  0x91   :  { %v101_v44 = vpop.permute.xlu1 %100   ;;  %280 = vst.msk [vmem:[%s654_s1 + $0xb] sm:$0x1] %vm7_vm0, %v93_v43   ;;  %281 = vst.msk [vmem:[%s654_s1 + $0x2a] sm:$0x2] %vm7_vm0, %v93_v43  }
  0x92   :  { %282 = vst.msk [vmem:[%s654_s1 + $0xc] sm:$0x1] %vm7_vm0, %v101_v44   ;;  %283 = vst.msk [vmem:[%s654_s1 + $0x2b] sm:$0x2] %vm7_vm0, %v101_v44  }
  0x94   :  { %v109_v45 = vpop.permute.xlu0 %108  }
  0x95   :  { %v117_v46 = vpop.permute.xlu1 %116   ;;  %284 = vst.msk [vmem:[%s654_s1 + $0xd] sm:$0x1] %vm7_vm0, %v109_v45   ;;  %285 = vst.msk [vmem:[%s654_s1 + $0x2c] sm:$0x2] %vm7_vm0, %v109_v45  }
  0x96   :  { %286 = vst.msk [vmem:[%s654_s1 + $0xe] sm:$0x1] %vm7_vm0, %v117_v46   ;;  %287 = vst.msk [vmem:[%s654_s1 + $0x2d] sm:$0x2] %vm7_vm0, %v117_v46  }
  0x98   :  { %v125_v47 = vpop.permute.xlu0 %124  }
  0x99   :  { %v133_v48 = vpop.permute.xlu1 %132   ;;  %288 = vst.msk [vmem:[%s654_s1 + $0xf] sm:$0x1] %vm7_vm0, %v125_v47   ;;  %289 = vst.msk [vmem:[%s654_s1 + $0x2e] sm:$0x2] %vm7_vm0, %v125_v47  }
  0x9a   :  { %290 = vst.msk [vmem:[%s654_s1 + $0x10] sm:$0x1] %vm7_vm0, %v133_v48   ;;  %291 = vst.msk [vmem:[%s654_s1 + $0x2f] sm:$0x2] %vm7_vm0, %v133_v48  }
  0x9c   :  { %v141_v49 = vpop.permute.xlu0 %140  }
  0x9d   :  { %v149_v50 = vpop.permute.xlu1 %148   ;;  %292 = vst.msk [vmem:[%s654_s1 + $0x11] sm:$0x1] %vm7_vm0, %v141_v49   ;;  %293 = vst.msk [vmem:[%s654_s1 + $0x30] sm:$0x2] %vm7_vm0, %v141_v49  }
  0x9e   :  { %294 = vst.msk [vmem:[%s654_s1 + $0x12] sm:$0x1] %vm7_vm0, %v149_v50   ;;  %295 = vst.msk [vmem:[%s654_s1 + $0x31] sm:$0x2] %vm7_vm0, %v149_v50  }
  0xa0   :  { %v157_v51 = vpop.permute.xlu0 %156  }
  0xa1   :  { %v165_v52 = vpop.permute.xlu1 %164   ;;  %296 = vst.msk [vmem:[%s654_s1 + $0x13] sm:$0x1] %vm7_vm0, %v157_v51   ;;  %297 = vst.msk [vmem:[%s654_s1 + $0x32] sm:$0x2] %vm7_vm0, %v157_v51  }
  0xa2   :  { %298 = vst.msk [vmem:[%s654_s1 + $0x14] sm:$0x1] %vm7_vm0, %v165_v52   ;;  %299 = vst.msk [vmem:[%s654_s1 + $0x33] sm:$0x2] %vm7_vm0, %v165_v52  }
  0xa4   :  { %v173_v53 = vpop.permute.xlu0 %172  }
  0xa5   :  { %v181_v54 = vpop.permute.xlu1 %180   ;;  %300 = vst.msk [vmem:[%s654_s1 + $0x15] sm:$0x1] %vm7_vm0, %v173_v53   ;;  %301 = vst.msk [vmem:[%s654_s1 + $0x34] sm:$0x2] %vm7_vm0, %v173_v53  }
  0xa6   :  { %302 = vst.msk [vmem:[%s654_s1 + $0x16] sm:$0x1] %vm7_vm0, %v181_v54   ;;  %303 = vst.msk [vmem:[%s654_s1 + $0x35] sm:$0x2] %vm7_vm0, %v181_v54  }
  0xa8   :  { %v189_v55 = vpop.permute.xlu0 %188  }
  0xa9   :  { %v197_v56 = vpop.permute.xlu1 %196   ;;  %304 = vst.msk [vmem:[%s654_s1 + $0x17] sm:$0x1] %vm7_vm0, %v189_v55   ;;  %305 = vst.msk [vmem:[%s654_s1 + $0x36] sm:$0x2] %vm7_vm0, %v189_v55  }
  0xaa   :  { %306 = vst.msk [vmem:[%s654_s1 + $0x18] sm:$0x1] %vm7_vm0, %v197_v56   ;;  %307 = vst.msk [vmem:[%s654_s1 + $0x37] sm:$0x2] %vm7_vm0, %v197_v56  }
  0xac   :  { %v205_v57 = vpop.permute.xlu0 %204  }
  0xad   :  { %v213_v58 = vpop.permute.xlu1 %212   ;;  %308 = vst.msk [vmem:[%s654_s1 + $0x19] sm:$0x1] %vm7_vm0, %v205_v57   ;;  %309 = vst.msk [vmem:[%s654_s1 + $0x38] sm:$0x2] %vm7_vm0, %v205_v57  }
  0xae   :  { %310 = vst.msk [vmem:[%s654_s1 + $0x1a] sm:$0x1] %vm7_vm0, %v213_v58   ;;  %311 = vst.msk [vmem:[%s654_s1 + $0x39] sm:$0x2] %vm7_vm0, %v213_v58  }
  0xb0   :  { %v221_v59 = vpop.permute.xlu0 %220  }
  0xb1   :  { %v229_v60 = vpop.permute.xlu1 %228   ;;  %312 = vst.msk [vmem:[%s654_s1 + $0x1b] sm:$0x1] %vm7_vm0, %v221_v59   ;;  %313 = vst.msk [vmem:[%s654_s1 + $0x3a] sm:$0x2] %vm7_vm0, %v221_v59  }
  0xb2   :  { %314 = vst.msk [vmem:[%s654_s1 + $0x1c] sm:$0x1] %vm7_vm0, %v229_v60   ;;  %315 = vst.msk [vmem:[%s654_s1 + $0x3b] sm:$0x2] %vm7_vm0, %v229_v60  }
  0xb4   :  { %v237_v61 = vpop.permute.xlu0 %236  }
  0xb5   :  { %v245_v62 = vpop.permute.xlu1 %244   ;;  %316 = vst.msk [vmem:[%s654_s1 + $0x1d] sm:$0x1] %vm7_vm0, %v237_v61   ;;  %317 = vst.msk [vmem:[%s654_s1 + $0x3c] sm:$0x2] %vm7_vm0, %v237_v61  }
  0xb6   :  { %318 = vst.msk [vmem:[%s654_s1 + $0x1e] sm:$0x1] %vm7_vm0, %v245_v62   ;;  %319 = vst.msk [vmem:[%s654_s1 + $0x3d] sm:$0x2] %vm7_vm0, %v245_v62  }
  0xb8   :  { %v253_v63 = vpop.permute.xlu0 %252  }
  0xb9   :  { %320 = vst.msk [vmem:[%s654_s1 + $0x1f] sm:$0x1] %vm7_vm0, %v253_v63   ;;  %321 = vst.msk [vmem:[%s654_s1 + $0x3e] sm:$0x2] %vm7_vm0, %v253_v63  }

// kernel: vae_resblock.3
= control target key start
LH: loop header
LB: loop body
LE: loop exit
PB: predicated region body
PF: predicated region fallthrough
CT: control target
= control target key end

     0   :  { %6 = vsyncpa [#allocation3], 0  ;;  %s835_s0 = inlined_call_operand.hbm [shape: f32[2,16,16,32], index: 0, kind: input, shape index: {}]   ;;  %s836_s1 = inlined_call_operand.vmem [shape: f32[2,2,32], index: 1, kind: output, shape index: {}]  }
   0x1   :  { %8 = vsyncpa [#allocation3 + $0x1], 0  ;;  %s613_s6 = smov 0   ;;  %s615_s7 = smov 0  }
   0x2   :  { %s617_s8 = smov 0   ;;  %s619_s9 = smov 0  }
   0x3   :  { %s621_s10 = smov 0   ;;  %s623_s11 = smov 0  }
   0x4 LB: > { %s448_s12 = sadd.s32 4294967295, %s598_s11   ;;  %s26_s13 = sadd.s32 1, %s594_s10  ;;  %s598_s11 = sphi %s623_s11, %s14_s11   ;;  %s594_s10 = sphi %s621_s10, %s844_s10   ;;  %s590_s9 = sphi %s619_s9, %s843_s9   ;;  %s586_s8 = sphi %s617_s8, %s842_s8   ;;  %s582_s7 = sphi %s615_s7, %s841_s7   ;;  %s578_s6 = sphi %s613_s6, %s840_s6  }
   0x5   : > { %p28_p0 = scmp.ge.s32.totalorder %s26_s13, 2  ;;  %s35_s14 = sadd.s32 1, %s586_s8 }
   0x6   : > { %p42_p1 = scmp.ne.s32.totalorder %s586_s8, %s582_s7  ;;  %p43_p2 = scmp.eq.s32.totalorder %s598_s11, 0 }
   0x7   : > { %s846_s13 = smov (%p28_p0, %s26_s13), 0  ;;  %p48_p4 = scmp.ne.s32.totalorder %s582_s7, %s578_s6 }
   0x8   : > { %p649_p3 = por %p43_p2, %p42_p1  ;;  %s30_s16 = ssub.s32 %s594_s10, %s846_s13 }
   0x9   : > { %p49_p5 = scmp.eq.s32.totalorder %s448_s12, 0  ;;  %p33_p6 = scmp.eq.s32.totalorder %s30_s16, 0 }
   0xa   : > { %p467_p8 = scmp.lt.s32.totalorder %s598_s11, 2  ;;  %s98_s19 = sand.u32 1, %s586_s8  }
   0xb   : > { %p656_p7 = por %p49_p5, %p48_p4  ;;  %s460_s20 = sshll.u32 %s594_s10, 12 }
   0xc   : > { %s662_s18 = scalar_select %p33_p6, %s586_s8, %s35_s14  }
   0xd   : > { %s452_s21 = sshll.u32 %s98_s19, 8  ;;  %s669_s24 = scalar_lea.hbm %s835_s0, %s460_s20 }
   0xe   : > { %s102_s25 = scalar_lea.vmem [#allocation2], %s452_s21  ;;  %p673_p9 = pnand %p467_p8, %p649_p3 }
   0xf   : > { %s112_s26 = sshll.u32 %s102_s25, 4  ;;  %s679_s28 = scalar_lea.sflag [#allocation3], %s98_s19  ;;  %s677_s26 = int_to_ptr.vmem [resolvable:$true] %s112_s26 }
  0x10   : > { %s518_s29 = scalar_lea.hbm %s669_s24, 4096  ;;  %p520_p11 = pneg %p673_p9 }
  0x11   : > { %p519_p10 = scmp.ne.s32.totalorder %s669_s24, %s518_s29  ;;  %s523_s3 = scalar_lea.hbm %s835_s0, 8192 }
  0x12   : > { %p524_p0 = scmp.lt.u32.totalorder %s669_s24, %s835_s0  ;;  %p525_p1 = scmp.lt.u32.totalorder %s523_s3, %s518_s29 }
  0x13   : > { %p521_p12 = pnand %p520_p11, %p519_p10  ;;  %p527_p3 = scmp.lt.u32.totalorder %s518_s29, %s669_s24 }
  0x14   : > { %p526_p2 = por %p525_p1, %p524_p0 }
  0x15   : > { %p522_p13 = pneg %p521_p12 }
  0x16   : > { %p528_p4 = por %p527_p3, %p526_p2 }
  0x18   : > { %p529_p5 = pnand %p528_p4, %p522_p13 }
  0x1a   : > { %532 = shalt.err (!%p529_p5)
}
  0x1b   : > { %s533_s6 = scalar_lea.vmem %s677_s26, 4096  ;;  %s600_s12 = smov [#allocation2]  }
  0x1c   : > { %p534_p6 = scmp.ne.s32.totalorder %s677_s26, %s533_s6  ;;  %s538_s14 = sshll.u32 %s600_s12, 4  ;;  %s539_s14 = int_to_ptr.vmem [resolvable:$false] %s538_s14 }
  0x1d   : > { %s540_s15 = scalar_lea.vmem %s539_s14, 8192  ;;  %p541_p12 = scmp.lt.s32.totalorder %s677_s26, %s539_s14 }
  0x1e   : > { %p536_p8 = pnand %p534_p6, %p520_p11  ;;  %p542_p0 = scmp.lt.s32.totalorder %s540_s15, %s533_s6 }
  0x20   : > { %p537_p10 = pneg %p536_p8  ;;  %p543_p1 = por %p542_p0, %p541_p12 }
  0x22   : > { %p544_p2 = pnand %p543_p1, %p537_p10 }
  0x24   : > { %547 = shalt.err (!%p544_p2)
}
  0x25   : > { %s601_s16 = smov 128   ;;  %s602_s19 = smov 8  }
  0x26   : > { %466 = dma.hbm_to_vmem [thread:$0]  (!%p673_p9), %s669_s24, 4096, %s677_s26, %s679_s28, %s601_s16, %s601_s16, %s602_s19  }
  0x27   : > { %p455_p11 = scmp.ge.s32.totalorder %s598_s11, 1  ;;  %p120_p13 = scmp.lt.s32.totalorder %s598_s11, 3 }
  0x29   : > { %p121_p3 = pnand %p455_p11, %p120_p13 }
  0x2a   : > { %s126_s20 = sand.u32 (!%p121_p3), 1, %s582_s7  }
  0x2b   : > { %124 = sbr.rel (%p121_p3) target bundleno = 134 (0x86), region = 24  ;;  %s456_s21 = sshll.u32 (!%p121_p3), %s126_s20, 8 }
  0x2c   : > { %s127_s22 = scalar_lea.sflag (!%p121_p3), [#allocation3], %s126_s20  ;;  %s710_s23 = scalar_lea.vmem (!%p121_p3), [#allocation2], %s456_s21 }
  0x32   : > { %573 = dma.done.wait (%p656_p7), %s127_s22, 4096  }
  0x33   : > { %575 = vsyncadd (%p656_p7), %s127_s22, 4294963200  ;;  %vm185_vm0 = vcmask 261120   ;;  %v153_v0 = vld [vmem:[%s710_s23] sm:$0xff]  ;;  %v154_v1 = vld [vmem:[%s710_s23 + $0x8] sm:$0xff]  ;;  %p149_p7 = scmp.lt.s32.totalorder %s590_s9, 1  ;;  %vm356_vm1 = vcmask 1040384  }
  0x34   : > { %v155_v2 = vld [vmem:[%s710_s23 + $0x10] sm:$0xff]  ;;  %v186_v3 = vsel %vm185_vm0, %v153_v0, 0.0  ;;  %v187_v4 = vsel %vm185_vm0, %v154_v1, 0.0  ;;  %v156_v6 = vld [vmem:[%s710_s23 + $0x18] sm:$0xff]  ;;  %v157_v9 = vld [vmem:[%s710_s23 + $0x20] sm:$0xff]  ;;  %v255_v27 = vmul.f32 %v153_v0, %v153_v0  ;;  %v256_v28 = vmul.f32 %v154_v1, %v154_v1 }
  0x35   : > { %v189_v5 = vsel %vm185_vm0, %v155_v2, 0.0  ;;  %v188_v7 = vadd.f32 %v187_v4, %v186_v3  ;;  %v191_v8 = vsel %vm185_vm0, %v156_v6, 0.0  ;;  %v193_v11 = vsel %vm185_vm0, %v157_v9, 0.0  ;;  %v158_v12 = vld [vmem:[%s710_s23 + $0x28] sm:$0xff]  ;;  %v159_v15 = vld [vmem:[%s710_s23 + $0x30] sm:$0xff]  ;;  %v160_v18 = vld [vmem:[%s710_s23 + $0x38] sm:$0xff] }
  0x36   : > { %v195_v14 = vsel %vm185_vm0, %v158_v12, 0.0  ;;  %v197_v17 = vsel %vm185_vm0, %v159_v15, 0.0  ;;  %v199_v20 = vsel %vm185_vm0, %v160_v18, 0.0  ;;  %v161_v21 = vld [vmem:[%s710_s23 + $0x40] sm:$0xff]  ;;  %v162_v24 = vld [vmem:[%s710_s23 + $0x48] sm:$0xff]  ;;  %v257_v29 = vmul.f32 %v155_v2, %v155_v2  ;;  %v163_v30 = vld [vmem:[%s710_s23 + $0x50] sm:$0xff] }
  0x37   : > { %v190_v10 = vadd.f32 %v189_v5, %v188_v7  ;;  %v201_v23 = vsel %vm185_vm0, %v161_v21, 0.0  ;;  %v203_v26 = vsel %vm185_vm0, %v162_v24, 0.0  ;;  %v164_v32 = vld [vmem:[%s710_s23 + $0x58] sm:$0xff]  ;;  %v205_v33 = vsel %vm185_vm0, %v163_v30, 0.0  ;;  %v165_v41 = vld [vmem:[%s710_s23 + $0x60] sm:$0xff]  ;;  %v166_v47 = vld [vmem:[%s710_s23 + $0x68] sm:$0xff] }
  0x38   : > { %v258_v34 = vmul.f32 %v156_v6, %v156_v6  ;;  %v207_v36 = vsel %vm185_vm0, %v164_v32, 0.0  ;;  %v259_v37 = vmul.f32 %v157_v9, %v157_v9  ;;  %v287_v38 = vsel %vm185_vm0, %v255_v27, 0.0  ;;  %v167_v53 = vld [vmem:[%s710_s23 + $0x70] sm:$0xff]  ;;  %v168_v59 = vld [vmem:[%s710_s23 + $0x78] sm:$0xff]  ;;  %v169_v1 = vld [vmem:[%s710_s23 + $0x80] sm:$0xff]  ;;  %s848_s9 = smov (!%p149_p7, %s590_s9), 1 }
  0x39   : > { %v192_v13 = vadd.f32 %v191_v8, %v190_v10  ;;  %v288_v39 = vsel %vm185_vm0, %v256_v28, 0.0  ;;  %v290_v40 = vsel %vm185_vm0, %v257_v29, 0.0  ;;  %v209_v44 = vsel %vm185_vm0, %v165_v41, 0.0  ;;  %v170_v7 = vld [vmem:[%s710_s23 + $0x88] sm:$0xff]  ;;  %s457_s17 = sshll.u32 %s848_s9, 1 }
  0x3a   : > { %v289_v43 = vadd.f32 %v288_v39, %v287_v38  ;;  %v260_v45 = vmul.f32 %v158_v12, %v158_v12  ;;  %v292_v46 = vsel %vm185_vm0, %v258_v34, 0.0  ;;  %v211_v50 = vsel %vm185_vm0, %v166_v47, 0.0  ;;  %s152_s26 = scalar_lea.vmem %s836_s1, %s457_s17 }
  0x3b   : > { %v194_v16 = vadd.f32 %v193_v11, %v192_v13  ;;  %v261_v51 = vmul.f32 %v159_v15, %v159_v15  ;;  %v294_v52 = vsel %vm185_vm0, %v259_v37, 0.0  ;;  %v213_v56 = vsel %vm185_vm0, %v167_v53, 0.0  ;;  %v171_v13 = vld [vmem:[%s710_s23 + $0x90] sm:$0xff] }
  0x3c   : > { %v291_v49 = vadd.f32 %v290_v40, %v289_v43  ;;  %v262_v57 = vmul.f32 %v160_v18, %v160_v18  ;;  %v296_v58 = vsel %vm185_vm0, %v260_v45, 0.0  ;;  %v215_v62 = vsel %vm185_vm0, %v168_v59, 0.0  ;;  %v175_v37 = vld [vmem:[%s710_s23 + $0xb0] sm:$0xff]  ;;  %v176_v43 = vld [vmem:[%s710_s23 + $0xb8] sm:$0xff] }
  0x3d   : > { %v196_v19 = vadd.f32 %v195_v14, %v194_v16  ;;  %v263_v63 = vmul.f32 %v161_v21, %v161_v21  ;;  %v298_v0 = vsel %vm185_vm0, %v261_v51, 0.0  ;;  %v217_v4 = vsel %vm185_vm0, %v169_v1, 0.0 }
  0x3e   : > { %v293_v55 = vadd.f32 %v292_v46, %v291_v49  ;;  %v264_v5 = vmul.f32 %v162_v24, %v162_v24  ;;  %v300_v6 = vsel %vm185_vm0, %v262_v57, 0.0  ;;  %v219_v10 = vsel %vm185_vm0, %v170_v7, 0.0  ;;  %v177_v49 = vld [vmem:[%s710_s23 + $0xc0] sm:$0xff] }
  0x3f   : > { %v198_v22 = vadd.f32 %v197_v17, %v196_v19  ;;  %v265_v11 = vmul.f32 %v163_v30, %v163_v30  ;;  %v302_v12 = vsel %vm185_vm0, %v263_v63, 0.0  ;;  %v221_v16 = vsel %vm185_vm0, %v171_v13, 0.0  ;;  %v172_v19 = vld [vmem:[%s710_s23 + $0x98] sm:$0xff] }
  0x40   : > { %v295_v61 = vadd.f32 %v294_v52, %v293_v55  ;;  %v266_v17 = vmul.f32 %v164_v32, %v164_v32  ;;  %v304_v18 = vsel %vm185_vm0, %v264_v5, 0.0  ;;  %v268_v29 = vmul.f32 %v166_v47, %v166_v47  ;;  %v178_v55 = vld [vmem:[%s710_s23 + $0xc8] sm:$0xff] }
  0x41   : > { %v200_v25 = vadd.f32 %v199_v20, %v198_v22  ;;  %v223_v22 = vsel %vm185_vm0, %v172_v19, 0.0  ;;  %v306_v24 = vsel %vm185_vm0, %v265_v11, 0.0  ;;  %v229_v40 = vsel %vm185_vm0, %v175_v37, 0.0 }
  0x42   : > { %v297_v3 = vadd.f32 %v296_v58, %v295_v61  ;;  %v308_v30 = vsel %vm185_vm0, %v266_v17, 0.0  ;;  %v231_v46 = vsel %vm185_vm0, %v176_v43, 0.0  ;;  %v271_v47 = vmul.f32 %v169_v1, %v169_v1  ;;  %v179_v61 = vld [vmem:[%s710_s23 + $0xd0] sm:$0xff] }
  0x43   : > { %v202_v31 = vadd.f32 %v201_v23, %v200_v25  ;;  %v267_v23 = vmul.f32 %v165_v41, %v165_v41  ;;  %v173_v25 = vld [vmem:[%s710_s23 + $0xa0] sm:$0xff]  ;;  %v270_v41 = vmul.f32 %v168_v59, %v168_v59  ;;  %v233_v52 = vsel %vm185_vm0, %v177_v49, 0.0 }
  0x44   : > { %v299_v9 = vadd.f32 %v298_v0, %v297_v3  ;;  %v225_v28 = vsel %vm185_vm0, %v173_v25, 0.0  ;;  %v235_v58 = vsel %vm185_vm0, %v178_v55, 0.0  ;;  %v273_v59 = vmul.f32 %v171_v13, %v171_v13  ;;  %v180_v3 = vld [vmem:[%s710_s23 + $0xd8] sm:$0xff] }
  0x45   : > { %v204_v35 = vadd.f32 %v203_v26, %v202_v31  ;;  %v174_v31 = vld [vmem:[%s710_s23 + $0xa8] sm:$0xff]  ;;  %v237_v0 = vsel %vm185_vm0, %v179_v61, 0.0  ;;  %v274_v1 = vmul.f32 %v172_v19, %v172_v19  ;;  %v277_v19 = vmul.f32 %v175_v37, %v175_v37 }
  0x46   : > { %v301_v15 = vadd.f32 %v300_v6, %v299_v9  ;;  %v227_v34 = vsel %vm185_vm0, %v174_v31, 0.0  ;;  %v239_v6 = vsel %vm185_vm0, %v180_v3, 0.0  ;;  %v181_v9 = vld [vmem:[%s710_s23 + $0xe0] sm:$0xff]  ;;  %v276_v13 = vmul.f32 %v174_v31, %v174_v31 }
  0x47   : > { %v206_v42 = vadd.f32 %v205_v33, %v204_v35  ;;  %v269_v35 = vmul.f32 %v167_v53, %v167_v53  ;;  %v272_v53 = vmul.f32 %v170_v7, %v170_v7  ;;  %v275_v7 = vmul.f32 %v173_v25, %v173_v25  ;;  %v183_v25 = vld [vmem:[%s710_s23 + $0xf0] sm:$0xff] }
  0x48   : > { %v303_v21 = vadd.f32 %v302_v12, %v301_v15  ;;  %v241_v12 = vsel %vm185_vm0, %v181_v9, 0.0  ;;  %v182_v15 = vld [vmem:[%s710_s23 + $0xe8] sm:$0xff]  ;;  %vm362_vm2 = vcmask 254976  }
  0x49   : > { %v208_v48 = vadd.f32 %v207_v36, %v206_v42  ;;  %v310_v36 = vsel %vm185_vm0, %v267_v23, 0.0  ;;  %v312_v42 = vsel %vm185_vm0, %v268_v29, 0.0  ;;  %v278_v23 = vmul.f32 %v176_v43, %v176_v43 }
  0x4a   : > { %v305_v27 = vadd.f32 %v304_v18, %v303_v21  ;;  %v243_v18 = vsel %vm185_vm0, %v182_v15, 0.0  ;;  %v279_v29 = vmul.f32 %v177_v49, %v177_v49 }
  0x4b   : > { %v210_v54 = vadd.f32 %v209_v44, %v208_v48  ;;  %v314_v48 = vsel %vm185_vm0, %v269_v35, 0.0 }
  0x4c   : > { %v307_v33 = vadd.f32 %v306_v24, %v305_v27  ;;  %v328_v24 = vsel %vm185_vm0, %v276_v13, 0.0 }
  0x4d   : > { %v212_v60 = vadd.f32 %v211_v50, %v210_v54  ;;  %v316_v54 = vsel %vm185_vm0, %v270_v41, 0.0  ;;  %v282_v41 = vmul.f32 %v180_v3, %v180_v3 }
  0x4e   : > { %v309_v39 = vadd.f32 %v308_v30, %v307_v33  ;;  %v330_v30 = vsel %vm185_vm0, %v277_v19, 0.0  ;;  %v332_v33 = vsel %vm185_vm0, %v278_v23, 0.0 }
  0x4f   : > { %v214_v2 = vadd.f32 %v213_v56, %v212_v60  ;;  %v318_v60 = vsel %vm185_vm0, %v271_v47, 0.0  ;;  %v340_v49 = vsel %vm185_vm0, %v282_v41, 0.0 }
  0x50   : > { %v311_v45 = vadd.f32 %v310_v36, %v309_v39  ;;  %v334_v39 = vsel %vm185_vm0, %v279_v29, 0.0 }
  0x51   : > { %v216_v8 = vadd.f32 %v215_v62, %v214_v2  ;;  %v320_v2 = vsel %vm185_vm0, %v272_v53, 0.0 }
  0x52   : > { %v313_v51 = vadd.f32 %v312_v42, %v311_v45  ;;  %v283_v45 = vmul.f32 %v181_v9, %v181_v9 }
  0x53   : > { %v218_v14 = vadd.f32 %v217_v4, %v216_v8  ;;  %v322_v8 = vsel %vm185_vm0, %v273_v59, 0.0 }
  0x54   : > { %v315_v57 = vadd.f32 %v314_v48, %v313_v51  ;;  %v284_v48 = vmul.f32 %v182_v15, %v182_v15  ;;  %v342_v53 = vsel %vm185_vm0, %v283_v45, 0.0 }
  0x55   : > { %v220_v20 = vadd.f32 %v219_v10, %v218_v14  ;;  %v324_v14 = vsel %vm185_vm0, %v274_v1, 0.0 }
  0x56   : > { %v317_v63 = vadd.f32 %v316_v54, %v315_v57 }
  0x57   : > { %v222_v26 = vadd.f32 %v221_v16, %v220_v20  ;;  %v326_v20 = vsel %vm185_vm0, %v275_v7, 0.0 }
  0x58   : > { %v319_v5 = vadd.f32 %v318_v60, %v317_v63 }
  0x59   : > { %v224_v32 = vadd.f32 %v223_v22, %v222_v26 }
  0x5a   : > { %v321_v11 = vadd.f32 %v320_v2, %v319_v5 }
  0x5b   : > { %v226_v38 = vadd.f32 %v225_v28, %v224_v32  ;;  %v245_v28 = vsel %vm185_vm0, %v183_v25, 0.0  ;;  %v280_v32 = vmul.f32 %v178_v55, %v178_v55 }
  0x5c   : > { %v323_v17 = vadd.f32 %v322_v8, %v321_v11 }
  0x5d   : > { %v228_v44 = vadd.f32 %v227_v34, %v226_v38  ;;  %v184_v34 = vld [vmem:[%s710_s23 + $0xf8] sm:$0xff]  ;;  %v281_v38 = vmul.f32 %v179_v61, %v179_v61  ;;  %v336_v42 = vsel %vm185_vm0, %v280_v32, 0.0 }
  0x5e   : > { %v325_v22 = vadd.f32 %v324_v14, %v323_v17  ;;  %v247_v37 = vsel %vm185_vm0, %v184_v34, 0.0  ;;  %v286_v55 = vmul.f32 %v184_v34, %v184_v34 }
  0x5f   : > { %v230_v50 = vadd.f32 %v229_v40, %v228_v44 }
  0x60   : > { %v327_v27 = vadd.f32 %v326_v20, %v325_v22  ;;  %v348_v61 = vsel %vm185_vm0, %v286_v55, 0.0 }
  0x61   : > { %v232_v56 = vadd.f32 %v231_v46, %v230_v50  ;;  %v338_v46 = vsel %vm185_vm0, %v281_v38, 0.0 }
  0x62   : > { %v329_v31 = vadd.f32 %v328_v24, %v327_v27 }
  0x63   : > { %v234_v62 = vadd.f32 %v233_v52, %v232_v56  ;;  %v285_v52 = vmul.f32 %v183_v25, %v183_v25  ;;  %v344_v56 = vsel %vm185_vm0, %v284_v48, 0.0 }
  0x64   : > { %v331_v36 = vadd.f32 %v330_v30, %v329_v31 }
  0x65   : > { %v236_v4 = vadd.f32 %v235_v58, %v234_v62  ;;  %v346_v59 = vsel %vm185_vm0, %v285_v52, 0.0 }
  0x66   : > { %v333_v40 = vadd.f32 %v332_v33, %v331_v36 }
  0x67   : > { %v238_v10 = vadd.f32 %v237_v0, %v236_v4 }
  0x68   : > { %v335_v44 = vadd.f32 %v334_v39, %v333_v40 }
  0x69   : > { %v240_v16 = vadd.f32 %v239_v6, %v238_v10 }
  0x6a   : > { %v337_v47 = vadd.f32 %v336_v42, %v335_v44 }
  0x6b   : > { %v242_v21 = vadd.f32 %v241_v12, %v240_v16 }
  0x6c   : > { %v339_v51 = vadd.f32 %v338_v46, %v337_v47 }
  0x6d   : > { %v244_v26 = vadd.f32 %v243_v18, %v242_v21 }
  0x6e   : > { %v341_v54 = vadd.f32 %v340_v49, %v339_v51 }
  0x6f   : > { %v246_v35 = vadd.f32 %v245_v28, %v244_v26 }
  0x70   : > { %v343_v58 = vadd.f32 %v342_v53, %v341_v54 }
  0x71   : > { %v248_v43 = vadd.f32 %v247_v37, %v246_v35 }
  0x72   : > { %v345_v60 = vadd.f32 %v344_v56, %v343_v58 }
  0x73   : > { %v249_v50 = vrot.slane %v248_v43, 4 }
  0x74   : > { %v347_v63 = vadd.f32 %v346_v59, %v345_v60 }
  0x75   : > { %v250_v57 = vadd.f32 %v249_v50, %v248_v43 }
  0x76   : > { %v349_v0 = vadd.f32 %v348_v61, %v347_v63 }
  0x77   : > { %v251_v62 = vrot.slane %v250_v57, 2 }
  0x78   : > { %v350_v2 = vrot.slane %v349_v0, 4 }
  0x79   : > { %v252_v1 = vadd.f32 %v251_v62, %v250_v57 }
  0x7a   : > { %v351_v3 = vadd.f32 %v350_v2, %v349_v0 }
  0x7b   : > { %v253_v4 = vrot.slane %v252_v1, 1 }
  0x7c   : > { %v352_v5 = vrot.slane %v351_v3, 2 }
  0x7d   : > { %v254_v7 = vadd.f32 %v253_v4, %v252_v1 }
  0x7e   : > { %v353_v6 = vadd.f32 %v352_v5, %v351_v3 }
  0x80   : > { %v354_v8 = vrot.slane %v353_v6, 1 }
  0x82   : > { %v355_v9 = vadd.f32 %v354_v8, %v353_v6 }
  0x84   : > { %v357_v10 = vsel %vm356_vm1, %v254_v7, %v355_v9 }
  0x85   : > { %363 = vst.msk [vmem:[%s152_s26] sm:$0x3] %vm362_vm2, %v357_v10 }
  0x86 PF: > { %s14_s11 = sadd.s32 1, %s598_s11   ;;  %s840_s6 = smov %s582_s7 }
  0x87   : > { %p11_p9 = scmp.ge.s32.totalorder %s14_s11, 4   ;;  %s841_s7 = smov %s586_s8 }
  0x88   : > { %s842_s8 = smov %s662_s18  ;;  %s843_s9 = smov %s594_s10 }
  0x89   : > { %s844_s10 = smov %s846_s13  ;;  %13 = sbr.rel (!%p11_p9) target bundleno = 4 (0x4), region = 72 }
  0x90   :  { %391 = vsyncpa [#allocation3], 1 }
  0x91   :  { %393 = vsyncpa [#allocation3 + $0x1], 1 }

// kernel: vae_resblock.4
= control target key start
LH: loop header
LB: loop body
LE: loop exit
PB: predicated region body
PF: predicated region fallthrough
CT: control target
= control target key end

     0   :  { %s3689_s26 = smov 0   ;;  %s3691_s2 = smov 0   ;;  %s4727_s0 = inlined_call_operand.vmem [shape: f32[2,16,16,32], index: 0, kind: input, shape index: {}, may-alias: {0,1,2}]   ;;  %s4728_s1 = inlined_call_operand.vmem [shape: f32[2,16,16,32], index: 1, kind: input, shape index: {}, may-alias: {0,1,2}]   ;;  %s4729_s2 = inlined_call_operand.vmem [shape: f32[2,16,16,32], index: 2, kind: input, shape index: {}, may-alias: {0,1,2}]   ;;  %s4730_s3 = inlined_call_operand.vmem [shape: f32[2,1,32], index: 3, kind: input, shape index: {}]   ;;  %s4731_s4 = inlined_call_operand.vmem [shape: f32[2,1,32], index: 4, kind: input, shape index: {}]   ;;  %s4732_s5 = inlined_call_operand.vmem [shape: bf16[3,96,64], index: 5, kind: input, shape index: {}]   ;;  %s4733_s6 = inlined_call_operand.vmem [shape: f32[1,64], index: 6, kind: input, shape index: {}]   ;;  %s4734_s7 = inlined_call_operand.vmem [shape: bf16[2,16,16,64], index: 7, kind: output, shape index: {0}]   ;;  %s4735_s8 = inlined_call_operand.vmem [shape: f32[2,2,64], index: 8, kind: output, shape index: {1}]  }
   0x1   :  { %s3693_s27 = smov 0  }
   0x2 LB: > { %s31_s28 = sadd.s32 1, %s3635_s2  ;;  %p3024_p0 = scmp.ge.s32.totalorder %s3639_s27, 1  ;;  %s3639_s27 = sphi %s3693_s27, %s19_s27   ;;  %s3635_s2 = sphi %s3691_s2, %s4741_s2   ;;  %s3631_s26 = sphi %s3689_s26, %s4740_s26  }
   0x3   : > { %p33_p1 = scmp.ge.s32.totalorder %s31_s28, 2  ;;  %p367_p2 = scmp.lt.s32.totalorder %s3639_s27, 3 }
   0x5   : > { %s4743_s28 = smov (%p33_p1, %s31_s28), 0  ;;  %p368_p3 = pnand %p3024_p0, %p367_p2 }
   0x6   : > { %p448_p4 = scmp.lt.s32.totalorder (!%p368_p3), %s3631_s26, 1  ;;  %s3641_s21 = smov (!%p368_p3), 32   ;;  %vm1063_vm0 = vcmask (!%p368_p3), 1047552   ;;  %vm1064_vm1 = vsmask.f32 (!%p368_p3), 7424  ;;  %vm1277_vm3 = vcmask (!%p368_p3), 785408  }
   0x7   : > { %371 = sbr.rel (%p368_p3) target bundleno = 565 (0x235), region = 48  ;;  %vm4014_vm2 = vmand (!%p368_p3), %vm1063_vm0, %vm1064_vm1  ;;  %vm996_vm4 = vcmask (!%p368_p3), 1040384   ;;  %vm997_vm5 = vsmask.f32 (!%p368_p3), 256  ;;  %vm1178_vm7 = vcmask (!%p368_p3), 261120   ;;  %vm1227_vm8 = vcmask (!%p368_p3), 523264  }
   0x8   : > { %vm4225_vm6 = vmand (!%p368_p3), %vm996_vm4, %vm997_vm5  ;;  %vm2616_vm9 = vcmask (!%p368_p3), 519168   ;;  %vm2824_vm10 = vcmask (!%p368_p3), 517120  }
   0xe   : > { %s4745_s26 = smov (!%p448_p4, %s3631_s26), 1 }
   0xf   : > { %s3197_s29 = sshll.u32 %s4745_s26, 8  ;;  %s494_s10 = scalar_lea.vmem %s4730_s3, %s4745_s26 }
  0x10   : > { %s3717_s13 = scalar_lea.vmem %s4727_s0, %s3197_s29  ;;  %s497_s16 = scalar_lea.vmem %s4731_s4, %s4745_s26  ;;  %v3723_v0 = vld [vmem:[%s494_s10] ss:$0 sm:$0xff] }
  0x11   : > { %v534_v1 = vld [vmem:[%s3717_s13 + $0xa0] sm:$0xff]  ;;  %v535_v2 = vld [vmem:[%s3717_s13 + $0xa8] sm:$0xff]  ;;  %v528_v6 = vld [vmem:[%s3717_s13 + $0x70] sm:$0xff]  ;;  %s3642_s10 = smov 64   ;;  %s3201_s17 = sshll.u32 %s4745_s26, 7 }
  0x12   : > { %v3727_v3 = vld [vmem:[%s497_s16] ss:$0 sm:$0xff]  ;;  %v578_v4 = vmul.f32 %v3723_v0, %v534_v1  ;;  %v579_v5 = vmul.f32 %v3723_v0, %v535_v2  ;;  %v529_v7 = vld [vmem:[%s3717_s13 + $0x78] sm:$0xff]  ;;  %v572_v9 = vmul.f32 %v3723_v0, %v528_v6  ;;  %v539_v11 = vld [vmem:[%s3717_s13 + $0xc8] sm:$0xff]  ;;  %s4535_s20 = scalar_lea.vmem %s4734_s7, %s3201_s17 }
  0x13   : > { %v538_v8 = vld [vmem:[%s3717_s13 + $0xc0] sm:$0xff]  ;;  %v573_v10 = vmul.f32 %v3723_v0, %v529_v7  ;;  %v531_v14 = vld [vmem:[%s3717_s13 + $0x88] sm:$0xff]  ;;  %v583_v17 = vmul.f32 %v3723_v0, %v539_v11  ;;  %v532_v23 = vld [vmem:[%s3717_s13 + $0x90] sm:$0xff] }
  0x14   : > { %v582_v12 = vmul.f32 %v3723_v0, %v538_v8  ;;  %v530_v13 = vld [vmem:[%s3717_s13 + $0x80] sm:$0xff]  ;;  %v3741_v15 = vadd.f32 %v3727_v3, %v578_v4  ;;  %v3744_v16 = vadd.f32 %v3727_v3, %v579_v5  ;;  %v3749_v19 = vadd.f32 %v3727_v3, %v572_v9  ;;  %v533_v28 = vld [vmem:[%s3717_s13 + $0x98] sm:$0xff]  ;;  %v516_v29 = vld [vmem:[%s3717_s13 + $0x10] sm:$0xff] }
  0x15   : > { %v574_v18 = vmul.f32 %v3723_v0, %v530_v13  ;;  %v3752_v20 = vadd.f32 %v3727_v3, %v573_v10  ;;  %v575_v22 = vmul.f32 %v3723_v0, %v531_v14  ;;  %v3762_v26 = vadd.f32 %v3727_v3, %v583_v17  ;;  %v517_v33 = vld [vmem:[%s3717_s13 + $0x18] sm:$0xff]  ;;  %v518_v34 = vld [vmem:[%s3717_s13 + $0x20] sm:$0xff]  ;;  %v519_v51 = vld [vmem:[%s3717_s13 + $0x28] sm:$0xff] }
  0x16   : > { %v3755_v21 = vadd.f32 %v3727_v3, %v582_v12  ;;  %v3056_v24 = vmul.f32 -1.442695, %v3741_v15  ;;  %v3057_v25 = vmul.f32 -1.442695, %v3744_v16  ;;  %v3050_v30 = vmul.f32 -1.442695, %v3749_v19 }
  0x17   : > { %v3765_v27 = vadd.f32 %v3727_v3, %v574_v18  ;;  %v3051_v31 = vmul.f32 -1.442695, %v3752_v20  ;;  %v3772_v32 = vadd.f32 %v3727_v3, %v575_v22  ;;  %v3061_v36 = vmul.f32 -1.442695, %v3762_v26  ;;  %v514_v54 = vld [vmem:[%s3717_s13] sm:$0xff]  ;;  %v515_v56 = vld [vmem:[%s3717_s13 + $0x8] sm:$0xff] }
  0x18   : > { %3489 = vpow2.f32 %v3056_v24  ;;  %v3060_v35 = vmul.f32 -1.442695, %v3755_v21  ;;  %v576_v37 = vmul.f32 %v3723_v0, %v532_v23  ;;  %v577_v39 = vmul.f32 %v3723_v0, %v533_v28  ;;  %v536_v62 = vld [vmem:[%s3717_s13 + $0xb0] sm:$0xff]  ;;  %v537_v4 = vld [vmem:[%s3717_s13 + $0xb8] sm:$0xff] }
  0x19   : > { %3491 = vpow2.f32 %v3057_v25  ;;  %v3052_v38 = vmul.f32 -1.442695, %v3765_v27  ;;  %v560_v40 = vmul.f32 %v3723_v0, %v516_v29  ;;  %v561_v42 = vmul.f32 %v3723_v0, %v517_v33  ;;  %v540_v8 = vld [vmem:[%s3717_s13 + $0xd0] sm:$0xff]  ;;  %v541_v18 = vld [vmem:[%s3717_s13 + $0xd8] sm:$0xff] }
  0x1a   : > { %3493 = vpow2.f32 %v3050_v30  ;;  %v3783_v41 = vadd.f32 %v3727_v3, %v576_v37  ;;  %v562_v43 = vmul.f32 %v3723_v0, %v518_v34  ;;  %v3053_v44 = vmul.f32 -1.442695, %v3772_v32  ;;  %v543_v37 = vld [vmem:[%s3717_s13 + $0xe8] sm:$0xff] }
  0x1b   : > { %3495 = vpow2.f32 %v3051_v31  ;;  %v3789_v45 = vadd.f32 %v3727_v3, %v577_v39  ;;  %v3792_v46 = vadd.f32 %v3727_v3, %v560_v40  ;;  %v3796_v48 = vadd.f32 %v3727_v3, %v561_v42  ;;  %v542_v31 = vld [vmem:[%s3717_s13 + $0xe0] sm:$0xff] }
  0x1c   : > { %3497 = vpow2.f32 %v3060_v35  ;;  %v3054_v47 = vmul.f32 -1.442695, %v3783_v41  ;;  %v3799_v49 = vadd.f32 %v3727_v3, %v562_v43  ;;  %v563_v57 = vmul.f32 %v3723_v0, %v519_v51 }
  0x1d   : > { %3499 = vpow2.f32 %v3061_v36  ;;  %v3055_v50 = vmul.f32 -1.442695, %v3789_v45  ;;  %v3038_v52 = vmul.f32 -1.442695, %v3792_v46  ;;  %v3039_v53 = vmul.f32 -1.442695, %v3796_v48 }
  0x1e   : > { %3501 = vpow2.f32 %v3052_v38  ;;  %v3040_v55 = vmul.f32 -1.442695, %v3799_v49  ;;  %v558_v61 = vmul.f32 %v3723_v0, %v514_v54  ;;  %v559_v2 = vmul.f32 %v3723_v0, %v515_v56  ;;  %v524_v38 = vld [vmem:[%s3717_s13 + $0x50] sm:$0xff] }
  0x1f   : > { %3503 = vpow2.f32 %v3053_v44  ;;  %v3814_v7 = vadd.f32 %v3727_v3, %v563_v57  ;;  %v580_v11 = vmul.f32 %v3723_v0, %v536_v62  ;;  %v581_v17 = vmul.f32 %v3723_v0, %v537_v4  ;;  %v525_v44 = vld [vmem:[%s3717_s13 + $0x58] sm:$0xff] }
  0x20   : > { %3505 = vpow2.f32 %v3054_v47  ;;  %v3819_v14 = vadd.f32 %v3727_v3, %v558_v61  ;;  %v3824_v24 = vadd.f32 %v3727_v3, %v559_v2  ;;  %v584_v25 = vmul.f32 %v3723_v0, %v540_v8  ;;  %v3471_v61 = vld [vmem:[%s4732_s5] sm:$0xff]   ;;  %v520_v2 = vld [vmem:[%s3717_s13 + $0x30] sm:$0xff]  ;;  %v521_v4 = vld [vmem:[%s3717_s13 + $0x38] sm:$0xff] }
  0x21   : > { %3507 = vpow2.f32 %v3055_v50  ;;  %v3041_v30 = vmul.f32 -1.442695, %v3814_v7  ;;  %v3830_v35 = vadd.f32 %v3727_v3, %v580_v11  ;;  %v585_v36 = vmul.f32 %v3723_v0, %v541_v18  ;;  %3432 = vmatprep.subr.bf16.mxu1 %v3471_v61  ;;  %3300 = vmatprep.subr.bf16.mxu0 %v3471_v61  ;;  %v544_v18 = vld [vmem:[%s3717_s13 + $0xf0] sm:$0xff] }
  0x22   : > { %v3490_v58 = vpop.eup %3489  ;;  %3509 = vpow2.f32 %v3038_v52  ;;  %v3036_v42 = vmul.f32 -1.442695, %v3819_v14  ;;  %v3837_v43 = vadd.f32 %v3727_v3, %v581_v17  ;;  %v3037_v51 = vmul.f32 -1.442695, %v3824_v24  ;;  %3438 = vmatpush3.bf16.msra.mxu1 %v3471_v61  ;;  %3301 = vmatpush3.bf16.msra.mxu0 %v3471_v61 }
  0x23   : > { %v3492_v59 = vpop.eup %3491  ;;  %v744_v60 = vadd.f32 1.0, %v3490_v58  ;;  %3511 = vpow2.f32 %v3039_v53  ;;  %v3842_v52 = vadd.f32 %v3727_v3, %v584_v25  ;;  %v568_v56 = vmul.f32 %v3723_v0, %v524_v38 }
  0x24   : > { %v3494_v63 = vpop.eup %3493  ;;  %v745_v1 = vadd.f32 1.0, %v3492_v59  ;;  %3513 = vpow2.f32 %v3040_v55  ;;  %v586_v55 = vmul.f32 %v3723_v0, %v542_v31  ;;  %v587_v59 = vmul.f32 %v3723_v0, %v543_v37 }
  0x25   : > { %v3496_v5 = vpop.eup %3495  ;;  %3515 = vrcp.f32 %v744_v60  ;;  %v738_v6 = vadd.f32 1.0, %v3494_v63  ;;  %v569_v60 = vmul.f32 %v3723_v0, %v525_v44  ;;  %v3058_v63 = vmul.f32 -1.442695, %v3830_v35 }
  0x26   : > { %v3498_v9 = vpop.eup %3497  ;;  %3517 = vrcp.f32 %v745_v1  ;;  %v739_v10 = vadd.f32 1.0, %v3496_v5  ;;  %v3059_v1 = vmul.f32 -1.442695, %v3837_v43  ;;  %v3856_v5 = vadd.f32 %v3727_v3, %v568_v56 }
  0x27   : > { %v3500_v12 = vpop.eup %3499  ;;  %3519 = vrcp.f32 %v738_v6  ;;  %v748_v13 = vadd.f32 1.0, %v3498_v9  ;;  %v3860_v9 = vadd.f32 %v3727_v3, %v585_v36  ;;  %v3868_v17 = vadd.f32 %v3727_v3, %v586_v55 }
  0x28   : > { %v3502_v22 = vpop.eup %3501  ;;  %3521 = vrcp.f32 %v739_v10  ;;  %v749_v23 = vadd.f32 1.0, %v3500_v12  ;;  %v3863_v10 = vadd.f32 %v3727_v3, %v569_v60  ;;  %v3874_v25 = vadd.f32 %v3727_v3, %v587_v59 }
  0x29   : > { %v3504_v28 = vpop.eup %3503  ;;  %3523 = vrcp.f32 %v748_v13  ;;  %v740_v29 = vadd.f32 1.0, %v3502_v22  ;;  %v3062_v13 = vmul.f32 -1.442695, %v3842_v52 }
  0x2a   : > { %v3506_v33 = vpop.eup %3505  ;;  %3525 = vrcp.f32 %v749_v23  ;;  %v741_v34 = vadd.f32 1.0, %v3504_v28  ;;  %v564_v28 = vmul.f32 %v3723_v0, %v520_v2 }
  0x2b   : > { %v3508_v39 = vpop.eup %3507  ;;  %3527 = vrcp.f32 %v740_v29  ;;  %v742_v40 = vadd.f32 1.0, %v3506_v33  ;;  %v523_v29 = vld [vmem:[%s3717_s13 + $0x48] sm:$0xff] }
  0x2c   : > { %v3510_v47 = vpop.eup %3509  ;;  %3529 = vrcp.f32 %v741_v34  ;;  %v743_v50 = vadd.f32 1.0, %v3508_v39  ;;  %v3888_v39 = vmul.f32 %v3723_v0, %v544_v18 }
  0x2d   : > { %v3512_v53 = vpop.eup %3511  ;;  %3531 = vrcp.f32 %v742_v40  ;;  %v726_v54 = vadd.f32 1.0, %v3510_v47 }
  0x2e   : > { %v3514_v57 = vpop.eup %3513  ;;  %3533 = vrcp.f32 %v743_v50  ;;  %v727_v58 = vadd.f32 1.0, %v3512_v53  ;;  %v3063_v50 = vmul.f32 -1.442695, %v3860_v9 }
  0x2f   : > { %v3516_v62 = vpop.eup %3515  ;;  %3535 = vrcp.f32 %v726_v54  ;;  %v728_v36 = vadd.f32 1.0, %v3514_v57 }
  0x30   : > { %v3518_v6 = vpop.eup %3517  ;;  %v840_v8 = vmul.f32 %v3516_v62, %v3741_v15  ;;  %3537 = vrcp.f32 %v727_v58  ;;  %v522_v15 = vld [vmem:[%s3717_s13 + $0x40] sm:$0xff]  ;;  %v3064_v58 = vmul.f32 -1.442695, %v3868_v17  ;;  %v3065_v62 = vmul.f32 -1.442695, %v3874_v25 }
  0x31   : > { %v3520_v11 = vpop.eup %3519  ;;  %v841_v12 = vmul.f32 %v3518_v6, %v3744_v16  ;;  %3539 = vpow2.f32 %v3041_v30  ;;  %v565_v16 = vmul.f32 %v3723_v0, %v521_v4  ;;  %v3472_v30 = vld [vmem:[%s4732_s5 + $0x8] sm:$0xff]   ;;  %v566_v38 = vmul.f32 %v3723_v0, %v522_v15 }
  0x32   : > { %v3522_v22 = vpop.eup %3521  ;;  %v834_v23 = vmul.f32 %v3520_v11, %v3749_v19  ;;  %3541 = vpow2.f32 %v3036_v42  ;;  %3433 = vmatprep.subr.bf16.mxu1 %v3472_v30  ;;  %3302 = vmatprep.subr.bf16.mxu0 %v3472_v30  ;;  %v527_v4 = vld [vmem:[%s3717_s13 + $0x68] sm:$0xff] }
  0x33   : > { %v3524_v31 = vpop.eup %3523  ;;  %v3882_v33 = vpack.c.bf16 %v841_v12, %v840_v8  ;;  %v835_v34 = vmul.f32 %v3522_v22, %v3752_v20  ;;  %3543 = vpow2.f32 %v3037_v51  ;;  %3439 = vmatpush3.bf16.msra.mxu1 %v3472_v30  ;;  %v3899_v51 = vadd.f32 %v3727_v3, %v564_v28  ;;  %3303 = vmatpush3.bf16.msra.mxu0 %v3472_v30 }
  0x34   : > { %v3526_v19 = vpop.eup %3525  ;;  %v844_v37 = vmul.f32 %v3524_v31, %v3755_v21  ;;  %3545 = vpow2.f32 %v3058_v63  ;;  %v567_v21 = vmul.f32 %v3723_v0, %v523_v29  ;;  %v3907_v55 = vadd.f32 %v3727_v3, %v565_v16 }
  0x35   : > { %v3528_v40 = vpop.eup %3527  ;;  %1118 = vrot.lane.b32.xlu1 %v3882_v33, %s3641_s21  ;;  %v3892_v44 = vpack.c.bf16 %v835_v34, %v834_v23  ;;  %v845_v20 = vmul.f32 %v3526_v19, %v3762_v26  ;;  %3547 = vpow2.f32 %v3059_v1  ;;  %v3913_v59 = vadd.f32 %v3727_v3, %v566_v38 }
  0x36   : > { %v3530_v42 = vpop.eup %3529  ;;  %v836_v47 = vmul.f32 %v3528_v40, %v3765_v27  ;;  %3549 = vrcp.f32 %v728_v36  ;;  %v526_v27 = vld [vmem:[%s3717_s13 + $0x60] sm:$0xff]  ;;  %v3922_v63 = vadd.f32 %v3727_v3, %v567_v21  ;;  %v3042_v2 = vmul.f32 -1.442695, %v3899_v51 }
  0x37   : > { %v3532_v53 = vpop.eup %3531  ;;  %1112 = vrot.lane.b32.xlu0 %v3892_v44, %s3641_s21  ;;  %v3903_v26 = vpack.c.bf16 %v845_v20, %v844_v37  ;;  %v837_v54 = vmul.f32 %v3530_v42, %v3772_v32  ;;  %3551 = vpow2.f32 %v3062_v13  ;;  %v570_v6 = vmul.f32 %v3723_v0, %v526_v27 }
  0x38   : > { %v3534_v56 = vpop.eup %3533  ;;  %v838_v57 = vmul.f32 %v3532_v53, %v3783_v41  ;;  %3553 = vpow2.f32 %v3063_v50  ;;  %v942_v12 = vshll.u32 %v3882_v33, 16  ;;  %v3043_v13 = vmul.f32 -1.442695, %v3907_v55 }
  0x39   : > { %v3536_v60 = vpop.eup %3535  ;;  %1122 = vrot.lane.b32.xlu1 %v3903_v26, %s3641_s21  ;;  %v3917_v32 = vpack.c.bf16 %v837_v54, %v836_v47  ;;  %v839_v61 = vmul.f32 %v3534_v56, %v3789_v45  ;;  %3555 = vpow2.f32 %v3064_v58  ;;  %v3937_v18 = vmul.f32 -1.442695, %v3913_v59 }
  0x3a   : > { %v3538_v41 = vpop.eup %3537  ;;  %v822_v1 = vmul.f32 %v3536_v60, %v3792_v46  ;;  %v921_v46 = vshll.u32 %v3892_v44, 16  ;;  %v3942_v28 = vmul.f32 -1.442695, %v3922_v63  ;;  %v3945_v16 = vmul.f32 -1.442695, %v3856_v5  ;;  %v3473_v60 = vld [vmem:[%s4732_s5 + $0x10] sm:$0xff]  }
  0x3b   : > { %v3540_v8 = vpop.eup %3539  ;;  %1114 = vrot.lane.b32.xlu0 %v3917_v32, %s3641_s21  ;;  %v3930_v11 = vpack.c.bf16 %v839_v61, %v838_v57  ;;  %v823_v45 = vmul.f32 %v3538_v41, %v3796_v48  ;;  %v571_v48 = vmul.f32 %v3723_v0, %v527_v4  ;;  %v3949_v31 = vmul.f32 -1.442695, %v3863_v10  ;;  %3434 = vmatprep.subr.bf16.mxu1 %v3473_v60 }
  0x3c   : > { %v729_v15 = vadd.f32 1.0, %v3540_v8  ;;  %v3542_v22 = vpop.eup %3541  ;;  %v3952_v34 = vadd.f32 %v3727_v3, %v570_v6  ;;  %v939_v37 = vshrl.u32 %v3882_v33, 16  ;;  %v1035_v38 = vrot.slane %v942_v12, 1  ;;  %3304 = vmatprep.subr.bf16.mxu0 %v3473_v60  ;;  %3440 = vmatpush3.bf16.msra.mxu1 %v3473_v60 }
  0x3d   : > { %v3939_v23 = vpack.c.bf16 %v823_v45, %v822_v1  ;;  %v3544_v29 = vpop.eup %3543  ;;  %v724_v30 = vadd.f32 1.0, %v3542_v22  ;;  %v918_v20 = vshrl.u32 %v3892_v44, 16  ;;  %v1029_v21 = vrot.slane %v921_v46, 1  ;;  %v545_v1 = vld [vmem:[%s3717_s13 + $0xf8] sm:$0xff]  ;;  %3305 = vmatpush3.bf16.msra.mxu0 %v3473_v60  ;;  %v3475_v44 = vld [vmem:[%s4732_s5 + $0x20] sm:$0xff]  }
  0x3e   : > { %3557 = vrcp.f32 %v729_v15  ;;  %v3546_v36 = vpop.eup %3545  ;;  %v725_v19 = vadd.f32 1.0, %v3544_v29  ;;  %v928_v53 = vshll.u32 %v3917_v32, 16  ;;  %v3966_v54 = vadd.f32 %v3727_v3, %v571_v48 }
  0x3f   : > { %1116 = vrot.lane.b32.xlu0 %v3930_v11, %s3641_s21  ;;  %1100 = vrot.lane.b32.xlu1 %v3939_v23, %s3641_s21  ;;  %3559 = vpow2.f32 %v3065_v62  ;;  %v3548_v40 = vpop.eup %3547  ;;  %v746_v42 = vadd.f32 1.0, %v3546_v36  ;;  %v920_v56 = vrot.slane %v918_v20, 7  ;;  %v941_v57 = vrot.slane %v939_v37, 7  ;;  %v3474_v36 = vld [vmem:[%s4732_s5 + $0x18] sm:$0xff]  }
  0x40   : > { %3561 = vrcp.f32 %v724_v30  ;;  %v3550_v47 = vpop.eup %3549  ;;  %v747_v50 = vadd.f32 1.0, %v3548_v40  ;;  %v3969_v58 = vmul.f32 -1.442695, %v3952_v34  ;;  %v3974_v62 = vor.u32 %v1035_v38, %v939_v37  ;;  %3435 = vmatprep.subr.bf16.mxu1 %v3474_v36  ;;  %3306 = vmatprep.subr.bf16.mxu0 %v3474_v36 }
  0x41   : > { %3563 = vrcp.f32 %v725_v19  ;;  %v3552_v27 = vpop.eup %3551  ;;  %v953_v41 = vshrl.u32 %v3903_v26, 16  ;;  %v824_v6 = vmul.f32 %v3550_v47, %v3799_v49  ;;  %v3979_v8 = vor.u32 %v1029_v21, %v918_v20  ;;  %3441 = vmatpush3.bf16.msra.mxu1 %v3474_v36  ;;  %3307 = vmatpush3.bf16.msra.mxu0 %v3474_v36 }
  0x42   : > { %3565 = vrcp.f32 %v746_v42  ;;  %v750_v61 = vadd.f32 1.0, %v3552_v27  ;;  %v3554_v4 = vpop.eup %3553  ;;  %v925_v45 = vshrl.u32 %v3917_v32, 16  ;;  %v1031_v15 = vrot.slane %v928_v53, 1  ;;  %3436 = vmatprep.subr.bf16.mxu1 %v3475_v44  ;;  %3308 = vmatprep.subr.bf16.mxu0 %v3475_v44 }
  0x43   : > { %3567 = vrcp.f32 %v747_v50  ;;  %v751_v22 = vadd.f32 1.0, %v3554_v4  ;;  %v935_v48 = vshll.u32 %v3930_v11, 16  ;;  %v3556_v29 = vpop.eup %3555  ;;  %v955_v49 = vrot.slane %v953_v41, 7 }
  0x44   : > { %3569 = vpow2.f32 %v3042_v2  ;;  %v589_v30 = vmul.f32 %v3723_v0, %v545_v1  ;;  %v3990_v2 = vadd.f32 %v3727_v3, %v3888_v39  ;;  %v927_v19 = vrot.slane %v925_v45, 7 }
  0x45   : > { %3571 = vrcp.f32 %v750_v61  ;;  %v752_v37 = vadd.f32 1.0, %v3556_v29  ;;  %v3997_v38 = vor.u32 %v942_v12, %v941_v57  ;;  %v956_v0 = vshll.u32 %v3903_v26, 16  ;;  %3442 = vmatpush3.bf16.msra.mxu1 %v3475_v44  ;;  %3309 = vmatpush3.bf16.msra.mxu0 %v3475_v44 }
  0x46   : > { %3573 = vpow2.f32 %v3043_v13  ;;  %v932_v13 = vshrl.u32 %v3930_v11, 16  ;;  %v4003_v39 = vadd.f32 %v3727_v3, %v589_v30  ;;  %v4006_v42 = vor.u32 %v1031_v15, %v925_v45  ;;  %v3476_v45 = vld [vmem:[%s4732_s5 + $0x28] sm:$0xff]  }
  0x47   : > { %3575 = vrcp.f32 %v751_v22  ;;  %v4010_v33 = vor.u32 %v921_v46, %v920_v56  ;;  %v4021_v47 = vor.u32 %v956_v0, %v955_v49  ;;  %v3049_v56 = vmul.f32 -1.442695, %v3966_v54  ;;  %3437 = vmatprep.subr.bf16.mxu1 %v3476_v45  ;;  %3310 = vmatprep.subr.bf16.mxu0 %v3476_v45 }
  0x48   : > { %v3558_v40 = vpop.eup %3557  ;;  %3577 = vpow2.f32 %v3937_v18  ;;  %v4037_v61 = vor.u32 %v928_v53, %v927_v19  ;;  %v879_v49 = vshll.u32 %v3939_v23, 16  ;;  %v4067_v36 = vrot.slane %v956_v0, 1 }
  0x49   : > { %v3560_v20 = vpop.eup %3559  ;;  %v825_v21 = vmul.f32 %v3558_v40, %v3814_v7  ;;  %3579 = vrcp.f32 %v752_v37  ;;  %v1033_v7 = vrot.slane %v935_v48, 1  ;;  %3443 = vmatpush3.bf16.msra.mxu1 %v3476_v45  ;;  %3311 = vmatpush3.bf16.msra.mxu0 %v3476_v45 }
  0x4a   : > { %v3562_v12 = vpop.eup %3561  ;;  %v753_v18 = vadd.f32 1.0, %v3560_v20  ;;  %3581 = vpow2.f32 %v3942_v28  ;;  %v1076_v28 = vsel %vm4014_vm2, %v3974_v62, 0  ;;  %v4157_v62 = vld [vmem:[%s4732_s5 + $0x60] sm:$0xff]  }
  0x4b   : > { %v3564_v46 = vpop.eup %3563  ;;  %v4026_v50 = vpack.c.bf16 %v825_v21, %v824_v6  ;;  %v820_v27 = vmul.f32 %v3562_v12, %v3819_v14  ;;  %3583 = vpow2.f32 %v3945_v16  ;;  %v1073_v14 = vsel %vm4014_vm2, %v3979_v8, 0  ;;  %3388 = vmatprep.subr.bf16.mxu0 %v4157_v62 }
  0x4c   : > { %v3566_v57 = vpop.eup %3565  ;;  %v821_v60 = vmul.f32 %v3564_v46, %v3824_v24  ;;  %3585 = vrcp.f32 %v753_v18  ;;  %v934_v16 = vrot.slane %v932_v13, 7  ;;  %v4049_v6 = vor.u32 %v1033_v7, %v932_v13  ;;  %v4094_v46 = vld [vmem:[%s4732_s5 + $0x30] sm:$0xff]  }
  0x4d   : > { %v3568_v1 = vpop.eup %3567  ;;  %1102 = vrot.lane.b32.xlu1 %v4026_v50, %s3641_s21  ;;  %v842_v24 = vmul.f32 %v3566_v57, %v3830_v35  ;;  %3587 = vpow2.f32 %v3949_v31  ;;  %v1074_v35 = vsel %vm4014_vm2, %v4006_v42, 0  ;;  %v876_v31 = vshrl.u32 %v3939_v23, 16  ;;  %3344 = vmatprep.subr.bf16.mxu1 %v4094_v46 }
  0x4e   : > { %v3570_v4 = vpop.eup %3569  ;;  %v4046_v32 = vpack.c.bf16 %v821_v60, %v820_v27  ;;  %v843_v53 = vmul.f32 %v3568_v1, %v3837_v43  ;;  %3589 = vpow2.f32 %v3969_v58  ;;  %v4071_v37 = vor.u32 %v935_v48, %v934_v16 }
  0x4f   : > { %v3572_v8 = vpop.eup %3571  ;;  %v730_v15 = vadd.f32 1.0, %v3570_v4  ;;  %3591 = vpow2.f32 %v3049_v56  ;;  %v1075_v13 = vsel %vm4014_vm2, %v4049_v6, 0  ;;  %v878_v0 = vrot.slane %v876_v31, 7 }
  0x50   : > { %v3574_v22 = vpop.eup %3573  ;;  %1098 = vrot.lane.b32.xlu0 %v4046_v32, %s3641_s21  ;;  %v4061_v43 = vpack.c.bf16 %v843_v53, %v842_v24  ;;  %v846_v58 = vmul.f32 %v3572_v8, %v3842_v52  ;;  %v872_v29 = vshll.u32 %v4046_v32, 16  ;;  %v869_v42 = vshrl.u32 %v4046_v32, 16 }
  0x51   : > { %v3576_v30 = vpop.eup %3575  ;;  %1160 = vrot.lane.b32.xlu1 %v1073_v14, %s3642_s10  ;;  %v731_v19 = vadd.f32 1.0, %v3574_v22  ;;  %3593 = vrcp.f32 %v730_v15  ;;  %v883_v11 = vshrl.u32 %v4026_v50, 16  ;;  %v3066_v60 = vmul.f32 -1.442695, %v3990_v2 }
  0x52   : > { %v3578_v40 = vpop.eup %3577  ;;  %v847_v52 = vmul.f32 %v3576_v30, %v3860_v9  ;;  %v949_v20 = vshll.u32 %v4061_v43, 16  ;;  %v946_v18 = vshrl.u32 %v4061_v43, 16  ;;  %v1015_v44 = vrot.slane %v872_v29, 1 }
  0x53   : > { %v3580_v21 = vpop.eup %3579  ;;  %3595 = vrcp.f32 %v731_v19  ;;  %v732_v48 = vadd.f32 1.0, %v3578_v40  ;;  %v885_v14 = vrot.slane %v883_v11, 7  ;;  %v886_v24 = vshll.u32 %v4026_v50, 16 }
  0x54   : > { %v3582_v12 = vpop.eup %3581  ;;  %1120 = vrot.lane.b32.xlu0 %v4061_v43, %s3641_s21  ;;  %v4084_v9 = vpack.c.bf16 %v847_v52, %v846_v58  ;;  %v1037_v7 = vrot.slane %v949_v20, 1  ;;  %v848_v56 = vmul.f32 %v3580_v21, %v3868_v17  ;;  %v3067_v4 = vmul.f32 -1.442695, %v4003_v39 }
  0x55   : > { %v3584_v27 = vpop.eup %3583  ;;  %1162 = vrot.lane.b32.xlu1 %v1074_v35, %s3642_s10  ;;  %v733_v57 = vadd.f32 1.0, %v3582_v12  ;;  %3597 = vrcp.f32 %v732_v48  ;;  %v871_v45 = vrot.slane %v869_v42, 7  ;;  %v4107_v17 = vor.u32 %v879_v49, %v878_v0 }
  0x56   : > { %v3586_v1 = vpop.eup %3585  ;;  %v734_v16 = vadd.f32 1.0, %v3584_v27  ;;  %v948_v35 = vrot.slane %v946_v18, 7  ;;  %v1038_v15 = vor.u32 %v1037_v7, %v946_v18  ;;  %v1016_v22 = vor.u32 %v1015_v44, %v869_v42 }
  0x57   : > { %v3588_v53 = vpop.eup %3587  ;;  %v849_v6 = vmul.f32 %v3586_v1, %v3874_v25  ;;  %3599 = vrcp.f32 %v733_v57  ;;  %v960_v40 = vshrl.u32 %v4084_v9, 16  ;;  %v963_v52 = vshll.u32 %v4084_v9, 16 }
  0x58   : > { %v3590_v8 = vpop.eup %3589  ;;  %1124 = vrot.lane.b32.xlu0 %v4084_v9, %s3641_s21  ;;  %v735_v58 = vadd.f32 1.0, %v3588_v53  ;;  %3601 = vrcp.f32 %v734_v16  ;;  %v4115_v21 = vor.u32 %v886_v24, %v885_v14  ;;  %v4122_v18 = vor.u32 %v872_v29, %v871_v45 }
  0x59   : > { %v3592_v30 = vpop.eup %3591  ;;  %v4111_v19 = vpack.c.bf16 %v849_v6, %v848_v56  ;;  %v736_v25 = vadd.f32 1.0, %v3590_v8  ;;  %v962_v12 = vrot.slane %v960_v40, 7  ;;  %v1040_v9 = vor.u32 %v4067_v36, %v953_v41 }
  0x5a   : > { %3603 = vrcp.f32 %v735_v58  ;;  %v737_v0 = vadd.f32 1.0, %v3592_v30  ;;  %v1017_v7 = vrot.slane %v879_v49, 1  ;;  %v1077_v56 = vsel %vm4014_vm2, %v1038_v15, 0 }
  0x5b   : > { %v3594_v48 = vpop.eup %3593  ;;  %1126 = vrot.lane.b32.xlu1 %v4111_v19, %s3641_s21  ;;  %v967_v42 = vshrl.u32 %v4111_v19, 16  ;;  %3605 = vrcp.f32 %v736_v25  ;;  %v970_v29 = vshll.u32 %v4111_v19, 16  ;;  %v1066_v26 = vsel %vm4014_vm2, %v1016_v22, 0 }
  0x5c   : > { %1164 = vrot.lane.b32.xlu0 %v1075_v13, %s3642_s10  ;;  %v826_v44 = vmul.f32 %v3594_v48, %v3899_v51  ;;  %3607 = vrcp.f32 %v737_v0  ;;  %v1019_v36 = vrot.slane %v886_v24, 1  ;;  %v1041_v51 = vrot.slane %v963_v52, 1 }
  0x5d   : > { %v3596_v27 = vpop.eup %3595  ;;  %v969_v32 = vrot.slane %v967_v42, 7  ;;  %3609 = vpow2.f32 %v3066_v60  ;;  %v4146_v13 = vor.u32 %v949_v20, %v948_v35  ;;  %v4148_v57 = vor.u32 %v963_v52, %v962_v12 }
  0x5e   : > { %v827_v41 = vmul.f32 %v3596_v27, %v3907_v55  ;;  %3611 = vpow2.f32 %v3067_v4  ;;  %v1078_v43 = vsel %vm4014_vm2, %v1040_v9, 0  ;;  %v1018_v20 = vor.u32 %v1017_v7, %v876_v31 }
  0x5f   : > { %v3598_v49 = vpop.eup %3597  ;;  %1166 = vrot.lane.b32.xlu1 %v1076_v28, %s3642_s10  ;;  %v4150_v60 = vor.u32 %v970_v29, %v969_v32  ;;  %v3643_v14 = vmov 0   ;;  %v1042_v53 = vor.u32 %v1041_v51, %v960_v40  ;;  %v1043_v23 = vrot.slane %v970_v29, 1 }
  0x60   : > { %1168 = vrot.lane.b32.xlu0 %v1077_v56, %s3642_s10  ;;  %v855_v55 = vpack.c.bf16 %v827_v41, %v826_v44  ;;  %v828_v1 = vmul.f32 %v3598_v49, %v3913_v59  ;;  %1298 = vst.msk [vmem:[#allocation2] sm:$0xff] %vm1277_vm3, %v3643_v14  ;;  %1352 = vst.msk [vmem:[#allocation2 + $0x88] sm:$0xff] %vm1277_vm3, %v3643_v14  ;;  %v1020_v59 = vor.u32 %v1019_v36, %v883_v11 }
  0x61   : > { %v3600_v28 = vpop.eup %3599  ;;  %v1067_v50 = vsel %vm4014_vm2, %v1018_v20, 0  ;;  %v1044_v12 = vor.u32 %v1043_v23, %v967_v42 }
  0x62   : > { %v829_v24 = vmul.f32 %v3600_v28, %v3922_v63  ;;  %v890_v16 = vshrl.u32 %v855_v55, 16  ;;  %v3602_v4 = vpop.eup %3601  ;;  %v893_v63 = vshll.u32 %v855_v55, 16  ;;  %v1068_v22 = vsel %vm4014_vm2, %v1020_v59, 0 }
  0x63   : > { %1146 = vrot.lane.b32.xlu1 %v1066_v26, %s3642_s10  ;;  %v830_v8 = vmul.f32 %v3602_v4, %v3856_v5  ;;  %v1079_v5 = vsel %vm4014_vm2, %v1042_v53, 0  ;;  %v1080_v49 = vsel %vm4014_vm2, %v1044_v12, 0 }
  0x64   : > { %v3604_v6 = vpop.eup %3603  ;;  %1170 = vrot.lane.b32.xlu0 %v1078_v43, %s3642_s10  ;;  %v856_v31 = vpack.c.bf16 %v829_v24, %v828_v1  ;;  %v892_v45 = vrot.slane %v890_v16, 7  ;;  %v1021_v27 = vrot.slane %v893_v63, 1 }
  0x65   : > { %v3606_v35 = vpop.eup %3605  ;;  %v831_v11 = vmul.f32 %v3604_v6, %v3863_v10 }
  0x66   : > { %v3608_v15 = vpop.eup %3607  ;;  %v897_v58 = vshrl.u32 %v856_v31, 16  ;;  %v900_v30 = vshll.u32 %v856_v31, 16  ;;  %v832_v40 = vmul.f32 %v3606_v35, %v3952_v34  ;;  %v4182_v48 = vor.u32 %v893_v63, %v892_v45 }
  0x67   : > { %v3610_v25 = vpop.eup %3609  ;;  %1104 = vrot.lane.b32.xlu1 %v855_v55, %s3641_s21  ;;  %v857_v52 = vpack.c.bf16 %v831_v11, %v830_v8  ;;  %v833_v0 = vmul.f32 %v3608_v15, %v3966_v54  ;;  %v1404_v44 = vld [vmem:[#allocation2] sm:$0xff]  ;;  %v1022_v51 = vor.u32 %v1021_v27, %v890_v16 }
  0x68   : > { %v3612_v10 = vpop.eup %3611  ;;  %1148 = vrot.lane.b32.xlu0 %v1067_v50, %s3642_s10  ;;  %v899_v9 = vrot.slane %v897_v58, 7  ;;  %v1023_v7 = vrot.slane %v900_v30, 1  ;;  %v754_v34 = vadd.f32 1.0, %v3610_v25  ;;  %3312 = vmatprep.mubr.msk.bf16.mxu0 %vm1277_vm3, %v1404_v44 }
  0x69   : > { %v858_v56 = vpack.c.bf16 %v833_v0, %v832_v40  ;;  %v904_v32 = vshrl.u32 %v857_v52, 16  ;;  %v755_v29 = vadd.f32 1.0, %v3612_v10  ;;  %v907_v41 = vshll.u32 %v857_v52, 16 }
  0x6a   : > { %3613 = vrcp.f32 %v754_v34  ;;  %v4188_v54 = vor.u32 %v900_v30, %v899_v9  ;;  %v1024_v19 = vor.u32 %v1023_v7, %v897_v58  ;;  %v1069_v14 = vsel %vm4014_vm2, %v1022_v51, 0 }
  0x6b   : > { %1150 = vrot.lane.b32.xlu1 %v1068_v22, %s3642_s10  ;;  %v906_v26 = vrot.slane %v904_v32, 7  ;;  %v911_v36 = vshrl.u32 %v858_v56, 16  ;;  %v914_v42 = vshll.u32 %v858_v56, 16  ;;  %3615 = vrcp.f32 %v755_v29 }
  0x6c   : > { %1172 = vrot.lane.b32.xlu0 %v1079_v5, %s3642_s10  ;;  %v1070_v43 = vsel %vm4014_vm2, %v1024_v19, 0  ;;  %v1025_v59 = vrot.slane %v907_v41, 1  ;;  %v1006_v0 = vsel %vm4225_vm6, 0, %v4010_v33  ;;  %v1007_v7 = vsel %vm4225_vm6, 0, %v4037_v61 }
  0x6d   : > { %v913_v55 = vrot.slane %v911_v36, 7  ;;  %v4194_v1 = vor.u32 %v907_v41, %v906_v26  ;;  %v1027_v20 = vrot.slane %v914_v42, 1  ;;  %v1008_v29 = vsel %vm4225_vm6, 0, %v4071_v37 }
  0x6e   : > { %v1026_v4 = vor.u32 %v1025_v59, %v904_v32  ;;  %v1009_v41 = vsel %vm4225_vm6, 0, %v3997_v38  ;;  %v1011_v59 = vsel %vm4225_vm6, 0, %v4021_v47  ;;  %v1000_v47 = vsel %vm4225_vm6, 0, %v4107_v17 }
  0x6f   : > { %1106 = vrot.lane.b32.xlu1 %v856_v31, %s3641_s21  ;;  %v4197_v28 = vor.u32 %v914_v42, %v913_v55  ;;  %v1028_v16 = vor.u32 %v1027_v20, %v911_v36  ;;  %v1010_v42 = vsel %vm4225_vm6, 0, %v4146_v13  ;;  %v999_v13 = vsel %vm4225_vm6, 0, %v4122_v18  ;;  %v3480_v18 = vld [vmem:[%s4732_s5 + $0x40] sm:$0xff]  }
  0x70   : > { %1174 = vrot.lane.b32.xlu0 %v1080_v49, %s3642_s10  ;;  %v1071_v45 = vsel %vm4014_vm2, %v1026_v4, 0  ;;  %v3478_v49 = vld [vmem:[%s4732_s5 + $0x38] sm:$0xff]  }
  0x71   : > { %v1072_v31 = vsel %vm4014_vm2, %v1028_v16, 0 }
  0x73   : > { %1154 = vrot.lane.b32.xlu1 %v1070_v43, %s3642_s10 }
  0x74   : > { %v3614_v24 = vpop.eup %3613  ;;  %1152 = vrot.lane.b32.xlu0 %v1069_v14, %s3642_s10 }
  0x75   : > { %v850_v53 = vmul.f32 %v3614_v24, %v3990_v2  ;;  %v3616_v6 = vpop.eup %3615 }
  0x76   : > { %v851_v23 = vmul.f32 %v3616_v6, %v4003_v39 }
  0x77   : > { %1110 = vrot.lane.b32.xlu1 %v858_v56, %s3641_s21 }
  0x78   : > { %1108 = vrot.lane.b32.xlu0 %v857_v52, %s3641_s21  ;;  %v867_v8 = vpack.c.bf16 %v851_v23, %v850_v53  ;;  %v2101_v52 = vld [vmem:[#allocation2 + $0x88] sm:$0xff] }
  0x7a   : > { %v974_v35 = vshrl.u32 %v867_v8, 16  ;;  %v977_v50 = vshll.u32 %v867_v8, 16 }
  0x7b   : > { %1158 = vrot.lane.b32.xlu1 %v1072_v31, %s3642_s10 }
  0x7c   : > { %1156 = vrot.lane.b32.xlu0 %v1071_v45, %s3642_s10  ;;  %v1045_v2 = vrot.slane %v977_v50, 1  ;;  %v976_v11 = vrot.slane %v974_v35, 7  ;;  %v3481_v45 = vld [vmem:[%s4732_s5 + $0x48] sm:$0xff]  }
  0x7e   : > { %v1046_v63 = vor.u32 %v1045_v2, %v974_v35  ;;  %v4220_v15 = vor.u32 %v977_v50, %v976_v11  ;;  %v1001_v35 = vsel %vm4225_vm6, 0, %v4115_v21  ;;  %v3484_v21 = vld [vmem:[%s4732_s5 + $0x50] sm:$0xff]  }
  0x80   : > { %1128 = vrot.lane.b32.xlu0 %v867_v8, %s3641_s21  ;;  %v1081_v39 = vsel %vm4014_vm2, %v1046_v63, 0  ;;  %v1012_v63 = vsel %vm4225_vm6, 0, %v4148_v57  ;;  %s3033_s21 = sshll.u32 %s4745_s26, 1 }
  0x81   : > { %1176 = vrot.lane.b32.xlu1 %v1081_v39, %s3642_s10  ;;  %s512_s24 = scalar_lea.vmem %s4735_s8, %s3033_s21 }
  0xa7   : > { %v1119_v22 = vpop.permute.xlu1 %1118 }
  0xa8   : > { %v1211_v55 = vsel %vm1178_vm7, %v1009_v41, %v1119_v22 }
  0xa9   : > { %v1113_v58 = vpop.permute.xlu0 %1112 }
  0xaa   : > { %v1202_v12 = vsel %vm1178_vm7, %v1006_v0, %v1113_v58  ;;  %v3482_v58 = vld [vmem:[%s4732_s5 + $0x68] sm:$0xff]   ;;  %v1013_v0 = vsel %vm4225_vm6, 0, %v4150_v60  ;;  %v3483_v60 = vld [vmem:[%s4732_s5 + $0x70] sm:$0xff]  }
  0xab   : > { %v1123_v30 = vpop.permute.xlu1 %1122 }
  0xad   : > { %v1115_v40 = vpop.permute.xlu0 %1114 }
  0xae   : > { %v1205_v27 = vsel %vm1178_vm7, %v1007_v7, %v1115_v40 }
  0xb1   : > { %v4222_v25 = vpop.permute.xlu1 %1100  ;;  %v1117_v5 = vpop.permute.xlu0 %1116 }
  0xb2   : > { %v1208_v36 = vsel %vm1178_vm7, %v1008_v29, %v1117_v5  ;;  %v1184_v17 = vsel %vm1178_vm7, %v1000_v47, %v4222_v25 }
  0xbf   : > { %v4229_v3 = vpop.permute.xlu1 %1102 }
  0xc0   : > { %v1187_v57 = vsel %vm1178_vm7, %v1001_v35, %v4229_v3  ;;  %v3485_v3 = vld [vmem:[%s4732_s5 + $0x58] sm:$0xff]  }
  0xc2   : > { %v1099_v10 = vpop.permute.xlu0 %1098 }
  0xc3   : > { %v1161_v9 = vpop.permute.xlu1 %1160  ;;  %v1181_v16 = vsel %vm1178_vm7, %v999_v13, %v1099_v10 }
  0xc4   : > { %v1250_v34 = vsel %vm1227_vm8, %v1202_v12, %v1161_v9 }
  0xc5   : > { %1285 = vst.msk [vmem:[#allocation2 + $0x40] sm:$0xff] %vm1277_vm3, %v1250_v34  ;;  %v1003_v34 = vsel %vm4225_vm6, 0, %v4188_v54 }
  0xc6   : > { %v1121_v44 = vpop.permute.xlu0 %1120 }
  0xc7   : > { %v1163_v56 = vpop.permute.xlu1 %1162  ;;  %v1214_v43 = vsel %vm1178_vm7, %v1010_v42, %v1121_v44 }
  0xc8   : > { %v1253_v32 = vsel %vm1227_vm8, %v1205_v27, %v1163_v56 }
  0xc9   : > { %1286 = vst.msk [vmem:[#allocation2 + $0x48] sm:$0xff] %vm1277_vm3, %v1253_v32 }
  0xca   : > { %v1125_v33 = vpop.permute.xlu0 %1124 }
  0xcc   : > { %v4246_v26 = vld [vmem:[#allocation2 + $0x40] sm:$0xff] }
  0xcd   : > { %v4248_v61 = vpop.permute.xlu1 %1126  ;;  %3328 = vmatprep.mubr.msk.bf16.mxu1 %vm1277_vm3, %v4246_v26 }
  0xce   : > { %v1165_v19 = vpop.permute.xlu0 %1164  ;;  %v1223_v9 = vsel %vm1178_vm7, %v1013_v0, %v4248_v61 }
  0xcf   : > { %v1256_v37 = vsel %vm1227_vm8, %v1208_v36, %v1165_v19 }
  0xd0   : > { %1287 = vst.msk [vmem:[#allocation2 + $0x50] sm:$0xff] %vm1277_vm3, %v1256_v37  ;;  %v4264_v51 = vld [vmem:[#allocation2 + $0x48] sm:$0xff]  ;;  %v3487_v37 = vld [vmem:[%s4732_s5 + $0x80] sm:$0xff]  }
  0xd1   : > { %v1167_v38 = vpop.permute.xlu1 %1166  ;;  %3329 = vmatmul.mubr.msk.bf16.vlgmr.msra.gmra.mrb[0].mxu1 %vm1277_vm3, %v4264_v51 }
  0xd2   : > { %v1259_v20 = vsel %vm1227_vm8, %v1211_v55, %v1167_v38  ;;  %v1169_v14 = vpop.permute.xlu0 %1168  ;;  %3345 = vmatpush3.bf16.msra.mxu1 %v4094_v46  ;;  %v1217_v46 = vsel %vm1178_vm7, %v1011_v59, %v1123_v30  ;;  %v1220_v30 = vsel %vm1178_vm7, %v1012_v63, %v1125_v33  ;;  %v1005_v55 = vsel %vm4225_vm6, 0, %v4197_v28 }
  0xd3   : > { %1288 = vst.msk [vmem:[#allocation2 + $0x58] sm:$0xff] %vm1277_vm3, %v1259_v20  ;;  %v1262_v24 = vsel %vm1227_vm8, %v1214_v43, %v1169_v14  ;;  %3346 = vmatprep.subr.bf16.mxu1 %v3478_v49  ;;  %v1004_v38 = vsel %vm4225_vm6, 0, %v4194_v1  ;;  %v3488_v14 = vld [vmem:[%s4732_s5 + $0x88] sm:$0xff]  }
  0xd4   : > { %1289 = vst.msk [vmem:[#allocation2 + $0x60] sm:$0xff] %vm1277_vm3, %v1262_v24 }
  0xd5   : > { %v1147_v4 = vpop.permute.xlu1 %1146 }
  0xd6   : > { %v1171_v53 = vpop.permute.xlu0 %1170  ;;  %v1229_v6 = vsel %vm1227_vm8, %v1181_v16, %v1147_v4  ;;  %3347 = vmatpush3.bf16.msra.mxu1 %v3478_v49  ;;  %v1014_v4 = vsel %vm4225_vm6, 0, %v4220_v15 }
  0xd7   : > { %v1265_v23 = vsel %vm1227_vm8, %v1217_v46, %v1171_v53  ;;  %1278 = vst.msk [vmem:[#allocation2 + $0x8] sm:$0xff] %vm1277_vm3, %v1229_v6  ;;  %v4292_v31 = vld [vmem:[#allocation2 + $0x50] sm:$0xff]  ;;  %3348 = vmatprep.subr.bf16.mxu1 %v3480_v18 }
  0xd8   : > { %1290 = vst.msk [vmem:[#allocation2 + $0x68] sm:$0xff] %vm1277_vm3, %v1265_v23  ;;  %3332 = vmatprep.mubr.msk.bf16.mxu1 %vm1277_vm3, %v4292_v31 }
  0xd9   : > { %v1105_v8 = vpop.permute.xlu1 %1104 }
  0xda   : > { %v1149_v50 = vpop.permute.xlu0 %1148  ;;  %v4305_v2 = vld [vmem:[#allocation2 + $0x58] sm:$0xff]  ;;  %3349 = vmatpush3.bf16.msra.mxu1 %v3480_v18 }
  0xdb   : > { %v1232_v39 = vsel %vm1227_vm8, %v1184_v17, %v1149_v50  ;;  %3333 = vmatmul.mubr.msk.bf16.gmra.mrb[4].mxu1 %vm1277_vm3, %v4305_v2  ;;  %v4313_v11 = vld [vmem:[#allocation2 + $0x60] sm:$0xff]  ;;  %3350 = vmatprep.subr.bf16.mxu1 %v3481_v45 }
  0xdc   : > { %1279 = vst.msk [vmem:[#allocation2 + $0x10] sm:$0xff] %vm1277_vm3, %v1232_v39  ;;  %3336 = vmatprep.mubr.msk.bf16.mxu1 %vm1277_vm3, %v4313_v11 }
  0xdd   : > { %v1151_v22 = vpop.permute.xlu1 %1150 }
  0xde   : > { %v1173_v40 = vpop.permute.xlu0 %1172  ;;  %v1235_v25 = vsel %vm1227_vm8, %v1187_v57, %v1151_v22  ;;  %v1405_v5 = vld [vmem:[#allocation2 + $0x8] sm:$0xff]  ;;  %3351 = vmatpush3.bf16.msra.mxu1 %v3481_v45 }
  0xdf   : > { %v1268_v10 = vsel %vm1227_vm8, %v1220_v30, %v1173_v40  ;;  %1280 = vst.msk [vmem:[#allocation2 + $0x18] sm:$0xff] %vm1277_vm3, %v1235_v25  ;;  %3313 = vmatmul.mubr.msk.bf16.vlgmr.msra.gmra.mrb[0].mxu0 %vm1277_vm3, %v1405_v5  ;;  %3352 = vmatprep.subr.bf16.mxu1 %v3484_v21  ;;  %v4347_v44 = vld [vmem:[#allocation2 + $0x68] sm:$0xff] }
  0xe0   : > { %1291 = vst.msk [vmem:[#allocation2 + $0x70] sm:$0xff] %vm1277_vm3, %v1268_v10  ;;  %3389 = vmatpush3.bf16.msra.mxu0 %v4157_v62  ;;  %v1002_v62 = vsel %vm4225_vm6, 0, %v4182_v48  ;;  %v3486_v48 = vld [vmem:[%s4732_s5 + $0x78] sm:$0xff]  }
  0xe1   : > { %v1107_v12 = vpop.permute.xlu1 %1106  ;;  %3390 = vmatprep.subr.bf16.mxu0 %v3482_v58  ;;  %v1190_v33 = vsel %vm1178_vm7, %v1002_v62, %v1105_v8 }
  0xe2   : > { %v1175_v7 = vpop.permute.xlu0 %1174  ;;  %3353 = vmatpush3.bf16.msra.mxu1 %v3484_v21  ;;  %v1193_v54 = vsel %vm1178_vm7, %v1003_v34, %v1107_v12 }
  0xe3   : > { %v1271_v27 = vsel %vm1227_vm8, %v1223_v9, %v1175_v7  ;;  %v1406_v56 = vld [vmem:[#allocation2 + $0x10] sm:$0xff]  ;;  %3337 = vmatmul.mubr.msk.bf16.gmra.mrb[8].mxu1 %vm1277_vm3, %v4347_v44  ;;  %3354 = vmatprep.subr.bf16.mxu1 %v3485_v3 }
  0xe4   : > { %1292 = vst.msk [vmem:[#allocation2 + $0x78] sm:$0xff] %vm1277_vm3, %v1271_v27  ;;  %3316 = vmatprep.mubr.msk.bf16.mxu0 %vm1277_vm3, %v1406_v56  ;;  %3391 = vmatpush3.bf16.msra.mxu0 %v3482_v58 }
  0xe5   : > { %v1155_v32 = vpop.permute.xlu1 %1154  ;;  %3392 = vmatprep.subr.bf16.mxu0 %v3483_v60 }
  0xe6   : > { %v1153_v29 = vpop.permute.xlu0 %1152  ;;  %v1241_v61 = vsel %vm1227_vm8, %v1193_v54, %v1155_v32  ;;  %v1407_v41 = vld [vmem:[#allocation2 + $0x18] sm:$0xff]  ;;  %3355 = vmatpush3.bf16.msra.mxu1 %v3485_v3 }
  0xe7   : > { %v1238_v36 = vsel %vm1227_vm8, %v1190_v33, %v1153_v29  ;;  %1282 = vst.msk [vmem:[#allocation2 + $0x28] sm:$0xff] %vm1277_vm3, %v1241_v61  ;;  %3317 = vmatmul.mubr.msk.bf16.gmra.mrb[4].mxu0 %vm1277_vm3, %v1407_v41  ;;  %v4366_v19 = vld [vmem:[#allocation2 + $0x70] sm:$0xff] }
  0xe8   : > { %1281 = vst.msk [vmem:[#allocation2 + $0x20] sm:$0xff] %vm1277_vm3, %v1238_v36  ;;  %3340 = vmatprep.mubr.msk.bf16.mxu1 %vm1277_vm3, %v4366_v19  ;;  %3393 = vmatpush3.bf16.msra.mxu0 %v3483_v60 }
  0xe9   : > { %v1111_v42 = vpop.permute.xlu1 %1110  ;;  %3394 = vmatprep.subr.bf16.mxu0 %v3486_v48 }
  0xea   : > { %v1109_v49 = vpop.permute.xlu0 %1108  ;;  %v1199_v43 = vsel %vm1178_vm7, %v1005_v55, %v1111_v42 }
  0xeb   : > { %v1419_v13 = vld [vmem:[#allocation2 + $0x78] sm:$0xff]  ;;  %v1196_v28 = vsel %vm1178_vm7, %v1004_v38, %v1109_v49 }
  0xec   : > { %3341 = vmatmul.mubr.msk.bf16.gmra.mrb[12].mxu1 %vm1277_vm3, %v1419_v13  ;;  %3395 = vmatpush3.bf16.msra.mxu0 %v3486_v48 }
  0xed   : > { %3356 = vmatprep.mubr.msk.bf16.mxu1 %vm1277_vm3, %v1405_v5  ;;  %v1159_v20 = vpop.permute.xlu1 %1158  ;;  %3396 = vmatprep.subr.bf16.mxu0 %v3487_v37 }
  0xee   : > { %v1157_v59 = vpop.permute.xlu0 %1156  ;;  %v1247_v24 = vsel %vm1227_vm8, %v1199_v43, %v1159_v20  ;;  %v1409_v1 = vld [vmem:[#allocation2 + $0x28] sm:$0xff] }
  0xef   : > { %v1244_v18 = vsel %vm1227_vm8, %v1196_v28, %v1157_v59  ;;  %1284 = vst.msk [vmem:[#allocation2 + $0x38] sm:$0xff] %vm1277_vm3, %v1247_v24  ;;  %v1408_v16 = vld [vmem:[#allocation2 + $0x20] sm:$0xff] }
  0xf0   : > { %1283 = vst.msk [vmem:[#allocation2 + $0x30] sm:$0xff] %vm1277_vm3, %v1244_v18  ;;  %3320 = vmatprep.mubr.msk.bf16.mxu0 %vm1277_vm3, %v1408_v16  ;;  %3397 = vmatpush3.bf16.msra.mxu0 %v3487_v37 }
  0xf1   : > { %3321 = vmatmul.mubr.msk.bf16.gmra.mrb[8].mxu0 %vm1277_vm3, %v1409_v1  ;;  %3398 = vmatprep.subr.bf16.mxu0 %v3488_v14 }
  0xf2   : > { %v1129_v46 = vpop.permute.xlu0 %1128 }
  0xf3   : > { %v1226_v53 = vsel %vm1178_vm7, %v1014_v4, %v1129_v46  ;;  %v1177_v6 = vpop.permute.xlu1 %1176 }
  0xf4   : > { %3357 = vmatmul.mubr.msk.bf16.vlgmr.msra.gmra.mrb[16].mxu1 %vm1277_vm3, %v1406_v56  ;;  %3399 = vmatpush3.bf16.msra.mxu0 %v3488_v14  ;;  %v1274_v47 = vsel %vm1227_vm8, %v1226_v53, %v1177_v6 }
  0xf5   : > { %3360 = vmatprep.mubr.msk.bf16.mxu1 %vm1277_vm3, %v1407_v41  ;;  %1293 = vst.msk [vmem:[#allocation2 + $0x80] sm:$0xff] %vm1277_vm3, %v1274_v47 }
  0xf6   : > { %v1411_v23 = vld [vmem:[#allocation2 + $0x38] sm:$0xff] }
  0xf7   : > { %v1410_v45 = vld [vmem:[#allocation2 + $0x30] sm:$0xff] }
  0xf8   : > { %3324 = vmatprep.mubr.msk.bf16.mxu0 %vm1277_vm3, %v1410_v45 }
  0xf9   : > { %3325 = vmatmul.mubr.msk.bf16.gmra.mrb[12].mxu0 %vm1277_vm3, %v1411_v23 }
  0xfa   : > { %3400 = vmatprep.mubr.msk.bf16.mxu0 %vm1277_vm3, %v1406_v56 }
  0xfc   : > { %3361 = vmatmul.mubr.msk.bf16.gmra.mrb[20].mxu1 %vm1277_vm3, %v1408_v16  ;;  %v1730_v15 = vld [vmem:[#allocation2 + $0x80] sm:$0xff] }
  0xfd   : > { %3364 = vmatprep.mubr.msk.bf16.mxu1 %vm1277_vm3, %v1409_v1 }
 0x101   : > { %3401 = vmatmul.mubr.msk.bf16.vlgmr.msra.gmra.mrb[16].mxu0 %vm1277_vm3, %v1407_v41 }
 0x102   : > { %3404 = vmatprep.mubr.msk.bf16.mxu0 %vm1277_vm3, %v1408_v16 }
 0x104   : > { %3365 = vmatmul.mubr.msk.bf16.gmra.mrb[24].mxu1 %vm1277_vm3, %v1410_v45 }
 0x105   : > { %3368 = vmatprep.mubr.msk.bf16.mxu1 %vm1277_vm3, %v1411_v23 }
 0x109   : > { %3405 = vmatmul.mubr.msk.bf16.gmra.mrb[20].mxu0 %vm1277_vm3, %v1409_v1 }
 0x10a   : > { %3408 = vmatprep.mubr.msk.bf16.mxu0 %vm1277_vm3, %v1410_v45 }
 0x10c   : > { %3369 = vmatmul.mubr.msk.bf16.gmra.mrb[28].mxu1 %vm1277_vm3, %v4246_v26 }
 0x10d   : > { %3372 = vmatprep.mubr.msk.bf16.mxu1 %vm1277_vm3, %v4264_v51 }
 0x111   : > { %3409 = vmatmul.mubr.msk.bf16.gmra.mrb[24].mxu0 %vm1277_vm3, %v1411_v23 }
 0x112   : > { %3412 = vmatprep.mubr.msk.bf16.mxu0 %vm1277_vm3, %v4246_v26  ;;  %v4449_v26 = vld [vmem:[%s4733_s6] ss:$0 sm:$0xff] }
 0x114   : > { %3373 = vmatmul.mubr.msk.bf16.gmra.mrb[32].mxu1 %vm1277_vm3, %v4292_v31 }
 0x115   : > { %3376 = vmatprep.mubr.msk.bf16.mxu1 %vm1277_vm3, %v4305_v2 }
 0x119   : > { %3413 = vmatmul.mubr.msk.bf16.gmra.mrb[28].mxu0 %vm1277_vm3, %v4264_v51 }
 0x11a   : > { %3416 = vmatprep.mubr.msk.bf16.mxu0 %vm1277_vm3, %v4292_v31 }
 0x11c   : > { %3377 = vmatmul.mubr.msk.bf16.gmra.mrb[36].mxu1 %vm1277_vm3, %v4313_v11 }
 0x11d   : > { %3380 = vmatprep.mubr.msk.bf16.mxu1 %vm1277_vm3, %v4347_v44 }
 0x121   : > { %3417 = vmatmul.mubr.msk.bf16.gmra.mrb[32].mxu0 %vm1277_vm3, %v4305_v2 }
 0x122   : > { %3420 = vmatprep.mubr.msk.bf16.mxu0 %vm1277_vm3, %v4313_v11 }
 0x124   : > { %3381 = vmatmul.mubr.msk.bf16.gmra.mrb[40].mxu1 %vm1277_vm3, %v4366_v19 }
 0x125   : > { %3384 = vmatprep.mubr.msk.bf16.mxu1 %vm1277_vm3, %v1419_v13 }
 0x129   : > { %3421 = vmatmul.mubr.msk.bf16.gmra.mrb[36].mxu0 %vm1277_vm3, %v4347_v44 }
 0x12a   : > { %3424 = vmatprep.mubr.msk.bf16.mxu0 %vm1277_vm3, %v4366_v19 }
 0x12c   : > { %3385 = vmatmul.mubr.msk.bf16.gmra.mrb[44].mxu1 %vm1277_vm3, %v1730_v15 }
 0x131   : > { %3425 = vmatmul.mubr.msk.bf16.gmra.mrb[40].mxu0 %vm1277_vm3, %v1419_v13 }
 0x132   : > { %3428 = vmatprep.mubr.msk.bf16.mxu0 %vm1277_vm3, %v1730_v15 }
 0x139   : > { %3429 = vmatmul.mubr.msk.bf16.gmra.mrb[44].mxu0 %vm1277_vm3, %v2101_v52 }
 0x1a4   : > { %v3330_v51 = vpop.f32.mrb[0].mxu1 }
 0x1a5   : > { %v1629_v31 = vadd.f32 %v3330_v51, %v4449_v26  ;;  %v1620_v8 = vpop.f32.mrb[1].mxu1 }
 0x1a6   : > { %v1621_v17 = vadd.f32 %v4449_v26, %v1620_v8  ;;  %v3331_v35 = vpop.f32.mrb[2].mxu1 }
 0x1a7   : > { %1701 = vst.msk [vmem:[#allocation3 + $0x90] sm:$0xff] %vm1227_vm8, %v1629_v31  ;;  %v1632_v50 = vadd.f32 %v3331_v35, %v4449_v26  ;;  %v1623_v2 = vpop.f32.mrb[3].mxu1 }
 0x1a8   : > { %1699 = vst.msk [vmem:[#allocation3 + $0x80] sm:$0xff] %vm1227_vm8, %v1621_v17  ;;  %v1624_v63 = vadd.f32 %v4449_v26, %v1623_v2 }
 0x1a9   : > { %1702 = vst.msk [vmem:[#allocation3 + $0x98] sm:$0xff] %vm1227_vm8, %v1632_v50 }
 0x1aa   : > { %1700 = vst.msk [vmem:[#allocation3 + $0x88] sm:$0xff] %vm1227_vm8, %v1624_v63 }
 0x1ae   : > { %v3334_v39 = vpop.f32.mrb[4].mxu1 }
 0x1af   : > { %v1645_v11 = vadd.f32 %v3334_v39, %v4449_v26  ;;  %v1636_v21 = vpop.f32.mrb[5].mxu1 }
 0x1b0   : > { %v1637_v57 = vadd.f32 %v4449_v26, %v1636_v21  ;;  %v3335_v22 = vpop.f32.mrb[6].mxu1 }
 0x1b1   : > { %1705 = vst.msk [vmem:[#allocation3 + $0xb0] sm:$0xff] %vm1227_vm8, %v1645_v11  ;;  %v1648_v58 = vadd.f32 %v3335_v22, %v4449_v26  ;;  %v1639_v30 = vpop.f32.mrb[7].mxu1 }
 0x1b2   : > { %1703 = vst.msk [vmem:[#allocation3 + $0xa0] sm:$0xff] %vm1227_vm8, %v1637_v57  ;;  %v1640_v40 = vadd.f32 %v4449_v26, %v1639_v30  ;;  %v3314_v25 = vpop.f32.mrb[0].mxu0 }
 0x1b3   : > { %1706 = vst.msk [vmem:[#allocation3 + $0xb8] sm:$0xff] %vm1227_vm8, %v1648_v58  ;;  %v1565_v5 = vadd.f32 %v3314_v25, %v4449_v26  ;;  %v1556_v0 = vpop.f32.mrb[1].mxu0 }
 0x1b4   : > { %1704 = vst.msk [vmem:[#allocation3 + $0xa8] sm:$0xff] %vm1227_vm8, %v1640_v40  ;;  %v1557_v10 = vadd.f32 %v4449_v26, %v1556_v0  ;;  %v3315_v3 = vpop.f32.mrb[2].mxu0 }
 0x1b5   : > { %1685 = vst.msk [vmem:[#allocation3 + $0x10] sm:$0xff] %vm1227_vm8, %v1565_v5  ;;  %v1568_v12 = vadd.f32 %v3315_v3, %v4449_v26  ;;  %v1559_v60 = vpop.f32.mrb[3].mxu0 }
 0x1b6   : > { %1683 = vst.msk [vmem:[#allocation3] sm:$0xff] %vm1227_vm8, %v1557_v10  ;;  %v1560_v9 = vadd.f32 %v4449_v26, %v1559_v60  ;;  %v3338_v7 = vpop.f32.mrb[8].mxu1 }
 0x1b7   : > { %1686 = vst.msk [vmem:[#allocation3 + $0x18] sm:$0xff] %vm1227_vm8, %v1568_v12  ;;  %v1661_v34 = vadd.f32 %v3338_v7, %v4449_v26  ;;  %v1652_v44 = vpop.f32.mrb[9].mxu1 }
 0x1b8   : > { %1684 = vst.msk [vmem:[#allocation3 + $0x8] sm:$0xff] %vm1227_vm8, %v1560_v9  ;;  %v1653_v62 = vadd.f32 %v4449_v26, %v1652_v44  ;;  %v3339_v27 = vpop.f32.mrb[10].mxu1 }
 0x1b9   : > { %1709 = vst.msk [vmem:[#allocation3 + $0xd0] sm:$0xff] %vm1227_vm8, %v1661_v34  ;;  %v1664_v56 = vadd.f32 %v3339_v27, %v4449_v26  ;;  %v1655_v54 = vpop.f32.mrb[11].mxu1 }
 0x1ba   : > { %1707 = vst.msk [vmem:[#allocation3 + $0xc0] sm:$0xff] %vm1227_vm8, %v1653_v62  ;;  %v1656_v32 = vadd.f32 %v4449_v26, %v1655_v54  ;;  %v3318_v48 = vpop.f32.mrb[4].mxu0 }
 0x1bb   : > { %1710 = vst.msk [vmem:[#allocation3 + $0xd8] sm:$0xff] %vm1227_vm8, %v1664_v56  ;;  %v1581_v33 = vadd.f32 %v3318_v48, %v4449_v26  ;;  %v1572_v29 = vpop.f32.mrb[5].mxu0 }
 0x1bc   : > { %1708 = vst.msk [vmem:[#allocation3 + $0xc8] sm:$0xff] %vm1227_vm8, %v1656_v32  ;;  %v1573_v61 = vadd.f32 %v4449_v26, %v1572_v29  ;;  %v3319_v41 = vpop.f32.mrb[6].mxu0  ;;  %v1991_v53 = vld [vmem:[#allocation3 + $0x10] sm:$0xff] }
 0x1bd   : > { %1689 = vst.msk [vmem:[#allocation3 + $0x30] sm:$0xff] %vm1227_vm8, %v1581_v33  ;;  %v1584_v36 = vadd.f32 %v3319_v41, %v4449_v26  ;;  %v1575_v19 = vpop.f32.mrb[7].mxu0  ;;  %v1989_v45 = vld [vmem:[#allocation3] sm:$0xff] }
 0x1be   : > { %1687 = vst.msk [vmem:[#allocation3 + $0x20] sm:$0xff] %vm1227_vm8, %v1573_v61  ;;  %v1576_v42 = vadd.f32 %v4449_v26, %v1575_v19  ;;  %v1992_v51 = vld [vmem:[#allocation3 + $0x18] sm:$0xff] }
 0x1bf   : > { %1690 = vst.msk [vmem:[#allocation3 + $0x38] sm:$0xff] %vm1227_vm8, %v1584_v36  ;;  %v3342_v37 = vpop.f32.mrb[12].mxu1  ;;  %v1990_v17 = vld [vmem:[#allocation3 + $0x8] sm:$0xff] }
 0x1c0   : > { %1688 = vst.msk [vmem:[#allocation3 + $0x28] sm:$0xff] %vm1227_vm8, %v1576_v42  ;;  %v1677_v49 = vadd.f32 %v3342_v37, %v4449_v26  ;;  %v1668_v55 = vpop.f32.mrb[13].mxu1 }
 0x1c1   : > { %v1669_v38 = vadd.f32 %v4449_v26, %v1668_v55  ;;  %v3343_v13 = vpop.f32.mrb[14].mxu1 }
 0x1c2   : > { %1713 = vst.msk [vmem:[#allocation3 + $0xf0] sm:$0xff] %vm1227_vm8, %v1677_v49  ;;  %v1680_v43 = vadd.f32 %v3343_v13, %v4449_v26  ;;  %v1671_v20 = vpop.f32.mrb[15].mxu1 }
 0x1c3   : > { %1711 = vst.msk [vmem:[#allocation3 + $0xe0] sm:$0xff] %vm1227_vm8, %v1669_v38  ;;  %v1672_v14 = vadd.f32 %v4449_v26, %v1671_v20 }
 0x1c4   : > { %1714 = vst.msk [vmem:[#allocation3 + $0xf8] sm:$0xff] %vm1227_vm8, %v1680_v43  ;;  %v3322_v28 = vpop.f32.mrb[8].mxu0  ;;  %v1995_v58 = vld [vmem:[#allocation3 + $0x30] sm:$0xff] }
 0x1c5   : > { %1712 = vst.msk [vmem:[#allocation3 + $0xe8] sm:$0xff] %vm1227_vm8, %v1672_v14  ;;  %v1597_v59 = vadd.f32 %v3322_v28, %v4449_v26  ;;  %v1588_v24 = vpop.f32.mrb[9].mxu0  ;;  %v1993_v5 = vld [vmem:[#allocation3 + $0x20] sm:$0xff] }
 0x1c6   : > { %v1589_v1 = vadd.f32 %v4449_v26, %v1588_v24  ;;  %v3323_v18 = vpop.f32.mrb[10].mxu0  ;;  %v1996_v3 = vld [vmem:[#allocation3 + $0x38] sm:$0xff] }
 0x1c7   : > { %1693 = vst.msk [vmem:[#allocation3 + $0x50] sm:$0xff] %vm1227_vm8, %v1597_v59  ;;  %v1600_v16 = vadd.f32 %v3323_v18, %v4449_v26  ;;  %v1591_v4 = vpop.f32.mrb[11].mxu0  ;;  %v3358_v46 = vpop.f32.mrb[16].mxu1  ;;  %v1994_v9 = vld [vmem:[#allocation3 + $0x28] sm:$0xff] }
 0x1c8   : > { %1691 = vst.msk [vmem:[#allocation3 + $0x40] sm:$0xff] %vm1227_vm8, %v1589_v1  ;;  %v1592_v6 = vadd.f32 %v4449_v26, %v1591_v4  ;;  %v2023_v47 = vadd.f32 %v3358_v46, %v1991_v53  ;;  %v1862_v23 = vpop.f32.mrb[17].mxu1 }
 0x1c9   : > { %1694 = vst.msk [vmem:[#allocation3 + $0x58] sm:$0xff] %vm1227_vm8, %v1600_v16  ;;  %v2021_v15 = vadd.f32 %v1989_v45, %v1862_v23  ;;  %v3359_v52 = vpop.f32.mrb[18].mxu1 }
 0x1ca   : > { %1692 = vst.msk [vmem:[#allocation3 + $0x48] sm:$0xff] %vm1227_vm8, %v1592_v6  ;;  %2055 = vst.msk [vmem:[#allocation3 + $0x10] sm:$0xff] %vm1227_vm8, %v2023_v47  ;;  %v2024_v31 = vadd.f32 %v3359_v52, %v1992_v51  ;;  %v1865_v8 = vpop.f32.mrb[19].mxu1 }
 0x1cb   : > { %2053 = vst.msk [vmem:[#allocation3] sm:$0xff] %vm1227_vm8, %v2021_v15  ;;  %v2022_v35 = vadd.f32 %v1990_v17, %v1865_v8 }
 0x1cc   : > { %2056 = vst.msk [vmem:[#allocation3 + $0x18] sm:$0xff] %vm1227_vm8, %v2024_v31  ;;  %v3326_v50 = vpop.f32.mrb[12].mxu0 }
 0x1cd   : > { %2054 = vst.msk [vmem:[#allocation3 + $0x8] sm:$0xff] %vm1227_vm8, %v2022_v35  ;;  %v1613_v2 = vadd.f32 %v3326_v50, %v4449_v26  ;;  %v1604_v63 = vpop.f32.mrb[13].mxu0 }
 0x1ce   : > { %v1605_v39 = vadd.f32 %v4449_v26, %v1604_v63  ;;  %v3327_v11 = vpop.f32.mrb[14].mxu0  ;;  %v1999_v29 = vld [vmem:[#allocation3 + $0x50] sm:$0xff] }
 0x1cf   : > { %1697 = vst.msk [vmem:[#allocation3 + $0x70] sm:$0xff] %vm1227_vm8, %v1613_v2  ;;  %v1616_v21 = vadd.f32 %v3327_v11, %v4449_v26  ;;  %v1607_v57 = vpop.f32.mrb[15].mxu0  ;;  %v3362_v22 = vpop.f32.mrb[20].mxu1  ;;  %v1997_v37 = vld [vmem:[#allocation3 + $0x40] sm:$0xff] }
 0x1d0   : > { %1695 = vst.msk [vmem:[#allocation3 + $0x60] sm:$0xff] %vm1227_vm8, %v1605_v39  ;;  %v1608_v30 = vadd.f32 %v4449_v26, %v1607_v57  ;;  %v2027_v40 = vadd.f32 %v3362_v22, %v1995_v58  ;;  %v1878_v25 = vpop.f32.mrb[21].mxu1  ;;  %v2000_v38 = vld [vmem:[#allocation3 + $0x58] sm:$0xff] }
 0x1d1   : > { %1698 = vst.msk [vmem:[#allocation3 + $0x78] sm:$0xff] %vm1227_vm8, %v1616_v21  ;;  %v2025_v0 = vadd.f32 %v1993_v5, %v1878_v25  ;;  %v3363_v10 = vpop.f32.mrb[22].mxu1  ;;  %v2362_v34 = vld [vmem:[#allocation3 + $0x10] sm:$0xff]  ;;  %v1998_v20 = vld [vmem:[#allocation3 + $0x48] sm:$0xff] }
 0x1d2   : > { %1696 = vst.msk [vmem:[#allocation3 + $0x68] sm:$0xff] %vm1227_vm8, %v1608_v30  ;;  %2059 = vst.msk [vmem:[#allocation3 + $0x30] sm:$0xff] %vm1227_vm8, %v2027_v40  ;;  %v2028_v12 = vadd.f32 %v3363_v10, %v1996_v3  ;;  %v1881_v60 = vpop.f32.mrb[23].mxu1  ;;  %v2360_v27 = vld [vmem:[#allocation3] sm:$0xff] }
 0x1d3   : > { %2057 = vst.msk [vmem:[#allocation3 + $0x20] sm:$0xff] %vm1227_vm8, %v2025_v0  ;;  %v2026_v7 = vadd.f32 %v1994_v9, %v1881_v60  ;;  %v2363_v32 = vld [vmem:[#allocation3 + $0x18] sm:$0xff] }
 0x1d4   : > { %2060 = vst.msk [vmem:[#allocation3 + $0x38] sm:$0xff] %vm1227_vm8, %v2028_v12  ;;  %v3402_v26 = vpop.f32.mrb[16].mxu0  ;;  %v2361_v41 = vld [vmem:[#allocation3 + $0x8] sm:$0xff] }
 0x1d5   : > { %2058 = vst.msk [vmem:[#allocation3 + $0x28] sm:$0xff] %vm1227_vm8, %v2026_v7  ;;  %v2394_v44 = vadd.f32 %v3402_v26, %v2362_v34  ;;  %v2233_v62 = vpop.f32.mrb[17].mxu0 }
 0x1d6   : > { %v2392_v56 = vadd.f32 %v2360_v27, %v2233_v62  ;;  %v3403_v54 = vpop.f32.mrb[18].mxu0  ;;  %v2003_v15 = vld [vmem:[#allocation3 + $0x70] sm:$0xff] }
 0x1d7   : > { %2426 = vst.msk [vmem:[#allocation3 + $0x10] sm:$0xff] %vm1227_vm8, %v2394_v44  ;;  %v2395_v48 = vadd.f32 %v3403_v54, %v2363_v32  ;;  %v3366_v33 = vpop.f32.mrb[24].mxu1  ;;  %v2236_v61 = vpop.f32.mrb[19].mxu0  ;;  %v2001_v40 = vld [vmem:[#allocation3 + $0x60] sm:$0xff] }
 0x1d8   : > { %2424 = vst.msk [vmem:[#allocation3] sm:$0xff] %vm1227_vm8, %v2392_v56  ;;  %v2031_v36 = vadd.f32 %v3366_v33, %v1999_v29  ;;  %v2393_v19 = vadd.f32 %v2361_v41, %v2236_v61  ;;  %v1894_v42 = vpop.f32.mrb[25].mxu1  ;;  %v2004_v12 = vld [vmem:[#allocation3 + $0x78] sm:$0xff] }
 0x1d9   : > { %2427 = vst.msk [vmem:[#allocation3 + $0x18] sm:$0xff] %vm1227_vm8, %v2395_v48  ;;  %v2029_v49 = vadd.f32 %v1997_v37, %v1894_v42  ;;  %v3367_v55 = vpop.f32.mrb[26].mxu1  ;;  %v2366_v59 = vld [vmem:[#allocation3 + $0x30] sm:$0xff]  ;;  %v2002_v60 = vld [vmem:[#allocation3 + $0x68] sm:$0xff] }
 0x1da   : > { %2063 = vst.msk [vmem:[#allocation3 + $0x50] sm:$0xff] %vm1227_vm8, %v2031_v36  ;;  %2425 = vst.msk [vmem:[#allocation3 + $0x8] sm:$0xff] %vm1227_vm8, %v2393_v19  ;;  %v2032_v13 = vadd.f32 %v3367_v55, %v2000_v38  ;;  %v1897_v43 = vpop.f32.mrb[27].mxu1  ;;  %v2364_v18 = vld [vmem:[#allocation3 + $0x20] sm:$0xff] }
 0x1db   : > { %2061 = vst.msk [vmem:[#allocation3 + $0x40] sm:$0xff] %vm1227_vm8, %v2029_v49  ;;  %v2030_v14 = vadd.f32 %v1998_v20, %v1897_v43  ;;  %v2367_v53 = vld [vmem:[#allocation3 + $0x38] sm:$0xff] }
 0x1dc   : > { %2064 = vst.msk [vmem:[#allocation3 + $0x58] sm:$0xff] %vm1227_vm8, %v2032_v13  ;;  %v3406_v28 = vpop.f32.mrb[20].mxu0  ;;  %v2365_v30 = vld [vmem:[#allocation3 + $0x28] sm:$0xff] }
 0x1dd   : > { %2062 = vst.msk [vmem:[#allocation3 + $0x48] sm:$0xff] %vm1227_vm8, %v2030_v14  ;;  %v2398_v24 = vadd.f32 %v3406_v28, %v2366_v59  ;;  %v2249_v1 = vpop.f32.mrb[21].mxu0 }
 0x1de   : > { %v2458_v16 = vld [vmem:[#allocation3 + $0x10] sm:$0xff]  ;;  %v2396_v4 = vadd.f32 %v2364_v18, %v2249_v1  ;;  %v3407_v46 = vpop.f32.mrb[22].mxu0 }
 0x1df   : > { %v3204_v6 = vpack.c.bf16 %v2458_v16, %v2458_v16  ;;  %v2456_v47 = vld [vmem:[#allocation3] sm:$0xff]  ;;  %2430 = vst.msk [vmem:[#allocation3 + $0x30] sm:$0xff] %vm1227_vm8, %v2398_v24  ;;  %v2399_v23 = vadd.f32 %v3407_v46, %v2367_v53  ;;  %v3370_v45 = vpop.f32.mrb[28].mxu1  ;;  %v2252_v52 = vpop.f32.mrb[23].mxu0  ;;  %v2652_v50 = vsel %vm1227_vm8, %v2458_v16, 0.0  ;;  %v2720_v2 = vmul.f32 %v2458_v16, %v2458_v16 }
 0x1e0   : > { %v3202_v51 = vpack.c.bf16 %v2456_v47, %v2456_v47  ;;  %v2718_v31 = vmul.f32 %v2456_v47, %v2456_v47  ;;  %v2459_v8 = vld [vmem:[#allocation3 + $0x18] sm:$0xff]  ;;  %2428 = vst.msk [vmem:[#allocation3 + $0x20] sm:$0xff] %vm1227_vm8, %v2396_v4  ;;  %v2035_v17 = vadd.f32 %v3370_v45, %v2003_v15  ;;  %v1910_v35 = vpop.f32.mrb[29].mxu1  ;;  %v2649_v21 = vsel %vm1227_vm8, %v2456_v47, 0.0 }
 0x1e1   : > { %2619 = vst.msk [vmem:[%s4535_s20 + $0x8] sm:$0xf] %vm2616_vm9, %v3204_v6  ;;  %v3205_v63 = vpack.c.bf16 %v2459_v8, %v2459_v8  ;;  %v2457_v39 = vld [vmem:[#allocation3 + $0x8] sm:$0xff]  ;;  %v3371_v11 = vpop.f32.mrb[30].mxu1  ;;  %v2721_v5 = vmul.f32 %v2459_v8, %v2459_v8  ;;  %v2397_v10 = vadd.f32 %v2365_v30, %v2252_v52  ;;  %v2033_v3 = vadd.f32 %v2001_v40, %v1910_v35  ;;  %v2370_v62 = vld [vmem:[#allocation3 + $0x50] sm:$0xff] }
 0x1e2   : > { %2431 = vst.msk [vmem:[#allocation3 + $0x38] sm:$0xff] %vm1227_vm8, %v2399_v23  ;;  %v3203_v57 = vpack.c.bf16 %v2457_v39, %v2457_v39  ;;  %v2650_v22 = vsel %vm1227_vm8, %v2457_v39, 0.0  ;;  %v2719_v58 = vmul.f32 %v2457_v39, %v2457_v39  ;;  %2067 = vst.msk [vmem:[#allocation3 + $0x70] sm:$0xff] %vm1227_vm8, %v2035_v17  ;;  %v1913_v25 = vpop.f32.mrb[31].mxu1  ;;  %v2750_v9 = vsel %vm1227_vm8, %v2718_v31, 0.0  ;;  %v2368_v48 = vld [vmem:[#allocation3 + $0x40] sm:$0xff] }
 0x1e3   : > { %2617 = vst.msk [vmem:[%s4535_s20] sm:$0xf] %vm2616_vm9, %v3202_v51  ;;  %2620 = vst.msk [vmem:[%s4535_s20 + $0xc] sm:$0xf] %vm2616_vm9, %v3205_v63  ;;  %v2651_v0 = vadd.f32 %v2650_v22, %v2649_v21  ;;  %v2036_v26 = vadd.f32 %v3371_v11, %v2004_v12  ;;  %v2034_v34 = vadd.f32 %v2002_v60, %v1913_v25  ;;  %v2753_v33 = vsel %vm1227_vm8, %v2720_v2, 0.0  ;;  %v2371_v18 = vld [vmem:[#allocation3 + $0x58] sm:$0xff] }
 0x1e4   : > { %2618 = vst.msk [vmem:[%s4535_s20 + $0x4] sm:$0xf] %vm2616_vm9, %v3203_v57  ;;  %v2751_v7 = vsel %vm1227_vm8, %v2719_v58, 0.0  ;;  %v3410_v44 = vpop.f32.mrb[24].mxu0  ;;  %v2654_v36 = vsel %vm1227_vm8, %v2459_v8, 0.0  ;;  %v2755_v19 = vsel %vm1227_vm8, %v2721_v5, 0.0 }
 0x1e5   : > { %v2653_v27 = vadd.f32 %v2652_v50, %v2651_v0  ;;  %v2752_v56 = vadd.f32 %v2751_v7, %v2750_v9  ;;  %2429 = vst.msk [vmem:[#allocation3 + $0x28] sm:$0xff] %vm1227_vm8, %v2397_v10  ;;  %2065 = vst.msk [vmem:[#allocation3 + $0x60] sm:$0xff] %vm1227_vm8, %v2033_v3  ;;  %v2402_v54 = vadd.f32 %v3410_v44, %v2370_v62  ;;  %v2265_v32 = vpop.f32.mrb[25].mxu0  ;;  %v2007_v6 = vld [vmem:[#allocation3 + $0x90] sm:$0xff]  ;;  %v2369_v47 = vld [vmem:[#allocation3 + $0x48] sm:$0xff] }
 0x1e6   : > { %v2462_v29 = vld [vmem:[#allocation3 + $0x30] sm:$0xff]  ;;  %2068 = vst.msk [vmem:[#allocation3 + $0x78] sm:$0xff] %vm1227_vm8, %v2036_v26  ;;  %2066 = vst.msk [vmem:[#allocation3 + $0x68] sm:$0xff] %vm1227_vm8, %v2034_v34  ;;  %v2400_v61 = vadd.f32 %v2368_v48, %v2265_v32  ;;  %v3411_v41 = vpop.f32.mrb[26].mxu0  ;;  %v2005_v23 = vld [vmem:[#allocation3 + $0x80] sm:$0xff] }
 0x1e7   : > { %v2754_v42 = vadd.f32 %v2753_v33, %v2752_v56  ;;  %v3208_v37 = vpack.c.bf16 %v2462_v29, %v2462_v29  ;;  %v2460_v49 = vld [vmem:[#allocation3 + $0x20] sm:$0xff]  ;;  %2434 = vst.msk [vmem:[#allocation3 + $0x50] sm:$0xff] %vm1227_vm8, %v2402_v54  ;;  %v3374_v55 = vpop.f32.mrb[32].mxu1  ;;  %v2268_v38 = vpop.f32.mrb[27].mxu0  ;;  %v2655_v43 = vadd.f32 %v2654_v36, %v2653_v27  ;;  %v2403_v53 = vadd.f32 %v3411_v41, %v2371_v18  ;;  %v2008_v8 = vld [vmem:[#allocation3 + $0x98] sm:$0xff]  ;;  %v2006_v17 = vld [vmem:[#allocation3 + $0x88] sm:$0xff] }
 0x1e8   : > { %v3206_v13 = vpack.c.bf16 %v2460_v49, %v2460_v49  ;;  %v2656_v20 = vsel %vm1227_vm8, %v2460_v49, 0.0  ;;  %v2722_v14 = vmul.f32 %v2460_v49, %v2460_v49  ;;  %2432 = vst.msk [vmem:[#allocation3 + $0x40] sm:$0xff] %vm1227_vm8, %v2400_v61  ;;  %v1926_v59 = vpop.f32.mrb[33].mxu1  ;;  %v2724_v15 = vmul.f32 %v2462_v29, %v2462_v29  ;;  %v2011_v33 = vld [vmem:[#allocation3 + $0xb0] sm:$0xff] }
 0x1e9   : > { %v2463_v28 = vld [vmem:[#allocation3 + $0x38] sm:$0xff]  ;;  %2623 = vst.msk [vmem:[%s4535_s20 + $0x18] sm:$0xf] %vm2616_vm9, %v3208_v37  ;;  %v2756_v24 = vadd.f32 %v2755_v19, %v2754_v42  ;;  %v3375_v16 = vpop.f32.mrb[34].mxu1  ;;  %v2657_v4 = vadd.f32 %v2656_v20, %v2655_v43  ;;  %v2039_v52 = vadd.f32 %v3374_v55, %v2007_v6  ;;  %v2401_v51 = vadd.f32 %v2369_v47, %v2268_v38  ;;  %v2374_v21 = vld [vmem:[#allocation3 + $0x70] sm:$0xff]  ;;  %v2009_v37 = vld [vmem:[#allocation3 + $0xa0] sm:$0xff] }
 0x1ea   : > { %v3209_v1 = vpack.c.bf16 %v2463_v28, %v2463_v28  ;;  %2621 = vst.msk [vmem:[%s4535_s20 + $0x10] sm:$0xf] %vm2616_vm9, %v3206_v13  ;;  %v2757_v46 = vsel %vm1227_vm8, %v2722_v14, 0.0  ;;  %v1929_v45 = vpop.f32.mrb[35].mxu1  ;;  %v2037_v31 = vadd.f32 %v2005_v23, %v1926_v59  ;;  %v2725_v50 = vmul.f32 %v2463_v28, %v2463_v28  ;;  %v2012_v20 = vld [vmem:[#allocation3 + $0xb8] sm:$0xff] }
 0x1eb   : > { %v2758_v35 = vadd.f32 %v2757_v46, %v2756_v24  ;;  %2435 = vst.msk [vmem:[#allocation3 + $0x58] sm:$0xff] %vm1227_vm8, %v2403_v53  ;;  %v2040_v63 = vadd.f32 %v3375_v16, %v2008_v8  ;;  %v2038_v39 = vadd.f32 %v2006_v17, %v1929_v45  ;;  %2071 = vst.msk [vmem:[#allocation3 + $0x90] sm:$0xff] %vm1227_vm8, %v2039_v52  ;;  %v2660_v5 = vsel %vm1227_vm8, %v2462_v29, 0.0 }
 0x1ec   : > { %2624 = vst.msk [vmem:[%s4535_s20 + $0x1c] sm:$0xf] %vm2616_vm9, %v3209_v1  ;;  %v2461_v2 = vld [vmem:[#allocation3 + $0x28] sm:$0xff]  ;;  %v3414_v11 = vpop.f32.mrb[28].mxu0  ;;  %v2372_v25 = vld [vmem:[#allocation3 + $0x60] sm:$0xff]  ;;  %v2761_v60 = vsel %vm1227_vm8, %v2724_v15, 0.0 }
 0x1ed   : > { %v3207_v57 = vpack.c.bf16 %v2461_v2, %v2461_v2  ;;  %v2658_v22 = vsel %vm1227_vm8, %v2461_v2, 0.0  ;;  %v2723_v58 = vmul.f32 %v2461_v2, %v2461_v2  ;;  %2433 = vst.msk [vmem:[#allocation3 + $0x48] sm:$0xff] %vm1227_vm8, %v2401_v51  ;;  %2069 = vst.msk [vmem:[#allocation3 + $0x80] sm:$0xff] %vm1227_vm8, %v2037_v31  ;;  %v2406_v30 = vadd.f32 %v3414_v11, %v2374_v21  ;;  %v2281_v40 = vpop.f32.mrb[29].mxu0  ;;  %v2375_v48 = vld [vmem:[#allocation3 + $0x78] sm:$0xff]  ;;  %v2373_v42 = vld [vmem:[#allocation3 + $0x68] sm:$0xff] }
 0x1ee   : > { %v2659_v0 = vadd.f32 %v2658_v22, %v2657_v4  ;;  %v2466_v10 = vld [vmem:[#allocation3 + $0x50] sm:$0xff]  ;;  %2072 = vst.msk [vmem:[#allocation3 + $0x98] sm:$0xff] %vm1227_vm8, %v2040_v63  ;;  %2070 = vst.msk [vmem:[#allocation3 + $0x88] sm:$0xff] %vm1227_vm8, %v2038_v39  ;;  %v2404_v3 = vadd.f32 %v2372_v25, %v2281_v40  ;;  %v3415_v12 = vpop.f32.mrb[30].mxu0  ;;  %v2662_v9 = vsel %vm1227_vm8, %v2463_v28, 0.0  ;;  %v2763_v27 = vsel %vm1227_vm8, %v2725_v50, 0.0 }
 0x1ef   : > { %2622 = vst.msk [vmem:[%s4535_s20 + $0x14] sm:$0xf] %vm2616_vm9, %v3207_v57  ;;  %v2759_v7 = vsel %vm1227_vm8, %v2723_v58, 0.0  ;;  %v3212_v26 = vpack.c.bf16 %v2466_v10, %v2466_v10  ;;  %v2464_v34 = vld [vmem:[#allocation3 + $0x40] sm:$0xff]  ;;  %v3378_v44 = vpop.f32.mrb[36].mxu1  ;;  %v2284_v62 = vpop.f32.mrb[31].mxu0  ;;  %v2407_v36 = vadd.f32 %v3415_v12, %v2375_v48  ;;  %v2728_v59 = vmul.f32 %v2466_v10, %v2466_v10 }
 0x1f0   : > { %2438 = vst.msk [vmem:[#allocation3 + $0x70] sm:$0xff] %vm1227_vm8, %v2406_v30  ;;  %v2661_v56 = vadd.f32 %v2660_v5, %v2659_v0  ;;  %v2760_v54 = vadd.f32 %v2759_v7, %v2758_v35  ;;  %v3210_v32 = vpack.c.bf16 %v2464_v34, %v2464_v34  ;;  %2436 = vst.msk [vmem:[#allocation3 + $0x60] sm:$0xff] %vm1227_vm8, %v2404_v3  ;;  %v1942_v29 = vpop.f32.mrb[37].mxu1  ;;  %v2664_v61 = vsel %vm1227_vm8, %v2464_v34, 0.0  ;;  %v2010_v28 = vld [vmem:[#allocation3 + $0xa8] sm:$0xff]  ;;  %v2015_v12 = vld [vmem:[#allocation3 + $0xd0] sm:$0xff] }
 0x1f1   : > { %2627 = vst.msk [vmem:[%s4535_s20 + $0x28] sm:$0xf] %vm2616_vm9, %v3212_v26  ;;  %v2726_v41 = vmul.f32 %v2464_v34, %v2464_v34  ;;  %v2043_v19 = vadd.f32 %v3378_v44, %v2011_v33  ;;  %v3379_v49 = vpop.f32.mrb[38].mxu1  ;;  %v2405_v13 = vadd.f32 %v2373_v42, %v2284_v62  ;;  %v2041_v43 = vadd.f32 %v2009_v37, %v1942_v29 }
 0x1f2   : > { %v2762_v55 = vadd.f32 %v2761_v60, %v2760_v54  ;;  %2625 = vst.msk [vmem:[%s4535_s20 + $0x20] sm:$0xf] %vm2616_vm9, %v3210_v32  ;;  %v2663_v38 = vadd.f32 %v2662_v9, %v2661_v56  ;;  %v1945_v14 = vpop.f32.mrb[39].mxu1  ;;  %v2467_v1 = vld [vmem:[#allocation3 + $0x58] sm:$0xff]  ;;  %v2044_v18 = vadd.f32 %v3379_v49, %v2012_v20  ;;  %v2668_v23 = vsel %vm1227_vm8, %v2466_v10, 0.0  ;;  %v2378_v51 = vld [vmem:[#allocation3 + $0x90] sm:$0xff] }
 0x1f3   : > { %v2765_v24 = vsel %vm1227_vm8, %v2726_v41, 0.0  ;;  %2439 = vst.msk [vmem:[#allocation3 + $0x78] sm:$0xff] %vm1227_vm8, %v2407_v36  ;;  %2075 = vst.msk [vmem:[#allocation3 + $0xb0] sm:$0xff] %vm1227_vm8, %v2043_v19  ;;  %v2042_v16 = vadd.f32 %v2010_v28, %v1945_v14  ;;  %v3213_v53 = vpack.c.bf16 %v2467_v1, %v2467_v1  ;;  %v2769_v11 = vsel %vm1227_vm8, %v2728_v59, 0.0  ;;  %v2014_v59 = vld [vmem:[#allocation3 + $0xc8] sm:$0xff] }
 0x1f4   : > { %v2665_v4 = vadd.f32 %v2664_v61, %v2663_v38  ;;  %v2764_v46 = vadd.f32 %v2763_v27, %v2762_v55  ;;  %v2465_v6 = vld [vmem:[#allocation3 + $0x48] sm:$0xff]  ;;  %2437 = vst.msk [vmem:[#allocation3 + $0x68] sm:$0xff] %vm1227_vm8, %v2405_v13  ;;  %2073 = vst.msk [vmem:[#allocation3 + $0xa0] sm:$0xff] %vm1227_vm8, %v2041_v43  ;;  %v3418_v47 = vpop.f32.mrb[32].mxu0  ;;  %v2376_v8 = vld [vmem:[#allocation3 + $0x80] sm:$0xff]  ;;  %v2729_v21 = vmul.f32 %v2467_v1, %v2467_v1  ;;  %v2670_v25 = vsel %vm1227_vm8, %v2467_v1, 0.0 }
 0x1f5   : > { %v3211_v45 = vpack.c.bf16 %v2465_v6, %v2465_v6  ;;  %v2666_v15 = vsel %vm1227_vm8, %v2465_v6, 0.0  ;;  %v2727_v52 = vmul.f32 %v2465_v6, %v2465_v6  ;;  %2076 = vst.msk [vmem:[#allocation3 + $0xb8] sm:$0xff] %vm1227_vm8, %v2044_v18  ;;  %2074 = vst.msk [vmem:[#allocation3 + $0xa8] sm:$0xff] %vm1227_vm8, %v2042_v16  ;;  %v2297_v31 = vpop.f32.mrb[33].mxu0  ;;  %v2410_v2 = vadd.f32 %v3418_v47, %v2378_v51  ;;  %v2379_v3 = vld [vmem:[#allocation3 + $0x98] sm:$0xff]  ;;  %v2377_v44 = vld [vmem:[#allocation3 + $0x88] sm:$0xff] }
 0x1f6   : > { %v2766_v17 = vadd.f32 %v2765_v24, %v2764_v46  ;;  %2628 = vst.msk [vmem:[%s4535_s20 + $0x2c] sm:$0xf] %vm2616_vm9, %v3213_v53  ;;  %v2667_v35 = vadd.f32 %v2666_v15, %v2665_v4  ;;  %v2408_v63 = vadd.f32 %v2376_v8, %v2297_v31  ;;  %v3419_v39 = vpop.f32.mrb[34].mxu0  ;;  %v2771_v33 = vsel %vm1227_vm8, %v2729_v21, 0.0  ;;  %v2013_v55 = vld [vmem:[#allocation3 + $0xc0] sm:$0xff]  ;;  %v2016_v38 = vld [vmem:[#allocation3 + $0xd8] sm:$0xff] }
 0x1f7   : > { %v2470_v50 = vld [vmem:[#allocation3 + $0x70] sm:$0xff]  ;;  %2626 = vst.msk [vmem:[%s4535_s20 + $0x24] sm:$0xf] %vm2616_vm9, %v3211_v45  ;;  %v2767_v57 = vsel %vm1227_vm8, %v2727_v52, 0.0  ;;  %v2468_v58 = vld [vmem:[#allocation3 + $0x60] sm:$0xff]  ;;  %v3382_v30 = vpop.f32.mrb[40].mxu1  ;;  %v2411_v26 = vadd.f32 %v3419_v39, %v2379_v3 }
 0x1f8   : > { %v3216_v22 = vpack.c.bf16 %v2470_v50, %v2470_v50  ;;  %v2300_v40 = vpop.f32.mrb[35].mxu0  ;;  %v2669_v5 = vadd.f32 %v2668_v23, %v2667_v35  ;;  %v2768_v0 = vadd.f32 %v2767_v57, %v2766_v17  ;;  %v3214_v10 = vpack.c.bf16 %v2468_v58, %v2468_v58  ;;  %2442 = vst.msk [vmem:[#allocation3 + $0x90] sm:$0xff] %vm1227_vm8, %v2410_v2  ;;  %v1958_v60 = vpop.f32.mrb[41].mxu1 }
 0x1f9   : > { %2440 = vst.msk [vmem:[#allocation3 + $0x80] sm:$0xff] %vm1227_vm8, %v2408_v63  ;;  %v2672_v9 = vsel %vm1227_vm8, %v2468_v58, 0.0  ;;  %v2730_v7 = vmul.f32 %v2468_v58, %v2468_v58  ;;  %v2047_v34 = vadd.f32 %v3382_v30, %v2015_v12  ;;  %v3383_v62 = vpop.f32.mrb[42].mxu1  ;;  %v2409_v32 = vadd.f32 %v2377_v44, %v2300_v40  ;;  %2443 = vst.msk [vmem:[#allocation3 + $0x98] sm:$0xff] %vm1227_vm8, %v2411_v26  ;;  %v2019_v58 = vld [vmem:[#allocation3 + $0xf0] sm:$0xff] }
 0x1fa   : > { %2631 = vst.msk [vmem:[%s4535_s20 + $0x38] sm:$0xf] %vm2616_vm9, %v3216_v22  ;;  %v2770_v27 = vadd.f32 %v2769_v11, %v2768_v0  ;;  %2629 = vst.msk [vmem:[%s4535_s20 + $0x30] sm:$0xf] %vm2616_vm9, %v3214_v10  ;;  %v2671_v56 = vadd.f32 %v2670_v25, %v2669_v5  ;;  %v2471_v54 = vld [vmem:[#allocation3 + $0x78] sm:$0xff]  ;;  %v1961_v48 = vpop.f32.mrb[43].mxu1  ;;  %v2732_v29 = vmul.f32 %v2470_v50, %v2470_v50 }
 0x1fb   : > { %v2773_v61 = vsel %vm1227_vm8, %v2730_v7, 0.0  ;;  %v3217_v41 = vpack.c.bf16 %v2471_v54, %v2471_v54  ;;  %v2469_v36 = vld [vmem:[#allocation3 + $0x68] sm:$0xff]  ;;  %2079 = vst.msk [vmem:[#allocation3 + $0xd0] sm:$0xff] %vm1227_vm8, %v2047_v34  ;;  %2441 = vst.msk [vmem:[#allocation3 + $0x88] sm:$0xff] %vm1227_vm8, %v2409_v32  ;;  %v2676_v43 = vsel %vm1227_vm8, %v2470_v50, 0.0  ;;  %v2045_v14 = vadd.f32 %v2013_v55, %v1958_v60  ;;  %v2382_v24 = vld [vmem:[#allocation3 + $0xb0] sm:$0xff] }
 0x1fc   : > { %v2673_v19 = vadd.f32 %v2672_v9, %v2671_v56  ;;  %v2772_v42 = vadd.f32 %v2771_v33, %v2770_v27  ;;  %v3215_v37 = vpack.c.bf16 %v2469_v36, %v2469_v36  ;;  %v2674_v49 = vsel %vm1227_vm8, %v2469_v36, 0.0  ;;  %v3422_v13 = vpop.f32.mrb[36].mxu0  ;;  %v2380_v53 = vld [vmem:[#allocation3 + $0xa0] sm:$0xff]  ;;  %v2383_v47 = vld [vmem:[#allocation3 + $0xb8] sm:$0xff]  ;;  %v2381_v30 = vld [vmem:[#allocation3 + $0xa8] sm:$0xff] }
 0x1fd   : > { %2632 = vst.msk [vmem:[%s4535_s20 + $0x3c] sm:$0xf] %vm2616_vm9, %v3217_v41  ;;  %v2731_v20 = vmul.f32 %v2469_v36, %v2469_v36  ;;  %v2048_v28 = vadd.f32 %v3383_v62, %v2016_v38  ;;  %v2313_v1 = vpop.f32.mrb[37].mxu0  ;;  %v2046_v4 = vadd.f32 %v2014_v59, %v1961_v48  ;;  %v2414_v46 = vadd.f32 %v3422_v13, %v2382_v24  ;;  %v2020_v32 = vld [vmem:[#allocation3 + $0xf8] sm:$0xff]  ;;  %v2018_v36 = vld [vmem:[#allocation3 + $0xe8] sm:$0xff] }
 0x1fe   : > { %v2774_v18 = vadd.f32 %v2773_v61, %v2772_v42  ;;  %2630 = vst.msk [vmem:[%s4535_s20 + $0x34] sm:$0xf] %vm2616_vm9, %v3215_v37  ;;  %v2675_v16 = vadd.f32 %v2674_v49, %v2673_v19  ;;  %v3423_v6 = vpop.f32.mrb[38].mxu0  ;;  %v2733_v23 = vmul.f32 %v2471_v54, %v2471_v54  ;;  %v2412_v51 = vadd.f32 %v2380_v53, %v2313_v1 }
 0x1ff   : > { %v2775_v45 = vsel %vm1227_vm8, %v2731_v20, 0.0  ;;  %v2474_v15 = vld [vmem:[#allocation3 + $0x90] sm:$0xff]  ;;  %2077 = vst.msk [vmem:[#allocation3 + $0xc0] sm:$0xff] %vm1227_vm8, %v2045_v14  ;;  %2080 = vst.msk [vmem:[#allocation3 + $0xd8] sm:$0xff] %vm1227_vm8, %v2048_v28  ;;  %v2415_v31 = vadd.f32 %v3423_v6, %v2383_v47  ;;  %v3386_v8 = vpop.f32.mrb[44].mxu1  ;;  %v2316_v17 = vpop.f32.mrb[39].mxu0 }
 0x200   : > { %v2472_v52 = vld [vmem:[#allocation3 + $0x80] sm:$0xff]  ;;  %v2777_v35 = vsel %vm1227_vm8, %v2732_v29, 0.0  ;;  %v2677_v50 = vadd.f32 %v2676_v43, %v2675_v16  ;;  %v2776_v2 = vadd.f32 %v2775_v45, %v2774_v18  ;;  %v3220_v63 = vpack.c.bf16 %v2474_v15, %v2474_v15  ;;  %2078 = vst.msk [vmem:[#allocation3 + $0xc8] sm:$0xff] %vm1227_vm8, %v2046_v4  ;;  %2446 = vst.msk [vmem:[#allocation3 + $0xb0] sm:$0xff] %vm1227_vm8, %v2414_v46  ;;  %v1974_v39 = vpop.f32.mrb[45].mxu1  ;;  %v2475_v0 = vld [vmem:[#allocation3 + $0x98] sm:$0xff] }
 0x201   : > { %v2678_v11 = vsel %vm1227_vm8, %v2471_v54, 0.0  ;;  %v3218_v21 = vpack.c.bf16 %v2472_v52, %v2472_v52  ;;  %v2680_v57 = vsel %vm1227_vm8, %v2472_v52, 0.0  ;;  %v2734_v22 = vmul.f32 %v2472_v52, %v2472_v52  ;;  %2444 = vst.msk [vmem:[#allocation3 + $0xa0] sm:$0xff] %vm1227_vm8, %v2412_v51  ;;  %2447 = vst.msk [vmem:[#allocation3 + $0xb8] sm:$0xff] %vm1227_vm8, %v2415_v31  ;;  %v3387_v40 = vpop.f32.mrb[46].mxu1  ;;  %v2017_v54 = vld [vmem:[#allocation3 + $0xe0] sm:$0xff] }
 0x202   : > { %v2778_v25 = vadd.f32 %v2777_v35, %v2776_v2  ;;  %2635 = vst.msk [vmem:[%s4535_s20 + $0x48] sm:$0xf] %vm2616_vm9, %v3220_v63  ;;  %v2679_v5 = vadd.f32 %v2678_v11, %v2677_v50  ;;  %v2051_v10 = vadd.f32 %v3386_v8, %v2019_v58  ;;  %v2413_v3 = vadd.f32 %v2381_v30, %v2316_v17  ;;  %v1977_v12 = vpop.f32.mrb[47].mxu1  ;;  %v2473_v34 = vld [vmem:[#allocation3 + $0x88] sm:$0xff]  ;;  %v2386_v38 = vld [vmem:[#allocation3 + $0xd0] sm:$0xff] }
 0x203   : > { %v2779_v60 = vsel %vm1227_vm8, %v2733_v23, 0.0  ;;  %v2684_v9 = vsel %vm1227_vm8, %v2474_v15, 0.0  ;;  %2633 = vst.msk [vmem:[%s4535_s20 + $0x40] sm:$0xf] %vm2616_vm9, %v3218_v21  ;;  %v2781_v7 = vsel %vm1227_vm8, %v2734_v22, 0.0  ;;  %v3221_v26 = vpack.c.bf16 %v2475_v0, %v2475_v0 }
 0x204   : > { %v2736_v44 = vmul.f32 %v2474_v15, %v2474_v15  ;;  %v2681_v62 = vadd.f32 %v2680_v57, %v2679_v5  ;;  %v2780_v27 = vadd.f32 %v2779_v60, %v2778_v25  ;;  %v3219_v56 = vpack.c.bf16 %v2473_v34, %v2473_v34  ;;  %2083 = vst.msk [vmem:[#allocation3 + $0xf0] sm:$0xff] %vm1227_vm8, %v2051_v10  ;;  %v3426_v48 = vpop.f32.mrb[40].mxu0 }
 0x205   : > { %2445 = vst.msk [vmem:[#allocation3 + $0xa8] sm:$0xff] %vm1227_vm8, %v2413_v3  ;;  %v2682_v33 = vsel %vm1227_vm8, %v2473_v34, 0.0  ;;  %v2735_v29 = vmul.f32 %v2473_v34, %v2473_v34  ;;  %v2049_v61 = vadd.f32 %v2017_v54, %v1974_v39  ;;  %v2052_v41 = vadd.f32 %v3387_v40, %v2020_v32  ;;  %v2329_v19 = vpop.f32.mrb[41].mxu0 }
 0x206   : > { %2636 = vst.msk [vmem:[%s4535_s20 + $0x4c] sm:$0xf] %vm2616_vm9, %v3221_v26  ;;  %v2782_v42 = vadd.f32 %v2781_v7, %v2780_v27  ;;  %v2737_v37 = vmul.f32 %v2475_v0, %v2475_v0  ;;  %2634 = vst.msk [vmem:[%s4535_s20 + $0x44] sm:$0xf] %vm2616_vm9, %v3219_v56  ;;  %v2683_v49 = vadd.f32 %v2682_v33, %v2681_v62  ;;  %v2384_v13 = vld [vmem:[#allocation3 + $0xc0] sm:$0xff]  ;;  %v3427_v43 = vpop.f32.mrb[42].mxu0 }
 0x207   : > { %v2050_v55 = vadd.f32 %v2018_v36, %v1977_v12  ;;  %v2387_v20 = vld [vmem:[#allocation3 + $0xd8] sm:$0xff]  ;;  %v2783_v14 = vsel %vm1227_vm8, %v2735_v29, 0.0  ;;  %v2478_v28 = vld [vmem:[#allocation3 + $0xb0] sm:$0xff]  ;;  %2081 = vst.msk [vmem:[#allocation3 + $0xe0] sm:$0xff] %vm1227_vm8, %v2049_v61  ;;  %2084 = vst.msk [vmem:[#allocation3 + $0xf8] sm:$0xff] %vm1227_vm8, %v2052_v41  ;;  %v2418_v59 = vadd.f32 %v3426_v48, %v2386_v38  ;;  %v2416_v24 = vadd.f32 %v2384_v13, %v2329_v19  ;;  %v2332_v18 = vpop.f32.mrb[43].mxu0 }
 0x208   : > { %v2419_v1 = vadd.f32 %v3427_v43, %v2387_v20  ;;  %v2785_v16 = vsel %vm1227_vm8, %v2736_v44, 0.0  ;;  %v2685_v4 = vadd.f32 %v2684_v9, %v2683_v49  ;;  %v2784_v46 = vadd.f32 %v2783_v14, %v2782_v42  ;;  %v2476_v6 = vld [vmem:[#allocation3 + $0xa0] sm:$0xff]  ;;  %v2479_v47 = vld [vmem:[#allocation3 + $0xb8] sm:$0xff]  ;;  %v2385_v17 = vld [vmem:[#allocation3 + $0xc8] sm:$0xff] }
 0x209   : > { %v3224_v53 = vpack.c.bf16 %v2478_v28, %v2478_v28  ;;  %2082 = vst.msk [vmem:[#allocation3 + $0xe8] sm:$0xff] %vm1227_vm8, %v2050_v55  ;;  %v2686_v23 = vsel %vm1227_vm8, %v2475_v0, 0.0  ;;  %v3222_v45 = vpack.c.bf16 %v2476_v6, %v2476_v6  ;;  %v2688_v15 = vsel %vm1227_vm8, %v2476_v6, 0.0  ;;  %2450 = vst.msk [vmem:[#allocation3 + $0xd0] sm:$0xff] %vm1227_vm8, %v2418_v59 }
 0x20a   : > { %v2738_v52 = vmul.f32 %v2476_v6, %v2476_v6  ;;  %2448 = vst.msk [vmem:[#allocation3 + $0xc0] sm:$0xff] %vm1227_vm8, %v2416_v24  ;;  %2451 = vst.msk [vmem:[#allocation3 + $0xd8] sm:$0xff] %vm1227_vm8, %v2419_v1  ;;  %v2786_v51 = vadd.f32 %v2785_v16, %v2784_v46  ;;  %v2687_v31 = vadd.f32 %v2686_v23, %v2685_v4  ;;  %v2787_v35 = vsel %vm1227_vm8, %v2737_v37, 0.0 }
 0x20b   : > { %2639 = vst.msk [vmem:[%s4535_s20 + $0x58] sm:$0xf] %vm2616_vm9, %v3224_v53  ;;  %v3225_v8 = vpack.c.bf16 %v2479_v47, %v2479_v47  ;;  %2637 = vst.msk [vmem:[%s4535_s20 + $0x50] sm:$0xf] %vm2616_vm9, %v3222_v45  ;;  %v2417_v63 = vadd.f32 %v2385_v17, %v2332_v18  ;;  %v2390_v58 = vld [vmem:[#allocation3 + $0xf0] sm:$0xff]  ;;  %v2740_v30 = vmul.f32 %v2478_v28, %v2478_v28  ;;  %v2692_v0 = vsel %vm1227_vm8, %v2478_v28, 0.0 }
 0x20c   : > { %v2789_v50 = vsel %vm1227_vm8, %v2738_v52, 0.0  ;;  %v2477_v2 = vld [vmem:[#allocation3 + $0xa8] sm:$0xff]  ;;  %v2689_v39 = vadd.f32 %v2688_v15, %v2687_v31  ;;  %v2788_v11 = vadd.f32 %v2787_v35, %v2786_v51  ;;  %v3430_v22 = vpop.f32.mrb[44].mxu0  ;;  %v2741_v7 = vmul.f32 %v2479_v47, %v2479_v47 }
 0x20d   : > { %2640 = vst.msk [vmem:[%s4535_s20 + $0x5c] sm:$0xf] %vm2616_vm9, %v3225_v8  ;;  %v3223_v21 = vpack.c.bf16 %v2477_v2, %v2477_v2  ;;  %v2690_v57 = vsel %vm1227_vm8, %v2477_v2, 0.0  ;;  %v2739_v40 = vmul.f32 %v2477_v2, %v2477_v2  ;;  %v2422_v25 = vadd.f32 %v3430_v22, %v2390_v58  ;;  %v2345_v5 = vpop.f32.mrb[45].mxu0 }
 0x20e   : > { %2449 = vst.msk [vmem:[#allocation3 + $0xc8] sm:$0xff] %vm1227_vm8, %v2417_v63  ;;  %v2790_v10 = vadd.f32 %v2789_v50, %v2788_v11  ;;  %v2691_v3 = vadd.f32 %v2690_v57, %v2689_v39  ;;  %v2388_v12 = vld [vmem:[#allocation3 + $0xe0] sm:$0xff]  ;;  %v3431_v60 = vpop.f32.mrb[46].mxu0  ;;  %v2391_v9 = vld [vmem:[#allocation3 + $0xf8] sm:$0xff]  ;;  %v2793_v61 = vsel %vm1227_vm8, %v2740_v30, 0.0  ;;  %v2694_v41 = vsel %vm1227_vm8, %v2479_v47, 0.0 }
 0x20f   : > { %2638 = vst.msk [vmem:[%s4535_s20 + $0x54] sm:$0xf] %vm2616_vm9, %v3223_v21  ;;  %v2791_v26 = vsel %vm1227_vm8, %v2739_v40, 0.0  ;;  %v2420_v34 = vadd.f32 %v2388_v12, %v2345_v5  ;;  %v2423_v44 = vadd.f32 %v3431_v60, %v2391_v9  ;;  %v2348_v62 = vpop.f32.mrb[47].mxu0  ;;  %v2795_v38 = vsel %vm1227_vm8, %v2741_v7, 0.0 }
 0x210   : > { %2454 = vst.msk [vmem:[#allocation3 + $0xf0] sm:$0xff] %vm1227_vm8, %v2422_v25  ;;  %v2389_v27 = vld [vmem:[#allocation3 + $0xe8] sm:$0xff]  ;;  %v2693_v56 = vadd.f32 %v2692_v0, %v2691_v3  ;;  %v2792_v54 = vadd.f32 %v2791_v26, %v2790_v10  ;;  %v2482_v32 = vld [vmem:[#allocation3 + $0xd0] sm:$0xff] }
 0x211   : > { %v2480_v48 = vld [vmem:[#allocation3 + $0xc0] sm:$0xff]  ;;  %v2483_v33 = vld [vmem:[#allocation3 + $0xd8] sm:$0xff]  ;;  %v2421_v29 = vadd.f32 %v2389_v27, %v2348_v62  ;;  %v3228_v36 = vpack.c.bf16 %v2482_v32, %v2482_v32  ;;  %2452 = vst.msk [vmem:[#allocation3 + $0xe0] sm:$0xff] %vm1227_vm8, %v2420_v34  ;;  %2455 = vst.msk [vmem:[#allocation3 + $0xf8] sm:$0xff] %vm1227_vm8, %v2423_v44  ;;  %v2744_v43 = vmul.f32 %v2482_v32, %v2482_v32  ;;  %v2700_v53 = vsel %vm1227_vm8, %v2482_v32, 0.0 }
 0x212   : > { %v3226_v19 = vpack.c.bf16 %v2480_v48, %v2480_v48  ;;  %v2794_v42 = vadd.f32 %v2793_v61, %v2792_v54  ;;  %v2695_v37 = vadd.f32 %v2694_v41, %v2693_v56  ;;  %v2696_v49 = vsel %vm1227_vm8, %v2480_v48, 0.0 }
 0x213   : > { %v2742_v55 = vmul.f32 %v2480_v48, %v2480_v48  ;;  %2453 = vst.msk [vmem:[#allocation3 + $0xe8] sm:$0xff] %vm1227_vm8, %v2421_v29  ;;  %v3229_v13 = vpack.c.bf16 %v2483_v33, %v2483_v33  ;;  %v2745_v6 = vmul.f32 %v2483_v33, %v2483_v33  ;;  %v2801_v45 = vsel %vm1227_vm8, %v2744_v43, 0.0 }
 0x214   : > { %2643 = vst.msk [vmem:[%s4535_s20 + $0x68] sm:$0xf] %vm2616_vm9, %v3228_v36  ;;  %2641 = vst.msk [vmem:[%s4535_s20 + $0x60] sm:$0xf] %vm2616_vm9, %v3226_v19  ;;  %v2697_v20 = vadd.f32 %v2696_v49, %v2695_v37  ;;  %v2796_v14 = vadd.f32 %v2795_v38, %v2794_v42  ;;  %v2702_v8 = vsel %vm1227_vm8, %v2483_v33, 0.0 }
 0x215   : > { %v2797_v28 = vsel %vm1227_vm8, %v2742_v55, 0.0  ;;  %v2481_v59 = vld [vmem:[#allocation3 + $0xc8] sm:$0xff]  ;;  %2644 = vst.msk [vmem:[%s4535_s20 + $0x6c] sm:$0xf] %vm2616_vm9, %v3229_v13  ;;  %v2803_v21 = vsel %vm1227_vm8, %v2745_v6, 0.0 }
 0x216   : > { %v3227_v24 = vpack.c.bf16 %v2481_v59, %v2481_v59  ;;  %v2698_v1 = vsel %vm1227_vm8, %v2481_v59, 0.0  ;;  %v2743_v18 = vmul.f32 %v2481_v59, %v2481_v59  ;;  %v2798_v16 = vadd.f32 %v2797_v28, %v2796_v14 }
 0x217   : > { %v2699_v4 = vadd.f32 %v2698_v1, %v2697_v20  ;;  %v2486_v46 = vld [vmem:[#allocation3 + $0xf0] sm:$0xff] }
 0x218   : > { %2642 = vst.msk [vmem:[%s4535_s20 + $0x64] sm:$0xf] %vm2616_vm9, %v3227_v24  ;;  %v2799_v47 = vsel %vm1227_vm8, %v2743_v18, 0.0  ;;  %v3232_v23 = vpack.c.bf16 %v2486_v46, %v2486_v46  ;;  %v2484_v51 = vld [vmem:[#allocation3 + $0xe0] sm:$0xff]  ;;  %v2487_v31 = vld [vmem:[#allocation3 + $0xf8] sm:$0xff]  ;;  %v2748_v5 = vmul.f32 %v2486_v46, %v2486_v46  ;;  %v2708_v12 = vsel %vm1227_vm8, %v2486_v46, 0.0 }
 0x219   : > { %v2701_v15 = vadd.f32 %v2700_v53, %v2699_v4  ;;  %v2800_v52 = vadd.f32 %v2799_v47, %v2798_v16  ;;  %v3230_v17 = vpack.c.bf16 %v2484_v51, %v2484_v51  ;;  %v2704_v35 = vsel %vm1227_vm8, %v2484_v51, 0.0 }
 0x21a   : > { %2647 = vst.msk [vmem:[%s4535_s20 + $0x78] sm:$0xf] %vm2616_vm9, %v3232_v23  ;;  %v2746_v50 = vmul.f32 %v2484_v51, %v2484_v51  ;;  %v2485_v2 = vld [vmem:[#allocation3 + $0xe8] sm:$0xff]  ;;  %v3233_v11 = vpack.c.bf16 %v2487_v31, %v2487_v31  ;;  %v2749_v60 = vmul.f32 %v2487_v31, %v2487_v31  ;;  %v2809_v26 = vsel %vm1227_vm8, %v2748_v5, 0.0 }
 0x21b   : > { %v2802_v63 = vadd.f32 %v2801_v45, %v2800_v52  ;;  %v2703_v39 = vadd.f32 %v2702_v8, %v2701_v15  ;;  %2645 = vst.msk [vmem:[%s4535_s20 + $0x70] sm:$0xf] %vm2616_vm9, %v3230_v17  ;;  %v3231_v22 = vpack.c.bf16 %v2485_v2, %v2485_v2  ;;  %v2706_v58 = vsel %vm1227_vm8, %v2485_v2, 0.0 }
 0x21c   : > { %v2805_v57 = vsel %vm1227_vm8, %v2746_v50, 0.0  ;;  %2648 = vst.msk [vmem:[%s4535_s20 + $0x7c] sm:$0xf] %vm2616_vm9, %v3233_v11  ;;  %v2747_v25 = vmul.f32 %v2485_v2, %v2485_v2  ;;  %v2710_v34 = vsel %vm1227_vm8, %v2487_v31, 0.0  ;;  %v2811_v27 = vsel %vm1227_vm8, %v2749_v60, 0.0 }
 0x21d   : > { %v2705_v30 = vadd.f32 %v2704_v35, %v2703_v39  ;;  %v2804_v40 = vadd.f32 %v2803_v21, %v2802_v63  ;;  %2646 = vst.msk [vmem:[%s4535_s20 + $0x74] sm:$0xf] %vm2616_vm9, %v3231_v22 }
 0x21e   : > { %v2807_v3 = vsel %vm1227_vm8, %v2747_v25, 0.0 }
 0x21f   : > { %v2806_v0 = vadd.f32 %v2805_v57, %v2804_v40  ;;  %v2707_v10 = vadd.f32 %v2706_v58, %v2705_v30 }
 0x221   : > { %v2709_v9 = vadd.f32 %v2708_v12, %v2707_v10  ;;  %v2808_v7 = vadd.f32 %v2807_v3, %v2806_v0 }
 0x223   : > { %v2711_v44 = vadd.f32 %v2710_v34, %v2709_v9  ;;  %v2810_v62 = vadd.f32 %v2809_v26, %v2808_v7 }
 0x225   : > { %v2712_v56 = vrot.slane %v2711_v44, 4  ;;  %v2812_v54 = vadd.f32 %v2811_v27, %v2810_v62 }
 0x227   : > { %v2713_v32 = vadd.f32 %v2712_v56, %v2711_v44  ;;  %v2813_v48 = vrot.slane %v2812_v54, 4 }
 0x229   : > { %v2714_v33 = vrot.slane %v2713_v32, 2  ;;  %v2814_v29 = vadd.f32 %v2813_v48, %v2812_v54 }
 0x22b   : > { %v2715_v61 = vadd.f32 %v2714_v33, %v2713_v32  ;;  %v2815_v41 = vrot.slane %v2814_v29, 2 }
 0x22d   : > { %v2716_v36 = vrot.slane %v2715_v61, 1  ;;  %v2816_v19 = vadd.f32 %v2815_v41, %v2814_v29 }
 0x22f   : > { %v2817_v42 = vrot.slane %v2816_v19, 1  ;;  %v2717_v37 = vadd.f32 %v2716_v36, %v2715_v61 }
 0x231   : > { %v2818_v49 = vadd.f32 %v2817_v42, %v2816_v19 }
 0x233   : > { %v2820_v55 = vsel %vm996_vm4, %v2717_v37, %v2818_v49 }
 0x234   : > { %2825 = vst.msk [vmem:[%s512_s24] sm:$0x3] %vm2824_vm10, %v2820_v55 }
 0x235 PF: > { %s19_s27 = sadd.s32 1, %s3639_s27   ;;  %s4740_s26 = smov %s3635_s2 }
 0x236   : > { %p16_p5 = scmp.ge.s32.totalorder %s19_s27, 4   ;;  %s4741_s2 = smov %s4743_s28 }
 0x238   :  { %18 = sbr.rel (!%p16_p5) target bundleno = 2 (0x2), region = 132 }

// kernel: vae_resblock.5
= control target key start
LH: loop header
LB: loop body
LE: loop exit
PB: predicated region body
PF: predicated region fallthrough
CT: control target
= control target key end

     0   :  { %15 = vsyncpa [#allocation5], 0  ;;  %s5276_s0 = inlined_call_operand.vmem [shape: bf16[2,16,16,64], index: 0, kind: input, shape index: {}, may-alias: {0,1,2}]   ;;  %s5277_s1 = inlined_call_operand.vmem [shape: bf16[2,16,16,64], index: 1, kind: input, shape index: {}, may-alias: {0,1,2}]   ;;  %s5278_s2 = inlined_call_operand.vmem [shape: bf16[2,16,16,64], index: 2, kind: input, shape index: {}, may-alias: {0,1,2}]   ;;  %s5279_s3 = inlined_call_operand.vmem [shape: f32[2,1,64], index: 3, kind: input, shape index: {}]   ;;  %s5280_s4 = inlined_call_operand.vmem [shape: f32[2,1,64], index: 4, kind: input, shape index: {}]   ;;  %s5281_s5 = inlined_call_operand.vmem [shape: bf16[3,192,64], index: 5, kind: input, shape index: {}]   ;;  %s5282_s6 = inlined_call_operand.vmem [shape: f32[1,64], index: 6, kind: input, shape index: {}]   ;;  %s5283_s7 = inlined_call_operand.vmem [shape: f32[2,16,16,32], index: 7, kind: input, shape index: {}]   ;;  %s5284_s8 = inlined_call_operand.vmem [shape: bf16[32,64], index: 8, kind: input, shape index: {}]   ;;  %s5285_s9 = inlined_call_operand.vmem [shape: f32[1,64], index: 9, kind: input, shape index: {}]   ;;  %s5286_s10 = inlined_call_operand.hbm [shape: f32[2,16,16,64], index: 10, kind: output, shape index: {}]  }
   0x1   :  { %17 = vsyncpa [#allocation5 + $0x1], 0  ;;  %s3977_s11 = smov 0   ;;  %s3979_s12 = smov 0  }
   0x2   :  { %s3981_s13 = smov 0   ;;  %s3983_s14 = smov 0  }
   0x3   :  { %s3985_s15 = smov 0   ;;  %s3987_s16 = smov 0  }
   0x4 LB: > { %s3239_s17 = sadd.s32 4294967295, %s3915_s16   ;;  %s3240_s18 = sadd.s32 4294967294, %s3915_s16   ;;  %s3915_s16 = sphi %s3987_s16, %s23_s16   ;;  %s3911_s15 = sphi %s3985_s15, %s5297_s15   ;;  %s3907_s14 = sphi %s3983_s14, %s5296_s14   ;;  %s3903_s13 = sphi %s3981_s13, %s5295_s13   ;;  %s3899_s12 = sphi %s3979_s12, %s5294_s12   ;;  %s3895_s11 = sphi %s3977_s11, %s5293_s11  }
   0x5   : > { %s35_s19 = sadd.s32 1, %s3911_s15  ;;  %s308_s20 = sadd.s32 1, %s3903_s13 }
   0x6   : > { %p37_p0 = scmp.ge.s32.totalorder %s35_s19, 2  ;;  %p318_p1 = scmp.ne.s32.totalorder %s3903_s13, %s3899_s12 }
   0x7   : > { %p319_p2 = scmp.eq.s32.totalorder %s3239_s17, 1  ;;  %p324_p3 = scmp.ne.s32.totalorder %s3899_s12, %s3895_s11 }
   0x8   : > { %s5299_s19 = smov (%p37_p0, %s35_s19), 0  ;;  %p325_p5 = scmp.eq.s32.totalorder %s3240_s18, 1 }
   0x9   : > { %p4017_p4 = por %p319_p2, %p318_p1  ;;  %s303_s22 = ssub.s32 %s3911_s15, %s5299_s19 }
   0xa   : > { %p3243_p6 = scmp.ge.s32.totalorder %s3915_s16, 1  ;;  %p306_p7 = scmp.eq.s32.totalorder %s303_s22, 0 }
   0xb   : > { %p4024_p8 = por %p325_p5, %p324_p3  ;;  %p435_p9 = scmp.lt.s32.totalorder %s3915_s16, 3 }
   0xc   : > { %s4030_s24 = scalar_select %p306_p7, %s3903_s13, %s308_s20  }
   0xd   : > { %p436_p10 = pnand %p3243_p6, %p435_p9 }
   0xe   : > { %p521_p11 = scmp.lt.s32.totalorder (!%p436_p10), %s3907_s14, 1  ;;  %v3670_v0 = vld [vmem:[%s5281_s5] sm:$0xff] (!%p436_p10)   ;;  %v3917_v1 = vmov (!%p436_p10), 0   ;;  %v3671_v2 = vld [vmem:[%s5281_s5 + $0x8] sm:$0xff] (!%p436_p10)   ;;  %vm1232_vm0 = vcmask (!%p436_p10), 523264   ;;  %v3672_v4 = vld [vmem:[%s5281_s5 + $0x10] sm:$0xff] (!%p436_p10)  }
   0xf   : > { %439 = sbr.rel (%p436_p10) target bundleno = 630 (0x276), region = 60  ;;  %1620 = vmatprep.subr.bf16.mxu0 (!%p436_p10), %v3917_v1  ;;  %1334 = vst [vmem:[#allocation2] sm:$0xff] (!%p436_p10), %v3917_v1  ;;  %1990 = vmatprep.subr.bf16.mxu1 (!%p436_p10), %v3917_v1  ;;  %v3673_v3 = vld [vmem:[%s5281_s5 + $0x60] sm:$0xff] (!%p436_p10)   ;;  %1335 = vst.msk [vmem:[#allocation2 + $0x8] sm:$0xff] (!%p436_p10), %vm1232_vm0, %v3917_v1  ;;  %v3674_v23 = vld [vmem:[%s5281_s5 + $0x18] sm:$0xff] (!%p436_p10)   ;;  %s3918_s30 = smov (!%p436_p10), 64  }
  0x10   : > { %1621 = vmatpush1.bf16.msra.mxu0 (!%p436_p10), %v3670_v0  ;;  %1388 = vst.msk [vmem:[#allocation2 + $0x118] sm:$0xff] (!%p436_p10), %vm1232_vm0, %v3917_v1  ;;  %1991 = vmatpush1.bf16.msra.mxu1 (!%p436_p10), %v3673_v3  ;;  %v3675_v29 = vld [vmem:[%s5281_s5 + $0x68] sm:$0xff] (!%p436_p10)   ;;  %v3676_v40 = vld [vmem:[%s5281_s5 + $0x20] sm:$0xff] (!%p436_p10)   ;;  %v3677_v41 = vld [vmem:[%s5281_s5 + $0x70] sm:$0xff] (!%p436_p10)   ;;  %vm1165_vm1 = vcmask (!%p436_p10), 1047552   ;;  %vm1098_vm4 = vcmask (!%p436_p10), 1040384  }
  0x11   : > { %1622 = vmatprep.subr.bf16.mxu0 (!%p436_p10), %v3917_v1  ;;  %1992 = vmatprep.subr.bf16.mxu1 (!%p436_p10), %v3917_v1  ;;  %v3679_v60 = vld [vmem:[%s5281_s5 + $0x78] sm:$0xff] (!%p436_p10)   ;;  %v3678_v0 = vld [vmem:[%s5281_s5 + $0x28] sm:$0xff] (!%p436_p10)   ;;  %vm1166_vm2 = vsmask.f32 (!%p436_p10), 7424  ;;  %vm1099_vm5 = vsmask.f32 (!%p436_p10), 256 }
  0x12   : > { %vm4416_vm3 = vmand (!%p436_p10), %vm1165_vm1, %vm1166_vm2  ;;  %vm2785_vm7 = vcmask (!%p436_p10), 261120  }
  0x13   : > { %vm4650_vm6 = vmand (!%p436_p10), %vm1098_vm4, %vm1099_vm5 }
  0x14   : > { %1623 = vmatpush1.bf16.msra.mxu0 (!%p436_p10), %v3671_v2  ;;  %1993 = vmatpush1.bf16.msra.mxu1 (!%p436_p10), %v3675_v29 }
  0x15   : > { %1624 = vmatprep.subr.bf16.mxu0 (!%p436_p10), %v3917_v1  ;;  %1994 = vmatprep.subr.bf16.mxu1 (!%p436_p10), %v3917_v1 }
  0x16   : > { %s4040_s27 = scalar_select %p521_p11, %s3907_s14, 1 }
  0x18   : > { %s3448_s2 = sshll.u32 %s4040_s27, 7  ;;  %s567_s17 = scalar_lea.vmem %s5279_s3, %s4040_s27  ;;  %1625 = vmatpush1.bf16.msra.mxu0 %v3672_v4  ;;  %1995 = vmatpush1.bf16.msra.mxu1 %v3677_v41 }
  0x19   : > { %s4061_s26 = scalar_lea.vmem %s5276_s0, %s3448_s2  ;;  %s570_s29 = scalar_lea.vmem %s5280_s4, %s4040_s27  ;;  %v4071_v6 = vld [vmem:[%s567_s17] ss:$0 sm:$0xff]  ;;  %1626 = vmatprep.subr.bf16.mxu0 %v3917_v1  ;;  %1996 = vmatprep.subr.bf16.mxu1 %v3917_v1 }
  0x1a   : > { %v3455_v5 = vld [vmem:[%s4061_s26] sm:$0xff]   ;;  %v3518_v7 = vld [vmem:[%s4061_s26 + $0x8] sm:$0xff]   ;;  %v3519_v12 = vld [vmem:[%s4061_s26 + $0x10] sm:$0xff]  }
  0x1b   : > { %v3456_v8 = vunpack.c.l.bf16 %v3455_v5  ;;  %v3457_v9 = vunpack.c.h.bf16 %v3455_v5  ;;  %v3460_v10 = vunpack.c.l.bf16 %v3518_v7  ;;  %v3461_v11 = vunpack.c.h.bf16 %v3518_v7  ;;  %v3520_v13 = vld [vmem:[%s4061_s26 + $0x18] sm:$0xff]   ;;  %v4078_v14 = vld [vmem:[%s570_s29] ss:$0 sm:$0xff]  ;;  %v3522_v34 = vld [vmem:[%s4061_s26 + $0x28] sm:$0xff]   ;;  %s3453_s29 = sshll.u32 %s3907_s14, 12 }
  0x1c   : > { %v3464_v15 = vunpack.c.l.bf16 %v3519_v12  ;;  %v3465_v16 = vunpack.c.h.bf16 %v3519_v12  ;;  %v3468_v17 = vunpack.c.l.bf16 %v3520_v13  ;;  %v3469_v18 = vunpack.c.h.bf16 %v3520_v13  ;;  %v3521_v28 = vld [vmem:[%s4061_s26 + $0x20] sm:$0xff]   ;;  %v3523_v39 = vld [vmem:[%s4061_s26 + $0x30] sm:$0xff]   ;;  %1627 = vmatpush1.bf16.msra.mxu0 %v3674_v23  ;;  %v3524_v59 = vld [vmem:[%s4061_s26 + $0x38] sm:$0xff]   ;;  %1997 = vmatpush1.bf16.msra.mxu1 %v3679_v60 }
  0x1d   : > { %v660_v19 = vmul.f32 %v3456_v8, %v4071_v6  ;;  %v661_v20 = vmul.f32 %v3457_v9, %v4071_v6  ;;  %v662_v21 = vmul.f32 %v3460_v10, %v4071_v6  ;;  %v663_v22 = vmul.f32 %v3461_v11, %v4071_v6  ;;  %1628 = vmatprep.subr.bf16.mxu0 %v3917_v1  ;;  %v3525_v5 = vld [vmem:[%s4061_s26 + $0x40] sm:$0xff]  }
  0x1e   : > { %v664_v24 = vmul.f32 %v3464_v15, %v4071_v6  ;;  %v665_v25 = vmul.f32 %v3465_v16, %v4071_v6  ;;  %v666_v26 = vmul.f32 %v3468_v17, %v4071_v6  ;;  %v667_v27 = vmul.f32 %v3469_v18, %v4071_v6  ;;  %v3681_v7 = vld [vmem:[%s5281_s5 + $0x80] sm:$0xff]   ;;  %v3526_v15 = vld [vmem:[%s4061_s26 + $0x48] sm:$0xff]   ;;  %1998 = vmatprep.subr.bf16.mxu1 %v3917_v1 }
  0x1f   : > { %v4096_v30 = vadd.f32 %v4078_v14, %v660_v19  ;;  %v4099_v31 = vadd.f32 %v4078_v14, %v661_v20  ;;  %v4102_v32 = vadd.f32 %v4078_v14, %v662_v21  ;;  %v4105_v33 = vadd.f32 %v4078_v14, %v663_v22  ;;  %v3680_v19 = vld [vmem:[%s5281_s5 + $0x30] sm:$0xff]   ;;  %v3683_v20 = vld [vmem:[%s5281_s5 + $0x88] sm:$0xff]  }
  0x20   : > { %v4110_v35 = vadd.f32 %v4078_v14, %v664_v24  ;;  %v4113_v36 = vadd.f32 %v4078_v14, %v665_v25  ;;  %v4116_v37 = vadd.f32 %v4078_v14, %v666_v26  ;;  %v4119_v38 = vadd.f32 %v4078_v14, %v667_v27  ;;  %1629 = vmatpush1.bf16.msra.mxu0 %v3676_v40 }
  0x21   : > { %v3255_v42 = vmul.f32 -1.442695, %v4096_v30  ;;  %v3256_v43 = vmul.f32 -1.442695, %v4099_v31  ;;  %v3257_v44 = vmul.f32 -1.442695, %v4102_v32  ;;  %v3472_v45 = vunpack.c.l.bf16 %v3521_v28  ;;  %1630 = vmatprep.subr.bf16.mxu0 %v3917_v1  ;;  %1999 = vmatpush1.bf16.msra.mxu1 %v3681_v7 }
  0x22   : > { %v3258_v46 = vmul.f32 -1.442695, %v4105_v33  ;;  %v3259_v47 = vmul.f32 -1.442695, %v4110_v35  ;;  %v3260_v48 = vmul.f32 -1.442695, %v4113_v36  ;;  %v3473_v49 = vunpack.c.h.bf16 %v3521_v28  ;;  %2000 = vmatprep.subr.bf16.mxu1 %v3917_v1 }
  0x23   : > { %3708 = vpow2.f32 %v3255_v42  ;;  %v3261_v50 = vmul.f32 -1.442695, %v4116_v37  ;;  %v3262_v51 = vmul.f32 -1.442695, %v4119_v38  ;;  %v668_v52 = vmul.f32 %v3472_v45, %v4071_v6 }
  0x24   : > { %3710 = vpow2.f32 %v3256_v43  ;;  %v669_v53 = vmul.f32 %v3473_v49, %v4071_v6  ;;  %v3476_v54 = vunpack.c.l.bf16 %v3522_v34  ;;  %v3477_v55 = vunpack.c.h.bf16 %v3522_v34  ;;  %1631 = vmatpush1.bf16.msra.mxu0 %v3678_v0  ;;  %v3682_v43 = vld [vmem:[%s5281_s5 + $0x38] sm:$0xff]  }
  0x25   : > { %3712 = vpow2.f32 %v3257_v44  ;;  %v4141_v56 = vadd.f32 %v4078_v14, %v668_v52  ;;  %v3480_v57 = vunpack.c.l.bf16 %v3523_v39  ;;  %v3481_v58 = vunpack.c.h.bf16 %v3523_v39  ;;  %1632 = vmatprep.subr.bf16.mxu0 %v3917_v1  ;;  %2001 = vmatpush1.bf16.msra.mxu1 %v3683_v20  ;;  %v3685_v52 = vld [vmem:[%s5281_s5 + $0x90] sm:$0xff]   ;;  %v3528_v0 = vld [vmem:[%s4061_s26 + $0x58] sm:$0xff]  }
  0x26   : > { %3714 = vpow2.f32 %v3258_v46  ;;  %v4149_v61 = vadd.f32 %v4078_v14, %v669_v53  ;;  %v670_v62 = vmul.f32 %v3476_v54, %v4071_v6  ;;  %v671_v63 = vmul.f32 %v3477_v55, %v4071_v6  ;;  %2002 = vmatprep.subr.bf16.mxu1 %v3917_v1 }
  0x27   : > { %3716 = vpow2.f32 %v3259_v47  ;;  %v3263_v2 = vmul.f32 -1.442695, %v4141_v56  ;;  %v672_v3 = vmul.f32 %v3480_v57, %v4071_v6  ;;  %v673_v4 = vmul.f32 %v3481_v58, %v4071_v6  ;;  %v3527_v58 = vld [vmem:[%s4061_s26 + $0x50] sm:$0xff]  }
  0x28   : > { %3718 = vpow2.f32 %v3260_v48  ;;  %v3264_v8 = vmul.f32 -1.442695, %v4149_v61  ;;  %v4166_v9 = vadd.f32 %v4078_v14, %v670_v62  ;;  %v4169_v10 = vadd.f32 %v4078_v14, %v671_v63  ;;  %1633 = vmatpush1.bf16.msra.mxu0 %v3680_v19 }
  0x29   : > { %3720 = vpow2.f32 %v3261_v50  ;;  %v4172_v11 = vadd.f32 %v4078_v14, %v672_v3  ;;  %v4175_v12 = vadd.f32 %v4078_v14, %v673_v4  ;;  %v3484_v13 = vunpack.c.l.bf16 %v3524_v59  ;;  %1634 = vmatprep.subr.bf16.mxu0 %v3917_v1  ;;  %2003 = vmatpush1.bf16.msra.mxu1 %v3685_v52 }
  0x2a   : > { %3722 = vpow2.f32 %v3262_v51  ;;  %v3265_v16 = vmul.f32 -1.442695, %v4166_v9  ;;  %v3266_v17 = vmul.f32 -1.442695, %v4169_v10  ;;  %v3485_v18 = vunpack.c.h.bf16 %v3524_v59  ;;  %2004 = vmatprep.subr.bf16.mxu1 %v3917_v1 }
  0x2b   : > { %3724 = vpow2.f32 %v3263_v2  ;;  %v3267_v21 = vmul.f32 -1.442695, %v4172_v11  ;;  %v4189_v22 = vmul.f32 -1.442695, %v4175_v12  ;;  %v674_v23 = vmul.f32 %v3484_v13, %v4071_v6  ;;  %v3684_v2 = vld [vmem:[%s5281_s5 + $0x40] sm:$0xff]  }
  0x2c   : > { %3726 = vpow2.f32 %v3264_v8  ;;  %v675_v24 = vmul.f32 %v3485_v18, %v4071_v6  ;;  %v3488_v25 = vunpack.c.l.bf16 %v3525_v5  ;;  %v3489_v26 = vunpack.c.h.bf16 %v3525_v5  ;;  %1635 = vmatpush1.bf16.msra.mxu0 %v3682_v43  ;;  %v3687_v8 = vld [vmem:[%s5281_s5 + $0x98] sm:$0xff]  }
  0x2d   : > { %v3709_v27 = vpop.eup %3708  ;;  %3728 = vpow2.f32 %v3265_v16  ;;  %v4195_v28 = vadd.f32 %v4078_v14, %v674_v23  ;;  %v3492_v29 = vunpack.c.l.bf16 %v3526_v15  ;;  %v3493_v34 = vunpack.c.h.bf16 %v3526_v15  ;;  %1636 = vmatprep.subr.bf16.mxu0 %v3917_v1  ;;  %2005 = vmatpush1.bf16.msra.mxu1 %v3687_v8 }
  0x2e   : > { %v3711_v39 = vpop.eup %3710  ;;  %v826_v40 = vadd.f32 1.0, %v3709_v27  ;;  %3730 = vpow2.f32 %v3266_v17  ;;  %v4199_v41 = vadd.f32 %v4078_v14, %v675_v24  ;;  %v676_v42 = vmul.f32 %v3488_v25, %v4071_v6  ;;  %v1439_v17 = vld [vmem:[#allocation2 + $0x8] sm:$0xff]  ;;  %2006 = vmatprep.subr.bf16.mxu1 %v3917_v1 }
  0x2f   : > { %v3713_v44 = vpop.eup %3712  ;;  %v827_v45 = vadd.f32 1.0, %v3711_v39  ;;  %3732 = vpow2.f32 %v3267_v21  ;;  %v4206_v46 = vmul.f32 -1.442695, %v4195_v28  ;;  %v677_v47 = vmul.f32 %v3489_v26, %v4071_v6  ;;  %3304 = vmatprep.mubr.msk.bf16.mxu0 %vm1232_vm0, %v1439_v17  ;;  %v3686_v27 = vld [vmem:[%s5281_s5 + $0x48] sm:$0xff]  }
  0x30   : > { %v3715_v48 = vpop.eup %3714  ;;  %3734 = vrcp.f32 %v826_v40  ;;  %v828_v49 = vadd.f32 1.0, %v3713_v44  ;;  %v4211_v50 = vmul.f32 -1.442695, %v4199_v41  ;;  %v4214_v51 = vadd.f32 %v4078_v14, %v676_v42  ;;  %1637 = vmatpush1.bf16.msra.mxu0 %v3684_v2  ;;  %v3529_v42 = vld [vmem:[%s4061_s26 + $0x60] sm:$0xff]  }
  0x31   : > { %v3717_v53 = vpop.eup %3716  ;;  %3736 = vrcp.f32 %v827_v45  ;;  %v829_v54 = vadd.f32 1.0, %v3715_v48  ;;  %v4220_v55 = vadd.f32 %v4078_v14, %v677_v47  ;;  %v678_v57 = vmul.f32 %v3492_v29, %v4071_v6  ;;  %1638 = vmatprep.subr.bf16.mxu0 %v3917_v1  ;;  %v3689_v48 = vld [vmem:[%s5281_s5 + $0xa0] sm:$0xff]  }
  0x32   : > { %v3719_v59 = vpop.eup %3718  ;;  %3738 = vrcp.f32 %v828_v49  ;;  %v830_v60 = vadd.f32 1.0, %v3717_v53  ;;  %v4226_v62 = vmul.f32 -1.442695, %v4214_v51  ;;  %v679_v63 = vmul.f32 %v3493_v34, %v4071_v6  ;;  %2007 = vmatpush1.bf16.msra.mxu1 %v3689_v48 }
  0x33   : > { %v3721_v3 = vpop.eup %3720  ;;  %3740 = vrcp.f32 %v829_v54  ;;  %v831_v4 = vadd.f32 1.0, %v3719_v59  ;;  %v4234_v5 = vmul.f32 -1.442695, %v4220_v55  ;;  %v4237_v7 = vadd.f32 %v4078_v14, %v678_v57  ;;  %v3688_v57 = vld [vmem:[%s5281_s5 + $0x50] sm:$0xff]   ;;  %2008 = vmatprep.subr.bf16.mxu1 %v3917_v1 }
  0x34   : > { %v3723_v13 = vpop.eup %3722  ;;  %3742 = vrcp.f32 %v830_v60  ;;  %v832_v15 = vadd.f32 1.0, %v3721_v3  ;;  %v3496_v16 = vunpack.c.l.bf16 %v3527_v58  ;;  %v4244_v20 = vadd.f32 %v4078_v14, %v679_v63  ;;  %1639 = vmatpush1.bf16.msra.mxu0 %v3686_v27 }
  0x35   : > { %v3725_v18 = vpop.eup %3724  ;;  %3744 = vrcp.f32 %v831_v4  ;;  %v833_v19 = vadd.f32 1.0, %v3723_v13  ;;  %v3497_v21 = vunpack.c.h.bf16 %v3527_v58  ;;  %v4249_v25 = vmul.f32 -1.442695, %v4237_v7  ;;  %1640 = vmatprep.subr.bf16.mxu0 %v3917_v1 }
  0x36   : > { %v3727_v23 = vpop.eup %3726  ;;  %3746 = vrcp.f32 %v832_v15  ;;  %v834_v24 = vadd.f32 1.0, %v3725_v18  ;;  %v680_v26 = vmul.f32 %v3496_v16, %v4071_v6  ;;  %v3500_v40 = vunpack.c.l.bf16 %v3528_v0 }
  0x37   : > { %v3729_v29 = vpop.eup %3728  ;;  %3748 = vrcp.f32 %v833_v19  ;;  %v835_v34 = vadd.f32 1.0, %v3727_v23  ;;  %v681_v39 = vmul.f32 %v3497_v21, %v4071_v6  ;;  %v3501_v47 = vunpack.c.h.bf16 %v3528_v0  ;;  %v3691_v0 = vld [vmem:[%s5281_s5 + $0xa8] sm:$0xff]  }
  0x38   : > { %v3731_v43 = vpop.eup %3730  ;;  %3750 = vrcp.f32 %v834_v24  ;;  %v836_v44 = vadd.f32 1.0, %v3729_v29  ;;  %v4259_v45 = vadd.f32 %v4078_v14, %v680_v26  ;;  %v682_v54 = vmul.f32 %v3500_v40, %v4071_v6  ;;  %1641 = vmatpush1.bf16.msra.mxu0 %v3688_v57  ;;  %2009 = vmatpush1.bf16.msra.mxu1 %v3691_v0 }
  0x39   : > { %v3733_v49 = vpop.eup %3732  ;;  %3752 = vrcp.f32 %v835_v34  ;;  %v837_v52 = vadd.f32 1.0, %v3731_v43  ;;  %v4265_v53 = vadd.f32 %v4078_v14, %v681_v39  ;;  %v3274_v60 = vmul.f32 -1.442695, %v4244_v20  ;;  %1642 = vmatprep.subr.bf16.mxu0 %v3917_v1  ;;  %v3530_v39 = vld [vmem:[%s4061_s26 + $0x68] sm:$0xff]   ;;  %2010 = vmatprep.subr.bf16.mxu1 %v3917_v1 }
  0x3a   : > { %v3735_v58 = vpop.eup %3734  ;;  %3754 = vrcp.f32 %v836_v44  ;;  %v838_v59 = vadd.f32 1.0, %v3733_v49  ;;  %v683_v63 = vmul.f32 %v3501_v47, %v4071_v6  ;;  %v3275_v4 = vmul.f32 -1.442695, %v4259_v45 }
  0x3b   : > { %v3737_v2 = vpop.eup %3736  ;;  %v922_v3 = vmul.f32 %v3735_v58, %v4096_v30  ;;  %3756 = vrcp.f32 %v837_v52  ;;  %v4283_v15 = vadd.f32 %v4078_v14, %v682_v54  ;;  %v3504_v16 = vunpack.c.l.bf16 %v3529_v42 }
  0x3c   : > { %v3739_v8 = vpop.eup %3738  ;;  %v923_v13 = vmul.f32 %v3737_v2, %v4099_v31  ;;  %3758 = vpow2.f32 %v4189_v22  ;;  %v3276_v30 = vmul.f32 -1.442695, %v4265_v53  ;;  %v3505_v19 = vunpack.c.h.bf16 %v3529_v42 }
  0x3d   : > { %v3741_v17 = vpop.eup %3740  ;;  %v924_v18 = vmul.f32 %v3739_v8, %v4102_v32  ;;  %3760 = vrcp.f32 %v838_v59  ;;  %v4293_v22 = vadd.f32 %v4078_v14, %v683_v63  ;;  %v3690_v32 = vld [vmem:[%s5281_s5 + $0x58] sm:$0xff]   ;;  %v684_v27 = vmul.f32 %v3504_v16, %v4071_v6 }
  0x3e   : > { %v3743_v21 = vpop.eup %3742  ;;  %v4288_v23 = vpack.c.bf16 %v923_v13, %v922_v3  ;;  %v925_v31 = vmul.f32 %v3741_v17, %v4105_v33  ;;  %3762 = vpow2.f32 %v4206_v46  ;;  %v685_v33 = vmul.f32 %v3505_v19, %v4071_v6  ;;  %v3692_v46 = vld [vmem:[%s5281_s5 + $0xb0] sm:$0xff]   ;;  %1643 = vmatpush1.bf16.msra.mxu0 %v3690_v32 }
  0x3f   : > { %v3745_v24 = vpop.eup %3744  ;;  %v926_v26 = vmul.f32 %v3743_v21, %v4110_v35  ;;  %3764 = vpow2.f32 %v4211_v50  ;;  %v3277_v50 = vmul.f32 -1.442695, %v4283_v15  ;;  %v4317_v43 = vadd.f32 %v4078_v14, %v684_v27  ;;  %2425 = vmatprep.subr.bf16.mxu0 %v3917_v1  ;;  %2011 = vmatpush1.bf16.msra.mxu1 %v3692_v46  ;;  %v4379_v27 = vld [vmem:[%s5281_s5 + $0xd0] sm:$0xff]  }
  0x40   : > { %v3747_v29 = vpop.eup %3746  ;;  %1200 = vrot.lane.b32.xlu0 %v4288_v23, %s3918_s30  ;;  %v4308_v34 = vpack.c.bf16 %v925_v31, %v924_v18  ;;  %v927_v35 = vmul.f32 %v3745_v24, %v4113_v36  ;;  %3766 = vpow2.f32 %v4226_v62  ;;  %v4325_v62 = vadd.f32 %v4078_v14, %v685_v33  ;;  %2012 = vmatprep.subr.bf16.mxu1 %v3917_v1 }
  0x41   : > { %v3749_v40 = vpop.eup %3748  ;;  %v928_v42 = vmul.f32 %v3747_v29, %v4116_v37  ;;  %3768 = vpow2.f32 %v4234_v5  ;;  %v4330_v37 = vld [vmem:[%s5281_s5 + $0xc0] sm:$0xff]   ;;  %v3278_v49 = vmul.f32 -1.442695, %v4293_v22  ;;  %v3279_v54 = vmul.f32 -1.442695, %v4317_v43  ;;  %1653 = vmatmul.mubr.bf16.vlgmr.msra.gmra.mrb[0].mxu0 %v3917_v1 }
  0x42   : > { %v3751_v44 = vpop.eup %3750  ;;  %v4320_v47 = vpack.c.bf16 %v927_v35, %v926_v26  ;;  %v929_v36 = vmul.f32 %v3749_v40, %v4119_v38  ;;  %3770 = vpow2.f32 %v4249_v25  ;;  %v3694_v38 = vld [vmem:[%s5281_s5 + $0xb8] sm:$0xff]   ;;  %v3508_v59 = vunpack.c.l.bf16 %v3530_v39  ;;  %2426 = vmatpush1.bf16.msra.mxu0 %v4330_v37 }
  0x43   : > { %v3753_v5 = vpop.eup %3752  ;;  %v930_v48 = vmul.f32 %v3751_v44, %v4141_v56  ;;  %3772 = vpow2.f32 %v3274_v60  ;;  %v3509_v60 = vunpack.c.h.bf16 %v3530_v39  ;;  %2427 = vmatprep.subr.bf16.mxu0 %v3917_v1  ;;  %2013 = vmatpush1.bf16.msra.mxu1 %v3694_v38  ;;  %v978_v32 = vshrl.u32 %v4308_v34, 16 }
  0x44   : > { %v3755_v25 = vpop.eup %3754  ;;  %1202 = vrot.lane.b32.xlu0 %v4308_v34, %s3918_s30  ;;  %1204 = vrot.lane.b32.xlu1 %v4320_v47, %s3918_s30  ;;  %v4342_v52 = vpack.c.bf16 %v929_v36, %v928_v42  ;;  %v931_v56 = vmul.f32 %v3753_v5, %v4149_v61  ;;  %3774 = vpow2.f32 %v3275_v4  ;;  %v3280_v61 = vmul.f32 -1.442695, %v4325_v62 }
  0x45   : > { %v3757_v57 = vpop.eup %3756  ;;  %v932_v58 = vmul.f32 %v3755_v25, %v4166_v9  ;;  %3776 = vpow2.f32 %v3276_v30  ;;  %v4357_v9 = vld [vmem:[%s5281_s5 + $0xc8] sm:$0xff]   ;;  %v686_v8 = vmul.f32 %v3508_v59, %v4071_v6  ;;  %v687_v13 = vmul.f32 %v3509_v60, %v4071_v6  ;;  %3587 = vmatprep.subr.bf16.mxu1 %v3917_v1  ;;  %v4400_v25 = vld [vmem:[%s5281_s5 + $0xd8] sm:$0xff]  }
  0x46   : > { %v3759_v63 = vpop.eup %3758  ;;  %v4348_v0 = vpack.c.bf16 %v931_v56, %v930_v48  ;;  %v933_v2 = vmul.f32 %v3757_v57, %v4169_v10  ;;  %3778 = vpow2.f32 %v3277_v50  ;;  %v3531_v10 = vld [vmem:[%s4061_s26 + $0x70] sm:$0xff]   ;;  %v971_v30 = vshrl.u32 %v4288_v23, 16  ;;  %2428 = vmatpush1.bf16.msra.mxu0 %v4357_v9  ;;  %v3532_v59 = vld [vmem:[%s4061_s26 + $0x78] sm:$0xff]   ;;  %s3452_s26 = sshll.u32 %s4040_s27, 8  ;;  %s517_s27 = sand.u32 1, %s3899_s12  }
  0x47   : > { %v3761_v3 = vpop.eup %3760  ;;  %v839_v4 = vadd.f32 1.0, %v3759_v63  ;;  %3780 = vpow2.f32 %v3278_v49  ;;  %v4371_v21 = vadd.f32 %v4078_v14, %v686_v8  ;;  %v3512_v26 = vunpack.c.l.bf16 %v3531_v10  ;;  %2429 = vmatprep.subr.bf16.mxu0 %v3917_v1  ;;  %s4911_s20 = scalar_lea.vmem %s5283_s7, %s3452_s26  ;;  %s3244_s1 = sshll.u32 %s517_s27, 8 }
  0x48   : > { %v3763_v16 = vpop.eup %3762  ;;  %1206 = vrot.lane.b32.xlu1 %v4342_v52, %s3918_s30  ;;  %1208 = vrot.lane.b32.xlu0 %v4348_v0, %s3918_s30  ;;  %v4367_v17 = vpack.c.bf16 %v933_v2, %v932_v58  ;;  %3782 = vpow2.f32 %v3279_v54  ;;  %v4382_v46 = vmul.f32 %v3761_v3, %v4172_v11  ;;  %v4385_v35 = vadd.f32 %v4078_v14, %v687_v13  ;;  %s5112_s28 = scalar_lea.vmem [#allocation4], %s3244_s1  ;;  %s5216_s26 = scalar_lea.hbm %s5286_s10, %s3453_s29 }
  0x49   : > { %v3765_v18 = vpop.eup %3764  ;;  %3784 = vrcp.f32 %v839_v4  ;;  %v840_v19 = vadd.f32 1.0, %v3763_v16  ;;  %v3513_v40 = vunpack.c.h.bf16 %v3531_v10  ;;  %v688_v42 = vmul.f32 %v3512_v26, %v4071_v6  ;;  %s3076_s18 = sshll.u32 %s5112_s28, 4  ;;  %s5230_s2 = scalar_lea.sflag [#allocation5], %s517_s27  ;;  %s5218_s18 = int_to_ptr.vmem [resolvable:$true] %s3076_s18 }
  0x4a   : > { %v3767_v31 = vpop.eup %3766  ;;  %v841_v24 = vadd.f32 1.0, %v3765_v18  ;;  %3786 = vpow2.f32 %v3280_v61  ;;  %v3281_v36 = vmul.f32 -1.442695, %v4371_v21  ;;  %2430 = vmatpush1.bf16.msra.mxu0 %v4379_v27  ;;  %v973_v57 = vrot.slane %v971_v30, 7  ;;  %s3837_s17 = scalar_lea.vmem %s5218_s18, 4096 }
  0x4b   : > { %v3769_v33 = vpop.eup %3768  ;;  %3788 = vrcp.f32 %v840_v19  ;;  %v842_v29 = vadd.f32 1.0, %v3767_v31  ;;  %v689_v49 = vmul.f32 %v3513_v40, %v4071_v6  ;;  %v4394_v38 = vadd.f32 %v4078_v14, %v688_v42  ;;  %2431 = vmatprep.subr.bf16.mxu0 %v3917_v1  ;;  %p3838_p12 = scmp.ne.s32.totalorder %s5218_s18, %s3837_s17 }
  0x4c   : > { %v3771_v50 = vpop.eup %3770  ;;  %1210 = vrot.lane.b32.xlu1 %v4367_v17, %s3918_s30  ;;  %3790 = vrcp.f32 %v841_v24  ;;  %v843_v39 = vadd.f32 1.0, %v3769_v33  ;;  %v974_v58 = vshll.u32 %v4288_v23, 16  ;;  %v3282_v2 = vmul.f32 -1.442695, %v4385_v35 }
  0x4d   : > { %v3773_v44 = vpop.eup %3772  ;;  %3792 = vrcp.f32 %v842_v29  ;;  %v844_v11 = vadd.f32 1.0, %v3771_v50  ;;  %v4409_v61 = vadd.f32 %v4078_v14, %v689_v49  ;;  %v3283_v18 = vmul.f32 -1.442695, %v4394_v38  ;;  %p3839_p13 = pnand %p3838_p12, %p4017_p4 }
  0x4e   : > { %v3775_v5 = vpop.eup %3774  ;;  %3794 = vrcp.f32 %v843_v39  ;;  %v845_v48 = vadd.f32 1.0, %v3773_v44  ;;  %v4411_v8 = vor.u32 %v974_v58, %v973_v57  ;;  %v1117_v13 = vrot.slane %v974_v58, 1  ;;  %2432 = vmatpush1.bf16.msra.mxu0 %v4400_v25  ;;  %v4430_v44 = vld [vmem:[%s5281_s5 + $0xe0] sm:$0xff]  }
  0x4f   : > { %v3777_v56 = vpop.eup %3776  ;;  %3796 = vrcp.f32 %v844_v11  ;;  %v846_v54 = vadd.f32 1.0, %v3775_v5  ;;  %v3516_v31 = vunpack.c.l.bf16 %v3532_v59  ;;  %v3284_v33 = vmul.f32 -1.442695, %v4409_v61  ;;  %2433 = vmatprep.subr.bf16.mxu0 %v3917_v1  ;;  %p3840_p0 = pneg %p3839_p13 }
  0x50   : > { %v3779_v60 = vpop.eup %3778  ;;  %3798 = vrcp.f32 %v845_v48  ;;  %v847_v63 = vadd.f32 1.0, %v3777_v56  ;;  %v1118_v29 = vor.u32 %v1117_v13, %v971_v30  ;;  %v3517_v40 = vunpack.c.h.bf16 %v3532_v59 }
  0x51   : > { %v3781_v3 = vpop.eup %3780  ;;  %3800 = vrcp.f32 %v846_v54  ;;  %v848_v4 = vadd.f32 1.0, %v3779_v60  ;;  %v690_v42 = vmul.f32 %v3516_v31, %v4071_v6  ;;  %v980_v30 = vrot.slane %v978_v32, 7 }
  0x52   : > { %v3783_v10 = vpop.eup %3782  ;;  %3802 = vrcp.f32 %v847_v63  ;;  %v849_v16 = vadd.f32 1.0, %v3781_v3  ;;  %v1168_v23 = vsel %vm4416_vm3, %v1118_v29, 0  ;;  %v691_v56 = vmul.f32 %v3517_v40, %v4071_v6  ;;  %2434 = vmatpush1.bf16.msra.mxu0 %v4430_v44 }
  0x53   : > { %v3785_v24 = vpop.eup %3784  ;;  %3804 = vrcp.f32 %v848_v4  ;;  %v850_v26 = vadd.f32 1.0, %v3783_v10  ;;  %1299 = vst.msk [vmem:[#allocation2 + $0x18] sm:$0xff] %vm1232_vm0, %v1168_v23  ;;  %v4445_v58 = vadd.f32 %v4078_v14, %v690_v42  ;;  %2435 = vmatprep.subr.bf16.mxu0 %v3917_v1  ;;  %v985_v4 = vshrl.u32 %v4320_v47, 16 }
  0x54   : > { %v3787_v50 = vpop.eup %3786  ;;  %v935_v39 = vmul.f32 %v3785_v24, %v4175_v12  ;;  %3806 = vrcp.f32 %v849_v16  ;;  %v4452_v6 = vadd.f32 %v4078_v14, %v691_v56  ;;  %v992_v16 = vshrl.u32 %v4342_v52, 16 }
  0x55   : > { %v3789_v11 = vpop.eup %3788  ;;  %v851_v5 = vadd.f32 1.0, %v3787_v50  ;;  %3808 = vrcp.f32 %v850_v26  ;;  %v3285_v1 = vmul.f32 -1.442695, %v4445_v58  ;;  %v987_v29 = vrot.slane %v985_v4, 7 }
  0x56   : > { %v3791_v48 = vpop.eup %3790  ;;  %v4437_v12 = vpack.c.bf16 %v935_v39, %v4382_v46  ;;  %v936_v49 = vmul.f32 %v3789_v11, %v4195_v28  ;;  %3810 = vpow2.f32 %v3281_v36  ;;  %v981_v36 = vshll.u32 %v4308_v34, 16 }
  0x57   : > { %v3793_v54 = vpop.eup %3792  ;;  %v937_v57 = vmul.f32 %v3791_v48, %v4199_v41  ;;  %3812 = vrcp.f32 %v851_v5  ;;  %v988_v40 = vshll.u32 %v4320_v47, 16  ;;  %v4499_v48 = vld [vmem:[#allocation2] sm:$0xff] }
  0x58   : > { %v3795_v46 = vpop.eup %3794  ;;  %1212 = vrot.lane.b32.xlu0 %v4437_v12, %s3918_s30  ;;  %v938_v28 = vmul.f32 %v3793_v54, %v4214_v51  ;;  %3814 = vpow2.f32 %v3282_v2  ;;  %v3286_v51 = vmul.f32 -1.442695, %v4452_v6  ;;  %v4461_v2 = vor.u32 %v981_v36, %v980_v30 }
  0x59   : > { %v3797_v59 = vpop.eup %3796  ;;  %v4455_v41 = vpack.c.bf16 %v937_v57, %v936_v49  ;;  %v939_v60 = vmul.f32 %v3795_v46, %v4220_v55  ;;  %3816 = vpow2.f32 %v3283_v18  ;;  %v1119_v18 = vrot.slane %v981_v36, 1 }
  0x5a   : > { %v3799_v63 = vpop.eup %3798  ;;  %v940_v3 = vmul.f32 %v3797_v59, %v4237_v7  ;;  %3818 = vpow2.f32 %v3284_v33  ;;  %v1441_v33 = vld [vmem:[#allocation2 + $0x18] sm:$0xff]  ;;  %v4497_v47 = vor.u32 %v988_v40, %v987_v29  ;;  %v1121_v30 = vrot.slane %v988_v40, 1 }
  0x5b   : > { %v3801_v14 = vpop.eup %3800  ;;  %1214 = vrot.lane.b32.xlu1 %v4455_v41, %s3918_s30  ;;  %v4466_v13 = vpack.c.bf16 %v939_v60, %v938_v28  ;;  %v941_v55 = vmul.f32 %v3799_v63, %v4244_v20  ;;  %3820 = vpow2.f32 %v3285_v1  ;;  %v4479_v20 = vld [vmem:[%s5281_s5 + $0xe8] sm:$0xff]   ;;  %v1120_v39 = vor.u32 %v1119_v18, %v978_v32  ;;  %3305 = vmatprep.mubr.msk.bf16.mxu0 %vm1232_vm0, %v1441_v33 }
  0x5c   : > { %v3803_v10 = vpop.eup %3802  ;;  %v942_v7 = vmul.f32 %v3801_v14, %v4259_v45  ;;  %3822 = vpow2.f32 %v3286_v51  ;;  %3356 = vmatprep.mubr.msk.bf16.mxu1 %vm1232_vm0, %v1441_v33  ;;  %2436 = vmatpush1.bf16.msra.mxu0 %v4479_v20  ;;  %v1006_v57 = vshrl.u32 %v4367_v17, 16  ;;  %v1122_v28 = vor.u32 %v1121_v30, %v985_v4 }
  0x5d   : > { %v3805_v31 = vpop.eup %3804  ;;  %1216 = vrot.lane.b32.xlu0 %v4466_v13, %s3918_s30  ;;  %v4473_v24 = vpack.c.bf16 %v941_v55, %v940_v3  ;;  %v943_v26 = vmul.f32 %v3803_v10, %v4265_v53  ;;  %v994_v53 = vrot.slane %v992_v16, 7  ;;  %v1169_v23 = vsel %vm4416_vm3, %v1120_v39, 0  ;;  %2437 = vmatprep.subr.bf16.mxu0 %v4499_v48 }
  0x5e   : > { %v3807_v50 = vpop.eup %3806  ;;  %v944_v45 = vmul.f32 %v3805_v31, %v4283_v15  ;;  %v995_v15 = vshll.u32 %v4342_v52, 16  ;;  %1301 = vst.msk [vmem:[#allocation2 + $0x28] sm:$0xff] %vm1232_vm0, %v1169_v23  ;;  %v1013_v60 = vshrl.u32 %v4437_v12, 16  ;;  %v1020_v1 = vshrl.u32 %v4455_v41, 16 }
  0x5f   : > { %v3809_v42 = vpop.eup %3808  ;;  %1218 = vrot.lane.b32.xlu1 %v4473_v24, %s3918_s30  ;;  %v4489_v11 = vpack.c.bf16 %v943_v26, %v942_v7  ;;  %v945_v5 = vmul.f32 %v3807_v50, %v4293_v22  ;;  %v999_v22 = vshrl.u32 %v4348_v0, 16  ;;  %v1170_v55 = vsel %vm4416_vm3, %v1122_v28, 0 }
  0x60   : > { %v3811_v34 = vpop.eup %3810  ;;  %v946_v32 = vmul.f32 %v3809_v42, %v4317_v43  ;;  %v4508_v43 = vor.u32 %v995_v15, %v994_v53  ;;  %v1123_v36 = vrot.slane %v995_v15, 1  ;;  %1303 = vst.msk [vmem:[#allocation2 + $0x38] sm:$0xff] %vm1232_vm0, %v1170_v55  ;;  %v1002_v18 = vshll.u32 %v4348_v0, 16 }
  0x61   : > { %v3813_v49 = vpop.eup %3812  ;;  %1220 = vrot.lane.b32.xlu0 %v4489_v11, %s3918_s30  ;;  %v4505_v52 = vpack.c.bf16 %v945_v5, %v944_v45  ;;  %v852_v56 = vadd.f32 1.0, %v3811_v34  ;;  %v1001_v7 = vrot.slane %v999_v22, 7  ;;  %v1027_v26 = vshrl.u32 %v4466_v13, 16 }
  0x62   : > { %v3815_v54 = vpop.eup %3814  ;;  %v947_v46 = vmul.f32 %v3813_v49, %v4325_v62  ;;  %v1124_v62 = vor.u32 %v1123_v36, %v992_v16  ;;  %v1125_v45 = vrot.slane %v1002_v18, 1  ;;  %v1008_v0 = vrot.slane %v1006_v57, 7 }
  0x63   : > { %v3817_v59 = vpop.eup %3816  ;;  %1222 = vrot.lane.b32.xlu1 %v4505_v52, %s3918_s30  ;;  %v853_v63 = vadd.f32 1.0, %v3815_v54  ;;  %3824 = vrcp.f32 %v852_v56  ;;  %v4528_v50 = vor.u32 %v1002_v18, %v1001_v7  ;;  %v1009_v39 = vshll.u32 %v4367_v17, 16 }
  0x64   : > { %v3819_v3 = vpop.eup %3818  ;;  %v4516_v51 = vpack.c.bf16 %v947_v46, %v946_v32  ;;  %v854_v14 = vadd.f32 1.0, %v3817_v59  ;;  %v1171_v29 = vsel %vm4416_vm3, %v1124_v62, 0  ;;  %v1015_v40 = vrot.slane %v1013_v60, 7 }
  0x65   : > { %v3821_v4 = vpop.eup %3820  ;;  %3826 = vrcp.f32 %v853_v63  ;;  %v855_v10 = vadd.f32 1.0, %v3819_v3  ;;  %1305 = vst.msk [vmem:[#allocation2 + $0x48] sm:$0xff] %vm1232_vm0, %v1171_v29  ;;  %v1034_v53 = vshrl.u32 %v4473_v24, 16  ;;  %v1126_v42 = vor.u32 %v1125_v45, %v999_v22 }
  0x66   : > { %v3823_v31 = vpop.eup %3822  ;;  %1224 = vrot.lane.b32.xlu0 %v4516_v51, %s3918_s30  ;;  %3828 = vrcp.f32 %v854_v14  ;;  %v856_v33 = vadd.f32 1.0, %v3821_v4  ;;  %v1016_v5 = vshll.u32 %v4437_v12, 16  ;;  %v4533_v15 = vor.u32 %v1009_v39, %v1008_v0  ;;  %v4546_v12 = vld [vmem:[%s5281_s5 + $0xf0] sm:$0xff]  }
  0x67   : > { %3830 = vrcp.f32 %v855_v10  ;;  %v857_v16 = vadd.f32 1.0, %v3823_v31  ;;  %v1127_v34 = vrot.slane %v1009_v39, 1  ;;  %v1022_v32 = vrot.slane %v1020_v1, 7  ;;  %2438 = vmatpush1.bf16.msra.mxu0 %v4546_v12 }
  0x68   : > { %3832 = vrcp.f32 %v856_v33  ;;  %v1023_v23 = vshll.u32 %v4455_v41, 16  ;;  %v1172_v30 = vsel %vm4416_vm3, %v1126_v42, 0  ;;  %v4538_v49 = vor.u32 %v1016_v5, %v1015_v40  ;;  %2439 = vmatprep.subr.bf16.mxu0 %v4499_v48 }
  0x69   : > { %3834 = vrcp.f32 %v857_v16  ;;  %v1129_v56 = vrot.slane %v1016_v5, 1  ;;  %v1029_v17 = vrot.slane %v1027_v26, 7  ;;  %1307 = vst.msk [vmem:[#allocation2 + $0x58] sm:$0xff] %vm1232_vm0, %v1172_v30  ;;  %v1128_v54 = vor.u32 %v1127_v34, %v1006_v57 }
  0x6a   : > { %v4541_v46 = vor.u32 %v1023_v23, %v1022_v32  ;;  %v1131_v22 = vrot.slane %v1023_v23, 1  ;;  %v1030_v36 = vshll.u32 %v4466_v13, 16  ;;  %v1036_v59 = vrot.slane %v1034_v53, 7 }
  0x6b   : > { %v1130_v41 = vor.u32 %v1129_v56, %v1013_v60  ;;  %v1173_v3 = vsel %vm4416_vm3, %v1128_v54, 0  ;;  %v1037_v13 = vshll.u32 %v4473_v24, 16  ;;  %v1044_v5 = vshll.u32 %v4489_v11, 16 }
  0x6c   : > { %v1132_v14 = vor.u32 %v1131_v22, %v1020_v1  ;;  %1309 = vst.msk [vmem:[#allocation2 + $0x68] sm:$0xff] %vm1232_vm0, %v1173_v3  ;;  %v4556_v62 = vor.u32 %v1030_v36, %v1029_v17  ;;  %v1133_v60 = vrot.slane %v1030_v36, 1  ;;  %v1051_v56 = vshll.u32 %v4505_v52, 16  ;;  %v4599_v17 = vld [vmem:[%s5281_s5 + $0x100] sm:$0xff]  }
  0x6d   : > { %v3825_v28 = vpop.eup %3824  ;;  %v1174_v55 = vsel %vm4416_vm3, %v1130_v41, 0  ;;  %v4566_v31 = vor.u32 %v1037_v13, %v1036_v59  ;;  %v1135_v16 = vrot.slane %v1037_v13, 1  ;;  %v1055_v41 = vshrl.u32 %v4516_v51, 16 }
  0x6e   : > { %v948_v63 = vmul.f32 %v3825_v28, %v4371_v21  ;;  %1311 = vst.msk [vmem:[#allocation2 + $0x78] sm:$0xff] %vm1232_vm0, %v1174_v55  ;;  %v1175_v1 = vsel %vm4416_vm3, %v1132_v14, 0  ;;  %v1134_v18 = vor.u32 %v1133_v60, %v1027_v26  ;;  %v1139_v22 = vrot.slane %v1051_v56, 1  ;;  %v4618_v60 = vld [vmem:[%s5281_s5 + $0x108] sm:$0xff]  }
  0x6f   : > { %v3827_v57 = vpop.eup %3826  ;;  %1313 = vst.msk [vmem:[#allocation2 + $0x88] sm:$0xff] %vm1232_vm0, %v1175_v1  ;;  %v1136_v40 = vor.u32 %v1135_v16, %v1034_v53  ;;  %v1137_v53 = vrot.slane %v1044_v5, 1  ;;  %v1058_v59 = vshll.u32 %v4516_v51, 16  ;;  %v1102_v19 = vsel %vm4650_vm6, 0, %v4461_v2 }
  0x70   : > { %v3829_v21 = vpop.eup %3828  ;;  %v949_v4 = vmul.f32 %v3827_v57, %v4385_v35  ;;  %v1041_v35 = vshrl.u32 %v4489_v11, 16  ;;  %v1176_v39 = vsel %vm4416_vm3, %v1134_v18, 0  ;;  %v1048_v11 = vshrl.u32 %v4505_v52, 16  ;;  %v4630_v18 = vld [vmem:[%s5281_s5 + $0x110] sm:$0xff]  }
  0x71   : > { %v3831_v10 = vpop.eup %3830  ;;  %v950_v7 = vmul.f32 %v3829_v21, %v4394_v38  ;;  %1315 = vst.msk [vmem:[#allocation2 + $0x98] sm:$0xff] %vm1232_vm0, %v1176_v39  ;;  %v1177_v34 = vsel %vm4416_vm3, %v1136_v40, 0  ;;  %v1057_v52 = vrot.slane %v1055_v41, 7  ;;  %v1141_v3 = vrot.slane %v1058_v59, 1 }
  0x72   : > { %v3833_v33 = vpop.eup %3832  ;;  %v967_v24 = vpack.c.bf16 %v949_v4, %v948_v63  ;;  %v951_v29 = vmul.f32 %v3831_v10, %v4409_v61  ;;  %v4579_v61 = vld [vmem:[%s5281_s5 + $0xf8] sm:$0xff]   ;;  %v1043_v42 = vrot.slane %v1041_v35, 7  ;;  %1317 = vst.msk [vmem:[#allocation2 + $0xa8] sm:$0xff] %vm1232_vm0, %v1177_v34  ;;  %v1138_v32 = vor.u32 %v1137_v53, %v1041_v35 }
  0x73   : > { %v3835_v45 = vpop.eup %3834  ;;  %v952_v0 = vmul.f32 %v3833_v33, %v4445_v58  ;;  %2440 = vmatpush1.bf16.msra.mxu0 %v4579_v61  ;;  %v1050_v30 = vrot.slane %v1048_v11, 7  ;;  %v1140_v28 = vor.u32 %v1139_v22, %v1048_v11  ;;  %v4610_v63 = vor.u32 %v1058_v59, %v1057_v52  ;;  %v4657_v11 = vld [vmem:[#allocation2 + $0x28] sm:$0xff] }
  0x74   : > { %1226 = vrot.lane.b32.xlu1 %v967_v24, %s3918_s30  ;;  %v968_v38 = vpack.c.bf16 %v951_v29, %v950_v7  ;;  %v953_v26 = vmul.f32 %v3835_v45, %v4452_v6  ;;  %v4587_v6 = vor.u32 %v1044_v5, %v1043_v42  ;;  %2441 = vmatprep.subr.bf16.mxu0 %v4499_v48  ;;  %v1178_v23 = vsel %vm4416_vm3, %v1138_v32, 0 }
  0x75   : > { %1319 = vst.msk [vmem:[#allocation2 + $0xb8] sm:$0xff] %vm1232_vm0, %v1178_v23  ;;  %v4601_v54 = vor.u32 %v1051_v56, %v1050_v30  ;;  %v1179_v36 = vsel %vm4416_vm3, %v1140_v28, 0  ;;  %v1142_v14 = vor.u32 %v1141_v3, %v1055_v41  ;;  %v1062_v57 = vshrl.u32 %v967_v24, 16  ;;  %v4685_v41 = vld [vmem:[#allocation2 + $0x38] sm:$0xff]  ;;  %v4708_v3 = vld [vmem:[#allocation2 + $0x48] sm:$0xff] }
  0x76   : > { %1228 = vrot.lane.b32.xlu0 %v968_v38, %s3918_s30  ;;  %v969_v58 = vpack.c.bf16 %v953_v26, %v952_v0  ;;  %1321 = vst.msk [vmem:[#allocation2 + $0xc8] sm:$0xff] %vm1232_vm0, %v1179_v36  ;;  %v1065_v21 = vshll.u32 %v967_v24, 16  ;;  %v1069_v10 = vshrl.u32 %v968_v38, 16  ;;  %v1072_v24 = vshll.u32 %v968_v38, 16  ;;  %v4642_v38 = vld [vmem:[%s5281_s5 + $0x118] sm:$0xff]  }
  0x77   : > { %2442 = vmatpush1.bf16.msra.mxu0 %v4599_v17  ;;  %v1180_v55 = vsel %vm4416_vm3, %v1142_v14, 0  ;;  %v1064_v13 = vrot.slane %v1062_v57, 7  ;;  %v1101_v53 = vsel %vm4650_vm6, 0, %v4411_v8  ;;  %v1103_v30 = vsel %vm4650_vm6, 0, %v4497_v47 }
  0x78   : > { %1230 = vrot.lane.b32.xlu1 %v969_v58, %s3918_s30  ;;  %2443 = vmatprep.subr.bf16.mxu0 %v4499_v48  ;;  %1323 = vst.msk [vmem:[#allocation2 + $0xd8] sm:$0xff] %vm1232_vm0, %v1180_v55  ;;  %v1143_v4 = vrot.slane %v1065_v21, 1  ;;  %v1071_v33 = vrot.slane %v1069_v10, 7  ;;  %v1145_v16 = vrot.slane %v1072_v24, 1  ;;  %v1076_v35 = vshrl.u32 %v969_v58, 16 }
  0x79   : > { %v4621_v51 = vor.u32 %v1065_v21, %v1064_v13  ;;  %v1079_v26 = vshll.u32 %v969_v58, 16  ;;  %v1105_v47 = vsel %vm4650_vm6, 0, %v4528_v50  ;;  %v1110_v55 = vsel %vm4650_vm6, 0, %v4566_v31  ;;  %v4876_v58 = vld [vmem:[%s5282_s6] ss:$0 sm:$0xff] }
  0x7a   : > { %v1144_v1 = vor.u32 %v1143_v4, %v1062_v57  ;;  %v4633_v29 = vor.u32 %v1072_v24, %v1071_v33  ;;  %v1146_v45 = vor.u32 %v1145_v16, %v1069_v10  ;;  %v1078_v39 = vrot.slane %v1076_v35, 7  ;;  %v4756_v4 = vld [vmem:[#allocation2 + $0x68] sm:$0xff]  ;;  %v4786_v24 = vld [vmem:[#allocation2 + $0x78] sm:$0xff] }
  0x7b   : > { %2444 = vmatpush1.bf16.msra.mxu0 %v4618_v60  ;;  %v1147_v42 = vrot.slane %v1079_v26, 1  ;;  %v1108_v57 = vsel %vm4650_vm6, 0, %v4541_v46  ;;  %v1112_v31 = vsel %vm4650_vm6, 0, %v4601_v54  ;;  %v1113_v54 = vsel %vm4650_vm6, 0, %v4610_v63  ;;  %v4803_v63 = vld [vmem:[#allocation2 + $0x88] sm:$0xff] }
  0x7c   : > { %2445 = vmatprep.subr.bf16.mxu0 %v4499_v48  ;;  %v1181_v7 = vsel %vm4416_vm3, %v1144_v1, 0  ;;  %v1182_v0 = vsel %vm4416_vm3, %v1146_v45, 0  ;;  %v4644_v40 = vor.u32 %v1079_v26, %v1078_v39  ;;  %v1115_v16 = vsel %vm4650_vm6, 0, %v4633_v29  ;;  %v4826_v39 = vld [vmem:[#allocation2 + $0x98] sm:$0xff]  ;;  %v4837_v29 = vld [vmem:[#allocation2 + $0xa8] sm:$0xff] }
  0x7d   : > { %1325 = vst.msk [vmem:[#allocation2 + $0xe8] sm:$0xff] %vm1232_vm0, %v1181_v7  ;;  %1327 = vst.msk [vmem:[#allocation2 + $0xf8] sm:$0xff] %vm1232_vm0, %v1182_v0  ;;  %v1148_v5 = vor.u32 %v1147_v42, %v1076_v35  ;;  %v4853_v42 = vld [vmem:[#allocation2 + $0xc8] sm:$0xff] }
  0x7e   : > { %v1116_v0 = vsel %vm4650_vm6, 0, %v4644_v40  ;;  %v4845_v40 = vld [vmem:[#allocation2 + $0xb8] sm:$0xff] }
  0x7f   : > { %2446 = vmatpush1.bf16.msra.mxu0 %v4630_v18  ;;  %v1183_v34 = vsel %vm4416_vm3, %v1148_v5, 0  ;;  %v4861_v5 = vld [vmem:[#allocation2 + $0xd8] sm:$0xff] }
  0x80   : > { %2447 = vmatprep.subr.bf16.mxu0 %v4499_v48  ;;  %1329 = vst.msk [vmem:[#allocation2 + $0x108] sm:$0xff] %vm1232_vm0, %v1183_v34 }
  0x83   : > { %2448 = vmatpush1.bf16.msra.mxu0 %v4642_v38 }
  0x84   : > { %v1467_v34 = vld [vmem:[#allocation2 + $0xe8] sm:$0xff] }
  0xb2   : > { %v1201_v32 = vpop.permute.xlu0 %1200 }
  0xb3   : > { %v1235_v23 = vsel %vm1232_vm0, %v1101_v53, %v1201_v32 }
  0xb4   : > { %1661 = vmatmul.mubr.bf16.gmra.mrb[4].mxu0 %v1235_v23  ;;  %2023 = vmatmul.mubr.bf16.vlgmr.msra.gmra.mrb[0].mxu1 %v1235_v23 }
  0xb5   : > { %3599 = vmatpush1.bf16.msra.mxu1 %v4330_v37  ;;  %3306 = vmatprep.mubr.msk.bf16.mxu0 %vm1232_vm0, %v4657_v11  ;;  %v1104_v37 = vsel %vm4650_vm6, 0, %v4508_v43 }
  0xb6   : > { %v1203_v8 = vpop.permute.xlu0 %1202  ;;  %v1205_v56 = vpop.permute.xlu1 %1204  ;;  %3357 = vmatprep.mubr.msk.bf16.mxu1 %vm1232_vm0, %v4657_v11  ;;  %3588 = vmatprep.subr.bf16.mxu1 %v4499_v48 }
  0xb7   : > { %v4673_v2 = vsel %vm1232_vm0, %v1102_v19, %v1203_v8  ;;  %v4676_v22 = vsel %vm1232_vm0, %v1103_v30, %v1205_v56  ;;  %v1469_v19 = vld [vmem:[#allocation2 + $0xf8] sm:$0xff] }
  0xb9   : > { %3600 = vmatpush1.bf16.msra.mxu1 %v4357_v9  ;;  %v1106_v9 = vsel %vm4650_vm6, 0, %v4533_v15 }
  0xba   : > { %v1207_v28 = vpop.permute.xlu1 %1206  ;;  %3589 = vmatprep.subr.bf16.mxu1 %v4499_v48  ;;  %v1209_v36 = vpop.permute.xlu0 %1208 }
  0xbb   : > { %v4689_v52 = vsel %vm1232_vm0, %v1104_v37, %v1207_v28  ;;  %v4692_v59 = vsel %vm1232_vm0, %v1105_v47, %v1209_v36  ;;  %v1844_v37 = vld [vmem:[#allocation2 + $0x108] sm:$0xff]  ;;  %v2717_v36 = vld [vmem:[%s4911_s20 + $0x18] sm:$0xff] }
  0xbc   : > { %1669 = vmatmul.mubr.bf16.gmra.mrb[8].mxu0 %v4673_v2  ;;  %2031 = vmatmul.mubr.bf16.gmra.mrb[4].mxu1 %v4673_v2  ;;  %v3707_v47 = vld [vmem:[%s5284_s8 + $0x8] sm:$0xff]  }
  0xbd   : > { %3307 = vmatprep.mubr.msk.bf16.mxu0 %vm1232_vm0, %v4685_v41  ;;  %3358 = vmatprep.mubr.msk.bf16.mxu1 %vm1232_vm0, %v4685_v41 }
  0xbe   : > { %3601 = vmatpush1.bf16.msra.mxu1 %v4379_v27  ;;  %v1211_v43 = vpop.permute.xlu1 %1210  ;;  %v1107_v27 = vsel %vm4650_vm6, 0, %v4538_v49 }
  0xbf   : > { %v4705_v50 = vsel %vm1232_vm0, %v1106_v9, %v1211_v43  ;;  %3590 = vmatprep.subr.bf16.mxu1 %v4499_v48 }
  0xc2   : > { %3602 = vmatpush1.bf16.msra.mxu1 %v4400_v25  ;;  %v4723_v25 = vld [vmem:[#allocation2 + $0x58] sm:$0xff] }
  0xc3   : > { %3591 = vmatprep.subr.bf16.mxu1 %v4499_v48 }
  0xc4   : > { %1677 = vmatmul.mubr.bf16.gmra.mrb[12].mxu0 %v4676_v22  ;;  %2039 = vmatmul.mubr.bf16.gmra.mrb[8].mxu1 %v4676_v22 }
  0xc5   : > { %3308 = vmatprep.mubr.msk.bf16.mxu0 %vm1232_vm0, %v4708_v3  ;;  %3359 = vmatprep.mubr.msk.bf16.mxu1 %vm1232_vm0, %v4708_v3 }
  0xc6   : > { %3603 = vmatpush1.bf16.msra.mxu1 %v4430_v44 }
  0xc7   : > { %3592 = vmatprep.subr.bf16.mxu1 %v4499_v48 }
  0xca   : > { %v1213_v15 = vpop.permute.xlu0 %1212  ;;  %3604 = vmatpush1.bf16.msra.mxu1 %v4479_v20  ;;  %v1109_v20 = vsel %vm4650_vm6, 0, %v4556_v62  ;;  %v1111_v62 = vsel %vm4650_vm6, 0, %v4587_v6 }
  0xcb   : > { %v4727_v14 = vsel %vm1232_vm0, %v1107_v27, %v1213_v15  ;;  %3593 = vmatprep.subr.bf16.mxu1 %v4499_v48  ;;  %v2723_v27 = vld [vmem:[%s4911_s20 + $0x48] sm:$0xff] }
  0xcc   : > { %1685 = vmatmul.mubr.bf16.gmra.mrb[16].mxu0 %v4689_v52  ;;  %2047 = vmatmul.mubr.bf16.gmra.mrb[12].mxu1 %v4689_v52 }
  0xcd   : > { %3309 = vmatprep.mubr.msk.bf16.mxu0 %vm1232_vm0, %v4723_v25  ;;  %3360 = vmatprep.mubr.msk.bf16.mxu1 %vm1232_vm0, %v4723_v25  ;;  %v1215_v44 = vpop.permute.xlu1 %1214 }
  0xce   : > { %v4743_v49 = vsel %vm1232_vm0, %v1108_v57, %v1215_v44  ;;  %3605 = vmatpush1.bf16.msra.mxu1 %v4546_v12  ;;  %v2725_v57 = vld [vmem:[%s4911_s20 + $0x58] sm:$0xff]  ;;  %v2726_v44 = vld [vmem:[%s4911_s20 + $0x60] sm:$0xff] }
  0xcf   : > { %v1217_v46 = vpop.permute.xlu0 %1216  ;;  %3594 = vmatprep.subr.bf16.mxu1 %v4499_v48 }
  0xd0   : > { %v4751_v13 = vsel %vm1232_vm0, %v1109_v20, %v1217_v46  ;;  %v2727_v20 = vld [vmem:[%s4911_s20 + $0x68] sm:$0xff] }
  0xd1   : > { %v1219_v21 = vpop.permute.xlu1 %1218 }
  0xd2   : > { %v4759_v1 = vsel %vm1232_vm0, %v1110_v55, %v1219_v21  ;;  %3606 = vmatpush1.bf16.msra.mxu1 %v4579_v61  ;;  %v2752_v55 = vpack.c.bf16 %v2727_v20, %v2726_v44  ;;  %v2729_v21 = vld [vmem:[%s4911_s20 + $0x78] sm:$0xff] }
  0xd3   : > { %v1221_v12 = vpop.permute.xlu0 %1220  ;;  %3595 = vmatprep.subr.bf16.mxu1 %v4499_v48 }
  0xd4   : > { %1693 = vmatmul.mubr.bf16.gmra.mrb[20].mxu0 %v4692_v59  ;;  %2055 = vmatmul.mubr.bf16.gmra.mrb[16].mxu1 %v4692_v59  ;;  %v4769_v6 = vsel %vm1232_vm0, %v1111_v62, %v1221_v12  ;;  %v2730_v62 = vld [vmem:[%s4911_s20 + $0x80] sm:$0xff] }
  0xd5   : > { %3310 = vmatprep.mubr.msk.bf16.mxu0 %vm1232_vm0, %v4756_v4  ;;  %3361 = vmatprep.mubr.msk.bf16.mxu1 %vm1232_vm0, %v4756_v4  ;;  %v1223_v61 = vpop.permute.xlu1 %1222 }
  0xd6   : > { %v4776_v10 = vsel %vm1232_vm0, %v1112_v31, %v1223_v61  ;;  %3607 = vmatpush1.bf16.msra.mxu1 %v4599_v17  ;;  %v4801_v17 = vld [vmem:[%s5284_s8] sm:$0xff]   ;;  %v2733_v61 = vld [vmem:[%s4911_s20 + $0x98] sm:$0xff] }
  0xd7   : > { %3596 = vmatprep.subr.bf16.mxu1 %v4499_v48 }
  0xd8   : > { %v1225_v7 = vpop.permute.xlu0 %1224 }
  0xd9   : > { %v4784_v33 = vsel %vm1232_vm0, %v1113_v54, %v1225_v7  ;;  %v2734_v54 = vld [vmem:[%s4911_s20 + $0xa0] sm:$0xff]  ;;  %v2735_v7 = vld [vmem:[%s4911_s20 + $0xa8] sm:$0xff] }
  0xda   : > { %3608 = vmatpush1.bf16.msra.mxu1 %v4618_v60  ;;  %v1114_v60 = vsel %vm4650_vm6, 0, %v4621_v51 }
  0xdb   : > { %3597 = vmatprep.subr.bf16.mxu1 %v4499_v48 }
  0xdc   : > { %1701 = vmatmul.mubr.bf16.gmra.mrb[24].mxu0 %v4705_v50  ;;  %2063 = vmatmul.mubr.bf16.gmra.mrb[20].mxu1 %v4705_v50 }
  0xdd   : > { %3311 = vmatprep.mubr.msk.bf16.mxu0 %vm1232_vm0, %v4786_v24  ;;  %3362 = vmatprep.mubr.msk.bf16.mxu1 %vm1232_vm0, %v4786_v24 }
  0xde   : > { %3609 = vmatpush1.bf16.msra.mxu1 %v4630_v18 }
  0xdf   : > { %3598 = vmatprep.subr.bf16.mxu1 %v4499_v48 }
  0xe2   : > { %3610 = vmatpush1.bf16.msra.mxu1 %v4642_v38 }
  0xe3   : > { %3551 = vmatprep.subr.bf16.mxu1 %v4801_v17 }
  0xe4   : > { %1709 = vmatmul.mubr.bf16.gmra.mrb[28].mxu0 %v4727_v14  ;;  %2071 = vmatmul.mubr.bf16.gmra.mrb[24].mxu1 %v4727_v14 }
  0xe5   : > { %3312 = vmatprep.mubr.msk.bf16.mxu0 %vm1232_vm0, %v4803_v63  ;;  %3363 = vmatprep.mubr.msk.bf16.mxu1 %vm1232_vm0, %v4803_v63 }
  0xe6   : > { %v1227_v18 = vpop.permute.xlu1 %1226 }
  0xe7   : > { %v1287_v45 = vsel %vm1232_vm0, %v1114_v60, %v1227_v18  ;;  %v2738_v60 = vld [vmem:[%s4911_s20 + $0xc0] sm:$0xff]  ;;  %v2739_v18 = vld [vmem:[%s4911_s20 + $0xc8] sm:$0xff] }
  0xe8   : > { %v1229_v35 = vpop.permute.xlu0 %1228 }
  0xe9   : > { %v4824_v51 = vsel %vm1232_vm0, %v1115_v16, %v1229_v35  ;;  %v2741_v35 = vld [vmem:[%s4911_s20 + $0xd8] sm:$0xff] }
  0xea   : > { %v1231_v26 = vpop.permute.xlu1 %1230 }
  0xeb   : > { %v4829_v38 = vsel %vm1232_vm0, %v1116_v0, %v1231_v26  ;;  %v2742_v0 = vld [vmem:[%s4911_s20 + $0xe0] sm:$0xff] }
  0xec   : > { %1717 = vmatmul.mubr.bf16.gmra.mrb[32].mxu0 %v4743_v49  ;;  %2079 = vmatmul.mubr.bf16.gmra.mrb[28].mxu1 %v4743_v49 }
  0xed   : > { %3313 = vmatprep.mubr.msk.bf16.mxu0 %vm1232_vm0, %v4826_v39  ;;  %3364 = vmatprep.mubr.msk.bf16.mxu1 %vm1232_vm0, %v4826_v39 }
  0xf4   : > { %1725 = vmatmul.mubr.bf16.gmra.mrb[36].mxu0 %v4751_v13  ;;  %2087 = vmatmul.mubr.bf16.gmra.mrb[32].mxu1 %v4751_v13 }
  0xf5   : > { %3314 = vmatprep.mubr.msk.bf16.mxu0 %vm1232_vm0, %v4837_v29  ;;  %3365 = vmatprep.mubr.msk.bf16.mxu1 %vm1232_vm0, %v4837_v29 }
  0xfc   : > { %1733 = vmatmul.mubr.bf16.gmra.mrb[40].mxu0 %v4759_v1  ;;  %2095 = vmatmul.mubr.bf16.gmra.mrb[36].mxu1 %v4759_v1 }
  0xfd   : > { %3315 = vmatprep.mubr.msk.bf16.mxu0 %vm1232_vm0, %v4845_v40  ;;  %3366 = vmatprep.mubr.msk.bf16.mxu1 %vm1232_vm0, %v4845_v40 }
 0x104   : > { %1741 = vmatmul.mubr.bf16.gmra.mrb[44].mxu0 %v4769_v6  ;;  %2103 = vmatmul.mubr.bf16.gmra.mrb[40].mxu1 %v4769_v6 }
 0x105   : > { %3316 = vmatprep.mubr.msk.bf16.mxu0 %vm1232_vm0, %v4853_v42  ;;  %3367 = vmatprep.mubr.msk.bf16.mxu1 %vm1232_vm0, %v4853_v42 }
 0x10c   : > { %1749 = vmatmul.mubr.bf16.gmra.mrb[48].mxu0 %v4776_v10  ;;  %2111 = vmatmul.mubr.bf16.gmra.mrb[44].mxu1 %v4776_v10 }
 0x10d   : > { %3317 = vmatprep.mubr.msk.bf16.mxu0 %vm1232_vm0, %v4861_v5  ;;  %3368 = vmatprep.mubr.msk.bf16.mxu1 %vm1232_vm0, %v4861_v5 }
 0x114   : > { %1757 = vmatmul.mubr.bf16.gmra.mrb[52].mxu0 %v4784_v33  ;;  %2119 = vmatmul.mubr.bf16.gmra.mrb[48].mxu1 %v4784_v33  ;;  %v1654_v53 = vpop.f32.mrb[0].mxu0 }
 0x115   : > { %3318 = vmatprep.mubr.msk.bf16.mxu0 %vm1232_vm0, %v1467_v34  ;;  %3369 = vmatprep.mubr.msk.bf16.mxu1 %vm1232_vm0, %v1467_v34  ;;  %v1655_v32 = vadd.f32 %v4876_v58, %v1654_v53  ;;  %v1656_v23 = vpop.f32.mrb[1].mxu0 }
 0x116   : > { %v1657_v30 = vpop.f32.mrb[2].mxu0 }
 0x117   : > { %1781 = vst.msk [vmem:[#allocation3] sm:$0xff] %vm1232_vm0, %v1655_v32  ;;  %v1658_v8 = vadd.f32 %v4876_v58, %v1657_v30  ;;  %v1659_v56 = vpop.f32.mrb[3].mxu0 }
 0x119   : > { %1782 = vst.msk [vmem:[#allocation3 + $0x8] sm:$0xff] %vm1232_vm0, %v1658_v8 }
 0x11c   : > { %1765 = vmatmul.mubr.bf16.gmra.mrb[56].mxu0 %v1287_v45  ;;  %2127 = vmatmul.mubr.bf16.gmra.mrb[52].mxu1 %v1287_v45 }
 0x11d   : > { %3319 = vmatprep.mubr.msk.bf16.mxu0 %vm1232_vm0, %v1469_v19  ;;  %3370 = vmatprep.mubr.msk.bf16.mxu1 %vm1232_vm0, %v1469_v19 }
 0x124   : > { %1773 = vmatmul.mubr.bf16.gmra.mrb[60].mxu0 %v4824_v51  ;;  %2135 = vmatmul.mubr.bf16.gmra.mrb[56].mxu1 %v4824_v51 }
 0x125   : > { %3371 = vmatprep.mubr.msk.bf16.mxu1 %vm1232_vm0, %v1844_v37  ;;  %3408 = vmatprep.mubr.msk.bf16.mxu0 %vm1232_vm0, %v4657_v11  ;;  %v2279_v11 = vld [vmem:[#allocation2 + $0x118] sm:$0xff] }
 0x12c   : > { %2143 = vmatmul.mubr.bf16.gmra.mrb[60].mxu1 %v4829_v38  ;;  %2458 = vmatmul.mubr.bf16.vlgmr.msra.gmra.mrb[64].mxu0 %v4673_v2  ;;  %v2714_v2 = vld [vmem:[%s4911_s20] sm:$0xff] }
 0x12d   : > { %3409 = vmatprep.mubr.msk.bf16.mxu0 %vm1232_vm0, %v4685_v41  ;;  %3420 = vmatprep.mubr.msk.bf16.mxu1 %vm1232_vm0, %v1467_v34  ;;  %v2716_v41 = vld [vmem:[%s4911_s20 + $0x10] sm:$0xff] }
 0x12e   : > { %v2747_v9 = vpack.c.bf16 %v2717_v36, %v2716_v41 }
 0x134   : > { %2466 = vmatmul.mubr.bf16.gmra.mrb[68].mxu0 %v4676_v22  ;;  %2554 = vmatmul.mubr.bf16.vlgmr.msra.gmra.mrb[64].mxu1 %v1287_v45  ;;  %v2715_v22 = vld [vmem:[%s4911_s20 + $0x8] sm:$0xff]  ;;  %v2758_v45 = vpack.c.bf16 %v2739_v18, %v2738_v60 }
 0x135   : > { %3552 = vmatpush3.bf16.msra.mxu1 %v4801_v17  ;;  %3410 = vmatprep.mubr.msk.bf16.mxu0 %vm1232_vm0, %v4708_v3  ;;  %v2746_v28 = vpack.c.bf16 %v2715_v22, %v2714_v2  ;;  %v2722_v3 = vld [vmem:[%s4911_s20 + $0x40] sm:$0xff]  ;;  %v2756_v17 = vpack.c.bf16 %v2735_v7, %v2734_v54 }
 0x136   : > { %3421 = vmatprep.mubr.msk.bf16.mxu1 %vm1232_vm0, %v1469_v19  ;;  %3553 = vmatprep.subr.bf16.mxu1 %v3707_v47  ;;  %v2750_v15 = vpack.c.bf16 %v2723_v27, %v2722_v3 }
 0x139   : > { %3554 = vmatpush3.bf16.msra.mxu1 %v3707_v47 }
 0x13c   : > { %2474 = vmatmul.mubr.bf16.gmra.mrb[72].mxu0 %v4689_v52  ;;  %2562 = vmatmul.mubr.bf16.gmra.mrb[68].mxu1 %v4824_v51  ;;  %v2718_v52 = vld [vmem:[%s4911_s20 + $0x20] sm:$0xff]  ;;  %v2743_v51 = vld [vmem:[%s4911_s20 + $0xe8] sm:$0xff] }
 0x13d   : > { %3411 = vmatprep.mubr.msk.bf16.mxu0 %vm1232_vm0, %v4723_v25  ;;  %3422 = vmatprep.mubr.msk.bf16.mxu1 %vm1232_vm0, %v1844_v37  ;;  %v2760_v26 = vpack.c.bf16 %v2743_v51, %v2742_v0 }
 0x144   : > { %2482 = vmatmul.mubr.bf16.gmra.mrb[76].mxu0 %v4692_v59  ;;  %2570 = vmatmul.mubr.bf16.gmra.mrb[72].mxu1 %v4829_v38  ;;  %v2719_v59 = vld [vmem:[%s4911_s20 + $0x28] sm:$0xff]  ;;  %v2151_v38 = vld [vmem:[#allocation3] sm:$0xff] }
 0x145   : > { %3412 = vmatprep.mubr.msk.bf16.mxu0 %vm1232_vm0, %v4756_v4  ;;  %3423 = vmatprep.mubr.msk.bf16.mxu1 %vm1232_vm0, %v2279_v11  ;;  %v2748_v43 = vpack.c.bf16 %v2719_v59, %v2718_v52  ;;  %v2731_v4 = vld [vmem:[%s4911_s20 + $0x88] sm:$0xff] }
 0x146   : > { %v2754_v31 = vpack.c.bf16 %v2731_v4, %v2730_v62 }
 0x14c   : > { %2490 = vmatmul.mubr.bf16.gmra.mrb[80].mxu0 %v4705_v50  ;;  %2578 = vmatmul.mubr.bf16.gmra.mrb[76].mxu1 %v4499_v48  ;;  %v2720_v48 = vld [vmem:[%s4911_s20 + $0x30] sm:$0xff]  ;;  %v2721_v50 = vld [vmem:[%s4911_s20 + $0x38] sm:$0xff] }
 0x14d   : > { %3413 = vmatprep.mubr.msk.bf16.mxu0 %vm1232_vm0, %v4786_v24  ;;  %3555 = vmatprep.mubr.msk.bf16.mxu1 %vm2785_vm7, %v2746_v28  ;;  %v2749_v25 = vpack.c.bf16 %v2721_v50, %v2720_v48 }
 0x154   : > { %2498 = vmatmul.mubr.bf16.gmra.mrb[84].mxu0 %v4727_v14  ;;  %3556 = vmatmul.mubr.msk.bf16.vlgmr.msra.gmra.mrb[80].mxu1 %vm2785_vm7, %v2747_v9  ;;  %v2724_v14 = vld [vmem:[%s4911_s20 + $0x50] sm:$0xff] }
 0x155   : > { %3414 = vmatprep.mubr.msk.bf16.mxu0 %vm1232_vm0, %v4803_v63  ;;  %3559 = vmatprep.mubr.msk.bf16.mxu1 %vm2785_vm7, %v2748_v43  ;;  %v2751_v46 = vpack.c.bf16 %v2725_v57, %v2724_v14  ;;  %v2737_v63 = vld [vmem:[%s4911_s20 + $0xb8] sm:$0xff] }
 0x15c   : > { %2506 = vmatmul.mubr.bf16.gmra.mrb[88].mxu0 %v4743_v49  ;;  %3560 = vmatmul.mubr.msk.bf16.gmra.mrb[84].mxu1 %vm2785_vm7, %v2749_v25  ;;  %v2728_v49 = vld [vmem:[%s4911_s20 + $0x70] sm:$0xff] }
 0x15d   : > { %3415 = vmatprep.mubr.msk.bf16.mxu0 %vm1232_vm0, %v4826_v39  ;;  %3563 = vmatprep.mubr.msk.bf16.mxu1 %vm2785_vm7, %v2750_v15  ;;  %v2753_v12 = vpack.c.bf16 %v2729_v21, %v2728_v49 }
 0x164   : > { %2514 = vmatmul.mubr.bf16.gmra.mrb[92].mxu0 %v4751_v13  ;;  %3564 = vmatmul.mubr.msk.bf16.gmra.mrb[88].mxu1 %vm2785_vm7, %v2751_v46  ;;  %v2732_v13 = vld [vmem:[%s4911_s20 + $0x90] sm:$0xff] }
 0x165   : > { %3416 = vmatprep.mubr.msk.bf16.mxu0 %vm1232_vm0, %v4837_v29  ;;  %3567 = vmatprep.mubr.msk.bf16.mxu1 %vm2785_vm7, %v2752_v55  ;;  %v2755_v24 = vpack.c.bf16 %v2733_v61, %v2732_v13  ;;  %v2745_v29 = vld [vmem:[%s4911_s20 + $0xf8] sm:$0xff] }
 0x16c   : > { %2522 = vmatmul.mubr.bf16.gmra.mrb[96].mxu0 %v4759_v1  ;;  %3568 = vmatmul.mubr.msk.bf16.gmra.mrb[92].mxu1 %vm2785_vm7, %v2753_v12  ;;  %v2736_v1 = vld [vmem:[%s4911_s20 + $0xb0] sm:$0xff] }
 0x16d   : > { %3417 = vmatprep.mubr.msk.bf16.mxu0 %vm1232_vm0, %v4845_v40  ;;  %3571 = vmatprep.mubr.msk.bf16.mxu1 %vm2785_vm7, %v2754_v31  ;;  %v2757_v16 = vpack.c.bf16 %v2737_v63, %v2736_v1 }
 0x174   : > { %2530 = vmatmul.mubr.bf16.gmra.mrb[100].mxu0 %v4769_v6  ;;  %3572 = vmatmul.mubr.msk.bf16.gmra.mrb[96].mxu1 %vm2785_vm7, %v2755_v24  ;;  %v2740_v6 = vld [vmem:[%s4911_s20 + $0xd0] sm:$0xff] }
 0x175   : > { %3418 = vmatprep.mubr.msk.bf16.mxu0 %vm1232_vm0, %v4853_v42  ;;  %3575 = vmatprep.mubr.msk.bf16.mxu1 %vm2785_vm7, %v2756_v17  ;;  %v2759_v39 = vpack.c.bf16 %v2741_v35, %v2740_v6 }
 0x17c   : > { %2538 = vmatmul.mubr.bf16.gmra.mrb[104].mxu0 %v4776_v10  ;;  %3576 = vmatmul.mubr.msk.bf16.gmra.mrb[100].mxu1 %vm2785_vm7, %v2757_v16  ;;  %v2744_v10 = vld [vmem:[%s4911_s20 + $0xf0] sm:$0xff]  ;;  %s3919_s20 = smov [#allocation4]  }
 0x17d   : > { %3419 = vmatprep.mubr.msk.bf16.mxu0 %vm1232_vm0, %v4861_v5  ;;  %3579 = vmatprep.mubr.msk.bf16.mxu1 %vm2785_vm7, %v2758_v45  ;;  %v2152_v5 = vld [vmem:[#allocation3 + $0x8] sm:$0xff]  ;;  %v2761_v19 = vpack.c.bf16 %v2745_v29, %v2744_v10  ;;  %s3841_s22 = sshll.u32 %s3919_s20, 4  ;;  %s3842_s22 = int_to_ptr.vmem [resolvable:$false] %s3841_s22 }
 0x17e   : > { %s3843_s25 = scalar_lea.vmem %s3842_s22, 8192  ;;  %p3844_p1 = scmp.lt.s32.totalorder %s5218_s18, %s3842_s22 }
 0x17f   : > { %p3845_p2 = scmp.lt.s32.totalorder %s3843_s25, %s3837_s17 }
 0x181   : > { %p3846_p3 = por %p3845_p2, %p3844_p1 }
 0x183   : > { %p3847_p5 = pnand %p3846_p3, %p3840_p0 }
 0x184   : > { %2546 = vmatmul.mubr.bf16.gmra.mrb[108].mxu0 %v4784_v33  ;;  %3580 = vmatmul.mubr.msk.bf16.gmra.mrb[104].mxu1 %vm2785_vm7, %v2759_v39 }
 0x185   : > { %3583 = vmatprep.mubr.msk.bf16.mxu1 %vm2785_vm7, %v2760_v26 }
 0x187   : > { %v1662_v40 = vpop.f32.mrb[4].mxu0  ;;  %v2024_v42 = vpop.f32.mrb[0].mxu1 }
 0x188   : > { %v1663_v34 = vadd.f32 %v4876_v58, %v1662_v40  ;;  %v2183_v53 = vadd.f32 %v2151_v38, %v2024_v42  ;;  %v1664_v32 = vpop.f32.mrb[5].mxu0  ;;  %v2026_v23 = vpop.f32.mrb[1].mxu1 }
 0x189   : > { %v1665_v30 = vpop.f32.mrb[6].mxu0  ;;  %v2027_v8 = vpop.f32.mrb[2].mxu1 }
 0x18a   : > { %1783 = vst.msk [vmem:[#allocation3 + $0x10] sm:$0xff] %vm1232_vm0, %v1663_v34  ;;  %2215 = vst.msk [vmem:[#allocation3] sm:$0xff] %vm1232_vm0, %v2183_v53  ;;  %v1666_v33 = vadd.f32 %v4876_v58, %v1665_v30  ;;  %v2184_v56 = vadd.f32 %v2152_v5, %v2027_v8  ;;  %v1667_v37 = vpop.f32.mrb[7].mxu0  ;;  %v2029_v47 = vpop.f32.mrb[3].mxu1 }
 0x18c   : > { %1784 = vst.msk [vmem:[#allocation3 + $0x18] sm:$0xff] %vm1232_vm0, %v1666_v33  ;;  %2216 = vst.msk [vmem:[#allocation3 + $0x8] sm:$0xff] %vm1232_vm0, %v2184_v56  ;;  %3584 = vmatmul.mubr.msk.bf16.gmra.mrb[108].mxu1 %vm2785_vm7, %v2761_v19 }
 0x18f   : > { %v1670_v11 = vpop.f32.mrb[8].mxu0  ;;  %v2032_v2 = vpop.f32.mrb[4].mxu1 }
 0x190   : > { %v1671_v22 = vadd.f32 %v4876_v58, %v1670_v11  ;;  %v1672_v28 = vpop.f32.mrb[9].mxu0  ;;  %v2034_v41 = vpop.f32.mrb[5].mxu1 }
 0x191   : > { %v2153_v36 = vld [vmem:[#allocation3 + $0x10] sm:$0xff]  ;;  %v1673_v52 = vpop.f32.mrb[10].mxu0  ;;  %v2035_v59 = vpop.f32.mrb[6].mxu1 }
 0x192   : > { %1785 = vst.msk [vmem:[#allocation3 + $0x20] sm:$0xff] %vm1232_vm0, %v1671_v22  ;;  %v2185_v9 = vadd.f32 %v2153_v36, %v2032_v2  ;;  %v1674_v43 = vadd.f32 %v4876_v58, %v1673_v52  ;;  %v1675_v48 = vpop.f32.mrb[11].mxu0  ;;  %v2037_v50 = vpop.f32.mrb[7].mxu1 }
 0x193   : > { %v2154_v3 = vld [vmem:[#allocation3 + $0x18] sm:$0xff] }
 0x194   : > { %2217 = vst.msk [vmem:[#allocation3 + $0x10] sm:$0xff] %vm1232_vm0, %v2185_v9  ;;  %1786 = vst.msk [vmem:[#allocation3 + $0x28] sm:$0xff] %vm1232_vm0, %v1674_v43  ;;  %v2186_v27 = vadd.f32 %v2154_v3, %v2035_v59 }
 0x196   : > { %2218 = vst.msk [vmem:[#allocation3 + $0x18] sm:$0xff] %vm1232_vm0, %v2186_v27 }
 0x197   : > { %v1678_v25 = vpop.f32.mrb[12].mxu0  ;;  %v2040_v15 = vpop.f32.mrb[8].mxu1 }
 0x198   : > { %v1679_v14 = vadd.f32 %v4876_v58, %v1678_v25  ;;  %v1680_v57 = vpop.f32.mrb[13].mxu0  ;;  %v2042_v44 = vpop.f32.mrb[9].mxu1 }
 0x199   : > { %v2155_v20 = vld [vmem:[#allocation3 + $0x20] sm:$0xff]  ;;  %v1681_v46 = vpop.f32.mrb[14].mxu0  ;;  %v2043_v55 = vpop.f32.mrb[10].mxu1 }
 0x19a   : > { %1787 = vst.msk [vmem:[#allocation3 + $0x30] sm:$0xff] %vm1232_vm0, %v1679_v14  ;;  %v2187_v49 = vadd.f32 %v2155_v20, %v2040_v15  ;;  %v1682_v21 = vadd.f32 %v4876_v58, %v1681_v46  ;;  %v1683_v62 = vpop.f32.mrb[15].mxu0  ;;  %v2045_v4 = vpop.f32.mrb[11].mxu1 }
 0x19b   : > { %v2156_v12 = vld [vmem:[#allocation3 + $0x28] sm:$0xff] }
 0x19c   : > { %2219 = vst.msk [vmem:[#allocation3 + $0x20] sm:$0xff] %vm1232_vm0, %v2187_v49  ;;  %1788 = vst.msk [vmem:[#allocation3 + $0x38] sm:$0xff] %vm1232_vm0, %v1682_v21  ;;  %v2188_v31 = vadd.f32 %v2156_v12, %v2043_v55 }
 0x19e   : > { %2220 = vst.msk [vmem:[#allocation3 + $0x28] sm:$0xff] %vm1232_vm0, %v2188_v31 }
 0x19f   : > { %v1686_v13 = vpop.f32.mrb[16].mxu0  ;;  %v2048_v61 = vpop.f32.mrb[12].mxu1 }
 0x1a0   : > { %v1687_v54 = vadd.f32 %v4876_v58, %v1686_v13  ;;  %v1688_v7 = vpop.f32.mrb[17].mxu0  ;;  %v2050_v24 = vpop.f32.mrb[13].mxu1 }
 0x1a1   : > { %v2157_v17 = vld [vmem:[#allocation3 + $0x30] sm:$0xff]  ;;  %v1689_v1 = vpop.f32.mrb[18].mxu0  ;;  %v2051_v63 = vpop.f32.mrb[14].mxu1 }
 0x1a2   : > { %1789 = vst.msk [vmem:[#allocation3 + $0x40] sm:$0xff] %vm1232_vm0, %v1687_v54  ;;  %v2189_v60 = vadd.f32 %v2157_v17, %v2048_v61  ;;  %v1690_v18 = vadd.f32 %v4876_v58, %v1689_v1  ;;  %v1691_v16 = vpop.f32.mrb[19].mxu0  ;;  %v2053_v45 = vpop.f32.mrb[15].mxu1 }
 0x1a3   : > { %v2158_v6 = vld [vmem:[#allocation3 + $0x38] sm:$0xff] }
 0x1a4   : > { %2221 = vst.msk [vmem:[#allocation3 + $0x30] sm:$0xff] %vm1232_vm0, %v2189_v60  ;;  %1790 = vst.msk [vmem:[#allocation3 + $0x48] sm:$0xff] %vm1232_vm0, %v1690_v18  ;;  %v2190_v35 = vadd.f32 %v2158_v6, %v2051_v63 }
 0x1a6   : > { %2222 = vst.msk [vmem:[#allocation3 + $0x38] sm:$0xff] %vm1232_vm0, %v2190_v35 }
 0x1a7   : > { %v1694_v0 = vpop.f32.mrb[20].mxu0  ;;  %v2056_v51 = vpop.f32.mrb[16].mxu1 }
 0x1a8   : > { %v1695_v39 = vadd.f32 %v4876_v58, %v1694_v0  ;;  %v1696_v26 = vpop.f32.mrb[21].mxu0  ;;  %v2058_v38 = vpop.f32.mrb[17].mxu1 }
 0x1a9   : > { %v2159_v10 = vld [vmem:[#allocation3 + $0x40] sm:$0xff]  ;;  %v1697_v29 = vpop.f32.mrb[22].mxu0  ;;  %v2059_v40 = vpop.f32.mrb[18].mxu1 }
 0x1aa   : > { %1791 = vst.msk [vmem:[#allocation3 + $0x50] sm:$0xff] %vm1232_vm0, %v1695_v39  ;;  %v2191_v42 = vadd.f32 %v2159_v10, %v2056_v51  ;;  %v1698_v5 = vadd.f32 %v4876_v58, %v1697_v29  ;;  %v1699_v34 = vpop.f32.mrb[23].mxu0  ;;  %v2061_v53 = vpop.f32.mrb[19].mxu1 }
 0x1ab   : > { %v2160_v32 = vld [vmem:[#allocation3 + $0x48] sm:$0xff] }
 0x1ac   : > { %2223 = vst.msk [vmem:[#allocation3 + $0x40] sm:$0xff] %vm1232_vm0, %v2191_v42  ;;  %1792 = vst.msk [vmem:[#allocation3 + $0x58] sm:$0xff] %vm1232_vm0, %v1698_v5  ;;  %v2192_v23 = vadd.f32 %v2160_v32, %v2059_v40 }
 0x1ae   : > { %2224 = vst.msk [vmem:[#allocation3 + $0x48] sm:$0xff] %vm1232_vm0, %v2192_v23 }
 0x1af   : > { %v1702_v19 = vpop.f32.mrb[24].mxu0  ;;  %v2064_v30 = vpop.f32.mrb[20].mxu1 }
 0x1b0   : > { %v1703_v8 = vadd.f32 %v4876_v58, %v1702_v19  ;;  %v1704_v33 = vpop.f32.mrb[25].mxu0  ;;  %v2066_v56 = vpop.f32.mrb[21].mxu1 }
 0x1b1   : > { %v2161_v37 = vld [vmem:[#allocation3 + $0x50] sm:$0xff]  ;;  %v1705_v47 = vpop.f32.mrb[26].mxu0  ;;  %v2067_v11 = vpop.f32.mrb[22].mxu1 }
 0x1b2   : > { %1793 = vst.msk [vmem:[#allocation3 + $0x60] sm:$0xff] %vm1232_vm0, %v1703_v8  ;;  %v2193_v2 = vadd.f32 %v2161_v37, %v2064_v30  ;;  %v1706_v22 = vadd.f32 %v4876_v58, %v1705_v47  ;;  %v1707_v28 = vpop.f32.mrb[27].mxu0  ;;  %v2069_v41 = vpop.f32.mrb[23].mxu1 }
 0x1b3   : > { %v2162_v36 = vld [vmem:[#allocation3 + $0x58] sm:$0xff] }
 0x1b4   : > { %2225 = vst.msk [vmem:[#allocation3 + $0x50] sm:$0xff] %vm1232_vm0, %v2193_v2  ;;  %1794 = vst.msk [vmem:[#allocation3 + $0x68] sm:$0xff] %vm1232_vm0, %v1706_v22  ;;  %v2194_v52 = vadd.f32 %v2162_v36, %v2067_v11 }
 0x1b6   : > { %2226 = vst.msk [vmem:[#allocation3 + $0x58] sm:$0xff] %vm1232_vm0, %v2194_v52 }
 0x1b7   : > { %v1710_v59 = vpop.f32.mrb[28].mxu0  ;;  %v2072_v9 = vpop.f32.mrb[24].mxu1 }
 0x1b8   : > { %v1711_v43 = vadd.f32 %v4876_v58, %v1710_v59  ;;  %v1712_v48 = vpop.f32.mrb[29].mxu0  ;;  %v2074_v50 = vpop.f32.mrb[25].mxu1 }
 0x1b9   : > { %v2163_v3 = vld [vmem:[#allocation3 + $0x60] sm:$0xff]  ;;  %v1713_v27 = vpop.f32.mrb[30].mxu0  ;;  %v2075_v25 = vpop.f32.mrb[26].mxu1 }
 0x1ba   : > { %1795 = vst.msk [vmem:[#allocation3 + $0x70] sm:$0xff] %vm1232_vm0, %v1711_v43  ;;  %v2195_v15 = vadd.f32 %v2163_v3, %v2072_v9  ;;  %v1714_v14 = vadd.f32 %v4876_v58, %v1713_v27  ;;  %v1715_v57 = vpop.f32.mrb[31].mxu0  ;;  %v2077_v44 = vpop.f32.mrb[27].mxu1 }
 0x1bb   : > { %v2164_v20 = vld [vmem:[#allocation3 + $0x68] sm:$0xff] }
 0x1bc   : > { %2227 = vst.msk [vmem:[#allocation3 + $0x60] sm:$0xff] %vm1232_vm0, %v2195_v15  ;;  %1796 = vst.msk [vmem:[#allocation3 + $0x78] sm:$0xff] %vm1232_vm0, %v1714_v14  ;;  %v2196_v46 = vadd.f32 %v2164_v20, %v2075_v25 }
 0x1be   : > { %2228 = vst.msk [vmem:[#allocation3 + $0x68] sm:$0xff] %vm1232_vm0, %v2196_v46 }
 0x1bf   : > { %v1718_v55 = vpop.f32.mrb[32].mxu0  ;;  %v2080_v49 = vpop.f32.mrb[28].mxu1 }
 0x1c0   : > { %v1719_v21 = vadd.f32 %v4876_v58, %v1718_v55  ;;  %v1720_v62 = vpop.f32.mrb[33].mxu0  ;;  %v2082_v4 = vpop.f32.mrb[29].mxu1 }
 0x1c1   : > { %v2165_v12 = vld [vmem:[#allocation3 + $0x70] sm:$0xff]  ;;  %v1721_v31 = vpop.f32.mrb[34].mxu0  ;;  %v2083_v13 = vpop.f32.mrb[30].mxu1 }
 0x1c2   : > { %1797 = vst.msk [vmem:[#allocation3 + $0x80] sm:$0xff] %vm1232_vm0, %v1719_v21  ;;  %v2197_v61 = vadd.f32 %v2165_v12, %v2080_v49  ;;  %v1722_v54 = vadd.f32 %v4876_v58, %v1721_v31  ;;  %v1723_v7 = vpop.f32.mrb[35].mxu0  ;;  %v2085_v24 = vpop.f32.mrb[31].mxu1 }
 0x1c3   : > { %v2166_v17 = vld [vmem:[#allocation3 + $0x78] sm:$0xff] }
 0x1c4   : > { %2229 = vst.msk [vmem:[#allocation3 + $0x70] sm:$0xff] %vm1232_vm0, %v2197_v61  ;;  %1798 = vst.msk [vmem:[#allocation3 + $0x88] sm:$0xff] %vm1232_vm0, %v1722_v54  ;;  %v2198_v1 = vadd.f32 %v2166_v17, %v2083_v13 }
 0x1c6   : > { %2230 = vst.msk [vmem:[#allocation3 + $0x78] sm:$0xff] %vm1232_vm0, %v2198_v1 }
 0x1c7   : > { %v1726_v63 = vpop.f32.mrb[36].mxu0  ;;  %v2088_v60 = vpop.f32.mrb[32].mxu1 }
 0x1c8   : > { %v1727_v18 = vadd.f32 %v4876_v58, %v1726_v63  ;;  %v1728_v16 = vpop.f32.mrb[37].mxu0  ;;  %v2090_v45 = vpop.f32.mrb[33].mxu1 }
 0x1c9   : > { %v2167_v6 = vld [vmem:[#allocation3 + $0x80] sm:$0xff]  ;;  %v1729_v35 = vpop.f32.mrb[38].mxu0  ;;  %v2091_v0 = vpop.f32.mrb[34].mxu1 }
 0x1ca   : > { %1799 = vst.msk [vmem:[#allocation3 + $0x90] sm:$0xff] %vm1232_vm0, %v1727_v18  ;;  %v2199_v51 = vadd.f32 %v2167_v6, %v2088_v60  ;;  %v1730_v39 = vadd.f32 %v4876_v58, %v1729_v35  ;;  %v1731_v26 = vpop.f32.mrb[39].mxu0  ;;  %v2093_v38 = vpop.f32.mrb[35].mxu1 }
 0x1cb   : > { %v2168_v10 = vld [vmem:[#allocation3 + $0x88] sm:$0xff] }
 0x1cc   : > { %2231 = vst.msk [vmem:[#allocation3 + $0x80] sm:$0xff] %vm1232_vm0, %v2199_v51  ;;  %1800 = vst.msk [vmem:[#allocation3 + $0x98] sm:$0xff] %vm1232_vm0, %v1730_v39  ;;  %v2200_v29 = vadd.f32 %v2168_v10, %v2091_v0 }
 0x1ce   : > { %2232 = vst.msk [vmem:[#allocation3 + $0x88] sm:$0xff] %vm1232_vm0, %v2200_v29 }
 0x1cf   : > { %v1734_v40 = vpop.f32.mrb[40].mxu0  ;;  %v2096_v42 = vpop.f32.mrb[36].mxu1 }
 0x1d0   : > { %v1735_v5 = vadd.f32 %v4876_v58, %v1734_v40  ;;  %v1736_v34 = vpop.f32.mrb[41].mxu0  ;;  %v2098_v53 = vpop.f32.mrb[37].mxu1 }
 0x1d1   : > { %v2169_v32 = vld [vmem:[#allocation3 + $0x90] sm:$0xff]  ;;  %v1737_v23 = vpop.f32.mrb[42].mxu0  ;;  %v2099_v19 = vpop.f32.mrb[38].mxu1 }
 0x1d2   : > { %1801 = vst.msk [vmem:[#allocation3 + $0xa0] sm:$0xff] %vm1232_vm0, %v1735_v5  ;;  %v2201_v30 = vadd.f32 %v2169_v32, %v2096_v42  ;;  %v1738_v8 = vadd.f32 %v4876_v58, %v1737_v23  ;;  %v1739_v33 = vpop.f32.mrb[43].mxu0  ;;  %v2101_v56 = vpop.f32.mrb[39].mxu1 }
 0x1d3   : > { %v2170_v37 = vld [vmem:[#allocation3 + $0x98] sm:$0xff] }
 0x1d4   : > { %2233 = vst.msk [vmem:[#allocation3 + $0x90] sm:$0xff] %vm1232_vm0, %v2201_v30  ;;  %1802 = vst.msk [vmem:[#allocation3 + $0xa8] sm:$0xff] %vm1232_vm0, %v1738_v8  ;;  %v2202_v47 = vadd.f32 %v2170_v37, %v2099_v19 }
 0x1d6   : > { %2234 = vst.msk [vmem:[#allocation3 + $0x98] sm:$0xff] %vm1232_vm0, %v2202_v47 }
 0x1d7   : > { %v1742_v11 = vpop.f32.mrb[44].mxu0  ;;  %v2104_v2 = vpop.f32.mrb[40].mxu1 }
 0x1d8   : > { %v1743_v22 = vadd.f32 %v4876_v58, %v1742_v11  ;;  %v1744_v28 = vpop.f32.mrb[45].mxu0  ;;  %v2106_v41 = vpop.f32.mrb[41].mxu1 }
 0x1d9   : > { %v2171_v36 = vld [vmem:[#allocation3 + $0xa0] sm:$0xff]  ;;  %v1745_v52 = vpop.f32.mrb[46].mxu0  ;;  %v2107_v59 = vpop.f32.mrb[42].mxu1 }
 0x1da   : > { %1803 = vst.msk [vmem:[#allocation3 + $0xb0] sm:$0xff] %vm1232_vm0, %v1743_v22  ;;  %v2203_v9 = vadd.f32 %v2171_v36, %v2104_v2  ;;  %v1746_v43 = vadd.f32 %v4876_v58, %v1745_v52  ;;  %v1747_v48 = vpop.f32.mrb[47].mxu0  ;;  %v2109_v50 = vpop.f32.mrb[43].mxu1 }
 0x1db   : > { %v2172_v3 = vld [vmem:[#allocation3 + $0xa8] sm:$0xff] }
 0x1dc   : > { %2235 = vst.msk [vmem:[#allocation3 + $0xa0] sm:$0xff] %vm1232_vm0, %v2203_v9  ;;  %1804 = vst.msk [vmem:[#allocation3 + $0xb8] sm:$0xff] %vm1232_vm0, %v1746_v43  ;;  %v2204_v27 = vadd.f32 %v2172_v3, %v2107_v59  ;;  %v2586_v43 = vld [vmem:[#allocation3] sm:$0xff] }
 0x1de   : > { %2236 = vst.msk [vmem:[#allocation3 + $0xa8] sm:$0xff] %vm1232_vm0, %v2204_v27 }
 0x1df   : > { %v1750_v25 = vpop.f32.mrb[48].mxu0  ;;  %v2112_v15 = vpop.f32.mrb[44].mxu1 }
 0x1e0   : > { %v1751_v14 = vadd.f32 %v4876_v58, %v1750_v25  ;;  %v1752_v57 = vpop.f32.mrb[49].mxu0  ;;  %v2114_v44 = vpop.f32.mrb[45].mxu1 }
 0x1e1   : > { %v2173_v20 = vld [vmem:[#allocation3 + $0xb0] sm:$0xff]  ;;  %v1753_v46 = vpop.f32.mrb[50].mxu0  ;;  %v2115_v55 = vpop.f32.mrb[46].mxu1 }
 0x1e2   : > { %1805 = vst.msk [vmem:[#allocation3 + $0xc0] sm:$0xff] %vm1232_vm0, %v1751_v14  ;;  %v2205_v49 = vadd.f32 %v2173_v20, %v2112_v15  ;;  %v1754_v21 = vadd.f32 %v4876_v58, %v1753_v46  ;;  %v1755_v62 = vpop.f32.mrb[51].mxu0  ;;  %v2117_v4 = vpop.f32.mrb[47].mxu1 }
 0x1e3   : > { %v2174_v12 = vld [vmem:[#allocation3 + $0xb8] sm:$0xff] }
 0x1e4   : > { %2237 = vst.msk [vmem:[#allocation3 + $0xb0] sm:$0xff] %vm1232_vm0, %v2205_v49  ;;  %1806 = vst.msk [vmem:[#allocation3 + $0xc8] sm:$0xff] %vm1232_vm0, %v1754_v21  ;;  %v2206_v31 = vadd.f32 %v2174_v12, %v2115_v55  ;;  %v2588_v21 = vld [vmem:[#allocation3 + $0x10] sm:$0xff] }
 0x1e6   : > { %2238 = vst.msk [vmem:[#allocation3 + $0xb8] sm:$0xff] %vm1232_vm0, %v2206_v31 }
 0x1e7   : > { %v1758_v13 = vpop.f32.mrb[52].mxu0  ;;  %v2120_v61 = vpop.f32.mrb[48].mxu1 }
 0x1e8   : > { %v1759_v54 = vadd.f32 %v4876_v58, %v1758_v13  ;;  %v1760_v7 = vpop.f32.mrb[53].mxu0  ;;  %v2122_v24 = vpop.f32.mrb[49].mxu1 }
 0x1e9   : > { %v2175_v17 = vld [vmem:[#allocation3 + $0xc0] sm:$0xff]  ;;  %v1761_v1 = vpop.f32.mrb[54].mxu0  ;;  %v2123_v63 = vpop.f32.mrb[50].mxu1  ;;  %v2589_v7 = vld [vmem:[#allocation3 + $0x18] sm:$0xff] }
 0x1ea   : > { %1807 = vst.msk [vmem:[#allocation3 + $0xd0] sm:$0xff] %vm1232_vm0, %v1759_v54  ;;  %v2207_v60 = vadd.f32 %v2175_v17, %v2120_v61  ;;  %v1762_v18 = vadd.f32 %v4876_v58, %v1761_v1  ;;  %v1763_v16 = vpop.f32.mrb[55].mxu0  ;;  %v2125_v45 = vpop.f32.mrb[51].mxu1 }
 0x1eb   : > { %v2176_v6 = vld [vmem:[#allocation3 + $0xc8] sm:$0xff]  ;;  %v2590_v45 = vld [vmem:[#allocation3 + $0x20] sm:$0xff] }
 0x1ec   : > { %2239 = vst.msk [vmem:[#allocation3 + $0xc0] sm:$0xff] %vm1232_vm0, %v2207_v60  ;;  %1808 = vst.msk [vmem:[#allocation3 + $0xd8] sm:$0xff] %vm1232_vm0, %v1762_v18  ;;  %v2208_v35 = vadd.f32 %v2176_v6, %v2123_v63 }
 0x1ee   : > { %2240 = vst.msk [vmem:[#allocation3 + $0xc8] sm:$0xff] %vm1232_vm0, %v2208_v35 }
 0x1ef   : > { %v1766_v0 = vpop.f32.mrb[56].mxu0  ;;  %v2128_v51 = vpop.f32.mrb[52].mxu1 }
 0x1f0   : > { %v1767_v39 = vadd.f32 %v4876_v58, %v1766_v0  ;;  %v1768_v26 = vpop.f32.mrb[57].mxu0  ;;  %v2130_v38 = vpop.f32.mrb[53].mxu1 }
 0x1f1   : > { %v2177_v10 = vld [vmem:[#allocation3 + $0xd0] sm:$0xff]  ;;  %v1769_v29 = vpop.f32.mrb[58].mxu0  ;;  %v2131_v40 = vpop.f32.mrb[54].mxu1 }
 0x1f2   : > { %1809 = vst.msk [vmem:[#allocation3 + $0xe0] sm:$0xff] %vm1232_vm0, %v1767_v39  ;;  %v2209_v42 = vadd.f32 %v2177_v10, %v2128_v51  ;;  %v1770_v5 = vadd.f32 %v4876_v58, %v1769_v29  ;;  %v1771_v34 = vpop.f32.mrb[59].mxu0  ;;  %v2133_v53 = vpop.f32.mrb[55].mxu1  ;;  %v2591_v10 = vld [vmem:[#allocation3 + $0x28] sm:$0xff] }
 0x1f3   : > { %v2178_v32 = vld [vmem:[#allocation3 + $0xd8] sm:$0xff]  ;;  %v2610_v4 = vld [vmem:[#allocation3 + $0xc0] sm:$0xff] }
 0x1f4   : > { %2241 = vst.msk [vmem:[#allocation3 + $0xd0] sm:$0xff] %vm1232_vm0, %v2209_v42  ;;  %1810 = vst.msk [vmem:[#allocation3 + $0xe8] sm:$0xff] %vm1232_vm0, %v1770_v5  ;;  %v2210_v23 = vadd.f32 %v2178_v32, %v2131_v40 }
 0x1f5   : > { %v2611_v17 = vld [vmem:[#allocation3 + $0xc8] sm:$0xff] }
 0x1f6   : > { %2242 = vst.msk [vmem:[#allocation3 + $0xd8] sm:$0xff] %vm1232_vm0, %v2210_v23  ;;  %v2592_v23 = vld [vmem:[#allocation3 + $0x30] sm:$0xff] }
 0x1f7   : > { %v1774_v19 = vpop.f32.mrb[60].mxu0  ;;  %v2136_v30 = vpop.f32.mrb[56].mxu1 }
 0x1f8   : > { %v1775_v8 = vadd.f32 %v4876_v58, %v1774_v19  ;;  %v1776_v33 = vpop.f32.mrb[61].mxu0  ;;  %v2138_v56 = vpop.f32.mrb[57].mxu1 }
 0x1f9   : > { %v2179_v37 = vld [vmem:[#allocation3 + $0xe0] sm:$0xff]  ;;  %v1777_v47 = vpop.f32.mrb[62].mxu0  ;;  %v2139_v11 = vpop.f32.mrb[58].mxu1 }
 0x1fa   : > { %1811 = vst.msk [vmem:[#allocation3 + $0xf0] sm:$0xff] %vm1232_vm0, %v1775_v8  ;;  %v2211_v2 = vadd.f32 %v2179_v37, %v2136_v30  ;;  %v1778_v22 = vadd.f32 %v4876_v58, %v1777_v47  ;;  %v1779_v28 = vpop.f32.mrb[63].mxu0  ;;  %v2141_v41 = vpop.f32.mrb[59].mxu1  ;;  %v2587_v58 = vld [vmem:[#allocation3 + $0x8] sm:$0xff] }
 0x1fb   : > { %v2180_v36 = vld [vmem:[#allocation3 + $0xe8] sm:$0xff]  ;;  %v2612_v35 = vld [vmem:[#allocation3 + $0xd0] sm:$0xff] }
 0x1fc   : > { %2243 = vst.msk [vmem:[#allocation3 + $0xe0] sm:$0xff] %vm1232_vm0, %v2211_v2  ;;  %1812 = vst.msk [vmem:[#allocation3 + $0xf8] sm:$0xff] %vm1232_vm0, %v1778_v22  ;;  %v2212_v52 = vadd.f32 %v2180_v36, %v2139_v11  ;;  %v2593_v11 = vld [vmem:[#allocation3 + $0x38] sm:$0xff] }
 0x1fd   : > { %v2613_v40 = vld [vmem:[#allocation3 + $0xd8] sm:$0xff] }
 0x1fe   : > { %2244 = vst.msk [vmem:[#allocation3 + $0xe8] sm:$0xff] %vm1232_vm0, %v2212_v52 }
 0x1ff   : > { %v2144_v59 = vpop.f32.mrb[60].mxu1  ;;  %v2459_v9 = vpop.f32.mrb[64].mxu0 }
 0x200   : > { %v2618_v48 = vadd.f32 %v2586_v43, %v2459_v9  ;;  %v2146_v50 = vpop.f32.mrb[61].mxu1  ;;  %v2461_v3 = vpop.f32.mrb[65].mxu0  ;;  %v2594_v9 = vld [vmem:[#allocation3 + $0x40] sm:$0xff] }
 0x201   : > { %v2181_v27 = vld [vmem:[#allocation3 + $0xf0] sm:$0xff]  ;;  %v2147_v25 = vpop.f32.mrb[62].mxu1  ;;  %v2462_v15 = vpop.f32.mrb[66].mxu0 }
 0x202   : > { %v2213_v14 = vadd.f32 %v2181_v27, %v2144_v59  ;;  %2650 = vst.msk [vmem:[#allocation3] sm:$0xff] %vm1232_vm0, %v2618_v48  ;;  %v2619_v57 = vadd.f32 %v2587_v58, %v2462_v15  ;;  %v2149_v44 = vpop.f32.mrb[63].mxu1  ;;  %v2464_v20 = vpop.f32.mrb[67].mxu0  ;;  %v2595_v58 = vld [vmem:[#allocation3 + $0x48] sm:$0xff] }
 0x203   : > { %v2182_v46 = vld [vmem:[#allocation3 + $0xf8] sm:$0xff]  ;;  %v2614_v30 = vld [vmem:[#allocation3 + $0xe0] sm:$0xff] }
 0x204   : > { %2245 = vst.msk [vmem:[#allocation3 + $0xf0] sm:$0xff] %vm1232_vm0, %v2213_v14  ;;  %v2214_v55 = vadd.f32 %v2182_v46, %v2147_v25  ;;  %2651 = vst.msk [vmem:[#allocation3 + $0x8] sm:$0xff] %vm1232_vm0, %v2619_v57 }
 0x205   : > { %v2615_v22 = vld [vmem:[#allocation3 + $0xe8] sm:$0xff] }
 0x206   : > { %2246 = vst.msk [vmem:[#allocation3 + $0xf8] sm:$0xff] %vm1232_vm0, %v2214_v55 }
 0x207   : > { %v2467_v49 = vpop.f32.mrb[68].mxu0  ;;  %v2555_v62 = vpop.f32.mrb[64].mxu1 }
 0x208   : > { %v2620_v12 = vadd.f32 %v2588_v21, %v2467_v49  ;;  %v2642_v31 = vadd.f32 %v2610_v4, %v2555_v62  ;;  %v2469_v13 = vpop.f32.mrb[69].mxu0  ;;  %v2557_v61 = vpop.f32.mrb[65].mxu1  ;;  %v5103_v49 = vld [vmem:[%s5285_s9] ss:$0 sm:$0xff]  ;;  %v2596_v62 = vld [vmem:[#allocation3 + $0x50] sm:$0xff] }
 0x209   : > { %v2470_v54 = vpop.f32.mrb[70].mxu0  ;;  %v2558_v24 = vpop.f32.mrb[66].mxu1 }
 0x20a   : > { %2652 = vst.msk [vmem:[#allocation3 + $0x10] sm:$0xff] %vm1232_vm0, %v2620_v12  ;;  %2674 = vst.msk [vmem:[#allocation3 + $0xc0] sm:$0xff] %vm1232_vm0, %v2642_v31  ;;  %v2621_v1 = vadd.f32 %v2589_v7, %v2470_v54  ;;  %v2643_v63 = vadd.f32 %v2611_v17, %v2558_v24  ;;  %v2472_v60 = vpop.f32.mrb[71].mxu0  ;;  %v2560_v18 = vpop.f32.mrb[67].mxu1  ;;  %v2597_v17 = vld [vmem:[#allocation3 + $0x58] sm:$0xff] }
 0x20b   : > { %v2616_v48 = vld [vmem:[#allocation3 + $0xf0] sm:$0xff]  ;;  %v2682_v60 = vld [vmem:[#allocation3] sm:$0xff] }
 0x20c   : > { %2653 = vst.msk [vmem:[#allocation3 + $0x18] sm:$0xff] %vm1232_vm0, %v2621_v1  ;;  %2675 = vst.msk [vmem:[#allocation3 + $0xc8] sm:$0xff] %vm1232_vm0, %v2643_v63 }
 0x20d   : > { %v2617_v57 = vld [vmem:[#allocation3 + $0xf8] sm:$0xff] }
 0x20f   : > { %v2475_v16 = vpop.f32.mrb[72].mxu0  ;;  %v2563_v6 = vpop.f32.mrb[68].mxu1 }
 0x210   : > { %v2622_v0 = vadd.f32 %v2590_v45, %v2475_v16  ;;  %v2644_v51 = vadd.f32 %v2612_v35, %v2563_v6  ;;  %v2477_v39 = vpop.f32.mrb[73].mxu0  ;;  %v2565_v26 = vpop.f32.mrb[69].mxu1 }
 0x211   : > { %v2478_v38 = vpop.f32.mrb[74].mxu0  ;;  %v2566_v29 = vpop.f32.mrb[70].mxu1  ;;  %v2684_v54 = vld [vmem:[#allocation3 + $0x10] sm:$0xff]  ;;  %v2683_v26 = vld [vmem:[#allocation3 + $0x8] sm:$0xff] }
 0x212   : > { %2654 = vst.msk [vmem:[#allocation3 + $0x20] sm:$0xff] %vm1232_vm0, %v2622_v0  ;;  %2676 = vst.msk [vmem:[#allocation3 + $0xd0] sm:$0xff] %vm1232_vm0, %v2644_v51  ;;  %v2623_v42 = vadd.f32 %v2591_v10, %v2478_v38  ;;  %v2645_v5 = vadd.f32 %v2613_v40, %v2566_v29  ;;  %v2480_v34 = vpop.f32.mrb[75].mxu0  ;;  %v2568_v53 = vpop.f32.mrb[71].mxu1  ;;  %v2598_v29 = vld [vmem:[#allocation3 + $0x60] sm:$0xff] }
 0x213   : > { %v2685_v0 = vld [vmem:[#allocation3 + $0x18] sm:$0xff] }
 0x214   : > { %2655 = vst.msk [vmem:[#allocation3 + $0x28] sm:$0xff] %vm1232_vm0, %v2623_v42  ;;  %2677 = vst.msk [vmem:[#allocation3 + $0xd8] sm:$0xff] %vm1232_vm0, %v2645_v5 }
 0x217   : > { %v2483_v32 = vpop.f32.mrb[76].mxu0  ;;  %v2571_v19 = vpop.f32.mrb[72].mxu1 }
 0x218   : > { %v2624_v8 = vadd.f32 %v2592_v23, %v2483_v32  ;;  %v2646_v33 = vadd.f32 %v2614_v30, %v2571_v19  ;;  %v2485_v56 = vpop.f32.mrb[77].mxu0  ;;  %v2573_v37 = vpop.f32.mrb[73].mxu1  ;;  %v2599_v30 = vld [vmem:[#allocation3 + $0x68] sm:$0xff] }
 0x219   : > { %v2486_v47 = vpop.f32.mrb[78].mxu0  ;;  %v2574_v2 = vpop.f32.mrb[74].mxu1  ;;  %v2686_v56 = vld [vmem:[#allocation3 + $0x20] sm:$0xff] }
 0x21a   : > { %2656 = vst.msk [vmem:[#allocation3 + $0x30] sm:$0xff] %vm1232_vm0, %v2624_v8  ;;  %2678 = vst.msk [vmem:[#allocation3 + $0xe0] sm:$0xff] %vm1232_vm0, %v2646_v33  ;;  %v2625_v28 = vadd.f32 %v2593_v11, %v2486_v47  ;;  %v2647_v41 = vadd.f32 %v2615_v22, %v2574_v2  ;;  %v2488_v36 = vpop.f32.mrb[79].mxu0  ;;  %v2576_v52 = vpop.f32.mrb[75].mxu1 }
 0x21b   : > { %v2687_v52 = vld [vmem:[#allocation3 + $0x28] sm:$0xff] }
 0x21c   : > { %2657 = vst.msk [vmem:[#allocation3 + $0x38] sm:$0xff] %vm1232_vm0, %v2625_v28  ;;  %2679 = vst.msk [vmem:[#allocation3 + $0xe8] sm:$0xff] %vm1232_vm0, %v2647_v41 }
 0x21f   : > { %v2491_v59 = vpop.f32.mrb[80].mxu0  ;;  %v2579_v43 = vpop.f32.mrb[76].mxu1 }
 0x220   : > { %v2626_v50 = vadd.f32 %v2594_v9, %v2491_v59  ;;  %v2648_v3 = vadd.f32 %v2616_v48, %v2579_v43  ;;  %v2493_v27 = vpop.f32.mrb[81].mxu0  ;;  %v2581_v25 = vpop.f32.mrb[77].mxu1  ;;  %v2600_v43 = vld [vmem:[#allocation3 + $0x70] sm:$0xff] }
 0x221   : > { %v2494_v15 = vpop.f32.mrb[82].mxu0  ;;  %v2582_v14 = vpop.f32.mrb[78].mxu1  ;;  %v2688_v32 = vld [vmem:[#allocation3 + $0x30] sm:$0xff] }
 0x222   : > { %2658 = vst.msk [vmem:[#allocation3 + $0x40] sm:$0xff] %vm1232_vm0, %v2626_v50  ;;  %2680 = vst.msk [vmem:[#allocation3 + $0xf0] sm:$0xff] %vm1232_vm0, %v2648_v3  ;;  %v2627_v44 = vadd.f32 %v2595_v58, %v2494_v15  ;;  %v2649_v20 = vadd.f32 %v2617_v57, %v2582_v14  ;;  %v2496_v46 = vpop.f32.mrb[83].mxu0  ;;  %v2584_v55 = vpop.f32.mrb[79].mxu1  ;;  %v2601_v57 = vld [vmem:[#allocation3 + $0x78] sm:$0xff] }
 0x223   : > { %v2689_v28 = vld [vmem:[#allocation3 + $0x38] sm:$0xff] }
 0x224   : > { %2659 = vst.msk [vmem:[#allocation3 + $0x48] sm:$0xff] %vm1232_vm0, %v2627_v44  ;;  %2681 = vst.msk [vmem:[#allocation3 + $0xf8] sm:$0xff] %vm1232_vm0, %v2649_v20 }
 0x227   : > { %v2499_v21 = vpop.f32.mrb[84].mxu0  ;;  %v3557_v4 = vpop.f32.mrb[80].mxu1 }
 0x228   : > { %v2628_v12 = vadd.f32 %v2596_v62, %v2499_v21  ;;  %v2877_v31 = vadd.f32 %v3557_v4, %v5103_v49  ;;  %v2501_v13 = vpop.f32.mrb[85].mxu0  ;;  %v2868_v61 = vpop.f32.mrb[81].mxu1 }
 0x229   : > { %v2869_v7 = vadd.f32 %v5103_v49, %v2868_v61  ;;  %v2502_v24 = vpop.f32.mrb[86].mxu0  ;;  %v3558_v1 = vpop.f32.mrb[82].mxu1  ;;  %v2690_v46 = vld [vmem:[#allocation3 + $0x40] sm:$0xff] }
 0x22a   : > { %2660 = vst.msk [vmem:[#allocation3 + $0x50] sm:$0xff] %vm1232_vm0, %v2628_v12  ;;  %v2997_v63 = vadd.f32 %v2877_v31, %v2684_v54  ;;  %v2629_v18 = vadd.f32 %v2597_v17, %v2502_v24  ;;  %v2880_v16 = vadd.f32 %v3558_v1, %v5103_v49  ;;  %v2504_v45 = vpop.f32.mrb[87].mxu0  ;;  %v2871_v6 = vpop.f32.mrb[83].mxu1  ;;  %v2602_v17 = vld [vmem:[#allocation3 + $0x80] sm:$0xff] }
 0x22b   : > { %v2995_v35 = vadd.f32 %v2869_v7, %v2682_v60  ;;  %v2872_v51 = vadd.f32 %v5103_v49, %v2871_v6  ;;  %v2691_v54 = vld [vmem:[#allocation3 + $0x48] sm:$0xff] }
 0x22c   : > { %3029 = vst.msk [vmem:[%s5112_s28 + $0x10] sm:$0xff] %vm1232_vm0, %v2997_v63  ;;  %2661 = vst.msk [vmem:[#allocation3 + $0x58] sm:$0xff] %vm1232_vm0, %v2629_v18  ;;  %v2998_v39 = vadd.f32 %v2880_v16, %v2685_v0  ;;  %v2603_v0 = vld [vmem:[#allocation3 + $0x88] sm:$0xff] }
 0x22d   : > { %3027 = vst.msk [vmem:[%s5112_s28] sm:$0xff] %vm1232_vm0, %v2995_v35  ;;  %v2996_v38 = vadd.f32 %v2872_v51, %v2683_v26 }
 0x22e   : > { %3030 = vst.msk [vmem:[%s5112_s28 + $0x18] sm:$0xff] %vm1232_vm0, %v2998_v39 }
 0x22f   : > { %3028 = vst.msk [vmem:[%s5112_s28 + $0x8] sm:$0xff] %vm1232_vm0, %v2996_v38  ;;  %v2507_v10 = vpop.f32.mrb[88].mxu0  ;;  %v3561_v40 = vpop.f32.mrb[84].mxu1 }
 0x230   : > { %v2630_v42 = vadd.f32 %v2598_v29, %v2507_v10  ;;  %v2893_v5 = vadd.f32 %v3561_v40, %v5103_v49  ;;  %v2509_v34 = vpop.f32.mrb[89].mxu0  ;;  %v2884_v53 = vpop.f32.mrb[85].mxu1 }
 0x231   : > { %v2885_v23 = vadd.f32 %v5103_v49, %v2884_v53  ;;  %v2510_v19 = vpop.f32.mrb[90].mxu0  ;;  %v3562_v8 = vpop.f32.mrb[86].mxu1  ;;  %v2692_v15 = vld [vmem:[#allocation3 + $0x50] sm:$0xff] }
 0x232   : > { %2662 = vst.msk [vmem:[#allocation3 + $0x60] sm:$0xff] %vm1232_vm0, %v2630_v42  ;;  %v3001_v33 = vadd.f32 %v2893_v5, %v2688_v32  ;;  %v2631_v37 = vadd.f32 %v2599_v30, %v2510_v19  ;;  %v2896_v47 = vadd.f32 %v3562_v8, %v5103_v49  ;;  %v2512_v11 = vpop.f32.mrb[91].mxu0  ;;  %v2887_v2 = vpop.f32.mrb[87].mxu1  ;;  %v2604_v30 = vld [vmem:[#allocation3 + $0x90] sm:$0xff] }
 0x233   : > { %v2999_v22 = vadd.f32 %v2885_v23, %v2686_v56  ;;  %v2888_v41 = vadd.f32 %v5103_v49, %v2887_v2  ;;  %v2693_v31 = vld [vmem:[#allocation3 + $0x58] sm:$0xff] }
 0x234   : > { %3033 = vst.msk [vmem:[%s5112_s28 + $0x30] sm:$0xff] %vm1232_vm0, %v3001_v33  ;;  %2663 = vst.msk [vmem:[#allocation3 + $0x68] sm:$0xff] %vm1232_vm0, %v2631_v37  ;;  %v3002_v36 = vadd.f32 %v2896_v47, %v2689_v28 }
 0x235   : > { %3031 = vst.msk [vmem:[%s5112_s28 + $0x20] sm:$0xff] %vm1232_vm0, %v2999_v22  ;;  %v3000_v59 = vadd.f32 %v2888_v41, %v2687_v52  ;;  %v2605_v22 = vld [vmem:[#allocation3 + $0x98] sm:$0xff] }
 0x236   : > { %3034 = vst.msk [vmem:[%s5112_s28 + $0x38] sm:$0xff] %vm1232_vm0, %v3002_v36 }
 0x237   : > { %3032 = vst.msk [vmem:[%s5112_s28 + $0x28] sm:$0xff] %vm1232_vm0, %v3000_v59  ;;  %v2515_v9 = vpop.f32.mrb[92].mxu0  ;;  %v3565_v48 = vpop.f32.mrb[88].mxu1 }
 0x238   : > { %v2632_v50 = vadd.f32 %v2600_v43, %v2515_v9  ;;  %v2909_v3 = vadd.f32 %v3565_v48, %v5103_v49  ;;  %v2517_v27 = vpop.f32.mrb[93].mxu0  ;;  %v2900_v25 = vpop.f32.mrb[89].mxu1 }
 0x239   : > { %v2901_v58 = vadd.f32 %v5103_v49, %v2900_v25  ;;  %v2518_v14 = vpop.f32.mrb[94].mxu0  ;;  %v3566_v44 = vpop.f32.mrb[90].mxu1  ;;  %v2694_v26 = vld [vmem:[#allocation3 + $0x60] sm:$0xff] }
 0x23a   : > { %2664 = vst.msk [vmem:[#allocation3 + $0x70] sm:$0xff] %vm1232_vm0, %v2632_v50  ;;  %v3005_v20 = vadd.f32 %v2909_v3, %v2692_v15  ;;  %v2633_v55 = vadd.f32 %v2601_v57, %v2518_v14  ;;  %v2912_v21 = vadd.f32 %v3566_v44, %v5103_v49  ;;  %v2520_v62 = vpop.f32.mrb[95].mxu0  ;;  %v2903_v4 = vpop.f32.mrb[91].mxu1  ;;  %v2606_v3 = vld [vmem:[#allocation3 + $0xa0] sm:$0xff] }
 0x23b   : > { %v3003_v12 = vadd.f32 %v2901_v58, %v2690_v46  ;;  %v2904_v13 = vadd.f32 %v5103_v49, %v2903_v4  ;;  %v2695_v32 = vld [vmem:[#allocation3 + $0x68] sm:$0xff] }
 0x23c   : > { %3037 = vst.msk [vmem:[%s5112_s28 + $0x50] sm:$0xff] %vm1232_vm0, %v3005_v20  ;;  %2665 = vst.msk [vmem:[#allocation3 + $0x78] sm:$0xff] %vm1232_vm0, %v2633_v55  ;;  %v3006_v61 = vadd.f32 %v2912_v21, %v2693_v31  ;;  %v2607_v20 = vld [vmem:[#allocation3 + $0xa8] sm:$0xff] }
 0x23d   : > { %3035 = vst.msk [vmem:[%s5112_s28 + $0x40] sm:$0xff] %vm1232_vm0, %v3003_v12  ;;  %v3004_v7 = vadd.f32 %v2904_v13, %v2691_v54  ;;  %v2608_v54 = vld [vmem:[#allocation3 + $0xb0] sm:$0xff] }
 0x23e   : > { %3038 = vst.msk [vmem:[%s5112_s28 + $0x58] sm:$0xff] %vm1232_vm0, %v3006_v61 }
 0x23f   : > { %3036 = vst.msk [vmem:[%s5112_s28 + $0x48] sm:$0xff] %vm1232_vm0, %v3004_v7  ;;  %v2523_v24 = vpop.f32.mrb[96].mxu0  ;;  %v3569_v1 = vpop.f32.mrb[92].mxu1 }
 0x240   : > { %v2634_v63 = vadd.f32 %v2602_v17, %v2523_v24  ;;  %v2925_v60 = vadd.f32 %v3569_v1, %v5103_v49  ;;  %v2525_v18 = vpop.f32.mrb[97].mxu0  ;;  %v2916_v16 = vpop.f32.mrb[93].mxu1 }
 0x241   : > { %v2696_v45 = vld [vmem:[#allocation3 + $0x70] sm:$0xff]  ;;  %v2917_v6 = vadd.f32 %v5103_v49, %v2916_v16  ;;  %v2526_v35 = vpop.f32.mrb[98].mxu0  ;;  %v3570_v51 = vpop.f32.mrb[94].mxu1 }
 0x242   : > { %2666 = vst.msk [vmem:[#allocation3 + $0x80] sm:$0xff] %vm1232_vm0, %v2634_v63  ;;  %v3009_v39 = vadd.f32 %v2925_v60, %v2696_v45  ;;  %v2635_v38 = vadd.f32 %v2603_v0, %v2526_v35  ;;  %v2928_v10 = vadd.f32 %v3570_v51, %v5103_v49  ;;  %v2528_v29 = vpop.f32.mrb[99].mxu0  ;;  %v2919_v40 = vpop.f32.mrb[95].mxu1  ;;  %v2708_v45 = vld [vmem:[#allocation3 + $0xd0] sm:$0xff]  ;;  %v2609_v0 = vld [vmem:[#allocation3 + $0xb8] sm:$0xff] }
 0x243   : > { %v3007_v42 = vadd.f32 %v2917_v6, %v2694_v26  ;;  %v2697_v5 = vld [vmem:[#allocation3 + $0x78] sm:$0xff]  ;;  %v2920_v34 = vadd.f32 %v5103_v49, %v2919_v40 }
 0x244   : > { %3041 = vst.msk [vmem:[%s5112_s28 + $0x70] sm:$0xff] %vm1232_vm0, %v3009_v39  ;;  %2667 = vst.msk [vmem:[#allocation3 + $0x88] sm:$0xff] %vm1232_vm0, %v2635_v38  ;;  %v3010_v53 = vadd.f32 %v2928_v10, %v2697_v5  ;;  %v2706_v38 = vld [vmem:[#allocation3 + $0xc0] sm:$0xff] }
 0x245   : > { %3039 = vst.msk [vmem:[%s5112_s28 + $0x60] sm:$0xff] %vm1232_vm0, %v3007_v42  ;;  %v3008_v23 = vadd.f32 %v2920_v34, %v2695_v32 }
 0x246   : > { %3042 = vst.msk [vmem:[%s5112_s28 + $0x78] sm:$0xff] %vm1232_vm0, %v3010_v53  ;;  %v2709_v53 = vld [vmem:[#allocation3 + $0xd8] sm:$0xff] }
 0x247   : > { %3040 = vst.msk [vmem:[%s5112_s28 + $0x68] sm:$0xff] %vm1232_vm0, %v3008_v23  ;;  %v2531_v19 = vpop.f32.mrb[100].mxu0  ;;  %v3573_v8 = vpop.f32.mrb[96].mxu1 }
 0x248   : > { %v2636_v33 = vadd.f32 %v2604_v30, %v2531_v19  ;;  %v2533_v56 = vpop.f32.mrb[101].mxu0  ;;  %v2932_v37 = vpop.f32.mrb[97].mxu1  ;;  %v2941_v25 = vadd.f32 %v3573_v8, %v5103_v49  ;;  %v2707_v30 = vld [vmem:[#allocation3 + $0xc8] sm:$0xff] }
 0x249   : > { %v2698_v47 = vld [vmem:[#allocation3 + $0x80] sm:$0xff]  ;;  %v2933_v11 = vadd.f32 %v5103_v49, %v2932_v37  ;;  %v2534_v2 = vpop.f32.mrb[102].mxu0  ;;  %v3574_v28 = vpop.f32.mrb[98].mxu1 }
 0x24a   : > { %2668 = vst.msk [vmem:[#allocation3 + $0x90] sm:$0xff] %vm1232_vm0, %v2636_v33  ;;  %v2637_v41 = vadd.f32 %v2605_v22, %v2534_v2  ;;  %v2536_v36 = vpop.f32.mrb[103].mxu0  ;;  %v2935_v52 = vpop.f32.mrb[99].mxu1  ;;  %v2944_v21 = vadd.f32 %v3574_v28, %v5103_v49  ;;  %v2712_v2 = vld [vmem:[#allocation3 + $0xf0] sm:$0xff] }
 0x24b   : > { %v3011_v59 = vadd.f32 %v2933_v11, %v2698_v47  ;;  %v2699_v9 = vld [vmem:[#allocation3 + $0x88] sm:$0xff]  ;;  %v2936_v43 = vadd.f32 %v5103_v49, %v2935_v52 }
 0x24c   : > { %2669 = vst.msk [vmem:[#allocation3 + $0x98] sm:$0xff] %vm1232_vm0, %v2637_v41 }
 0x24d   : > { %3043 = vst.msk [vmem:[%s5112_s28 + $0x80] sm:$0xff] %vm1232_vm0, %v3011_v59  ;;  %v3012_v48 = vadd.f32 %v2936_v43, %v2699_v9  ;;  %v2710_v59 = vld [vmem:[#allocation3 + $0xe0] sm:$0xff] }
 0x24f   : > { %3044 = vst.msk [vmem:[%s5112_s28 + $0x88] sm:$0xff] %vm1232_vm0, %v3012_v48  ;;  %v2539_v50 = vpop.f32.mrb[104].mxu0  ;;  %v3577_v27 = vpop.f32.mrb[100].mxu1 }
 0x250   : > { %v2638_v15 = vadd.f32 %v2606_v3, %v2539_v50  ;;  %v2541_v58 = vpop.f32.mrb[105].mxu0  ;;  %v2948_v14 = vpop.f32.mrb[101].mxu1  ;;  %v2957_v56 = vadd.f32 %v3577_v27, %v5103_v49  ;;  %v2713_v3 = vld [vmem:[#allocation3 + $0xf8] sm:$0xff] }
 0x251   : > { %v2700_v57 = vld [vmem:[#allocation3 + $0x90] sm:$0xff]  ;;  %v2542_v44 = vpop.f32.mrb[106].mxu0  ;;  %v3578_v46 = vpop.f32.mrb[102].mxu1  ;;  %v2949_v24 = vadd.f32 %v5103_v49, %v2948_v14  ;;  %v2711_v58 = vld [vmem:[#allocation3 + $0xe8] sm:$0xff] }
 0x252   : > { %v3013_v55 = vadd.f32 %v2941_v25, %v2700_v57  ;;  %2670 = vst.msk [vmem:[#allocation3 + $0xa0] sm:$0xff] %vm1232_vm0, %v2638_v15  ;;  %v2639_v62 = vadd.f32 %v2607_v20, %v2542_v44  ;;  %v2544_v4 = vpop.f32.mrb[107].mxu0  ;;  %v2951_v12 = vpop.f32.mrb[103].mxu1  ;;  %v2960_v41 = vadd.f32 %v3578_v46, %v5103_v49 }
 0x253   : > { %v2701_v31 = vld [vmem:[#allocation3 + $0x98] sm:$0xff]  ;;  %v2952_v16 = vadd.f32 %v5103_v49, %v2951_v12 }
 0x254   : > { %3045 = vst.msk [vmem:[%s5112_s28 + $0x90] sm:$0xff] %vm1232_vm0, %v3013_v55  ;;  %v3014_v13 = vadd.f32 %v2944_v21, %v2701_v31  ;;  %2671 = vst.msk [vmem:[#allocation3 + $0xa8] sm:$0xff] %vm1232_vm0, %v2639_v62 }
 0x256   : > { %3046 = vst.msk [vmem:[%s5112_s28 + $0x98] sm:$0xff] %vm1232_vm0, %v3014_v13 }
 0x257   : > { %v2547_v61 = vpop.f32.mrb[108].mxu0  ;;  %v3581_v7 = vpop.f32.mrb[104].mxu1 }
 0x258   : > { %v2640_v17 = vadd.f32 %v2608_v54, %v2547_v61  ;;  %v2973_v1 = vadd.f32 %v3581_v7, %v5103_v49  ;;  %v2549_v63 = vpop.f32.mrb[109].mxu0  ;;  %v2964_v60 = vpop.f32.mrb[105].mxu1 }
 0x259   : > { %v2702_v18 = vld [vmem:[#allocation3 + $0xa0] sm:$0xff]  ;;  %v2965_v6 = vadd.f32 %v5103_v49, %v2964_v60  ;;  %v2550_v35 = vpop.f32.mrb[110].mxu0  ;;  %v3582_v51 = vpop.f32.mrb[106].mxu1 }
 0x25a   : > { %v3015_v39 = vadd.f32 %v2949_v24, %v2702_v18  ;;  %2672 = vst.msk [vmem:[#allocation3 + $0xb0] sm:$0xff] %vm1232_vm0, %v2640_v17  ;;  %v3021_v26 = vadd.f32 %v2973_v1, %v2708_v45  ;;  %v2641_v10 = vadd.f32 %v2609_v0, %v2550_v35  ;;  %v2976_v29 = vadd.f32 %v3582_v51, %v5103_v49  ;;  %v2552_v40 = vpop.f32.mrb[111].mxu0  ;;  %v2967_v42 = vpop.f32.mrb[107].mxu1 }
 0x25b   : > { %v2703_v5 = vld [vmem:[#allocation3 + $0xa8] sm:$0xff]  ;;  %v3019_v34 = vadd.f32 %v2965_v6, %v2706_v38  ;;  %v2968_v32 = vadd.f32 %v5103_v49, %v2967_v42 }
 0x25c   : > { %3047 = vst.msk [vmem:[%s5112_s28 + $0xa0] sm:$0xff] %vm1232_vm0, %v3015_v39  ;;  %v3016_v23 = vadd.f32 %v2952_v16, %v2703_v5  ;;  %3053 = vst.msk [vmem:[%s5112_s28 + $0xd0] sm:$0xff] %vm1232_vm0, %v3021_v26  ;;  %v3022_v19 = vadd.f32 %v2976_v29, %v2709_v53 }
 0x25d   : > { %2673 = vst.msk [vmem:[#allocation3 + $0xb8] sm:$0xff] %vm1232_vm0, %v2641_v10  ;;  %3051 = vst.msk [vmem:[%s5112_s28 + $0xc0] sm:$0xff] %vm1232_vm0, %v3019_v34  ;;  %v3020_v8 = vadd.f32 %v2968_v32, %v2707_v30 }
 0x25e   : > { %3048 = vst.msk [vmem:[%s5112_s28 + $0xa8] sm:$0xff] %vm1232_vm0, %v3016_v23  ;;  %3054 = vst.msk [vmem:[%s5112_s28 + $0xd8] sm:$0xff] %vm1232_vm0, %v3022_v19 }
 0x25f   : > { %3052 = vst.msk [vmem:[%s5112_s28 + $0xc8] sm:$0xff] %vm1232_vm0, %v3020_v8  ;;  %v3585_v33 = vpop.f32.mrb[108].mxu1 }
 0x260   : > { %v2989_v37 = vadd.f32 %v3585_v33, %v5103_v49  ;;  %v2980_v47 = vpop.f32.mrb[109].mxu1 }
 0x261   : > { %v2704_v11 = vld [vmem:[#allocation3 + $0xb0] sm:$0xff]  ;;  %v2981_v22 = vadd.f32 %v5103_v49, %v2980_v47  ;;  %v3586_v28 = vpop.f32.mrb[110].mxu1 }
 0x262   : > { %v3017_v36 = vadd.f32 %v2957_v56, %v2704_v11  ;;  %v3025_v52 = vadd.f32 %v2989_v37, %v2712_v2  ;;  %v2992_v9 = vadd.f32 %v3586_v28, %v5103_v49  ;;  %v2983_v43 = vpop.f32.mrb[111].mxu1 }
 0x263   : > { %v3023_v50 = vadd.f32 %v2981_v22, %v2710_v59  ;;  %v2984_v27 = vadd.f32 %v5103_v49, %v2983_v43 }
 0x264   : > { %v2705_v48 = vld [vmem:[#allocation3 + $0xb8] sm:$0xff]  ;;  %3049 = vst.msk [vmem:[%s5112_s28 + $0xb0] sm:$0xff] %vm1232_vm0, %v3017_v36  ;;  %3057 = vst.msk [vmem:[%s5112_s28 + $0xf0] sm:$0xff] %vm1232_vm0, %v3025_v52  ;;  %v3026_v15 = vadd.f32 %v2992_v9, %v2713_v3 }
 0x265   : > { %v3018_v25 = vadd.f32 %v2960_v41, %v2705_v48  ;;  %3055 = vst.msk [vmem:[%s5112_s28 + $0xe0] sm:$0xff] %vm1232_vm0, %v3023_v50  ;;  %v3024_v49 = vadd.f32 %v2984_v27, %v2711_v58 }
 0x266   : > { %3058 = vst.msk [vmem:[%s5112_s28 + $0xf8] sm:$0xff] %vm1232_vm0, %v3026_v15 }
 0x267   : > { %3050 = vst.msk [vmem:[%s5112_s28 + $0xb8] sm:$0xff] %vm1232_vm0, %v3018_v25  ;;  %3056 = vst.msk [vmem:[%s5112_s28 + $0xe8] sm:$0xff] %vm1232_vm0, %v3024_v49 }
 0x268   : > { %3850 = shalt.err (!%p3847_p5)
}
 0x269   : > { %s3851_s27 = scalar_lea.hbm %s5216_s26, 4096  ;;  %s3855_s29 = scalar_lea.hbm %s5286_s10, 8192 }
 0x26a   : > { %p3852_p6 = scmp.ne.s32.totalorder %s5216_s26, %s3851_s27  ;;  %p3856_p10 = scmp.lt.u32.totalorder %s5216_s26, %s5286_s10 }
 0x26b   : > { %p3857_p11 = scmp.lt.u32.totalorder %s3855_s29, %s3851_s27  ;;  %p3859_p13 = scmp.lt.u32.totalorder %s3851_s27, %s5216_s26 }
 0x26c   : > { %p3853_p7 = pnand %p3852_p6, %p4017_p4 }
 0x26d   : > { %p3858_p12 = por %p3857_p11, %p3856_p10 }
 0x26e   : > { %p3854_p9 = pneg %p3853_p7 }
 0x26f   : > { %p3860_p0 = por %p3859_p13, %p3858_p12 }
 0x271   : > { %p3861_p1 = pnand %p3860_p0, %p3854_p9 }
 0x273   : > { %3864 = shalt.err (!%p3861_p1)
}
 0x274   : > { %s3920_s17 = smov 128   ;;  %s3921_s20 = smov 8  }
 0x275   : > { %3611 = dma.vmem_to_hbm [thread:$0]  (%p4017_p4), %s5218_s18, 4096, %s5216_s26, %s5230_s2, %s3920_s17, %s3920_s17, %s3921_s20  }
 0x276 PF: > { %p3617_p2 = scmp.ge.s32.totalorder %s3915_s16, 2  ;;  %s3091_s22 = sand.u32 1, %s3895_s11  }
 0x277   : > { %s3092_s25 = scalar_lea.sflag [#allocation5], %s3091_s22 }
 0x278   : > { %p3614_p3 = pnand %p3617_p2, %p4024_p8 }
 0x27a   : > { %3890 = dma.done.wait (!%p3614_p3), %s3092_s25, 4096  }
 0x27b   : > { %3892 = vsyncadd (!%p3614_p3), %s3092_s25, 4294963200  ;;  %s23_s16 = sadd.s32 1, %s3915_s16   ;;  %s5293_s11 = smov %s3899_s12 }
 0x27c   : > { %p20_p5 = scmp.ge.s32.totalorder %s23_s16, 4   ;;  %s5294_s12 = smov %s3903_s13 }
 0x27d   : > { %s5295_s13 = smov %s4030_s24  ;;  %s5296_s14 = smov %s3911_s15 }
 0x27e   : > { %s5297_s15 = smov %s5299_s19  ;;  %22 = sbr.rel (!%p20_p5) target bundleno = 4 (0x4), region = 132 }
 0x285   :  { %3097 = vsyncpa [#allocation5], 1 }
 0x286   :  { %3099 = vsyncpa [#allocation5 + $0x1], 1 }

</bundles_post_ra>
